<compile_context>
chip_gen: v5e
topology: v5e:2x2
jax: 0.10.0
libtpu: 0.0.40
codegen_flags: <defaults>
</compile_context>

<pallas_src>
import functools

import jax
import jax.numpy as jnp
from jax import lax
from jax.experimental import pallas as pl
from jax.experimental.pallas import tpu as pltpu


def mlp_kernel(x_ref,
               w1_ref, b1_ref,
               w2_ref, b2_ref,
               w3_ref, b3_ref,
               w4_ref, b4_ref,
               o_ref,
               *, n_chunks, elem_dtype):
    """Fused 4-layer MLP: (linear+relu) x3 -> linear. Dropout = identity (eval).

    x_ref  : (bm, F)    f32        batch tile (cast to bf16 in-kernel)
    w*_ref : (in, out)  bf16       VMEM-resident (w4 stored as a (1, 16) row)
    b*_ref : (1, out)   elem_dtype VMEM-resident (b1..b3); b4 is (1,) f32 in SMEM
    o_ref  : (1, bm)    f32        lane-dense output row for this batch tile
    """
    bm = x_ref.shape[0]
    cm = bm // n_chunks

    # Hoist the (tiny) weight/bias loads out of the chunk loop.
    w1 = w1_ref[...]
    w2 = w2_ref[...]
    w3 = w3_ref[...]
    w4 = w4_ref[...]
    b1 = b1_ref[...]
    b2 = b2_ref[...]
    b3 = b3_ref[...]
    b4 = b4_ref[0]                     # f32 scalar from SMEM

    # Statically unrolled M-chunks: independent dependency chains in one basic
    # block so the scheduler overlaps one chunk's MXU pushes with the other's
    # bias/ReLU (VPU) work.
    for c in range(n_chunks):
        x = x_ref[pl.ds(c * cm, cm), :].astype(jnp.bfloat16)          # (cm, F)

        h = jnp.dot(x, w1, preferred_element_type=jnp.float32)
        h = jnp.maximum(h.astype(elem_dtype) + b1, 0.0)               # (cm, 128)

        h = jnp.dot(h.astype(jnp.bfloat16), w2,
                    preferred_element_type=jnp.float32)
        h = jnp.maximum(h.astype(elem_dtype) + b2, 0.0)               # (cm, 64)

        h = jnp.dot(h.astype(jnp.bfloat16), w3,
                    preferred_element_type=jnp.float32)
        h = jnp.maximum(h.astype(elem_dtype) + b3, 0.0)               # (cm, 16)

        # Final 16 -> 1 layer, emitted lane-dense: (1,16) . (cm,16)^T -> (1,cm).
        out_row = lax.dot_general(
            w4, h.astype(jnp.bfloat16),
            dimension_numbers=(((1,), (1,)), ((), ())),
            preferred_element_type=jnp.float32)                       # (1, cm)
        o_ref[:, pl.ds(c * cm, cm)] = (out_row + b4).astype(o_ref.dtype)


def _round_up(x, m):
    return ((x + m - 1) // m) * m


def _elementwise_dtype():
    """bf16 bias/ReLU on v6e/v7x (bf16 VPU); f32 on v5 (no bf16 VPU)."""
    try:
        kind = jax.devices()[0].device_kind.lower()
    except Exception:
        kind = ""
    return jnp.float32 if "v5" in kind else jnp.bfloat16


@functools.partial(jax.jit, static_argnames=("block_m", "elem_dtype"))
def base_nn_forward(x, params, block_m=2048, elem_dtype=jnp.bfloat16):
    """x: (B, num_features) float32. params: dict of (in,out) weights + biases."""
    B, F = x.shape

    # Batch tile: large (per-step overhead ~0.35us vs ~0.1us of MLP work per 512
    # rows), multiple of 256 for lane-dense output / MXU width, clamped for
    # small batches.  Intermediates stay tiny (h1 at bm=4096 is 2 MiB f32),
    # far below even v7x's 32 MiB scoped-VMEM default.
    bm = _round_up(min(block_m, B), 256)
    nb = pl.cdiv(B, bm)
    # v7x shards the "parallel" grid axis over its 2 TensorCores: prefer an even
    # step count (or split one big step in two) so neither core idles.  The
    # extra step on 1-TC chips (v5e/v6e) costs only ~0.35us.
    if nb == 1 and bm >= 2048:
        bm = _round_up(pl.cdiv(B, 2), 256)
    elif nb > 1 and nb % 2 == 1:
        bm = _round_up(pl.cdiv(B, nb + 1), 256)
    nb = pl.cdiv(B, bm)

    # bf16 MXU operands (f32 accumulation inside the kernel).  x stays f32 and
    # is cast to bf16 in-kernel; biases for layers 1-3 are pre-cast to the
    # elementwise dtype (bf16 on v6e/v7x, f32 on v5e); b4 is an SMEM scalar.
    w1 = params["w1"].astype(jnp.bfloat16)                   # (F, 128)
    w2 = params["w2"].astype(jnp.bfloat16)                   # (128, 64)
    w3 = params["w3"].astype(jnp.bfloat16)                   # (64, 16)
    w4 = params["w4"].reshape(1, -1).astype(jnp.bfloat16)    # (1, 16) row
    b1 = params["b1"].reshape(1, -1).astype(elem_dtype)      # (1, 128)
    b2 = params["b2"].reshape(1, -1).astype(elem_dtype)      # (1, 64)
    b3 = params["b3"].reshape(1, -1).astype(elem_dtype)      # (1, 16)
    b4 = params["b4"].reshape(-1).astype(jnp.float32)        # (1,)

    # Whole-array VMEM-resident specs: copied in once, never re-DMA'd per grid
    # step, no double-buffering.
    def vmem_resident():
        return pl.BlockSpec(memory_space=pltpu.MemorySpace.VMEM)

    kernel = functools.partial(mlp_kernel, n_chunks=2, elem_dtype=elem_dtype)

    n_wparams = F * 128 + 128 * 64 + 64 * 16 + 16 * 1
    cost = pl.CostEstimate(
        flops=2 * B * n_wparams,
        transcendentals=0,
        bytes_accessed=B * (F * 4 + 4) + n_wparams * 2 + (128 + 64 + 16 + 1) * 4,
    )

    out_row = pl.pallas_call(
        kernel,
        out_shape=jax.ShapeDtypeStruct((1, nb * bm), jnp.float32),
        grid=(nb,),
        in_specs=[
            pl.BlockSpec((bm, F), lambda i: (i, 0)),           # x batch tile (f32)
            vmem_resident(), vmem_resident(),                  # w1, b1
            vmem_resident(), vmem_resident(),                  # w2, b2
            vmem_resident(), vmem_resident(),                  # w3, b3
            vmem_resident(),                                   # w4
            pl.BlockSpec(memory_space=pltpu.MemorySpace.SMEM), # b4 scalar
        ],
        # Lane-dense output: grid step i writes columns [i*bm, (i+1)*bm).
        out_specs=pl.BlockSpec((1, bm), lambda i: (0, i)),
        compiler_params=pltpu.CompilerParams(
            dimension_semantics=("parallel",)),                # 2 TCs on v7x
        cost_estimate=cost,
    )(x, w1, b1, w2, b2, w3, b3, w4, b4)

    # Back to the PyTorch (B, 1) layout; padded tail columns (if any) sliced off.
    return out_row[0, :B].reshape(B, 1).astype(x.dtype)


def init_params(key, num_features=8):
    """Deterministic init matching BaseNN.__init__ layer shapes.

    PyTorch Linear stores weight as (out, in); we store the transposed (in, out)
    form so the kernel can compute x @ W directly.
    """
    dims = [(num_features, 128), (128, 64), (64, 16), (16, 1)]
    params = {}
    for idx, (din, dout) in enumerate(dims, start=1):
        key, kw, kb = jax.random.split(key, 3)
        bound = 1.0 / jnp.sqrt(din)  # PyTorch default U(-1/sqrt(fan_in), 1/sqrt(fan_in))
        params[f"w{idx}"] = jax.random.uniform(
            kw, (din, dout), jnp.float32, minval=-bound, maxval=bound)
        params[f"b{idx}"] = jax.random.uniform(
            kb, (dout,), jnp.float32, minval=-bound, maxval=bound)
    return params


def reference_forward(x, params):
    """Pure-JAX f32 reference of BaseNN.forward (eval mode)."""
    h = jax.nn.relu(x @ params["w1"] + params["b1"])
    h = jax.nn.relu(h @ params["w2"] + params["b2"])
    h = jax.nn.relu(h @ params["w3"] + params["b3"])
    return h @ params["w4"] + params["b4"]


if __name__ == "__main__":
    num_features = 8
    batch = 4096          # 2 grid steps at block_m=2048 -> both v7x TensorCores busy

    key = jax.random.PRNGKey(0)
    key, kx = jax.random.split(key)
    x = jax.random.normal(kx, (batch, num_features), jnp.float32)
    params = init_params(key, num_features)

    elem_dtype = _elementwise_dtype()     # bf16 on v6e/v7x, f32 on v5e
    out = base_nn_forward(x, params, elem_dtype=elem_dtype)
    out = jax.block_until_ready(out)

    ref = reference_forward(x, params)
    assert out.shape == (batch, 1), out.shape
    err = jnp.max(jnp.abs(out - ref))
    # bf16 MXU operands (f32 accumulation): loosened tolerance vs pure-f32 reference.
    assert jnp.allclose(out, ref, atol=5e-2, rtol=5e-2), f"max abs err = {err}"

    print("KERNEL_OK")
</pallas_src>

<mosaic_0001>
module attributes {stable_mosaic.version = 11 : i64} {
  func.func @mlp_kernel(%arg0: i32, %arg1: memref<2048x8xf32, #tpu.memory_space<vmem>>, %arg2: memref<8x128xbf16, #tpu.memory_space<vmem>>, %arg3: memref<1x128xbf16, #tpu.memory_space<vmem>>, %arg4: memref<128x64xbf16, #tpu.memory_space<vmem>>, %arg5: memref<1x64xbf16, #tpu.memory_space<vmem>>, %arg6: memref<64x16xbf16, #tpu.memory_space<vmem>>, %arg7: memref<1x16xbf16, #tpu.memory_space<vmem>>, %arg8: memref<1x16xbf16, #tpu.memory_space<vmem>>, %arg9: memref<1xf32, #tpu.memory_space<smem>>, %arg10: memref<1x2048xf32, #tpu.memory_space<vmem>>) attributes {dimension_semantics = [#tpu.dimension_semantics<parallel>], iteration_bounds = array<i64: 2>, scalar_prefetch = 0 : i64, scratch_operands = 0 : i64, tpu.core_type = #tpu.core_type<tc>, window_params = [{transform_indices = @transform_0, window_bounds = array<i64: 2048, 8>}, {pipeline_mode = #tpu.pipeline_mode<synchronous>, transform_indices = @transform_1, window_bounds = array<i64: 8, 128>}, {pipeline_mode = #tpu.pipeline_mode<synchronous>, transform_indices = @transform_2, window_bounds = array<i64: 1, 128>}, {pipeline_mode = #tpu.pipeline_mode<synchronous>, transform_indices = @transform_3, window_bounds = array<i64: 128, 64>}, {pipeline_mode = #tpu.pipeline_mode<synchronous>, transform_indices = @transform_4, window_bounds = array<i64: 1, 64>}, {pipeline_mode = #tpu.pipeline_mode<synchronous>, transform_indices = @transform_5, window_bounds = array<i64: 64, 16>}, {pipeline_mode = #tpu.pipeline_mode<synchronous>, transform_indices = @transform_6, window_bounds = array<i64: 1, 16>}, {pipeline_mode = #tpu.pipeline_mode<synchronous>, transform_indices = @transform_7, window_bounds = array<i64: 1, 16>}, {transform_indices = @transform_8, window_bounds = array<i64: 1>}, {transform_indices = @transform_9, window_bounds = array<i64: 1, 2048>}]} {
    %c0 = arith.constant 0 : index
    %c0_0 = arith.constant 0 : index
    %0 = vector.load %arg2[%c0, %c0_0] : memref<8x128xbf16, #tpu.memory_space<vmem>>, vector<8x128xbf16>
    %c0_1 = arith.constant 0 : index
    %c0_2 = arith.constant 0 : index
    %1 = vector.load %arg4[%c0_1, %c0_2] : memref<128x64xbf16, #tpu.memory_space<vmem>>, vector<128x64xbf16>
    %c0_3 = arith.constant 0 : index
    %c0_4 = arith.constant 0 : index
    %2 = vector.load %arg6[%c0_3, %c0_4] : memref<64x16xbf16, #tpu.memory_space<vmem>>, vector<64x16xbf16>
    %c0_5 = arith.constant 0 : index
    %c0_6 = arith.constant 0 : index
    %3 = vector.load %arg8[%c0_5, %c0_6] : memref<1x16xbf16, #tpu.memory_space<vmem>>, vector<1x16xbf16>
    %c0_7 = arith.constant 0 : index
    %c0_8 = arith.constant 0 : index
    %4 = vector.load %arg3[%c0_7, %c0_8] : memref<1x128xbf16, #tpu.memory_space<vmem>>, vector<1x128xbf16>
    %c0_9 = arith.constant 0 : index
    %c0_10 = arith.constant 0 : index
    %5 = vector.load %arg5[%c0_9, %c0_10] : memref<1x64xbf16, #tpu.memory_space<vmem>>, vector<1x64xbf16>
    %c0_11 = arith.constant 0 : index
    %c0_12 = arith.constant 0 : index
    %6 = vector.load %arg7[%c0_11, %c0_12] : memref<1x16xbf16, #tpu.memory_space<vmem>>, vector<1x16xbf16>
    %c0_13 = arith.constant 0 : index
    %7 = memref.load %arg9[%c0_13] : memref<1xf32, #tpu.memory_space<smem>>
    %c0_14 = arith.constant 0 : index
    %c0_15 = arith.constant 0 : index
    %8 = vector.load %arg1[%c0_14, %c0_15] : memref<2048x8xf32, #tpu.memory_space<vmem>>, vector<1024x8xf32>
    %9 = arith.truncf %8 : vector<1024x8xf32> to vector<1024x8xbf16>
    %cst = arith.constant dense<0.000000e+00> : vector<1024x128xf32>
    %10 = tpu.matmul %9, %0, %cst {dimension_numbers = #tpu.dot_dimension_numbers<[1], [0], [0], [1], [0, 0, 1, 1], [], []>} : vector<1024x8xbf16>, vector<8x128xbf16>, vector<1024x128xf32> -> vector<1024x128xf32>
    %11 = arith.truncf %10 : vector<1024x128xf32> to vector<1024x128xbf16>
    %12 = vector.broadcast %4 : vector<1x128xbf16> to vector<1024x128xbf16>
    %13 = arith.addf %11, %12 : vector<1024x128xbf16>
    %cst_16 = arith.constant 0.000000e+00 : bf16
    %14 = vector.broadcast %cst_16 : bf16 to vector<1024x128xbf16>
    %15 = arith.maximumf %13, %14 : vector<1024x128xbf16>
    %cst_17 = arith.constant dense<0.000000e+00> : vector<1024x64xf32>
    %16 = tpu.matmul %15, %1, %cst_17 {dimension_numbers = #tpu.dot_dimension_numbers<[1], [0], [0], [1], [0, 0, 1, 1], [], []>} : vector<1024x128xbf16>, vector<128x64xbf16>, vector<1024x64xf32> -> vector<1024x64xf32>
    %17 = arith.truncf %16 : vector<1024x64xf32> to vector<1024x64xbf16>
    %18 = vector.broadcast %5 : vector<1x64xbf16> to vector<1024x64xbf16>
    %19 = arith.addf %17, %18 : vector<1024x64xbf16>
    %cst_18 = arith.constant 0.000000e+00 : bf16
    %20 = vector.broadcast %cst_18 : bf16 to vector<1024x64xbf16>
    %21 = arith.maximumf %19, %20 : vector<1024x64xbf16>
    %cst_19 = arith.constant dense<0.000000e+00> : vector<1024x16xf32>
    %22 = tpu.matmul %21, %2, %cst_19 {dimension_numbers = #tpu.dot_dimension_numbers<[1], [0], [0], [1], [0, 0, 1, 1], [], []>} : vector<1024x64xbf16>, vector<64x16xbf16>, vector<1024x16xf32> -> vector<1024x16xf32>
    %23 = arith.truncf %22 : vector<1024x16xf32> to vector<1024x16xbf16>
    %24 = vector.broadcast %6 : vector<1x16xbf16> to vector<1024x16xbf16>
    %25 = arith.addf %23, %24 : vector<1024x16xbf16>
    %cst_20 = arith.constant 0.000000e+00 : bf16
    %26 = vector.broadcast %cst_20 : bf16 to vector<1024x16xbf16>
    %27 = arith.maximumf %25, %26 : vector<1024x16xbf16>
    %cst_21 = arith.constant dense<0.000000e+00> : vector<1x1024xf32>
    %28 = tpu.matmul %3, %27, %cst_21 {dimension_numbers = #tpu.dot_dimension_numbers<[1], [1], [0], [0], [0, 0, 1, 0], [], []>} : vector<1x16xbf16>, vector<1024x16xbf16>, vector<1x1024xf32> -> vector<1x1024xf32>
    %29 = vector.broadcast %7 : f32 to vector<1x1024xf32>
    %30 = arith.addf %28, %29 : vector<1x1024xf32>
    %c0_22 = arith.constant 0 : index
    %c0_23 = arith.constant 0 : index
    %31 = vector.load %arg10[%c0_22, %c0_23] : memref<1x2048xf32, #tpu.memory_space<vmem>>, vector<1x1024xf32>
    tpu.vector_store %arg10[%c0_22, %c0_23], %30 {strides = array<i32>} : memref<1x2048xf32, #tpu.memory_space<vmem>>, vector<1x1024xf32>,
    %c1024 = arith.constant 1024 : index
    %c0_24 = arith.constant 0 : index
    %32 = vector.load %arg1[%c1024, %c0_24] : memref<2048x8xf32, #tpu.memory_space<vmem>>, vector<1024x8xf32>
    %33 = arith.truncf %32 : vector<1024x8xf32> to vector<1024x8xbf16>
    %cst_25 = arith.constant dense<0.000000e+00> : vector<1024x128xf32>
    %34 = tpu.matmul %33, %0, %cst_25 {dimension_numbers = #tpu.dot_dimension_numbers<[1], [0], [0], [1], [0, 0, 1, 1], [], []>} : vector<1024x8xbf16>, vector<8x128xbf16>, vector<1024x128xf32> -> vector<1024x128xf32>
    %35 = arith.truncf %34 : vector<1024x128xf32> to vector<1024x128xbf16>
    %36 = vector.broadcast %4 : vector<1x128xbf16> to vector<1024x128xbf16>
    %37 = arith.addf %35, %36 : vector<1024x128xbf16>
    %cst_26 = arith.constant 0.000000e+00 : bf16
    %38 = vector.broadcast %cst_26 : bf16 to vector<1024x128xbf16>
    %39 = arith.maximumf %37, %38 : vector<1024x128xbf16>
    %cst_27 = arith.constant dense<0.000000e+00> : vector<1024x64xf32>
    %40 = tpu.matmul %39, %1, %cst_27 {dimension_numbers = #tpu.dot_dimension_numbers<[1], [0], [0], [1], [0, 0, 1, 1], [], []>} : vector<1024x128xbf16>, vector<128x64xbf16>, vector<1024x64xf32> -> vector<1024x64xf32>
    %41 = arith.truncf %40 : vector<1024x64xf32> to vector<1024x64xbf16>
    %42 = vector.broadcast %5 : vector<1x64xbf16> to vector<1024x64xbf16>
    %43 = arith.addf %41, %42 : vector<1024x64xbf16>
    %cst_28 = arith.constant 0.000000e+00 : bf16
    %44 = vector.broadcast %cst_28 : bf16 to vector<1024x64xbf16>
    %45 = arith.maximumf %43, %44 : vector<1024x64xbf16>
    %cst_29 = arith.constant dense<0.000000e+00> : vector<1024x16xf32>
    %46 = tpu.matmul %45, %2, %cst_29 {dimension_numbers = #tpu.dot_dimension_numbers<[1], [0], [0], [1], [0, 0, 1, 1], [], []>} : vector<1024x64xbf16>, vector<64x16xbf16>, vector<1024x16xf32> -> vector<1024x16xf32>
    %47 = arith.truncf %46 : vector<1024x16xf32> to vector<1024x16xbf16>
    %48 = vector.broadcast %6 : vector<1x16xbf16> to vector<1024x16xbf16>
    %49 = arith.addf %47, %48 : vector<1024x16xbf16>
    %cst_30 = arith.constant 0.000000e+00 : bf16
    %50 = vector.broadcast %cst_30 : bf16 to vector<1024x16xbf16>
    %51 = arith.maximumf %49, %50 : vector<1024x16xbf16>
    %cst_31 = arith.constant dense<0.000000e+00> : vector<1x1024xf32>
    %52 = tpu.matmul %3, %51, %cst_31 {dimension_numbers = #tpu.dot_dimension_numbers<[1], [1], [0], [0], [0, 0, 1, 0], [], []>} : vector<1x16xbf16>, vector<1024x16xbf16>, vector<1x1024xf32> -> vector<1x1024xf32>
    %53 = vector.broadcast %7 : f32 to vector<1x1024xf32>
    %54 = arith.addf %52, %53 : vector<1x1024xf32>
    %c0_32 = arith.constant 0 : index
    %c1024_33 = arith.constant 1024 : index
    %55 = vector.load %arg10[%c0_32, %c1024_33] : memref<1x2048xf32, #tpu.memory_space<vmem>>, vector<1x1024xf32>
    tpu.vector_store %arg10[%c0_32, %c1024_33], %54 {strides = array<i32>} : memref<1x2048xf32, #tpu.memory_space<vmem>>, vector<1x1024xf32>,
    return
  }
  func.func @transform_0(%arg0: i32) -> (i32, i32) {
    %c0_i32 = arith.constant 0 : i32
    %c0_i32_0 = arith.constant 0 : i32
    return %arg0, %c0_i32 : i32, i32
  }
  func.func @transform_1(%arg0: i32) -> (i32, i32) {
    %c0_i32 = arith.constant 0 : i32
    %c0_i32_0 = arith.constant 0 : i32
    %c0_i32_1 = arith.constant 0 : i32
    return %c0_i32, %c0_i32_0 : i32, i32
  }
  func.func @transform_2(%arg0: i32) -> (i32, i32) {
    %c0_i32 = arith.constant 0 : i32
    %c0_i32_0 = arith.constant 0 : i32
    %c0_i32_1 = arith.constant 0 : i32
    return %c0_i32, %c0_i32_0 : i32, i32
  }
  func.func @transform_3(%arg0: i32) -> (i32, i32) {
    %c0_i32 = arith.constant 0 : i32
    %c0_i32_0 = arith.constant 0 : i32
    %c0_i32_1 = arith.constant 0 : i32
    return %c0_i32, %c0_i32_0 : i32, i32
  }
  func.func @transform_4(%arg0: i32) -> (i32, i32) {
    %c0_i32 = arith.constant 0 : i32
    %c0_i32_0 = arith.constant 0 : i32
    %c0_i32_1 = arith.constant 0 : i32
    return %c0_i32, %c0_i32_0 : i32, i32
  }
  func.func @transform_5(%arg0: i32) -> (i32, i32) {
    %c0_i32 = arith.constant 0 : i32
    %c0_i32_0 = arith.constant 0 : i32
    %c0_i32_1 = arith.constant 0 : i32
    return %c0_i32, %c0_i32_0 : i32, i32
  }
  func.func @transform_6(%arg0: i32) -> (i32, i32) {
    %c0_i32 = arith.constant 0 : i32
    %c0_i32_0 = arith.constant 0 : i32
    %c0_i32_1 = arith.constant 0 : i32
    return %c0_i32, %c0_i32_0 : i32, i32
  }
  func.func @transform_7(%arg0: i32) -> (i32, i32) {
    %c0_i32 = arith.constant 0 : i32
    %c0_i32_0 = arith.constant 0 : i32
    %c0_i32_1 = arith.constant 0 : i32
    return %c0_i32, %c0_i32_0 : i32, i32
  }
  func.func @transform_8(%arg0: i32) -> i32 {
    %c0_i32 = arith.constant 0 : i32
    %c0_i32_0 = arith.constant 0 : i32
    return %c0_i32 : i32
  }
  func.func @transform_9(%arg0: i32) -> (i32, i32) {
    %c0_i32 = arith.constant 0 : i32
    %c0_i32_0 = arith.constant 0 : i32
    return %c0_i32, %arg0 : i32, i32
  }
}

</mosaic_0001>

<bundles_post_ra>
// kernel: base_nn_forward.1
= control target key start
LH: loop header
LB: loop body
LE: loop exit
PB: predicated region body
PF: predicated region fallthrough
CT: control target
= control target key end

     0   :  { %s12010_s0 = inlined_call_operand.vmem [shape: f32[4096,8], index: 0, kind: input, shape index: {}]   ;;  %s12011_s1 = inlined_call_operand.vmem [shape: bf16[8,128], index: 1, kind: input, shape index: {}]   ;;  %s12012_s2 = inlined_call_operand.vmem [shape: bf16[1,128], index: 2, kind: input, shape index: {}]   ;;  %s12013_s3 = inlined_call_operand.vmem [shape: bf16[128,64], index: 3, kind: input, shape index: {}]   ;;  %s12014_s4 = inlined_call_operand.vmem [shape: bf16[1,64], index: 4, kind: input, shape index: {}]   ;;  %s12015_s5 = inlined_call_operand.vmem [shape: bf16[64,16], index: 5, kind: input, shape index: {}]   ;;  %s12016_s6 = inlined_call_operand.vmem [shape: bf16[1,16], index: 6, kind: input, shape index: {}]   ;;  %s12017_s7 = inlined_call_operand.vmem [shape: bf16[1,16], index: 7, kind: input, shape index: {}]   ;;  %s12018_s8 = inlined_call_operand.<no memory space> [shape: f32[1], index: 8, kind: input, shape index: {}]   ;;  %s12019_s9 = inlined_call_operand.hbm [shape: f32[1,4096], index: 9, kind: output, shape index: {}]  }
   0x1   :  { %14 = sst [smem:[#allocation2]] %s12018_s8 }
   0x2   :  { %15 = vsyncpa [#allocation4], 0 }
   0x3   :  { %17 = vsyncpa [#allocation4 + $0x1], 0  ;;  %s9818_s11 = smov 0   ;;  %s9820_s12 = smov 0  }
   0x4   :  { %s9822_s13 = smov 0   ;;  %s9824_s14 = smov 0  }
   0x5 LB: > { %s9839_s8 = sadd.s32 4294967295, %s9763_s14   ;;  %s9303_s15 = sadd.s32 4294967294, %s9763_s14   ;;  %s9763_s14 = sphi %s9824_s14, %s12042_s14   ;;  %s9759_s13 = sphi %s9822_s13, %s12041_s13   ;;  %s9755_s12 = sphi %s9820_s12, %s12040_s12   ;;  %s9751_s11 = sphi %s9818_s11, %s12039_s11  }
   0x6   : > { %s9843_s16 = sadd.s32 1, %s9763_s14   ;;  %s224_s17 = sadd.s32 1, %s9759_s13 }
   0x7   : > { %s221_s18 = ssub.s32 %s9763_s14, %s9843_s16  ;;  %p234_p0 = scmp.ne.s32.totalorder %s9759_s13, %s9755_s12 }
   0x8   : > { %p222_p1 = scmp.eq.s32.totalorder %s221_s18, 0  ;;  %p235_p2 = scmp.eq.s32.totalorder %s9839_s8, 1 }
   0x9   : > { %p240_p3 = scmp.ne.s32.totalorder %s9755_s12, %s9751_s11  ;;  %p241_p4 = scmp.eq.s32.totalorder %s9303_s15, 1 }
   0xa   : > { %s9854_s19 = scalar_select %p222_p1, %s9759_s13, %s224_s17  }
   0xb   : > { %p9856_p5 = por %p235_p2, %p234_p0  ;;  %p9860_p6 = por %p241_p4, %p240_p3 }
   0xc   : > { %p9306_p7 = scmp.ge.s32.totalorder %s9763_s14, 1  ;;  %p292_p8 = scmp.lt.s32.totalorder %s9763_s14, 3 }
   0xe   : > { %p293_p9 = pnand %p9306_p7, %p292_p8 }
  0x10   : > { %296 = sbr.rel (%p293_p9) target bundleno = 3698 (0xe72), region = 56 }
  0x15   : > { %v336_v0 = vld [vmem:[%s12011_s1] sm:$0xf]  ;;  %vm751_vm0 = vcmask 1043456   ;;  %s9308_s24 = sshll.u32 %s9839_s8, 8  ;;  %vm558_vm1 = vcmask 64512   ;;  %v9641_v20 = vld [vmem:[%s12013_s3 + $0x38] sm:$0xff] }
  0x16   : > { %v9871_v1 = vsel %vm751_vm0, %v336_v0, 0  ;;  %p329_p10 = scmp.lt.s32.totalorder %s9308_s24, 511  ;;  %1969 = vmatpush.bf16.msra.mxu1 %v9641_v20  ;;  %v9640_v21 = vld [vmem:[%s12013_s3 + $0x30] sm:$0xff]  ;;  %v9639_v22 = vld [vmem:[%s12013_s3 + $0x28] sm:$0xff]  ;;  %v9638_v25 = vld [vmem:[%s12013_s3 + $0x20] sm:$0xff]  ;;  %vm3159_vm2 = vcmask 523264  }
  0x17   : > { %12023 = vst [vmem:[#allocation6_spill] sm:$0xff] %v9871_v1  ;;  %762 = vmatpush.bf16.msra.mxu0 %v9871_v1  ;;  %9646 = vmatpush.bf16.msra.mxu3 %v9871_v1  ;;  %v9637_v27 = vld [vmem:[%s12013_s3 + $0x18] sm:$0xff]  ;;  %v9636_v28 = vld [vmem:[%s12013_s3 + $0x10] sm:$0xff]  ;;  %v9635_v29 = vld [vmem:[%s12013_s3 + $0x8] sm:$0xff]  ;;  %vm4519_vm3 = vcmask 130048   ;;  %vm4834_vm4 = vcmask 1040384  }
  0x18   : > { %s12044_s24 = smov (!%p329_p10, %s9308_s24), 511  ;;  %v9634_v32 = vld [vmem:[%s12013_s3] sm:$0xff]  ;;  %vm4836_vm5 = vcmask 1042434   ;;  %vm4838_vm6 = vcmask 1041408   ;;  %vm4840_vm7 = vcmask 1044484   ;;  %s325_s18 = sand.u32 1, %s9755_s12  }
  0x19   : > { %s9309_s25 = sshll.u32 %s12044_s24, 3  ;;  %v362_v34 = vld [vmem:[%s12012_s2] sm:$0x1]  ;;  %s365_s24 = sld [smem:[#allocation2]]  ;;  %vm4842_vm8 = vcmask 1046534   ;;  %vm4844_vm9 = vcmask 1045508  }
  0x1a   : > { %s9878_s28 = scalar_lea.vmem %s12010_s0, %s9309_s25  ;;  %1970 = vmatpush.bf16.msra.mxu1 %v9640_v21  ;;  %v1213_v37 = vpack.i.b16 %v362_v34, %v362_v34  ;;  %s9307_s22 = sshll.u32 %s325_s18, 4 }
  0x1b   : > { %v366_v2 = vld [vmem:[%s9878_s28] sm:$0xff]  ;;  %v367_v3 = vld [vmem:[%s9878_s28 + $0x8] sm:$0xff]  ;;  %v368_v5 = vld [vmem:[%s9878_s28 + $0x10] sm:$0xff]  ;;  %6394 = vmatpush.bf16.msrb.mxu0 %v9641_v20  ;;  %s11079_s23 = scalar_lea.vmem [#allocation3], %s9307_s22  ;;  %s9631_s30 = sshll.u32 %s9839_s8, 4 }
  0x1c   : > { %v494_v4 = vpack.c.bf16 %v367_v3, %v366_v2  ;;  %v369_v6 = vld [vmem:[%s9878_s28 + $0x18] sm:$0xff]  ;;  %v370_v8 = vld [vmem:[%s9878_s28 + $0x20] sm:$0xff]  ;;  %v371_v9 = vld [vmem:[%s9878_s28 + $0x28] sm:$0xff]  ;;  %v1215_v41 = vperm.slane %v1213_v37, 0  ;;  %s9239_s17 = scalar_lea.hbm %s12019_s9, %s9631_s30  ;;  %s9241_s22 = sshll.u32 %s11079_s23, 4  ;;  %s9242_s22 = int_to_ptr.vmem [resolvable:$true] %s9241_s22 }
  0x1d   : > { %v495_v7 = vpack.c.bf16 %v369_v6, %v368_v5  ;;  %v496_v10 = vpack.c.bf16 %v371_v9, %v370_v8  ;;  %v372_v11 = vld [vmem:[%s9878_s28 + $0x30] sm:$0xff]  ;;  %v373_v12 = vld [vmem:[%s9878_s28 + $0x38] sm:$0xff]  ;;  %v374_v14 = vld [vmem:[%s9878_s28 + $0x40] sm:$0xff]  ;;  %s9229_s8 = scalar_lea.sflag [#allocation4], %s325_s18  ;;  %s9721_s29 = scalar_lea.hbm %s12019_s9, 32 }
  0x1e   : > { %9310 = vmatmul.msk.bf16.vlgmr.msra.gmra.mxu0 %vm558_vm1, %v494_v4  ;;  %v497_v13 = vpack.c.bf16 %v373_v12, %v372_v11  ;;  %v375_v15 = vld [vmem:[%s9878_s28 + $0x48] sm:$0xff]  ;;  %v376_v17 = vld [vmem:[%s9878_s28 + $0x50] sm:$0xff]  ;;  %v377_v18 = vld [vmem:[%s9878_s28 + $0x58] sm:$0xff]  ;;  %1971 = vmatpush.bf16.msra.mxu1 %v9639_v22  ;;  %v9934_v43 = vunpack.c.l.bf16 %v1215_v41 }
  0x1f   : > { %v498_v16 = vpack.c.bf16 %v375_v15, %v374_v14  ;;  %v499_v19 = vpack.c.bf16 %v377_v18, %v376_v17  ;;  %6395 = vmatpush.bf16.msrb.mxu0 %v9640_v21  ;;  %v378_v23 = vld [vmem:[%s9878_s28 + $0x60] sm:$0xff]  ;;  %v379_v24 = vld [vmem:[%s9878_s28 + $0x68] sm:$0xff]  ;;  %v380_v30 = vld [vmem:[%s9878_s28 + $0x70] sm:$0xff] }
  0x20   : > { %v500_v26 = vpack.c.bf16 %v379_v24, %v378_v23  ;;  %v381_v31 = vld [vmem:[%s9878_s28 + $0x78] sm:$0xff]  ;;  %v382_v35 = vld [vmem:[%s9878_s28 + $0x80] sm:$0xff]  ;;  %v383_v36 = vld [vmem:[%s9878_s28 + $0x88] sm:$0xff] }
  0x21   : > { %v501_v33 = vpack.c.bf16 %v381_v31, %v380_v30  ;;  %v502_v38 = vpack.c.bf16 %v383_v36, %v382_v35  ;;  %v384_v48 = vld [vmem:[%s9878_s28 + $0x90] sm:$0xff]  ;;  %v385_v49 = vld [vmem:[%s9878_s28 + $0x98] sm:$0xff]  ;;  %v386_v62 = vld [vmem:[%s9878_s28 + $0xa0] sm:$0xff] }
  0x22   : > { %1972 = vmatpush.bf16.msra.mxu1 %v9638_v25  ;;  %v503_v51 = vpack.c.bf16 %v385_v49, %v384_v48  ;;  %v387_v63 = vld [vmem:[%s9878_s28 + $0xa8] sm:$0xff]  ;;  %v389_v14 = vld [vmem:[%s9878_s28 + $0xb8] sm:$0xff]  ;;  %v392_v41 = vld [vmem:[%s9878_s28 + $0xd0] sm:$0xff] }
  0x23   : > { %6396 = vmatpush.bf16.msrb.mxu0 %v9639_v22  ;;  %v504_v2 = vpack.c.bf16 %v387_v63, %v386_v62 }
  0x26   : > { %1973 = vmatpush.bf16.msra.mxu1 %v9637_v27 }
  0x27   : > { %6397 = vmatpush.bf16.msrb.mxu0 %v9638_v25 }
  0x2a   : > { %1974 = vmatpush.bf16.msra.mxu1 %v9636_v28 }
  0x2b   : > { %6398 = vmatpush.bf16.msrb.mxu0 %v9637_v27  ;;  %v390_v27 = vld [vmem:[%s9878_s28 + $0xc0] sm:$0xff] }
  0x2e   : > { %9311 = vmatmul.msk.bf16.gmra.mxu0 %vm558_vm1, %v495_v7  ;;  %1975 = vmatpush.bf16.msra.mxu1 %v9635_v29 }
  0x2f   : > { %6399 = vmatpush.bf16.msrb.mxu0 %v9636_v28  ;;  %v391_v28 = vld [vmem:[%s9878_s28 + $0xc8] sm:$0xff] }
  0x30   : > { %v506_v30 = vpack.c.bf16 %v391_v28, %v390_v27 }
  0x32   : > { %1976 = vmatpush.bf16.msra.mxu1 %v9634_v32 }
  0x33   : > { %6400 = vmatpush.bf16.msrb.mxu0 %v9635_v29 }
  0x37   : > { %6401 = vmatpush.bf16.msrb.mxu0 %v9634_v32 }
  0x3e   : > { %9312 = vmatmul.msk.bf16.gmra.mxu0 %vm558_vm1, %v496_v10 }
  0x4e   : > { %9313 = vmatmul.msk.bf16.gmra.mxu0 %vm558_vm1, %v497_v13  ;;  %v388_v13 = vld [vmem:[%s9878_s28 + $0xb0] sm:$0xff] }
  0x5e   : > { %9314 = vmatmul.msk.bf16.gmra.mxu0 %vm558_vm1, %v498_v16  ;;  %v505_v16 = vpack.c.bf16 %v389_v14, %v388_v13 }
  0x6e   : > { %9315 = vmatmul.msk.bf16.gmra.mxu0 %vm558_vm1, %v499_v19 }
  0x7e   : > { %9316 = vmatmul.msk.bf16.gmra.mxu0 %vm558_vm1, %v500_v26 }
  0x8e   : > { %9317 = vmatmul.msk.bf16.gmra.mxu0 %vm558_vm1, %v501_v33 }
  0x9b   : > { %v764_v39 = vpop.f32.mrf.mxu0 }
  0x9c   : > { %v1084_v40 = vpack.c.bf16 %v764_v39, %v764_v39 }
  0x9e   : > { %9318 = vmatmul.msk.bf16.gmra.mxu0 %vm558_vm1, %v502_v38  ;;  %v1216_v42 = vunpack.c.l.bf16 %v1084_v40 }
  0xa0   : > { %v1345_v46 = vadd.f32 %v9934_v43, %v1216_v42  ;;  %v393_v42 = vld [vmem:[%s9878_s28 + $0xd8] sm:$0xff] }
  0xa2   : > { %v1729_v52 = vmax.f32 %v1345_v46, 0.0 }
  0xa3   : > { %v766_v44 = vpop.f32.mrf.mxu0 }
  0xa4   : > { %v1085_v45 = vpack.c.bf16 %v766_v44, %v766_v44 }
  0xa6   : > { %v1217_v47 = vunpack.c.l.bf16 %v1085_v45  ;;  %v507_v45 = vpack.c.bf16 %v393_v42, %v392_v41 }
  0xa8   : > { %v1346_v50 = vadd.f32 %v9934_v43, %v1217_v47 }
  0xaa   : > { %v1730_v53 = vmax.f32 %v1346_v50, 0.0 }
  0xab   : > { %v769_v54 = vpop.f32.mrf.mxu0 }
  0xac   : > { %v1857_v55 = vpack.c.bf16 %v1730_v53, %v1729_v52  ;;  %v1086_v56 = vpack.c.bf16 %v769_v54, %v769_v54 }
  0xae   : > { %9319 = vmatmul.msk.bf16.gmra.mxu0 %vm558_vm1, %v503_v51  ;;  %1977 = vmatmul.bf16.vlgmr.msra.gmra.mxu1 %v1857_v55  ;;  %v1218_v57 = vunpack.c.l.bf16 %v1086_v56  ;;  %v394_v56 = vld [vmem:[%s9878_s28 + $0xe0] sm:$0xff] }
  0xb0   : > { %v1347_v60 = vadd.f32 %v9934_v43, %v1218_v57  ;;  %v395_v57 = vld [vmem:[%s9878_s28 + $0xe8] sm:$0xff] }
  0xb2   : > { %v1731_v3 = vmax.f32 %v1347_v60, 0.0 }
  0xb3   : > { %v771_v58 = vpop.f32.mrf.mxu0 }
  0xb4   : > { %v1087_v59 = vpack.c.bf16 %v771_v58, %v771_v58 }
  0xb6   : > { %v1219_v61 = vunpack.c.l.bf16 %v1087_v59  ;;  %v508_v59 = vpack.c.bf16 %v395_v57, %v394_v56 }
  0xb8   : > { %v1348_v0 = vadd.f32 %v9934_v43, %v1219_v61 }
  0xba   : > { %v1732_v4 = vmax.f32 %v1348_v0, 0.0 }
  0xbb   : > { %v774_v5 = vpop.f32.mrf.mxu0 }
  0xbc   : > { %v1858_v6 = vpack.c.bf16 %v1732_v4, %v1731_v3  ;;  %v1088_v7 = vpack.c.bf16 %v774_v5, %v774_v5 }
  0xbe   : > { %9320 = vmatmul.msk.bf16.gmra.mxu0 %vm558_vm1, %v504_v2  ;;  %1982 = vmatmul.bf16.gmra.mxu1 %v1858_v6  ;;  %v1220_v8 = vunpack.c.l.bf16 %v1088_v7  ;;  %v396_v7 = vld [vmem:[%s9878_s28 + $0xf0] sm:$0xff] }
  0xc0   : > { %v1349_v11 = vadd.f32 %v9934_v43, %v1220_v8  ;;  %v397_v8 = vld [vmem:[%s9878_s28 + $0xf8] sm:$0xff] }
  0xc2   : > { %v1733_v17 = vmax.f32 %v1349_v11, 0.0 }
  0xc3   : > { %v776_v9 = vpop.f32.mrf.mxu0 }
  0xc4   : > { %v1089_v10 = vpack.c.bf16 %v776_v9, %v776_v9 }
  0xc6   : > { %v1221_v12 = vunpack.c.l.bf16 %v1089_v10  ;;  %v509_v10 = vpack.c.bf16 %v397_v8, %v396_v7 }
  0xc8   : > { %v1350_v15 = vadd.f32 %v9934_v43, %v1221_v12 }
  0xca   : > { %v1734_v18 = vmax.f32 %v1350_v15, 0.0 }
  0xcb   : > { %v779_v19 = vpop.f32.mrf.mxu0 }
  0xcc   : > { %v1859_v20 = vpack.c.bf16 %v1734_v18, %v1733_v17  ;;  %v1090_v21 = vpack.c.bf16 %v779_v19, %v779_v19 }
  0xce   : > { %9321 = vmatmul.msk.bf16.gmra.mxu0 %vm558_vm1, %v505_v16  ;;  %1987 = vmatmul.bf16.gmra.mxu1 %v1859_v20  ;;  %v1222_v22 = vunpack.c.l.bf16 %v1090_v21  ;;  %v398_v21 = vld [vmem:[%s9878_s28 + $0x100] sm:$0xff] }
  0xd0   : > { %v1351_v25 = vadd.f32 %v9934_v43, %v1222_v22  ;;  %v399_v22 = vld [vmem:[%s9878_s28 + $0x108] sm:$0xff] }
  0xd2   : > { %v1735_v31 = vmax.f32 %v1351_v25, 0.0 }
  0xd3   : > { %v781_v23 = vpop.f32.mrf.mxu0 }
  0xd4   : > { %v1091_v24 = vpack.c.bf16 %v781_v23, %v781_v23 }
  0xd6   : > { %v1223_v26 = vunpack.c.l.bf16 %v1091_v24  ;;  %v510_v24 = vpack.c.bf16 %v399_v22, %v398_v21 }
  0xd8   : > { %v1352_v29 = vadd.f32 %v9934_v43, %v1223_v26 }
  0xda   : > { %v1736_v32 = vmax.f32 %v1352_v29, 0.0 }
  0xdb   : > { %v784_v33 = vpop.f32.mrf.mxu0 }
  0xdc   : > { %v1860_v34 = vpack.c.bf16 %v1736_v32, %v1735_v31  ;;  %v1092_v35 = vpack.c.bf16 %v784_v33, %v784_v33 }
  0xde   : > { %9322 = vmatmul.msk.bf16.gmra.mxu0 %vm558_vm1, %v506_v30  ;;  %1992 = vmatmul.bf16.gmra.mxu1 %v1860_v34  ;;  %v1224_v36 = vunpack.c.l.bf16 %v1092_v35  ;;  %v363_v35 = vld [vmem:[%s12014_s4] sm:$0x1] }
  0xe0   : > { %v1353_v39 = vadd.f32 %v9934_v43, %v1224_v36  ;;  %v400_v36 = vld [vmem:[%s9878_s28 + $0x110] sm:$0xff] }
  0xe2   : > { %v1737_v46 = vmax.f32 %v1353_v39, 0.0  ;;  %v2427_v39 = vpack.i.b16 %v363_v35, %v363_v35 }
  0xe3   : > { %v786_v37 = vpop.f32.mrf.mxu0 }
  0xe4   : > { %v1093_v38 = vpack.c.bf16 %v786_v37, %v786_v37  ;;  %v401_v37 = vld [vmem:[%s9878_s28 + $0x118] sm:$0xff] }
  0xe6   : > { %v1225_v40 = vunpack.c.l.bf16 %v1093_v38 }
  0xe8   : > { %v1354_v44 = vadd.f32 %v9934_v43, %v1225_v40  ;;  %v511_v40 = vpack.c.bf16 %v401_v37, %v400_v36 }
  0xea   : > { %v1738_v47 = vmax.f32 %v1354_v44, 0.0 }
  0xeb   : > { %v789_v48 = vpop.f32.mrf.mxu0 }
  0xec   : > { %v1861_v49 = vpack.c.bf16 %v1738_v47, %v1737_v46  ;;  %v1094_v50 = vpack.c.bf16 %v789_v48, %v789_v48  ;;  %v9986_v47 = vld [vmem:[%s12015_s5 + $0x18] sm:$0xff] }
  0xed   : > { %3356 = vmatpush.bf16.msrb.mxu1 %v9986_v47  ;;  %9647 = vmatpush.bf16.msra.mxu2 %v9986_v47 }
  0xee   : > { %9323 = vmatmul.msk.bf16.gmra.mxu0 %vm558_vm1, %v507_v45  ;;  %1997 = vmatmul.bf16.gmra.mxu1 %v1861_v49  ;;  %v1226_v51 = vunpack.c.l.bf16 %v1094_v50  ;;  %v2429_v50 = vperm.slane %v2427_v39, 0 }
  0xf0   : > { %v1355_v54 = vadd.f32 %v9934_v43, %v1226_v51 }
  0xf2   : > { %v1739_v60 = vmax.f32 %v1355_v54, 0.0 }
  0xf3   : > { %v791_v52 = vpop.f32.mrf.mxu0 }
  0xf4   : > { %v1095_v53 = vpack.c.bf16 %v791_v52, %v791_v52 }
  0xf6   : > { %v1227_v55 = vunpack.c.l.bf16 %v1095_v53  ;;  %v9991_v53 = vunpack.c.l.bf16 %v2429_v50 }
  0xf8   : > { %v1356_v58 = vadd.f32 %v9934_v43, %v1227_v55 }
  0xfa   : > { %v1740_v61 = vmax.f32 %v1356_v58, 0.0 }
  0xfb   : > { %v794_v62 = vpop.f32.mrf.mxu0 }
  0xfc   : > { %v1862_v63 = vpack.c.bf16 %v1740_v61, %v1739_v60  ;;  %v1096_v0 = vpack.c.bf16 %v794_v62, %v794_v62  ;;  %v402_v62 = vld [vmem:[%s9878_s28 + $0x120] sm:$0xff] }
  0xfe   : > { %9324 = vmatmul.msk.bf16.gmra.mxu0 %vm558_vm1, %v508_v59  ;;  %2002 = vmatmul.bf16.gmra.mxu1 %v1862_v63  ;;  %v1228_v2 = vunpack.c.l.bf16 %v1096_v0  ;;  %v403_v63 = vld [vmem:[%s9878_s28 + $0x128] sm:$0xff] }
 0x100   : > { %v1357_v5 = vadd.f32 %v9934_v43, %v1228_v2 }
 0x102   : > { %v1741_v11 = vmax.f32 %v1357_v5, 0.0 }
 0x103   : > { %v796_v3 = vpop.f32.mrf.mxu0 }
 0x104   : > { %v1097_v4 = vpack.c.bf16 %v796_v3, %v796_v3  ;;  %v512_v3 = vpack.c.bf16 %v403_v63, %v402_v62 }
 0x106   : > { %v1229_v6 = vunpack.c.l.bf16 %v1097_v4 }
 0x108   : > { %v1358_v9 = vadd.f32 %v9934_v43, %v1229_v6 }
 0x10a   : > { %v1742_v12 = vmax.f32 %v1358_v9, 0.0 }
 0x10b   : > { %v799_v13 = vpop.f32.mrf.mxu0 }
 0x10c   : > { %v1863_v14 = vpack.c.bf16 %v1742_v12, %v1741_v11  ;;  %v1098_v15 = vpack.c.bf16 %v799_v13, %v799_v13 }
 0x10e   : > { %9325 = vmatmul.msk.bf16.gmra.mxu0 %vm558_vm1, %v509_v10  ;;  %2007 = vmatmul.bf16.gmra.mxu1 %v1863_v14  ;;  %v1230_v16 = vunpack.c.l.bf16 %v1098_v15 }
 0x110   : > { %v1359_v19 = vadd.f32 %v9934_v43, %v1230_v16 }
 0x112   : > { %v1743_v25 = vmax.f32 %v1359_v19, 0.0 }
 0x113   : > { %v801_v17 = vpop.f32.mrf.mxu0 }
 0x114   : > { %v1099_v18 = vpack.c.bf16 %v801_v17, %v801_v17 }
 0x116   : > { %v1231_v20 = vunpack.c.l.bf16 %v1099_v18 }
 0x118   : > { %v1360_v23 = vadd.f32 %v9934_v43, %v1231_v20 }
 0x11a   : > { %v1744_v26 = vmax.f32 %v1360_v23, 0.0 }
 0x11b   : > { %v804_v27 = vpop.f32.mrf.mxu0 }
 0x11c   : > { %v1864_v28 = vpack.c.bf16 %v1744_v26, %v1743_v25  ;;  %v1100_v29 = vpack.c.bf16 %v804_v27, %v804_v27  ;;  %v405_v25 = vld [vmem:[%s9878_s28 + $0x138] sm:$0xff] }
 0x11e   : > { %9326 = vmatmul.msk.bf16.gmra.mxu0 %vm558_vm1, %v510_v24  ;;  %2012 = vmatmul.bf16.gmra.mxu1 %v1864_v28  ;;  %v1232_v30 = vunpack.c.l.bf16 %v1100_v29  ;;  %v404_v24 = vld [vmem:[%s9878_s28 + $0x130] sm:$0xff] }
 0x11f   : > { %v513_v28 = vpack.c.bf16 %v405_v25, %v404_v24 }
 0x120   : > { %v1361_v33 = vadd.f32 %v9934_v43, %v1232_v30 }
 0x122   : > { %v1745_v41 = vmax.f32 %v1361_v33, 0.0 }
 0x123   : > { %v806_v31 = vpop.f32.mrf.mxu0 }
 0x124   : > { %v1101_v32 = vpack.c.bf16 %v806_v31, %v806_v31 }
 0x126   : > { %v1233_v34 = vunpack.c.l.bf16 %v1101_v32 }
 0x128   : > { %v1362_v38 = vadd.f32 %v9934_v43, %v1233_v34 }
 0x12a   : > { %v1746_v42 = vmax.f32 %v1362_v38, 0.0 }
 0x12b   : > { %v809_v44 = vpop.f32.mrf.mxu0  ;;  %v1978_v45 = vpop.f32.mrf.mxu1 }
 0x12c   : > { %v1865_v46 = vpack.c.bf16 %v1746_v42, %v1745_v41  ;;  %v1102_v48 = vpack.c.bf16 %v809_v44, %v809_v44  ;;  %v2298_v49 = vpack.c.bf16 %v1978_v45, %v1978_v45 }
 0x12e   : > { %9327 = vmatmul.msk.bf16.gmra.mxu0 %vm558_vm1, %v511_v40  ;;  %2017 = vmatmul.bf16.gmra.mxu1 %v1865_v46  ;;  %v1234_v51 = vunpack.c.l.bf16 %v1102_v48  ;;  %v2430_v52 = vunpack.c.l.bf16 %v2298_v49 }
 0x130   : > { %v1363_v58 = vadd.f32 %v9934_v43, %v1234_v51  ;;  %v2559_v59 = vadd.f32 %v9991_v53, %v2430_v52  ;;  %v406_v51 = vld [vmem:[%s9878_s28 + $0x140] sm:$0xff]  ;;  %v407_v52 = vld [vmem:[%s9878_s28 + $0x148] sm:$0xff] }
 0x132   : > { %v2943_v4 = vmax.f32 %v2559_v59, 0.0  ;;  %v1747_v6 = vmax.f32 %v1363_v58, 0.0 }
 0x133   : > { %v811_v54 = vpop.f32.mrf.mxu0  ;;  %v1980_v55 = vpop.f32.mrf.mxu1 }
 0x134   : > { %v1103_v56 = vpack.c.bf16 %v811_v54, %v811_v54  ;;  %v2299_v57 = vpack.c.bf16 %v1980_v55, %v1980_v55 }
 0x136   : > { %v1235_v60 = vunpack.c.l.bf16 %v1103_v56  ;;  %v2431_v61 = vunpack.c.l.bf16 %v2299_v57  ;;  %v514_v56 = vpack.c.bf16 %v407_v52, %v406_v51 }
 0x138   : > { %v2560_v0 = vadd.f32 %v9991_v53, %v2431_v61  ;;  %v1364_v2 = vadd.f32 %v9934_v43, %v1235_v60 }
 0x13a   : > { %v2944_v5 = vmax.f32 %v2560_v0, 0.0  ;;  %v1748_v7 = vmax.f32 %v1364_v2, 0.0 }
 0x13b   : > { %v814_v8 = vpop.f32.mrf.mxu0  ;;  %v1983_v9 = vpop.f32.mrf.mxu1 }
 0x13c   : > { %v9999_v10 = vpack.c.bf16 %v2944_v5, %v2943_v4  ;;  %v1866_v11 = vpack.c.bf16 %v1748_v7, %v1747_v6  ;;  %v1104_v12 = vpack.c.bf16 %v814_v8, %v814_v8  ;;  %v2300_v13 = vpack.c.bf16 %v1983_v9, %v1983_v9 }
 0x13e   : > { %9328 = vmatmul.msk.bf16.gmra.mxu0 %vm558_vm1, %v512_v3  ;;  %2022 = vmatmul.bf16.gmra.mxu1 %v1866_v11  ;;  %v1236_v14 = vunpack.c.l.bf16 %v1104_v12  ;;  %v2432_v15 = vunpack.c.l.bf16 %v2300_v13 }
 0x140   : > { %v1365_v20 = vadd.f32 %v9934_v43, %v1236_v14  ;;  %v2561_v21 = vadd.f32 %v9991_v53, %v2432_v15  ;;  %v408_v15 = vld [vmem:[%s9878_s28 + $0x150] sm:$0xff] }
 0x142   : > { %v2945_v29 = vmax.f32 %v2561_v21, 0.0  ;;  %v1749_v31 = vmax.f32 %v1365_v20, 0.0 }
 0x143   : > { %v816_v16 = vpop.f32.mrf.mxu0  ;;  %v1985_v17 = vpop.f32.mrf.mxu1 }
 0x144   : > { %v1105_v18 = vpack.c.bf16 %v816_v16, %v816_v16  ;;  %v2301_v19 = vpack.c.bf16 %v1985_v17, %v1985_v17  ;;  %v409_v16 = vld [vmem:[%s9878_s28 + $0x158] sm:$0xff] }
 0x146   : > { %v1237_v22 = vunpack.c.l.bf16 %v1105_v18  ;;  %v2433_v23 = vunpack.c.l.bf16 %v2301_v19  ;;  %v515_v19 = vpack.c.bf16 %v409_v16, %v408_v15 }
 0x148   : > { %v2562_v26 = vadd.f32 %v9991_v53, %v2433_v23  ;;  %v1366_v27 = vadd.f32 %v9934_v43, %v1237_v22 }
 0x14a   : > { %v2946_v30 = vmax.f32 %v2562_v26, 0.0  ;;  %v1750_v32 = vmax.f32 %v1366_v27, 0.0 }
 0x14b   : > { %v819_v33 = vpop.f32.mrf.mxu0  ;;  %v1988_v34 = vpop.f32.mrf.mxu1 }
 0x14c   : > { %v10008_v35 = vpack.c.bf16 %v2946_v30, %v2945_v29  ;;  %v1867_v36 = vpack.c.bf16 %v1750_v32, %v1749_v31  ;;  %v1106_v37 = vpack.c.bf16 %v819_v33, %v819_v33  ;;  %v2302_v38 = vpack.c.bf16 %v1988_v34, %v1988_v34 }
 0x14e   : > { %9329 = vmatmul.msk.bf16.gmra.mxu0 %vm558_vm1, %v513_v28  ;;  %2027 = vmatmul.bf16.gmra.mxu1 %v1867_v36  ;;  %v1238_v39 = vunpack.c.l.bf16 %v1106_v37  ;;  %v2434_v40 = vunpack.c.l.bf16 %v2302_v38 }
 0x150   : > { %v1367_v46 = vadd.f32 %v9934_v43, %v1238_v39  ;;  %v2563_v48 = vadd.f32 %v9991_v53, %v2434_v40 }
 0x152   : > { %v2947_v57 = vmax.f32 %v2563_v48, 0.0  ;;  %v1751_v59 = vmax.f32 %v1367_v46, 0.0 }
 0x153   : > { %v821_v41 = vpop.f32.mrf.mxu0  ;;  %v1990_v42 = vpop.f32.mrf.mxu1 }
 0x154   : > { %v1107_v44 = vpack.c.bf16 %v821_v41, %v821_v41  ;;  %v2303_v45 = vpack.c.bf16 %v1990_v42, %v1990_v42  ;;  %v410_v41 = vld [vmem:[%s9878_s28 + $0x160] sm:$0xff]  ;;  %v411_v42 = vld [vmem:[%s9878_s28 + $0x168] sm:$0xff] }
 0x155   : > { %v516_v46 = vpack.c.bf16 %v411_v42, %v410_v41 }
 0x156   : > { %v1239_v49 = vunpack.c.l.bf16 %v1107_v44  ;;  %v2435_v50 = vunpack.c.l.bf16 %v2303_v45 }
 0x158   : > { %v2564_v54 = vadd.f32 %v9991_v53, %v2435_v50  ;;  %v1368_v55 = vadd.f32 %v9934_v43, %v1239_v49 }
 0x15a   : > { %v2948_v58 = vmax.f32 %v2564_v54, 0.0  ;;  %v1752_v60 = vmax.f32 %v1368_v55, 0.0 }
 0x15b   : > { %v824_v61 = vpop.f32.mrf.mxu0  ;;  %v1993_v62 = vpop.f32.mrf.mxu1 }
 0x15c   : > { %v10017_v63 = vpack.c.bf16 %v2948_v58, %v2947_v57  ;;  %v1868_v0 = vpack.c.bf16 %v1752_v60, %v1751_v59  ;;  %v1108_v2 = vpack.c.bf16 %v824_v61, %v824_v61  ;;  %v2304_v3 = vpack.c.bf16 %v1993_v62, %v1993_v62 }
 0x15e   : > { %9330 = vmatmul.msk.bf16.gmra.mxu0 %vm558_vm1, %v514_v56  ;;  %2032 = vmatmul.bf16.gmra.mxu1 %v1868_v0  ;;  %v1240_v4 = vunpack.c.l.bf16 %v1108_v2  ;;  %v2436_v5 = vunpack.c.l.bf16 %v2304_v3 }
 0x160   : > { %v1369_v11 = vadd.f32 %v9934_v43, %v1240_v4  ;;  %v2565_v12 = vadd.f32 %v9991_v53, %v2436_v5 }
 0x162   : > { %v1753_v20 = vmax.f32 %v1369_v11, 0.0  ;;  %v2949_v21 = vmax.f32 %v2565_v12, 0.0 }
 0x163   : > { %v826_v6 = vpop.f32.mrf.mxu0  ;;  %v1995_v7 = vpop.f32.mrf.mxu1 }
 0x164   : > { %v1109_v8 = vpack.c.bf16 %v826_v6, %v826_v6  ;;  %v2305_v9 = vpack.c.bf16 %v1995_v7, %v1995_v7  ;;  %v412_v7 = vld [vmem:[%s9878_s28 + $0x170] sm:$0xff] }
 0x166   : > { %v1241_v13 = vunpack.c.l.bf16 %v1109_v8  ;;  %v2437_v14 = vunpack.c.l.bf16 %v2305_v9  ;;  %v413_v8 = vld [vmem:[%s9878_s28 + $0x178] sm:$0xff] }
 0x167   : > { %v517_v12 = vpack.c.bf16 %v413_v8, %v412_v7 }
 0x168   : > { %v1370_v17 = vadd.f32 %v9934_v43, %v1241_v13  ;;  %v2566_v18 = vadd.f32 %v9991_v53, %v2437_v14 }
 0x16a   : > { %v1754_v22 = vmax.f32 %v1370_v17, 0.0  ;;  %v2950_v23 = vmax.f32 %v2566_v18, 0.0 }
 0x16b   : > { %v829_v24 = vpop.f32.mrf.mxu0  ;;  %v1998_v25 = vpop.f32.mrf.mxu1 }
 0x16c   : > { %v10026_v26 = vpack.c.bf16 %v2950_v23, %v2949_v21  ;;  %v1869_v27 = vpack.c.bf16 %v1754_v22, %v1753_v20  ;;  %v1110_v28 = vpack.c.bf16 %v829_v24, %v829_v24  ;;  %v2306_v29 = vpack.c.bf16 %v1998_v25, %v1998_v25 }
 0x16e   : > { %9331 = vmatmul.msk.bf16.gmra.mxu0 %vm558_vm1, %v515_v19  ;;  %2037 = vmatmul.bf16.gmra.mxu1 %v1869_v27  ;;  %v1242_v30 = vunpack.c.l.bf16 %v1110_v28  ;;  %v2438_v31 = vunpack.c.l.bf16 %v2306_v29 }
 0x170   : > { %v1371_v37 = vadd.f32 %v9934_v43, %v1242_v30  ;;  %v2567_v38 = vadd.f32 %v9991_v53, %v2438_v31 }
 0x172   : > { %v1755_v48 = vmax.f32 %v1371_v37, 0.0  ;;  %v2951_v49 = vmax.f32 %v2567_v38, 0.0 }
 0x173   : > { %v831_v32 = vpop.f32.mrf.mxu0  ;;  %v2000_v33 = vpop.f32.mrf.mxu1 }
 0x174   : > { %v1111_v34 = vpack.c.bf16 %v831_v32, %v831_v32  ;;  %v2307_v36 = vpack.c.bf16 %v2000_v33, %v2000_v33 }
 0x176   : > { %v1243_v39 = vunpack.c.l.bf16 %v1111_v34  ;;  %v2439_v40 = vunpack.c.l.bf16 %v2307_v36  ;;  %v414_v34 = vld [vmem:[%s9878_s28 + $0x180] sm:$0xff]  ;;  %v415_v36 = vld [vmem:[%s9878_s28 + $0x188] sm:$0xff] }
 0x178   : > { %v1372_v44 = vadd.f32 %v9934_v43, %v1243_v39  ;;  %v2568_v45 = vadd.f32 %v9991_v53, %v2439_v40  ;;  %v518_v39 = vpack.c.bf16 %v415_v36, %v414_v34 }
 0x17a   : > { %v1756_v50 = vmax.f32 %v1372_v44, 0.0  ;;  %v2952_v51 = vmax.f32 %v2568_v45, 0.0 }
 0x17b   : > { %v834_v52 = vpop.f32.mrf.mxu0  ;;  %v2003_v54 = vpop.f32.mrf.mxu1 }
 0x17c   : > { %v10035_v55 = vpack.c.bf16 %v2952_v51, %v2951_v49  ;;  %v1870_v56 = vpack.c.bf16 %v1756_v50, %v1755_v48  ;;  %v1112_v57 = vpack.c.bf16 %v834_v52, %v834_v52  ;;  %v2308_v58 = vpack.c.bf16 %v2003_v54, %v2003_v54 }
 0x17e   : > { %9332 = vmatmul.msk.bf16.gmra.mxu0 %vm558_vm1, %v516_v46  ;;  %2042 = vmatmul.bf16.gmra.mxu1 %v1870_v56  ;;  %v1244_v59 = vunpack.c.l.bf16 %v1112_v57  ;;  %v2440_v60 = vunpack.c.l.bf16 %v2308_v58 }
 0x180   : > { %v1373_v3 = vadd.f32 %v9934_v43, %v1244_v59  ;;  %v2569_v4 = vadd.f32 %v9991_v53, %v2440_v60 }
 0x182   : > { %v1757_v13 = vmax.f32 %v1373_v3, 0.0  ;;  %v2953_v14 = vmax.f32 %v2569_v4, 0.0  ;;  %v417_v3 = vld [vmem:[%s9878_s28 + $0x198] sm:$0xff] }
 0x183   : > { %v836_v61 = vpop.f32.mrf.mxu0  ;;  %v2005_v62 = vpop.f32.mrf.mxu1 }
 0x184   : > { %v1113_v0 = vpack.c.bf16 %v836_v61, %v836_v61  ;;  %v2309_v2 = vpack.c.bf16 %v2005_v62, %v2005_v62 }
 0x186   : > { %v1245_v5 = vunpack.c.l.bf16 %v1113_v0  ;;  %v2441_v6 = vunpack.c.l.bf16 %v2309_v2  ;;  %v416_v2 = vld [vmem:[%s9878_s28 + $0x190] sm:$0xff] }
 0x188   : > { %v1374_v9 = vadd.f32 %v9934_v43, %v1245_v5  ;;  %v2570_v11 = vadd.f32 %v9991_v53, %v2441_v6  ;;  %v519_v6 = vpack.c.bf16 %v417_v3, %v416_v2 }
 0x18a   : > { %v1758_v15 = vmax.f32 %v1374_v9, 0.0  ;;  %v2954_v16 = vmax.f32 %v2570_v11, 0.0 }
 0x18b   : > { %v839_v17 = vpop.f32.mrf.mxu0  ;;  %v2008_v18 = vpop.f32.mrf.mxu1 }
 0x18c   : > { %v10044_v19 = vpack.c.bf16 %v2954_v16, %v2953_v14  ;;  %v1871_v20 = vpack.c.bf16 %v1758_v15, %v1757_v13  ;;  %v1114_v21 = vpack.c.bf16 %v839_v17, %v839_v17  ;;  %v2310_v22 = vpack.c.bf16 %v2008_v18, %v2008_v18 }
 0x18e   : > { %9333 = vmatmul.msk.bf16.gmra.mxu0 %vm558_vm1, %v517_v12  ;;  %2047 = vmatmul.bf16.gmra.mxu1 %v1871_v20  ;;  %v1246_v23 = vunpack.c.l.bf16 %v1114_v21  ;;  %v2442_v24 = vunpack.c.l.bf16 %v2310_v22 }
 0x190   : > { %v1375_v30 = vadd.f32 %v9934_v43, %v1246_v23  ;;  %v2571_v31 = vadd.f32 %v9991_v53, %v2442_v24 }
 0x192   : > { %v1759_v40 = vmax.f32 %v1375_v30, 0.0  ;;  %v2955_v41 = vmax.f32 %v2571_v31, 0.0  ;;  %v418_v30 = vld [vmem:[%s9878_s28 + $0x1a0] sm:$0xff]  ;;  %v419_v31 = vld [vmem:[%s9878_s28 + $0x1a8] sm:$0xff] }
 0x193   : > { %v841_v25 = vpop.f32.mrf.mxu0  ;;  %v2010_v27 = vpop.f32.mrf.mxu1  ;;  %v520_v34 = vpack.c.bf16 %v419_v31, %v418_v30 }
 0x194   : > { %v1115_v28 = vpack.c.bf16 %v841_v25, %v841_v25  ;;  %v2311_v29 = vpack.c.bf16 %v2010_v27, %v2010_v27 }
 0x196   : > { %v1247_v32 = vunpack.c.l.bf16 %v1115_v28  ;;  %v2443_v33 = vunpack.c.l.bf16 %v2311_v29 }
 0x198   : > { %v1376_v37 = vadd.f32 %v9934_v43, %v1247_v32  ;;  %v2572_v38 = vadd.f32 %v9991_v53, %v2443_v33 }
 0x19a   : > { %v1760_v42 = vmax.f32 %v1376_v37, 0.0  ;;  %v2956_v44 = vmax.f32 %v2572_v38, 0.0 }
 0x19b   : > { %v844_v45 = vpop.f32.mrf.mxu0  ;;  %v2013_v46 = vpop.f32.mrf.mxu1 }
 0x19c   : > { %v10053_v48 = vpack.c.bf16 %v2956_v44, %v2955_v41  ;;  %v1872_v49 = vpack.c.bf16 %v1760_v42, %v1759_v40  ;;  %v1116_v50 = vpack.c.bf16 %v844_v45, %v844_v45  ;;  %v2312_v51 = vpack.c.bf16 %v2013_v46, %v2013_v46 }
 0x19e   : > { %9334 = vmatmul.msk.bf16.gmra.mxu0 %vm558_vm1, %v518_v39  ;;  %2052 = vmatmul.bf16.gmra.mxu1 %v1872_v49  ;;  %v1248_v52 = vunpack.c.l.bf16 %v1116_v50  ;;  %v2444_v54 = vunpack.c.l.bf16 %v2312_v51 }
 0x1a0   : > { %v1377_v60 = vadd.f32 %v9934_v43, %v1248_v52  ;;  %v2573_v61 = vadd.f32 %v9991_v53, %v2444_v54 }
 0x1a2   : > { %v1761_v7 = vmax.f32 %v1377_v60, 0.0  ;;  %v2957_v8 = vmax.f32 %v2573_v61, 0.0  ;;  %v420_v61 = vld [vmem:[%s9878_s28 + $0x1b0] sm:$0xff] }
 0x1a3   : > { %v846_v56 = vpop.f32.mrf.mxu0  ;;  %v2015_v57 = vpop.f32.mrf.mxu1 }
 0x1a4   : > { %v1117_v58 = vpack.c.bf16 %v846_v56, %v846_v56  ;;  %v2313_v59 = vpack.c.bf16 %v2015_v57, %v2015_v57 }
 0x1a6   : > { %v1249_v62 = vunpack.c.l.bf16 %v1117_v58  ;;  %v2445_v0 = vunpack.c.l.bf16 %v2313_v59 }
 0x1a8   : > { %v1378_v4 = vadd.f32 %v9934_v43, %v1249_v62  ;;  %v2574_v5 = vadd.f32 %v9991_v53, %v2445_v0  ;;  %v421_v62 = vld [vmem:[%s9878_s28 + $0x1b8] sm:$0xff] }
 0x1a9   : > { %v521_v3 = vpack.c.bf16 %v421_v62, %v420_v61  ;;  %v425_v61 = vld [vmem:[%s9878_s28 + $0x1d8] sm:$0xff] }
 0x1aa   : > { %v1762_v9 = vmax.f32 %v1378_v4, 0.0  ;;  %v2958_v11 = vmax.f32 %v2574_v5, 0.0 }
 0x1ab   : > { %v849_v12 = vpop.f32.mrf.mxu0  ;;  %v2018_v13 = vpop.f32.mrf.mxu1 }
 0x1ac   : > { %v10062_v14 = vpack.c.bf16 %v2958_v11, %v2957_v8  ;;  %v1873_v15 = vpack.c.bf16 %v1762_v9, %v1761_v7  ;;  %v1118_v16 = vpack.c.bf16 %v849_v12, %v849_v12  ;;  %v2314_v17 = vpack.c.bf16 %v2018_v13, %v2018_v13 }
 0x1ae   : > { %9335 = vmatmul.msk.bf16.gmra.mxu0 %vm558_vm1, %v519_v6  ;;  %2057 = vmatmul.bf16.gmra.mxu1 %v1873_v15  ;;  %v1250_v18 = vunpack.c.l.bf16 %v1118_v16  ;;  %v2446_v20 = vunpack.c.l.bf16 %v2314_v17 }
 0x1b0   : > { %v1379_v25 = vadd.f32 %v9934_v43, %v1250_v18  ;;  %v2575_v27 = vadd.f32 %v9991_v53, %v2446_v20 }
 0x1b2   : > { %v1763_v36 = vmax.f32 %v1379_v25, 0.0  ;;  %v2959_v37 = vmax.f32 %v2575_v27, 0.0 }
 0x1b3   : > { %v851_v21 = vpop.f32.mrf.mxu0  ;;  %v2020_v22 = vpop.f32.mrf.mxu1 }
 0x1b4   : > { %v1119_v23 = vpack.c.bf16 %v851_v21, %v851_v21  ;;  %v2315_v24 = vpack.c.bf16 %v2020_v22, %v2020_v22 }
 0x1b6   : > { %v1251_v28 = vunpack.c.l.bf16 %v1119_v23  ;;  %v2447_v29 = vunpack.c.l.bf16 %v2315_v24 }
 0x1b8   : > { %v1380_v32 = vadd.f32 %v9934_v43, %v1251_v28  ;;  %v2576_v33 = vadd.f32 %v9991_v53, %v2447_v29  ;;  %v422_v28 = vld [vmem:[%s9878_s28 + $0x1c0] sm:$0xff]  ;;  %v423_v29 = vld [vmem:[%s9878_s28 + $0x1c8] sm:$0xff] }
 0x1ba   : > { %v1764_v38 = vmax.f32 %v1380_v32, 0.0  ;;  %v2960_v39 = vmax.f32 %v2576_v33, 0.0  ;;  %v522_v32 = vpack.c.bf16 %v423_v29, %v422_v28  ;;  %v426_v28 = vld [vmem:[%s9878_s28 + $0x1e0] sm:$0xff]  ;;  %v427_v29 = vld [vmem:[%s9878_s28 + $0x1e8] sm:$0xff] }
 0x1bb   : > { %v854_v40 = vpop.f32.mrf.mxu0  ;;  %v2023_v41 = vpop.f32.mrf.mxu1 }
 0x1bc   : > { %v10071_v42 = vpack.c.bf16 %v2960_v39, %v2959_v37  ;;  %v1874_v44 = vpack.c.bf16 %v1764_v38, %v1763_v36  ;;  %v1120_v45 = vpack.c.bf16 %v854_v40, %v854_v40  ;;  %v2316_v46 = vpack.c.bf16 %v2023_v41, %v2023_v41 }
 0x1be   : > { %9336 = vmatmul.msk.bf16.gmra.mxu0 %vm558_vm1, %v520_v34  ;;  %2062 = vmatmul.bf16.gmra.mxu1 %v1874_v44  ;;  %v1252_v49 = vunpack.c.l.bf16 %v1120_v45  ;;  %v2448_v50 = vunpack.c.l.bf16 %v2316_v46 }
 0x1c0   : > { %v1381_v57 = vadd.f32 %v9934_v43, %v1252_v49  ;;  %v2577_v58 = vadd.f32 %v9991_v53, %v2448_v50 }
 0x1c2   : > { %v1765_v4 = vmax.f32 %v1381_v57, 0.0  ;;  %v2961_v5 = vmax.f32 %v2577_v58, 0.0 }
 0x1c3   : > { %v856_v51 = vpop.f32.mrf.mxu0  ;;  %v2025_v52 = vpop.f32.mrf.mxu1 }
 0x1c4   : > { %v1121_v54 = vpack.c.bf16 %v856_v51, %v856_v51  ;;  %v2317_v56 = vpack.c.bf16 %v2025_v52, %v2025_v52 }
 0x1c6   : > { %v1253_v59 = vunpack.c.l.bf16 %v1121_v54  ;;  %v2449_v60 = vunpack.c.l.bf16 %v2317_v56 }
 0x1c8   : > { %v1382_v0 = vadd.f32 %v9934_v43, %v1253_v59  ;;  %v2578_v2 = vadd.f32 %v9991_v53, %v2449_v60  ;;  %v424_v60 = vld [vmem:[%s9878_s28 + $0x1d0] sm:$0xff] }
 0x1ca   : > { %v1766_v6 = vmax.f32 %v1382_v0, 0.0  ;;  %v2962_v7 = vmax.f32 %v2578_v2, 0.0  ;;  %v523_v2 = vpack.c.bf16 %v425_v61, %v424_v60  ;;  %v428_v61 = vld [vmem:[%s9878_s28 + $0x1f0] sm:$0xff] }
 0x1cb   : > { %v859_v8 = vpop.f32.mrf.mxu0  ;;  %v2028_v9 = vpop.f32.mrf.mxu1 }
 0x1cc   : > { %v10080_v11 = vpack.c.bf16 %v2962_v7, %v2961_v5  ;;  %v1875_v12 = vpack.c.bf16 %v1766_v6, %v1765_v4  ;;  %v1122_v13 = vpack.c.bf16 %v859_v8, %v859_v8  ;;  %v2318_v15 = vpack.c.bf16 %v2028_v9, %v2028_v9 }
 0x1ce   : > { %9337 = vmatmul.msk.bf16.gmra.mxu0 %vm558_vm1, %v521_v3  ;;  %2067 = vmatmul.bf16.gmra.mxu1 %v1875_v12  ;;  %v1254_v16 = vunpack.c.l.bf16 %v1122_v13  ;;  %v2450_v17 = vunpack.c.l.bf16 %v2318_v15 }
 0x1d0   : > { %v1383_v23 = vadd.f32 %v9934_v43, %v1254_v16  ;;  %v2579_v24 = vadd.f32 %v9991_v53, %v2450_v17 }
 0x1d2   : > { %v1767_v33 = vmax.f32 %v1383_v23, 0.0  ;;  %v2963_v34 = vmax.f32 %v2579_v24, 0.0 }
 0x1d3   : > { %v861_v18 = vpop.f32.mrf.mxu0  ;;  %v2030_v20 = vpop.f32.mrf.mxu1 }
 0x1d4   : > { %v1123_v21 = vpack.c.bf16 %v861_v18, %v861_v18  ;;  %v2319_v22 = vpack.c.bf16 %v2030_v20, %v2030_v20 }
 0x1d6   : > { %v1255_v25 = vunpack.c.l.bf16 %v1123_v21  ;;  %v2451_v27 = vunpack.c.l.bf16 %v2319_v22 }
 0x1d8   : > { %v1384_v30 = vadd.f32 %v9934_v43, %v1255_v25  ;;  %v2580_v31 = vadd.f32 %v9991_v53, %v2451_v27 }
 0x1da   : > { %v1768_v36 = vmax.f32 %v1384_v30, 0.0  ;;  %v2964_v37 = vmax.f32 %v2580_v31, 0.0 }
 0x1db   : > { %v864_v38 = vpop.f32.mrf.mxu0  ;;  %v2033_v39 = vpop.f32.mrf.mxu1 }
 0x1dc   : > { %v10089_v40 = vpack.c.bf16 %v2964_v37, %v2963_v34  ;;  %v1876_v41 = vpack.c.bf16 %v1768_v36, %v1767_v33  ;;  %v1124_v44 = vpack.c.bf16 %v864_v38, %v864_v38  ;;  %v2320_v45 = vpack.c.bf16 %v2033_v39, %v2033_v39 }
 0x1de   : > { %9338 = vmatmul.msk.bf16.gmra.mxu0 %vm558_vm1, %v522_v32  ;;  %2072 = vmatmul.bf16.gmra.mxu1 %v1876_v41  ;;  %v1256_v46 = vunpack.c.l.bf16 %v1124_v44  ;;  %v2452_v49 = vunpack.c.l.bf16 %v2320_v45  ;;  %v524_v32 = vpack.c.bf16 %v427_v29, %v426_v28 }
 0x1e0   : > { %v1385_v56 = vadd.f32 %v9934_v43, %v1256_v46  ;;  %v2581_v57 = vadd.f32 %v9991_v53, %v2452_v49 }
 0x1e2   : > { %v1769_v3 = vmax.f32 %v1385_v56, 0.0  ;;  %v2965_v4 = vmax.f32 %v2581_v57, 0.0 }
 0x1e3   : > { %v866_v50 = vpop.f32.mrf.mxu0  ;;  %v2035_v51 = vpop.f32.mrf.mxu1 }
 0x1e4   : > { %v1125_v52 = vpack.c.bf16 %v866_v50, %v866_v50  ;;  %v2321_v54 = vpack.c.bf16 %v2035_v51, %v2035_v51 }
 0x1e6   : > { %v1257_v58 = vunpack.c.l.bf16 %v1125_v52  ;;  %v2453_v59 = vunpack.c.l.bf16 %v2321_v54 }
 0x1e8   : > { %v1386_v62 = vadd.f32 %v9934_v43, %v1257_v58  ;;  %v2582_v0 = vadd.f32 %v9991_v53, %v2453_v59 }
 0x1ea   : > { %v1770_v5 = vmax.f32 %v1386_v62, 0.0  ;;  %v2966_v6 = vmax.f32 %v2582_v0, 0.0  ;;  %v429_v62 = vld [vmem:[%s9878_s28 + $0x1f8] sm:$0xff] }
 0x1eb   : > { %v869_v7 = vpop.f32.mrf.mxu0  ;;  %v2038_v8 = vpop.f32.mrf.mxu1 }
 0x1ec   : > { %v10098_v9 = vpack.c.bf16 %v2966_v6, %v2965_v4  ;;  %v1877_v12 = vpack.c.bf16 %v1770_v5, %v1769_v3  ;;  %v1126_v13 = vpack.c.bf16 %v869_v7, %v869_v7  ;;  %v2322_v15 = vpack.c.bf16 %v2038_v8, %v2038_v8 }
 0x1ed   : > { %v525_v3 = vpack.c.bf16 %v429_v62, %v428_v61 }
 0x1ee   : > { %9339 = vmatmul.msk.bf16.gmra.mxu0 %vm558_vm1, %v523_v2  ;;  %2077 = vmatmul.bf16.gmra.mxu1 %v1877_v12  ;;  %v1258_v16 = vunpack.c.l.bf16 %v1126_v13  ;;  %v2454_v17 = vunpack.c.l.bf16 %v2322_v15 }
 0x1f0   : > { %v1387_v23 = vadd.f32 %v9934_v43, %v1258_v16  ;;  %v2583_v24 = vadd.f32 %v9991_v53, %v2454_v17 }
 0x1f2   : > { %v1771_v33 = vmax.f32 %v1387_v23, 0.0  ;;  %v2967_v34 = vmax.f32 %v2583_v24, 0.0 }
 0x1f3   : > { %v871_v18 = vpop.f32.mrf.mxu0  ;;  %v2040_v20 = vpop.f32.mrf.mxu1 }
 0x1f4   : > { %v1127_v21 = vpack.c.bf16 %v871_v18, %v871_v18  ;;  %v2323_v22 = vpack.c.bf16 %v2040_v20, %v2040_v20  ;;  %v9644_v18 = vld [vmem:[%s12015_s5 + $0x10] sm:$0xff] }
 0x1f5   : > { %9648 = vmatpush.bf16.msra.mxu2 %v9644_v18  ;;  %3357 = vmatpush.bf16.msrb.mxu1 %v9644_v18 }
 0x1f6   : > { %v1259_v25 = vunpack.c.l.bf16 %v1127_v21  ;;  %v2455_v27 = vunpack.c.l.bf16 %v2323_v22 }
 0x1f8   : > { %v1388_v30 = vadd.f32 %v9934_v43, %v1259_v25  ;;  %v2584_v31 = vadd.f32 %v9991_v53, %v2455_v27  ;;  %v9643_v27 = vld [vmem:[%s12015_s5 + $0x8] sm:$0xff] }
 0x1f9   : > { %9649 = vmatpush.bf16.msra.mxu2 %v9643_v27  ;;  %3358 = vmatpush.bf16.msrb.mxu1 %v9643_v27 }
 0x1fa   : > { %v1772_v36 = vmax.f32 %v1388_v30, 0.0  ;;  %v2968_v37 = vmax.f32 %v2584_v31, 0.0 }
 0x1fb   : > { %v874_v38 = vpop.f32.mrf.mxu0  ;;  %v2043_v39 = vpop.f32.mrf.mxu1 }
 0x1fc   : > { %v10107_v41 = vpack.c.bf16 %v2968_v37, %v2967_v34  ;;  %v1878_v44 = vpack.c.bf16 %v1772_v36, %v1771_v33  ;;  %v1128_v45 = vpack.c.bf16 %v874_v38, %v874_v38  ;;  %v2324_v46 = vpack.c.bf16 %v2043_v39, %v2043_v39  ;;  %v431_v33 = vld [vmem:[%s9878_s28 + $0x208] sm:$0xff]  ;;  %v9642_v38 = vld [vmem:[%s12015_s5] sm:$0xff] }
 0x1fd   : > { %9650 = vmatpush.bf16.msra.mxu2 %v9642_v38  ;;  %3359 = vmatpush.bf16.msrb.mxu1 %v9642_v38 }
 0x1fe   : > { %9340 = vmatmul.msk.bf16.gmra.mxu0 %vm558_vm1, %v524_v32  ;;  %2082 = vmatmul.bf16.gmra.mxu1 %v1878_v44  ;;  %v1260_v49 = vunpack.c.l.bf16 %v1128_v45  ;;  %v2456_v50 = vunpack.c.l.bf16 %v2324_v46  ;;  %v430_v32 = vld [vmem:[%s9878_s28 + $0x200] sm:$0xff] }
 0x1ff   : > { %v526_v37 = vpack.c.bf16 %v431_v33, %v430_v32 }
 0x200   : > { %v1389_v57 = vadd.f32 %v9934_v43, %v1260_v49  ;;  %v2585_v58 = vadd.f32 %v9991_v53, %v2456_v50 }
 0x201   : > { %7751 = vmatpush.bf16.msrb.mxu2 %v9986_v47 }
 0x202   : > { %v1773_v4 = vmax.f32 %v1389_v57, 0.0  ;;  %v2969_v5 = vmax.f32 %v2585_v58, 0.0 }
 0x203   : > { %v876_v51 = vpop.f32.mrf.mxu0  ;;  %v2045_v52 = vpop.f32.mrf.mxu1 }
 0x204   : > { %v1129_v54 = vpack.c.bf16 %v876_v51, %v876_v51  ;;  %v2325_v56 = vpack.c.bf16 %v2045_v52, %v2045_v52 }
 0x205   : > { %7752 = vmatpush.bf16.msrb.mxu2 %v9644_v18 }
 0x206   : > { %v1261_v59 = vunpack.c.l.bf16 %v1129_v54  ;;  %v2457_v60 = vunpack.c.l.bf16 %v2325_v56 }
 0x208   : > { %v1390_v0 = vadd.f32 %v9934_v43, %v1261_v59  ;;  %v2586_v2 = vadd.f32 %v9991_v53, %v2457_v60 }
 0x209   : > { %7753 = vmatpush.bf16.msrb.mxu2 %v9643_v27 }
 0x20a   : > { %v1774_v6 = vmax.f32 %v1390_v0, 0.0  ;;  %v2970_v7 = vmax.f32 %v2586_v2, 0.0 }
 0x20b   : > { %v879_v8 = vpop.f32.mrf.mxu0  ;;  %v2048_v12 = vpop.f32.mrf.mxu1 }
 0x20c   : > { %v10116_v13 = vpack.c.bf16 %v2970_v7, %v2969_v5  ;;  %v1879_v15 = vpack.c.bf16 %v1774_v6, %v1773_v4  ;;  %v1130_v16 = vpack.c.bf16 %v879_v8, %v879_v8  ;;  %v2326_v17 = vpack.c.bf16 %v2048_v12, %v2048_v12  ;;  %v432_v4 = vld [vmem:[%s9878_s28 + $0x210] sm:$0xff]  ;;  %v433_v5 = vld [vmem:[%s9878_s28 + $0x218] sm:$0xff] }
 0x20d   : > { %7754 = vmatpush.bf16.msrb.mxu2 %v9642_v38  ;;  %v527_v8 = vpack.c.bf16 %v433_v5, %v432_v4  ;;  %v435_v38 = vld [vmem:[%s9878_s28 + $0x228] sm:$0xff] }
 0x20e   : > { %9341 = vmatmul.msk.bf16.gmra.mxu0 %vm558_vm1, %v525_v3  ;;  %2087 = vmatmul.bf16.gmra.mxu1 %v1879_v15  ;;  %v1262_v20 = vunpack.c.l.bf16 %v1130_v16  ;;  %v2458_v21 = vunpack.c.l.bf16 %v2326_v17 }
 0x210   : > { %v1391_v28 = vadd.f32 %v9934_v43, %v1262_v20  ;;  %v2587_v29 = vadd.f32 %v9991_v53, %v2458_v21 }
 0x212   : > { %v1775_v39 = vmax.f32 %v1391_v28, 0.0  ;;  %v2971_v44 = vmax.f32 %v2587_v29, 0.0 }
 0x213   : > { %v881_v22 = vpop.f32.mrf.mxu0  ;;  %v2050_v23 = vpop.f32.mrf.mxu1 }
 0x214   : > { %v1131_v24 = vpack.c.bf16 %v881_v22, %v881_v22  ;;  %v2327_v25 = vpack.c.bf16 %v2050_v23, %v2050_v23 }
 0x216   : > { %v1263_v30 = vunpack.c.l.bf16 %v1131_v24  ;;  %v2459_v31 = vunpack.c.l.bf16 %v2327_v25 }
 0x218   : > { %v1392_v34 = vadd.f32 %v9934_v43, %v1263_v30  ;;  %v2588_v36 = vadd.f32 %v9991_v53, %v2459_v31 }
 0x21a   : > { %v1776_v45 = vmax.f32 %v1392_v34, 0.0  ;;  %v2972_v46 = vmax.f32 %v2588_v36, 0.0 }
 0x21b   : > { %v884_v49 = vpop.f32.mrf.mxu0  ;;  %v2053_v50 = vpop.f32.mrf.mxu1 }
 0x21c   : > { %v10134_v51 = vpack.c.bf16 %v2972_v46, %v2971_v44  ;;  %v1880_v52 = vpack.c.bf16 %v1776_v45, %v1775_v39  ;;  %v1132_v54 = vpack.c.bf16 %v884_v49, %v884_v49  ;;  %v2328_v56 = vpack.c.bf16 %v2053_v50, %v2053_v50 }
 0x21e   : > { %9342 = vmatmul.msk.bf16.gmra.mxu0 %vm558_vm1, %v526_v37  ;;  %2092 = vmatmul.bf16.gmra.mxu1 %v1880_v52  ;;  %v1264_v57 = vunpack.c.l.bf16 %v1132_v54  ;;  %v2460_v58 = vunpack.c.l.bf16 %v2328_v56  ;;  %v434_v37 = vld [vmem:[%s9878_s28 + $0x220] sm:$0xff] }
 0x21f   : > { %v528_v45 = vpack.c.bf16 %v435_v38, %v434_v37 }
 0x220   : > { %v1393_v0 = vadd.f32 %v9934_v43, %v1264_v57  ;;  %v2589_v2 = vadd.f32 %v9991_v53, %v2460_v58 }
 0x222   : > { %v1777_v12 = vmax.f32 %v1393_v0, 0.0  ;;  %v2973_v15 = vmax.f32 %v2589_v2, 0.0 }
 0x223   : > { %v886_v59 = vpop.f32.mrf.mxu0  ;;  %v2055_v60 = vpop.f32.mrf.mxu1 }
 0x224   : > { %v1133_v61 = vpack.c.bf16 %v886_v59, %v886_v59  ;;  %v2329_v62 = vpack.c.bf16 %v2055_v60, %v2055_v60 }
 0x226   : > { %v1265_v47 = vunpack.c.l.bf16 %v1133_v61  ;;  %v2461_v3 = vunpack.c.l.bf16 %v2329_v62 }
 0x228   : > { %v1394_v6 = vadd.f32 %v9934_v43, %v1265_v47  ;;  %v2590_v7 = vadd.f32 %v9991_v53, %v2461_v3 }
 0x22a   : > { %v1778_v16 = vmax.f32 %v1394_v6, 0.0  ;;  %v2974_v17 = vmax.f32 %v2590_v7, 0.0 }
 0x22b   : > { %v889_v18 = vpop.f32.mrf.mxu0  ;;  %v2058_v20 = vpop.f32.mrf.mxu1 }
 0x22c   : > { %v10144_v21 = vpack.c.bf16 %v2974_v17, %v2973_v15  ;;  %v1881_v22 = vpack.c.bf16 %v1778_v16, %v1777_v12  ;;  %v1134_v23 = vpack.c.bf16 %v889_v18, %v889_v18  ;;  %v2330_v24 = vpack.c.bf16 %v2058_v20, %v2058_v20  ;;  %v437_v12 = vld [vmem:[%s9878_s28 + $0x238] sm:$0xff] }
 0x22e   : > { %9343 = vmatmul.msk.bf16.gmra.mxu0 %vm558_vm1, %v527_v8  ;;  %2097 = vmatmul.bf16.gmra.mxu1 %v1881_v22  ;;  %v1266_v25 = vunpack.c.l.bf16 %v1134_v23  ;;  %v2462_v27 = vunpack.c.l.bf16 %v2330_v24  ;;  %v436_v8 = vld [vmem:[%s9878_s28 + $0x230] sm:$0xff] }
 0x22f   : > { %v529_v17 = vpack.c.bf16 %v437_v12, %v436_v8 }
 0x230   : > { %v1395_v32 = vadd.f32 %v9934_v43, %v1266_v25  ;;  %v2591_v33 = vadd.f32 %v9991_v53, %v2462_v27 }
 0x232   : > { %v1779_v46 = vmax.f32 %v1395_v32, 0.0  ;;  %v2975_v49 = vmax.f32 %v2591_v33, 0.0 }
 0x233   : > { %v891_v28 = vpop.f32.mrf.mxu0  ;;  %v2060_v29 = vpop.f32.mrf.mxu1 }
 0x234   : > { %v1135_v30 = vpack.c.bf16 %v891_v28, %v891_v28  ;;  %v2331_v31 = vpack.c.bf16 %v2060_v29, %v2060_v29 }
 0x236   : > { %v1267_v34 = vunpack.c.l.bf16 %v1135_v30  ;;  %v2463_v36 = vunpack.c.l.bf16 %v2331_v31 }
 0x238   : > { %v1396_v39 = vadd.f32 %v9934_v43, %v1267_v34  ;;  %v2592_v44 = vadd.f32 %v9991_v53, %v2463_v36 }
 0x23a   : > { %v1780_v50 = vmax.f32 %v1396_v39, 0.0  ;;  %v2976_v52 = vmax.f32 %v2592_v44, 0.0 }
 0x23b   : > { %v894_v54 = vpop.f32.mrf.mxu0  ;;  %v2063_v56 = vpop.f32.mrf.mxu1 }
 0x23c   : > { %v1882_v57 = vpack.c.bf16 %v1780_v50, %v1779_v46  ;;  %v3087_v58 = vpack.c.bf16 %v2976_v52, %v2975_v49  ;;  %v1136_v59 = vpack.c.bf16 %v894_v54, %v894_v54  ;;  %v2332_v60 = vpack.c.bf16 %v2063_v56, %v2063_v56  ;;  %v438_v46 = vld [vmem:[%s9878_s28 + $0x240] sm:$0xff]  ;;  %v439_v49 = vld [vmem:[%s9878_s28 + $0x248] sm:$0xff] }
 0x23d   : > { %v530_v54 = vpack.c.bf16 %v439_v49, %v438_v46 }
 0x23e   : > { %9344 = vmatmul.msk.bf16.gmra.mxu0 %vm558_vm1, %v528_v45  ;;  %2102 = vmatmul.bf16.gmra.mxu1 %v1882_v57  ;;  %v1268_v61 = vunpack.c.l.bf16 %v1136_v59  ;;  %v2464_v62 = vunpack.c.l.bf16 %v2332_v60 }
 0x23f   : > { %9438 = vmatmul.msk.bf16.vlgmr.msra.gmra.mxu2 %vm3159_vm2, %v3087_v58 }
 0x240   : > { %v1397_v4 = vadd.f32 %v9934_v43, %v1268_v61  ;;  %v2593_v5 = vadd.f32 %v9991_v53, %v2464_v62 }
 0x242   : > { %v1781_v18 = vmax.f32 %v1397_v4, 0.0  ;;  %v2977_v20 = vmax.f32 %v2593_v5, 0.0 }
 0x243   : > { %v896_v0 = vpop.f32.mrf.mxu0  ;;  %v2065_v2 = vpop.f32.mrf.mxu1 }
 0x244   : > { %v1137_v47 = vpack.c.bf16 %v896_v0, %v896_v0  ;;  %v2333_v3 = vpack.c.bf16 %v2065_v2, %v2065_v2 }
 0x246   : > { %v1269_v6 = vunpack.c.l.bf16 %v1137_v47  ;;  %v2465_v7 = vunpack.c.l.bf16 %v2333_v3 }
 0x248   : > { %v1398_v15 = vadd.f32 %v9934_v43, %v1269_v6  ;;  %v2594_v16 = vadd.f32 %v9991_v53, %v2465_v7 }
 0x24a   : > { %v1782_v22 = vmax.f32 %v1398_v15, 0.0  ;;  %v2978_v23 = vmax.f32 %v2594_v16, 0.0 }
 0x24b   : > { %v899_v24 = vpop.f32.mrf.mxu0  ;;  %v2068_v25 = vpop.f32.mrf.mxu1 }
 0x24c   : > { %v1883_v27 = vpack.c.bf16 %v1782_v22, %v1781_v18  ;;  %v3088_v28 = vpack.c.bf16 %v2978_v23, %v2977_v20  ;;  %v1138_v29 = vpack.c.bf16 %v899_v24, %v899_v24  ;;  %v2334_v30 = vpack.c.bf16 %v2068_v25, %v2068_v25  ;;  %v440_v18 = vld [vmem:[%s9878_s28 + $0x250] sm:$0xff]  ;;  %v441_v20 = vld [vmem:[%s9878_s28 + $0x258] sm:$0xff] }
 0x24d   : > { %v531_v24 = vpack.c.bf16 %v441_v20, %v440_v18 }
 0x24e   : > { %9345 = vmatmul.msk.bf16.gmra.mxu0 %vm558_vm1, %v529_v17  ;;  %2107 = vmatmul.bf16.gmra.mxu1 %v1883_v27  ;;  %v1270_v31 = vunpack.c.l.bf16 %v1138_v29  ;;  %v2466_v32 = vunpack.c.l.bf16 %v2334_v30 }
 0x24f   : > { %9439 = vmatmul.msk.bf16.gmra.mxu2 %vm3159_vm2, %v3088_v28 }
 0x250   : > { %v1399_v38 = vadd.f32 %v9934_v43, %v1270_v31  ;;  %v2595_v39 = vadd.f32 %v9991_v53, %v2466_v32 }
 0x252   : > { %v1783_v56 = vmax.f32 %v1399_v38, 0.0  ;;  %v2979_v57 = vmax.f32 %v2595_v39, 0.0 }
 0x253   : > { %v901_v33 = vpop.f32.mrf.mxu0  ;;  %v2070_v34 = vpop.f32.mrf.mxu1 }
 0x254   : > { %v1139_v36 = vpack.c.bf16 %v901_v33, %v901_v33  ;;  %v2335_v37 = vpack.c.bf16 %v2070_v34, %v2070_v34 }
 0x256   : > { %v1271_v44 = vunpack.c.l.bf16 %v1139_v36  ;;  %v2467_v45 = vunpack.c.l.bf16 %v2335_v37 }
 0x258   : > { %v1400_v50 = vadd.f32 %v9934_v43, %v1271_v44  ;;  %v2596_v52 = vadd.f32 %v9991_v53, %v2467_v45 }
 0x25a   : > { %v1784_v58 = vmax.f32 %v1400_v50, 0.0  ;;  %v2980_v59 = vmax.f32 %v2596_v52, 0.0 }
 0x25b   : > { %v904_v60 = vpop.f32.mrf.mxu0  ;;  %v2073_v61 = vpop.f32.mrf.mxu1 }
 0x25c   : > { %v1884_v62 = vpack.c.bf16 %v1784_v58, %v1783_v56  ;;  %v3089_v0 = vpack.c.bf16 %v2980_v59, %v2979_v57  ;;  %v1140_v2 = vpack.c.bf16 %v904_v60, %v904_v60  ;;  %v2336_v47 = vpack.c.bf16 %v2073_v61, %v2073_v61  ;;  %v442_v56 = vld [vmem:[%s9878_s28 + $0x260] sm:$0xff]  ;;  %v443_v57 = vld [vmem:[%s9878_s28 + $0x268] sm:$0xff] }
 0x25d   : > { %v532_v60 = vpack.c.bf16 %v443_v57, %v442_v56 }
 0x25e   : > { %9346 = vmatmul.msk.bf16.gmra.mxu0 %vm558_vm1, %v530_v54  ;;  %2112 = vmatmul.bf16.gmra.mxu1 %v1884_v62  ;;  %v1272_v3 = vunpack.c.l.bf16 %v1140_v2  ;;  %v2468_v4 = vunpack.c.l.bf16 %v2336_v47 }
 0x25f   : > { %9440 = vmatmul.msk.bf16.gmra.mxu2 %vm3159_vm2, %v3089_v0 }
 0x260   : > { %v1401_v12 = vadd.f32 %v9934_v43, %v1272_v3  ;;  %v2597_v15 = vadd.f32 %v9991_v53, %v2468_v4 }
 0x262   : > { %v1785_v25 = vmax.f32 %v1401_v12, 0.0  ;;  %v2981_v27 = vmax.f32 %v2597_v15, 0.0 }
 0x263   : > { %v906_v5 = vpop.f32.mrf.mxu0  ;;  %v2075_v6 = vpop.f32.mrf.mxu1 }
 0x264   : > { %v1141_v7 = vpack.c.bf16 %v906_v5, %v906_v5  ;;  %v2337_v8 = vpack.c.bf16 %v2075_v6, %v2075_v6 }
 0x266   : > { %v1273_v16 = vunpack.c.l.bf16 %v1141_v7  ;;  %v2469_v17 = vunpack.c.l.bf16 %v2337_v8 }
 0x268   : > { %v1402_v22 = vadd.f32 %v9934_v43, %v1273_v16  ;;  %v2598_v23 = vadd.f32 %v9991_v53, %v2469_v17 }
 0x26a   : > { %v1786_v28 = vmax.f32 %v1402_v22, 0.0  ;;  %v2982_v29 = vmax.f32 %v2598_v23, 0.0 }
 0x26b   : > { %v909_v30 = vpop.f32.mrf.mxu0  ;;  %v2078_v31 = vpop.f32.mrf.mxu1 }
 0x26c   : > { %v1885_v32 = vpack.c.bf16 %v1786_v28, %v1785_v25  ;;  %v3090_v33 = vpack.c.bf16 %v2982_v29, %v2981_v27  ;;  %v1142_v34 = vpack.c.bf16 %v909_v30, %v909_v30  ;;  %v2338_v36 = vpack.c.bf16 %v2078_v31, %v2078_v31  ;;  %v444_v25 = vld [vmem:[%s9878_s28 + $0x270] sm:$0xff]  ;;  %v445_v27 = vld [vmem:[%s9878_s28 + $0x278] sm:$0xff] }
 0x26d   : > { %v533_v30 = vpack.c.bf16 %v445_v27, %v444_v25 }
 0x26e   : > { %9347 = vmatmul.msk.bf16.gmra.mxu0 %vm558_vm1, %v531_v24  ;;  %2117 = vmatmul.bf16.gmra.mxu1 %v1885_v32  ;;  %v1274_v37 = vunpack.c.l.bf16 %v1142_v34  ;;  %v2470_v38 = vunpack.c.l.bf16 %v2338_v36 }
 0x26f   : > { %9441 = vmatmul.msk.bf16.gmra.mxu2 %vm3159_vm2, %v3090_v33 }
 0x270   : > { %v1403_v49 = vadd.f32 %v9934_v43, %v1274_v37  ;;  %v2599_v50 = vadd.f32 %v9991_v53, %v2470_v38 }
 0x272   : > { %v1787_v61 = vmax.f32 %v1403_v49, 0.0  ;;  %v2983_v62 = vmax.f32 %v2599_v50, 0.0 }
 0x273   : > { %v911_v39 = vpop.f32.mrf.mxu0  ;;  %v2080_v44 = vpop.f32.mrf.mxu1 }
 0x274   : > { %v1143_v45 = vpack.c.bf16 %v911_v39, %v911_v39  ;;  %v2339_v46 = vpack.c.bf16 %v2080_v44, %v2080_v44 }
 0x276   : > { %v1275_v52 = vunpack.c.l.bf16 %v1143_v45  ;;  %v2471_v54 = vunpack.c.l.bf16 %v2339_v46 }
 0x278   : > { %v1404_v58 = vadd.f32 %v9934_v43, %v1275_v52  ;;  %v2600_v59 = vadd.f32 %v9991_v53, %v2471_v54 }
 0x27a   : > { %v1788_v0 = vmax.f32 %v1404_v58, 0.0  ;;  %v2984_v2 = vmax.f32 %v2600_v59, 0.0 }
 0x27b   : > { %v914_v47 = vpop.f32.mrf.mxu0  ;;  %v2083_v3 = vpop.f32.mrf.mxu1 }
 0x27c   : > { %v1886_v4 = vpack.c.bf16 %v1788_v0, %v1787_v61  ;;  %v3091_v5 = vpack.c.bf16 %v2984_v2, %v2983_v62  ;;  %v1144_v6 = vpack.c.bf16 %v914_v47, %v914_v47  ;;  %v2340_v7 = vpack.c.bf16 %v2083_v3, %v2083_v3  ;;  %v446_v61 = vld [vmem:[%s9878_s28 + $0x280] sm:$0xff]  ;;  %v447_v62 = vld [vmem:[%s9878_s28 + $0x288] sm:$0xff] }
 0x27d   : > { %v534_v47 = vpack.c.bf16 %v447_v62, %v446_v61 }
 0x27e   : > { %9348 = vmatmul.msk.bf16.gmra.mxu0 %vm558_vm1, %v532_v60  ;;  %2122 = vmatmul.bf16.gmra.mxu1 %v1886_v4  ;;  %v1276_v8 = vunpack.c.l.bf16 %v1144_v6  ;;  %v2472_v12 = vunpack.c.l.bf16 %v2340_v7 }
 0x27f   : > { %9442 = vmatmul.msk.bf16.gmra.mxu2 %vm3159_vm2, %v3091_v5 }
 0x280   : > { %v1405_v20 = vadd.f32 %v9934_v43, %v1276_v8  ;;  %v2601_v22 = vadd.f32 %v9991_v53, %v2472_v12 }
 0x282   : > { %v1789_v31 = vmax.f32 %v1405_v20, 0.0  ;;  %v2985_v32 = vmax.f32 %v2601_v22, 0.0 }
 0x283   : > { %v916_v15 = vpop.f32.mrf.mxu0  ;;  %v2085_v16 = vpop.f32.mrf.mxu1 }
 0x284   : > { %v1145_v17 = vpack.c.bf16 %v916_v15, %v916_v15  ;;  %v2341_v18 = vpack.c.bf16 %v2085_v16, %v2085_v16 }
 0x286   : > { %v1277_v23 = vunpack.c.l.bf16 %v1145_v17  ;;  %v2473_v24 = vunpack.c.l.bf16 %v2341_v18 }
 0x288   : > { %v1406_v28 = vadd.f32 %v9934_v43, %v1277_v23  ;;  %v2602_v29 = vadd.f32 %v9991_v53, %v2473_v24 }
 0x28a   : > { %v1790_v33 = vmax.f32 %v1406_v28, 0.0  ;;  %v2986_v34 = vmax.f32 %v2602_v29, 0.0 }
 0x28b   : > { %v919_v36 = vpop.f32.mrf.mxu0  ;;  %v2088_v37 = vpop.f32.mrf.mxu1 }
 0x28c   : > { %v1887_v38 = vpack.c.bf16 %v1790_v33, %v1789_v31  ;;  %v3092_v39 = vpack.c.bf16 %v2986_v34, %v2985_v32  ;;  %v1146_v44 = vpack.c.bf16 %v919_v36, %v919_v36  ;;  %v2342_v45 = vpack.c.bf16 %v2088_v37, %v2088_v37  ;;  %v448_v31 = vld [vmem:[%s9878_s28 + $0x290] sm:$0xff]  ;;  %v449_v32 = vld [vmem:[%s9878_s28 + $0x298] sm:$0xff] }
 0x28d   : > { %v535_v36 = vpack.c.bf16 %v449_v32, %v448_v31 }
 0x28e   : > { %9349 = vmatmul.msk.bf16.gmra.mxu0 %vm558_vm1, %v533_v30  ;;  %2127 = vmatmul.bf16.gmra.mxu1 %v1887_v38  ;;  %v1278_v46 = vunpack.c.l.bf16 %v1146_v44  ;;  %v2474_v49 = vunpack.c.l.bf16 %v2342_v45 }
 0x28f   : > { %9443 = vmatmul.msk.bf16.gmra.mxu2 %vm3159_vm2, %v3092_v39 }
 0x290   : > { %v1407_v57 = vadd.f32 %v9934_v43, %v1278_v46  ;;  %v2603_v58 = vadd.f32 %v9991_v53, %v2474_v49 }
 0x292   : > { %v1791_v3 = vmax.f32 %v1407_v57, 0.0  ;;  %v2987_v4 = vmax.f32 %v2603_v58, 0.0 }
 0x293   : > { %v921_v50 = vpop.f32.mrf.mxu0  ;;  %v2090_v52 = vpop.f32.mrf.mxu1 }
 0x294   : > { %v1147_v54 = vpack.c.bf16 %v921_v50, %v921_v50  ;;  %v2343_v56 = vpack.c.bf16 %v2090_v52, %v2090_v52 }
 0x296   : > { %v1279_v59 = vunpack.c.l.bf16 %v1147_v54  ;;  %v2475_v60 = vunpack.c.l.bf16 %v2343_v56 }
 0x298   : > { %v1408_v0 = vadd.f32 %v9934_v43, %v1279_v59  ;;  %v2604_v2 = vadd.f32 %v9991_v53, %v2475_v60 }
 0x29a   : > { %v1792_v5 = vmax.f32 %v1408_v0, 0.0  ;;  %v2988_v6 = vmax.f32 %v2604_v2, 0.0 }
 0x29b   : > { %v924_v7 = vpop.f32.mrf.mxu0  ;;  %v2093_v8 = vpop.f32.mrf.mxu1 }
 0x29c   : > { %v1888_v12 = vpack.c.bf16 %v1792_v5, %v1791_v3  ;;  %v3093_v15 = vpack.c.bf16 %v2988_v6, %v2987_v4  ;;  %v1148_v16 = vpack.c.bf16 %v924_v7, %v924_v7  ;;  %v2344_v17 = vpack.c.bf16 %v2093_v8, %v2093_v8  ;;  %v450_v3 = vld [vmem:[%s9878_s28 + $0x2a0] sm:$0xff]  ;;  %v451_v4 = vld [vmem:[%s9878_s28 + $0x2a8] sm:$0xff] }
 0x29d   : > { %v536_v7 = vpack.c.bf16 %v451_v4, %v450_v3 }
 0x29e   : > { %9350 = vmatmul.msk.bf16.gmra.mxu0 %vm558_vm1, %v534_v47  ;;  %2132 = vmatmul.bf16.gmra.mxu1 %v1888_v12  ;;  %v1280_v18 = vunpack.c.l.bf16 %v1148_v16  ;;  %v2476_v20 = vunpack.c.l.bf16 %v2344_v17 }
 0x29f   : > { %9444 = vmatmul.msk.bf16.gmra.mxu2 %vm3159_vm2, %v3093_v15 }
 0x2a0   : > { %v1409_v27 = vadd.f32 %v9934_v43, %v1280_v18  ;;  %v2605_v28 = vadd.f32 %v9991_v53, %v2476_v20 }
 0x2a2   : > { %v1793_v37 = vmax.f32 %v1409_v27, 0.0  ;;  %v2989_v38 = vmax.f32 %v2605_v28, 0.0 }
 0x2a3   : > { %v926_v22 = vpop.f32.mrf.mxu0  ;;  %v2095_v23 = vpop.f32.mrf.mxu1 }
 0x2a4   : > { %v1149_v24 = vpack.c.bf16 %v926_v22, %v926_v22  ;;  %v2345_v25 = vpack.c.bf16 %v2095_v23, %v2095_v23 }
 0x2a6   : > { %v1281_v29 = vunpack.c.l.bf16 %v1149_v24  ;;  %v2477_v30 = vunpack.c.l.bf16 %v2345_v25  ;;  %v364_v25 = vld [vmem:[%s12016_s6] sm:$0x1] }
 0x2a7   : > { %v3810_v27 = vpack.i.b16 %v364_v25, %v364_v25 }
 0x2a8   : > { %v1410_v33 = vadd.f32 %v9934_v43, %v1281_v29  ;;  %v2606_v34 = vadd.f32 %v9991_v53, %v2477_v30 }
 0x2aa   : > { %v1794_v39 = vmax.f32 %v1410_v33, 0.0  ;;  %v2990_v44 = vmax.f32 %v2606_v34, 0.0 }
 0x2ab   : > { %v929_v45 = vpop.f32.mrf.mxu0  ;;  %v2098_v46 = vpop.f32.mrf.mxu1 }
 0x2ac   : > { %v1889_v49 = vpack.c.bf16 %v1794_v39, %v1793_v37  ;;  %v3094_v50 = vpack.c.bf16 %v2990_v44, %v2989_v38  ;;  %v1150_v52 = vpack.c.bf16 %v929_v45, %v929_v45  ;;  %v2346_v54 = vpack.c.bf16 %v2098_v46, %v2098_v46  ;;  %v452_v46 = vld [vmem:[%s9878_s28 + $0x2b0] sm:$0xff] }
 0x2ad   : > { %v3812_v37 = vperm.slane %v3810_v27, 0 }
 0x2ae   : > { %9351 = vmatmul.msk.bf16.gmra.mxu0 %vm558_vm1, %v535_v36  ;;  %2137 = vmatmul.bf16.gmra.mxu1 %v1889_v49  ;;  %v1282_v56 = vunpack.c.l.bf16 %v1150_v52  ;;  %v2478_v57 = vunpack.c.l.bf16 %v2346_v54  ;;  %v453_v49 = vld [vmem:[%s9878_s28 + $0x2b8] sm:$0xff] }
 0x2af   : > { %9445 = vmatmul.msk.bf16.gmra.mxu2 %vm3159_vm2, %v3094_v50 }
 0x2b0   : > { %v1411_v62 = vadd.f32 %v9934_v43, %v1282_v56  ;;  %v2607_v0 = vadd.f32 %v9991_v53, %v2478_v57  ;;  %v10228_v56 = vunpack.c.l.bf16 %v3812_v37  ;;  %v537_v57 = vpack.c.bf16 %v453_v49, %v452_v46 }
 0x2b2   : > { %v1795_v8 = vmax.f32 %v1411_v62, 0.0  ;;  %v2991_v12 = vmax.f32 %v2607_v0, 0.0 }
 0x2b3   : > { %v931_v58 = vpop.f32.mrf.mxu0  ;;  %v2100_v59 = vpop.f32.mrf.mxu1 }
 0x2b4   : > { %v1151_v60 = vpack.c.bf16 %v931_v58, %v931_v58  ;;  %v2347_v61 = vpack.c.bf16 %v2100_v59, %v2100_v59 }
 0x2b6   : > { %v1283_v2 = vunpack.c.l.bf16 %v1151_v60  ;;  %v2479_v47 = vunpack.c.l.bf16 %v2347_v61 }
 0x2b8   : > { %v1412_v5 = vadd.f32 %v9934_v43, %v1283_v2  ;;  %v2608_v6 = vadd.f32 %v9991_v53, %v2479_v47 }
 0x2ba   : > { %v1796_v15 = vmax.f32 %v1412_v5, 0.0  ;;  %v2992_v16 = vmax.f32 %v2608_v6, 0.0 }
 0x2bb   : > { %v934_v17 = vpop.f32.mrf.mxu0  ;;  %v2103_v18 = vpop.f32.mrf.mxu1 }
 0x2bc   : > { %v1890_v20 = vpack.c.bf16 %v1796_v15, %v1795_v8  ;;  %v3095_v22 = vpack.c.bf16 %v2992_v16, %v2991_v12  ;;  %v1152_v23 = vpack.c.bf16 %v934_v17, %v934_v17  ;;  %v2348_v24 = vpack.c.bf16 %v2103_v18, %v2103_v18 }
 0x2be   : > { %9352 = vmatmul.msk.bf16.gmra.mxu0 %vm558_vm1, %v536_v7  ;;  %2142 = vmatmul.bf16.gmra.mxu1 %v1890_v20  ;;  %v1284_v28 = vunpack.c.l.bf16 %v1152_v23  ;;  %v2480_v29 = vunpack.c.l.bf16 %v2348_v24 }
 0x2bf   : > { %9446 = vmatmul.msk.bf16.gmra.mxu2 %vm3159_vm2, %v3095_v22 }
 0x2c0   : > { %v1413_v38 = vadd.f32 %v9934_v43, %v1284_v28  ;;  %v2609_v39 = vadd.f32 %v9991_v53, %v2480_v29 }
 0x2c2   : > { %v3441_v30 = vpop.f32.mrf.mxu2  ;;  %v1797_v58 = vmax.f32 %v1413_v38, 0.0  ;;  %v2993_v59 = vmax.f32 %v2609_v39, 0.0 }
 0x2c3   : > { %v936_v31 = vpop.f32.mrf.mxu0  ;;  %v2105_v32 = vpop.f32.mrf.mxu1  ;;  %v3713_v36 = vpack.c.bf16 %v3441_v30, %v3441_v30 }
 0x2c4   : > { %v1153_v33 = vpack.c.bf16 %v936_v31, %v936_v31  ;;  %v2349_v34 = vpack.c.bf16 %v2105_v32, %v2105_v32 }
 0x2c5   : > { %v3845_v54 = vunpack.c.l.bf16 %v3713_v36 }
 0x2c6   : > { %v1285_v44 = vunpack.c.l.bf16 %v1153_v33  ;;  %v2481_v45 = vunpack.c.l.bf16 %v2349_v34  ;;  %v454_v33 = vld [vmem:[%s9878_s28 + $0x2c0] sm:$0xff]  ;;  %v455_v34 = vld [vmem:[%s9878_s28 + $0x2c8] sm:$0xff] }
 0x2c7   : > { %v3974_v5 = vadd.f32 %v10228_v56, %v3845_v54  ;;  %v538_v39 = vpack.c.bf16 %v455_v34, %v454_v33 }
 0x2c8   : > { %v1414_v50 = vadd.f32 %v9934_v43, %v1285_v44  ;;  %v2610_v52 = vadd.f32 %v9991_v53, %v2481_v45 }
 0x2c9   : > { %v4358_v15 = vmax.f32 %v3974_v5, 0.0 }
 0x2ca   : > { %v1798_v60 = vmax.f32 %v1414_v50, 0.0  ;;  %v2994_v61 = vmax.f32 %v2610_v52, 0.0  ;;  %v3443_v62 = vpop.f32.mrf.mxu2 }
 0x2cb   : > { %v3714_v0 = vpack.c.bf16 %v3443_v62, %v3443_v62  ;;  %v939_v2 = vpop.f32.mrf.mxu0  ;;  %v2108_v47 = vpop.f32.mrf.mxu1 }
 0x2cc   : > { %v1891_v3 = vpack.c.bf16 %v1798_v60, %v1797_v58  ;;  %v3096_v4 = vpack.c.bf16 %v2994_v61, %v2993_v59  ;;  %v1154_v7 = vpack.c.bf16 %v939_v2, %v939_v2  ;;  %v2350_v8 = vpack.c.bf16 %v2108_v47, %v2108_v47 }
 0x2cd   : > { %v3846_v6 = vunpack.c.l.bf16 %v3714_v0 }
 0x2ce   : > { %9353 = vmatmul.msk.bf16.gmra.mxu0 %vm558_vm1, %v537_v57  ;;  %2147 = vmatmul.bf16.gmra.mxu1 %v1891_v3  ;;  %v1286_v17 = vunpack.c.l.bf16 %v1154_v7  ;;  %v2482_v18 = vunpack.c.l.bf16 %v2350_v8 }
 0x2cf   : > { %v3975_v12 = vadd.f32 %v10228_v56, %v3846_v6  ;;  %9447 = vmatmul.msk.bf16.gmra.mxu2 %vm3159_vm2, %v3096_v4 }
 0x2d0   : > { %v1415_v29 = vadd.f32 %v9934_v43, %v1286_v17  ;;  %v2611_v30 = vadd.f32 %v9991_v53, %v2482_v18 }
 0x2d1   : > { %v4359_v16 = vmax.f32 %v3975_v12, 0.0 }
 0x2d2   : > { %v3446_v20 = vpop.f32.mrf.mxu2  ;;  %v1799_v44 = vmax.f32 %v1415_v29, 0.0  ;;  %v2995_v45 = vmax.f32 %v2611_v30, 0.0 }
 0x2d3   : > { %v941_v22 = vpop.f32.mrf.mxu0  ;;  %v2110_v23 = vpop.f32.mrf.mxu1  ;;  %v10234_v24 = vpack.c.bf16 %v4359_v16, %v4358_v15  ;;  %v3715_v28 = vpack.c.bf16 %v3446_v20, %v3446_v20 }
 0x2d4   : > { %v1155_v25 = vpack.c.bf16 %v941_v22, %v941_v22  ;;  %v2351_v27 = vpack.c.bf16 %v2110_v23, %v2110_v23 }
 0x2d5   : > { %v3847_v38 = vunpack.c.l.bf16 %v3715_v28 }
 0x2d6   : > { %v1287_v31 = vunpack.c.l.bf16 %v1155_v25  ;;  %v2483_v32 = vunpack.c.l.bf16 %v2351_v27  ;;  %v456_v25 = vld [vmem:[%s9878_s28 + $0x2d0] sm:$0xff]  ;;  %v457_v27 = vld [vmem:[%s9878_s28 + $0x2d8] sm:$0xff] }
 0x2d7   : > { %v3976_v60 = vadd.f32 %v10228_v56, %v3847_v38 }
 0x2d8   : > { %v1416_v36 = vadd.f32 %v9934_v43, %v1287_v31  ;;  %v2612_v37 = vadd.f32 %v9991_v53, %v2483_v32  ;;  %v539_v31 = vpack.c.bf16 %v457_v27, %v456_v25 }
 0x2d9   : > { %v4360_v47 = vmax.f32 %v3976_v60, 0.0 }
 0x2da   : > { %v1800_v46 = vmax.f32 %v1416_v36, 0.0  ;;  %v2996_v49 = vmax.f32 %v2612_v37, 0.0  ;;  %v3448_v50 = vpop.f32.mrf.mxu2 }
 0x2db   : > { %v3716_v52 = vpack.c.bf16 %v3448_v50, %v3448_v50  ;;  %v944_v54 = vpop.f32.mrf.mxu0  ;;  %v2113_v57 = vpop.f32.mrf.mxu1 }
 0x2dc   : > { %v1892_v58 = vpack.c.bf16 %v1800_v46, %v1799_v44  ;;  %v3097_v59 = vpack.c.bf16 %v2996_v49, %v2995_v45  ;;  %v1156_v62 = vpack.c.bf16 %v944_v54, %v944_v54  ;;  %v2352_v0 = vpack.c.bf16 %v2113_v57, %v2113_v57  ;;  %v462_v57 = vld [vmem:[%s9878_s28 + $0x300] sm:$0xff] }
 0x2dd   : > { %v3848_v61 = vunpack.c.l.bf16 %v3716_v52 }
 0x2de   : > { %9354 = vmatmul.msk.bf16.gmra.mxu0 %vm558_vm1, %v538_v39  ;;  %2152 = vmatmul.bf16.gmra.mxu1 %v1892_v58  ;;  %v1288_v4 = vunpack.c.l.bf16 %v1156_v62  ;;  %v2484_v5 = vunpack.c.l.bf16 %v2352_v0  ;;  %v463_v58 = vld [vmem:[%s9878_s28 + $0x308] sm:$0xff] }
 0x2df   : > { %v3977_v2 = vadd.f32 %v10228_v56, %v3848_v61  ;;  %9448 = vmatmul.msk.bf16.gmra.mxu2 %vm3159_vm2, %v3097_v59  ;;  %v542_v60 = vpack.c.bf16 %v463_v58, %v462_v57 }
 0x2e0   : > { %v1417_v18 = vadd.f32 %v9934_v43, %v1288_v4  ;;  %v2613_v20 = vadd.f32 %v9991_v53, %v2484_v5 }
 0x2e1   : > { %v4361_v3 = vmax.f32 %v3977_v2, 0.0  ;;  %9358 = vmatmul.msk.bf16.vlgmr.msra.gmra.mxu3 %vm558_vm1, %v542_v60 }
 0x2e2   : > { %v3451_v6 = vpop.f32.mrf.mxu2  ;;  %v1801_v32 = vmax.f32 %v1417_v18, 0.0  ;;  %v2997_v33 = vmax.f32 %v2613_v20, 0.0  ;;  %v458_v20 = vld [vmem:[%s9878_s28 + $0x2e0] sm:$0xff] }
 0x2e3   : > { %v946_v7 = vpop.f32.mrf.mxu0  ;;  %v2115_v8 = vpop.f32.mrf.mxu1  ;;  %v10246_v12 = vpack.c.bf16 %v4361_v3, %v4360_v47  ;;  %v3717_v17 = vpack.c.bf16 %v3451_v6, %v3451_v6 }
 0x2e4   : > { %v1157_v15 = vpack.c.bf16 %v946_v7, %v946_v7  ;;  %v2353_v16 = vpack.c.bf16 %v2115_v8, %v2115_v8 }
 0x2e5   : > { %v3849_v30 = vunpack.c.l.bf16 %v3717_v17 }
 0x2e6   : > { %v1289_v22 = vunpack.c.l.bf16 %v1157_v15  ;;  %v2485_v23 = vunpack.c.l.bf16 %v2353_v16 }
 0x2e7   : > { %v3978_v49 = vadd.f32 %v10228_v56, %v3849_v30 }
 0x2e8   : > { %v1418_v28 = vadd.f32 %v9934_v43, %v1289_v22  ;;  %v2614_v29 = vadd.f32 %v9991_v53, %v2485_v23  ;;  %v459_v22 = vld [vmem:[%s9878_s28 + $0x2e8] sm:$0xff] }
 0x2e9   : > { %v4362_v61 = vmax.f32 %v3978_v49, 0.0 }
 0x2ea   : > { %v1802_v34 = vmax.f32 %v1418_v28, 0.0  ;;  %v2998_v36 = vmax.f32 %v2614_v29, 0.0  ;;  %v3453_v37 = vpop.f32.mrf.mxu2  ;;  %v540_v28 = vpack.c.bf16 %v459_v22, %v458_v20 }
 0x2eb   : > { %v3718_v38 = vpack.c.bf16 %v3453_v37, %v3453_v37  ;;  %v949_v39 = vpop.f32.mrf.mxu0  ;;  %v2118_v44 = vpop.f32.mrf.mxu1 }
 0x2ec   : > { %v1893_v45 = vpack.c.bf16 %v1802_v34, %v1801_v32  ;;  %v3098_v46 = vpack.c.bf16 %v2998_v36, %v2997_v33  ;;  %v1158_v52 = vpack.c.bf16 %v949_v39, %v949_v39  ;;  %v2354_v54 = vpack.c.bf16 %v2118_v44, %v2118_v44 }
 0x2ed   : > { %v3850_v50 = vunpack.c.l.bf16 %v3718_v38 }
 0x2ee   : > { %9355 = vmatmul.msk.bf16.gmra.mxu0 %vm558_vm1, %v539_v31  ;;  %2157 = vmatmul.bf16.gmra.mxu1 %v1893_v45  ;;  %v1290_v0 = vunpack.c.l.bf16 %v1158_v52  ;;  %v2486_v2 = vunpack.c.l.bf16 %v2354_v54  ;;  %v465_v52 = vld [vmem:[%s9878_s28 + $0x318] sm:$0xff] }
 0x2ef   : > { %v3979_v59 = vadd.f32 %v10228_v56, %v3850_v50  ;;  %9449 = vmatmul.msk.bf16.gmra.mxu2 %vm3159_vm2, %v3098_v46  ;;  %v464_v50 = vld [vmem:[%s9878_s28 + $0x310] sm:$0xff] }
 0x2f0   : > { %v1419_v15 = vadd.f32 %v9934_v43, %v1290_v0  ;;  %v2615_v16 = vadd.f32 %v9991_v53, %v2486_v2  ;;  %v543_v57 = vpack.c.bf16 %v465_v52, %v464_v50 }
 0x2f1   : > { %v4363_v62 = vmax.f32 %v3979_v59, 0.0 }
 0x2f2   : > { %v3456_v47 = vpop.f32.mrf.mxu2  ;;  %v1803_v29 = vmax.f32 %v1419_v15, 0.0  ;;  %v2999_v30 = vmax.f32 %v2615_v16, 0.0  ;;  %9359 = vmatmul.msk.bf16.gmra.mxu3 %vm558_vm1, %v543_v57 }
 0x2f3   : > { %v951_v3 = vpop.f32.mrf.mxu0  ;;  %v2120_v4 = vpop.f32.mrf.mxu1  ;;  %v10261_v5 = vpack.c.bf16 %v4363_v62, %v4362_v61  ;;  %v3719_v8 = vpack.c.bf16 %v3456_v47, %v3456_v47 }
 0x2f4   : > { %v1159_v6 = vpack.c.bf16 %v951_v3, %v951_v3  ;;  %v2355_v7 = vpack.c.bf16 %v2120_v4, %v2120_v4 }
 0x2f5   : > { %v3851_v27 = vunpack.c.l.bf16 %v3719_v8 }
 0x2f6   : > { %v1291_v17 = vunpack.c.l.bf16 %v1159_v6  ;;  %v2487_v18 = vunpack.c.l.bf16 %v2355_v7 }
 0x2f7   : > { %v3980_v44 = vadd.f32 %v10228_v56, %v3851_v27 }
 0x2f8   : > { %v1420_v23 = vadd.f32 %v9934_v43, %v1291_v17  ;;  %v2616_v25 = vadd.f32 %v9991_v53, %v2487_v18  ;;  %v460_v17 = vld [vmem:[%s9878_s28 + $0x2f0] sm:$0xff]  ;;  %v461_v18 = vld [vmem:[%s9878_s28 + $0x2f8] sm:$0xff] }
 0x2f9   : > { %v4364_v58 = vmax.f32 %v3980_v44, 0.0 }
 0x2fa   : > { %v1804_v31 = vmax.f32 %v1420_v23, 0.0  ;;  %v3000_v32 = vmax.f32 %v2616_v25, 0.0  ;;  %v3458_v33 = vpop.f32.mrf.mxu2  ;;  %v541_v25 = vpack.c.bf16 %v461_v18, %v460_v17 }
 0x2fb   : > { %v3720_v34 = vpack.c.bf16 %v3458_v33, %v3458_v33  ;;  %v954_v36 = vpop.f32.mrf.mxu0  ;;  %v2123_v37 = vpop.f32.mrf.mxu1 }
 0x2fc   : > { %v3099_v38 = vpack.c.bf16 %v3000_v32, %v2999_v30  ;;  %v1894_v39 = vpack.c.bf16 %v1804_v31, %v1803_v29  ;;  %v1160_v46 = vpack.c.bf16 %v954_v36, %v954_v36  ;;  %v2356_v49 = vpack.c.bf16 %v2123_v37, %v2123_v37 }
 0x2fd   : > { %v3852_v45 = vunpack.c.l.bf16 %v3720_v34 }
 0x2fe   : > { %9356 = vmatmul.msk.bf16.gmra.mxu0 %vm558_vm1, %v540_v28  ;;  %2162 = vmatmul.bf16.gmra.mxu1 %v1894_v39  ;;  %v1292_v60 = vunpack.c.l.bf16 %v1160_v46  ;;  %v2488_v61 = vunpack.c.l.bf16 %v2356_v49  ;;  %v466_v46 = vld [vmem:[%s9878_s28 + $0x320] sm:$0xff]  ;;  %v467_v49 = vld [vmem:[%s9878_s28 + $0x328] sm:$0xff] }
 0x2ff   : > { %v3981_v54 = vadd.f32 %v10228_v56, %v3852_v45  ;;  %9450 = vmatmul.msk.bf16.gmra.mxu2 %vm3159_vm2, %v3099_v38  ;;  %v544_v52 = vpack.c.bf16 %v467_v49, %v466_v46 }
 0x300   : > { %v1421_v7 = vadd.f32 %v9934_v43, %v1292_v60  ;;  %v2617_v8 = vadd.f32 %v9991_v53, %v2488_v61 }
 0x301   : > { %v4365_v59 = vmax.f32 %v3981_v54, 0.0 }
 0x302   : > { %v3461_v62 = vpop.f32.mrf.mxu2  ;;  %v1805_v27 = vmax.f32 %v1421_v7, 0.0  ;;  %v3001_v28 = vmax.f32 %v2617_v8, 0.0  ;;  %9360 = vmatmul.msk.bf16.gmra.mxu3 %vm558_vm1, %v544_v52 }
 0x303   : > { %v956_v0 = vpop.f32.mrf.mxu0  ;;  %v2125_v2 = vpop.f32.mrf.mxu1  ;;  %v10276_v47 = vpack.c.bf16 %v4365_v59, %v4364_v58  ;;  %v3721_v6 = vpack.c.bf16 %v3461_v62, %v3461_v62 }
 0x304   : > { %v1161_v3 = vpack.c.bf16 %v956_v0, %v956_v0  ;;  %v2357_v4 = vpack.c.bf16 %v2125_v2, %v2125_v2 }
 0x305   : > { %v3853_v23 = vunpack.c.l.bf16 %v3721_v6 }
 0x306   : > { %v1293_v15 = vunpack.c.l.bf16 %v1161_v3  ;;  %v2489_v16 = vunpack.c.l.bf16 %v2357_v4 }
 0x307   : > { %v3982_v38 = vadd.f32 %v10228_v56, %v3853_v23 }
 0x308   : > { %v1422_v20 = vadd.f32 %v9934_v43, %v1293_v15  ;;  %v2618_v22 = vadd.f32 %v9991_v53, %v2489_v16 }
 0x309   : > { %v4366_v54 = vmax.f32 %v3982_v38, 0.0  ;;  %v468_v38 = vld [vmem:[%s9878_s28 + $0x330] sm:$0xff] }
 0x30a   : > { %v1806_v29 = vmax.f32 %v1422_v20, 0.0  ;;  %v3002_v30 = vmax.f32 %v2618_v22, 0.0  ;;  %v3463_v31 = vpop.f32.mrf.mxu2 }
 0x30b   : > { %v3722_v32 = vpack.c.bf16 %v3463_v31, %v3463_v31  ;;  %v959_v33 = vpop.f32.mrf.mxu0  ;;  %v2128_v34 = vpop.f32.mrf.mxu1 }
 0x30c   : > { %v3100_v36 = vpack.c.bf16 %v3002_v30, %v3001_v28  ;;  %v1895_v37 = vpack.c.bf16 %v1806_v29, %v1805_v27  ;;  %v1162_v44 = vpack.c.bf16 %v959_v33, %v959_v33  ;;  %v2358_v45 = vpack.c.bf16 %v2128_v34, %v2128_v34 }
 0x30d   : > { %v3854_v39 = vunpack.c.l.bf16 %v3722_v32 }
 0x30e   : > { %9357 = vmatmul.msk.bf16.gmra.mxu0 %vm558_vm1, %v541_v25  ;;  %2167 = vmatmul.bf16.gmra.mxu1 %v1895_v37  ;;  %v1294_v58 = vunpack.c.l.bf16 %v1162_v44  ;;  %v2490_v59 = vunpack.c.l.bf16 %v2358_v45 }
 0x30f   : > { %v3983_v50 = vadd.f32 %v10228_v56, %v3854_v39  ;;  %9451 = vmatmul.msk.bf16.gmra.mxu2 %vm3159_vm2, %v3100_v36  ;;  %v469_v39 = vld [vmem:[%s9878_s28 + $0x338] sm:$0xff] }
 0x310   : > { %v1423_v6 = vadd.f32 %v9934_v43, %v1294_v58  ;;  %v2619_v7 = vadd.f32 %v9991_v53, %v2490_v59  ;;  %v545_v45 = vpack.c.bf16 %v469_v39, %v468_v38 }
 0x311   : > { %v4367_v57 = vmax.f32 %v3983_v50, 0.0 }
 0x312   : > { %v3466_v60 = vpop.f32.mrf.mxu2  ;;  %v1807_v20 = vmax.f32 %v1423_v6, 0.0  ;;  %v3003_v22 = vmax.f32 %v2619_v7, 0.0  ;;  %9361 = vmatmul.msk.bf16.gmra.mxu3 %vm558_vm1, %v545_v45 }
 0x313   : > { %v961_v61 = vpop.f32.mrf.mxu0  ;;  %v2130_v62 = vpop.f32.mrf.mxu1  ;;  %v10291_v0 = vpack.c.bf16 %v4367_v57, %v4366_v54  ;;  %v3723_v4 = vpack.c.bf16 %v3466_v60, %v3466_v60 }
 0x314   : > { %v1163_v2 = vpack.c.bf16 %v961_v61, %v961_v61  ;;  %v2359_v3 = vpack.c.bf16 %v2130_v62, %v2130_v62 }
 0x315   : > { %v3855_v18 = vunpack.c.l.bf16 %v3723_v4 }
 0x316   : > { %v1295_v8 = vunpack.c.l.bf16 %v1163_v2  ;;  %v2491_v15 = vunpack.c.l.bf16 %v2359_v3 }
 0x317   : > { %v3984_v33 = vadd.f32 %v10228_v56, %v3855_v18 }
 0x318   : > { %v1424_v16 = vadd.f32 %v9934_v43, %v1295_v8  ;;  %v2620_v17 = vadd.f32 %v9991_v53, %v2491_v15 }
 0x319   : > { %v4368_v46 = vmax.f32 %v3984_v33, 0.0 }
 0x31a   : > { %v1808_v23 = vmax.f32 %v1424_v16, 0.0  ;;  %v3004_v25 = vmax.f32 %v2620_v17, 0.0  ;;  %v3468_v27 = vpop.f32.mrf.mxu2 }
 0x31b   : > { %v3724_v28 = vpack.c.bf16 %v3468_v27, %v3468_v27  ;;  %v964_v29 = vpop.f32.mrf.mxu0  ;;  %v2133_v30 = vpop.f32.mrf.mxu1 }
 0x31c   : > { %v3101_v31 = vpack.c.bf16 %v3004_v25, %v3003_v22  ;;  %v1896_v32 = vpack.c.bf16 %v1808_v23, %v1807_v20  ;;  %v1164_v36 = vpack.c.bf16 %v964_v29, %v964_v29  ;;  %v2360_v37 = vpack.c.bf16 %v2133_v30, %v2133_v30 }
 0x31d   : > { %v3856_v34 = vunpack.c.l.bf16 %v3724_v28 }
 0x31e   : > { %2172 = vmatmul.bf16.gmra.mxu1 %v1896_v32  ;;  %v1296_v50 = vunpack.c.l.bf16 %v1164_v36  ;;  %v2492_v52 = vunpack.c.l.bf16 %v2360_v37  ;;  %v471_v36 = vld [vmem:[%s9878_s28 + $0x348] sm:$0xff] }
 0x31f   : > { %v3985_v44 = vadd.f32 %v10228_v56, %v3856_v34  ;;  %9452 = vmatmul.msk.bf16.gmra.mxu2 %vm3159_vm2, %v3101_v31  ;;  %v470_v34 = vld [vmem:[%s9878_s28 + $0x340] sm:$0xff] }
 0x320   : > { %v1425_v2 = vadd.f32 %v9934_v43, %v1296_v50  ;;  %v2621_v3 = vadd.f32 %v9991_v53, %v2492_v52  ;;  %v546_v38 = vpack.c.bf16 %v471_v36, %v470_v34 }
 0x321   : > { %v4369_v49 = vmax.f32 %v3985_v44, 0.0 }
 0x322   : > { %v3471_v54 = vpop.f32.mrf.mxu2  ;;  %v1809_v16 = vmax.f32 %v1425_v2, 0.0  ;;  %v3005_v17 = vmax.f32 %v2621_v3, 0.0  ;;  %9362 = vmatmul.msk.bf16.gmra.mxu3 %vm558_vm1, %v546_v38 }
 0x323   : > { %v966_v57 = vpop.f32.mrf.mxu0  ;;  %v2135_v58 = vpop.f32.mrf.mxu1  ;;  %v10303_v59 = vpack.c.bf16 %v4369_v49, %v4368_v46  ;;  %v3725_v62 = vpack.c.bf16 %v3471_v54, %v3471_v54 }
 0x324   : > { %v1165_v60 = vpack.c.bf16 %v966_v57, %v966_v57  ;;  %v2361_v61 = vpack.c.bf16 %v2135_v58, %v2135_v58 }
 0x325   : > { %v3857_v15 = vunpack.c.l.bf16 %v3725_v62 }
 0x326   : > { %v1297_v4 = vunpack.c.l.bf16 %v1165_v60  ;;  %v2493_v6 = vunpack.c.l.bf16 %v2361_v61 }
 0x327   : > { %v3986_v30 = vadd.f32 %v10228_v56, %v3857_v15 }
 0x328   : > { %v1426_v7 = vadd.f32 %v9934_v43, %v1297_v4  ;;  %v2622_v8 = vadd.f32 %v9991_v53, %v2493_v6 }
 0x329   : > { %v4370_v39 = vmax.f32 %v3986_v30, 0.0 }
 0x32a   : > { %v1810_v18 = vmax.f32 %v1426_v7, 0.0  ;;  %v3006_v20 = vmax.f32 %v2622_v8, 0.0  ;;  %v3473_v22 = vpop.f32.mrf.mxu2 }
 0x32b   : > { %v3726_v23 = vpack.c.bf16 %v3473_v22, %v3473_v22  ;;  %v969_v25 = vpop.f32.mrf.mxu0  ;;  %v2138_v27 = vpop.f32.mrf.mxu1 }
 0x32c   : > { %v3102_v28 = vpack.c.bf16 %v3006_v20, %v3005_v17  ;;  %v1897_v29 = vpack.c.bf16 %v1810_v18, %v1809_v16  ;;  %v1166_v32 = vpack.c.bf16 %v969_v25, %v969_v25  ;;  %v2362_v33 = vpack.c.bf16 %v2138_v27, %v2138_v27 }
 0x32d   : > { %v3858_v31 = vunpack.c.l.bf16 %v3726_v23 }
 0x32e   : > { %2177 = vmatmul.bf16.gmra.mxu1 %v1897_v29  ;;  %v1298_v45 = vunpack.c.l.bf16 %v1166_v32  ;;  %v2494_v46 = vunpack.c.l.bf16 %v2362_v33  ;;  %v472_v32 = vld [vmem:[%s9878_s28 + $0x350] sm:$0xff]  ;;  %v473_v33 = vld [vmem:[%s9878_s28 + $0x358] sm:$0xff] }
 0x32f   : > { %v3987_v37 = vadd.f32 %v10228_v56, %v3858_v31  ;;  %9453 = vmatmul.msk.bf16.gmra.mxu2 %vm3159_vm2, %v3102_v28  ;;  %v547_v36 = vpack.c.bf16 %v473_v33, %v472_v32  ;;  %v475_v32 = vld [vmem:[%s9878_s28 + $0x368] sm:$0xff] }
 0x330   : > { %v1427_v61 = vadd.f32 %v9934_v43, %v1298_v45  ;;  %v2623_v62 = vadd.f32 %v9991_v53, %v2494_v46 }
 0x331   : > { %v4371_v44 = vmax.f32 %v3987_v37, 0.0 }
 0x332   : > { %v3476_v49 = vpop.f32.mrf.mxu2  ;;  %v1811_v8 = vmax.f32 %v1427_v61, 0.0  ;;  %v3007_v15 = vmax.f32 %v2623_v62, 0.0  ;;  %9363 = vmatmul.msk.bf16.gmra.mxu3 %vm558_vm1, %v547_v36 }
 0x333   : > { %v971_v50 = vpop.f32.mrf.mxu0  ;;  %v2140_v52 = vpop.f32.mrf.mxu1  ;;  %v10315_v54 = vpack.c.bf16 %v4371_v44, %v4370_v39  ;;  %v3727_v60 = vpack.c.bf16 %v3476_v49, %v3476_v49 }
 0x334   : > { %v1167_v57 = vpack.c.bf16 %v971_v50, %v971_v50  ;;  %v2363_v58 = vpack.c.bf16 %v2140_v52, %v2140_v52 }
 0x335   : > { %v3859_v7 = vunpack.c.l.bf16 %v3727_v60 }
 0x336   : > { %v1299_v2 = vunpack.c.l.bf16 %v1167_v57  ;;  %v2495_v3 = vunpack.c.l.bf16 %v2363_v58 }
 0x337   : > { %v3988_v28 = vadd.f32 %v10228_v56, %v3859_v7 }
 0x338   : > { %v1428_v4 = vadd.f32 %v9934_v43, %v1299_v2  ;;  %v2624_v6 = vadd.f32 %v9991_v53, %v2495_v3 }
 0x339   : > { %v4372_v37 = vmax.f32 %v3988_v28, 0.0 }
 0x33a   : > { %v1812_v16 = vmax.f32 %v1428_v4, 0.0  ;;  %v3008_v17 = vmax.f32 %v2624_v6, 0.0  ;;  %v3478_v18 = vpop.f32.mrf.mxu2 }
 0x33b   : > { %v3728_v20 = vpack.c.bf16 %v3478_v18, %v3478_v18  ;;  %v974_v22 = vpop.f32.mrf.mxu0  ;;  %v2143_v23 = vpop.f32.mrf.mxu1 }
 0x33c   : > { %v3103_v25 = vpack.c.bf16 %v3008_v17, %v3007_v15  ;;  %v1898_v27 = vpack.c.bf16 %v1812_v16, %v1811_v8  ;;  %v1168_v30 = vpack.c.bf16 %v974_v22, %v974_v22  ;;  %v2364_v31 = vpack.c.bf16 %v2143_v23, %v2143_v23 }
 0x33d   : > { %v3860_v29 = vunpack.c.l.bf16 %v3728_v20 }
 0x33e   : > { %2182 = vmatmul.bf16.gmra.mxu1 %v1898_v27  ;;  %v1300_v39 = vunpack.c.l.bf16 %v1168_v30  ;;  %v2496_v44 = vunpack.c.l.bf16 %v2364_v31  ;;  %v474_v31 = vld [vmem:[%s9878_s28 + $0x360] sm:$0xff] }
 0x33f   : > { %v3989_v34 = vadd.f32 %v10228_v56, %v3860_v29  ;;  %9454 = vmatmul.msk.bf16.gmra.mxu2 %vm3159_vm2, %v3103_v25 }
 0x340   : > { %v1429_v60 = vadd.f32 %v9934_v43, %v1300_v39  ;;  %v2625_v61 = vadd.f32 %v9991_v53, %v2496_v44 }
 0x341   : > { %v4373_v38 = vmax.f32 %v3989_v34, 0.0  ;;  %v548_v34 = vpack.c.bf16 %v475_v32, %v474_v31  ;;  %v476_v31 = vld [vmem:[%s9878_s28 + $0x370] sm:$0xff]  ;;  %v477_v32 = vld [vmem:[%s9878_s28 + $0x378] sm:$0xff] }
 0x342   : > { %v3481_v45 = vpop.f32.mrf.mxu2  ;;  %v1813_v7 = vmax.f32 %v1429_v60, 0.0  ;;  %v3009_v8 = vmax.f32 %v2625_v61, 0.0 }
 0x343   : > { %v976_v46 = vpop.f32.mrf.mxu0  ;;  %v2145_v49 = vpop.f32.mrf.mxu1  ;;  %v10327_v50 = vpack.c.bf16 %v4373_v38, %v4372_v37  ;;  %v3729_v58 = vpack.c.bf16 %v3481_v45, %v3481_v45  ;;  %9364 = vmatmul.msk.bf16.gmra.mxu3 %vm558_vm1, %v548_v34  ;;  %v549_v34 = vpack.c.bf16 %v477_v32, %v476_v31  ;;  %v478_v32 = vld [vmem:[%s9878_s28 + $0x380] sm:$0xff] }
 0x344   : > { %v1169_v52 = vpack.c.bf16 %v976_v46, %v976_v46  ;;  %v2365_v57 = vpack.c.bf16 %v2145_v49, %v2145_v49 }
 0x345   : > { %v3861_v6 = vunpack.c.l.bf16 %v3729_v58 }
 0x346   : > { %v1301_v62 = vunpack.c.l.bf16 %v1169_v52  ;;  %v2497_v2 = vunpack.c.l.bf16 %v2365_v57 }
 0x347   : > { %v3990_v27 = vadd.f32 %v10228_v56, %v3861_v6 }
 0x348   : > { %v1430_v3 = vadd.f32 %v9934_v43, %v1301_v62  ;;  %v2626_v4 = vadd.f32 %v9991_v53, %v2497_v2 }
 0x349   : > { %v4374_v36 = vmax.f32 %v3990_v27, 0.0 }
 0x34a   : > { %v1814_v15 = vmax.f32 %v1430_v3, 0.0  ;;  %v3010_v16 = vmax.f32 %v2626_v4, 0.0  ;;  %v3483_v17 = vpop.f32.mrf.mxu2 }
 0x34b   : > { %v3730_v18 = vpack.c.bf16 %v3483_v17, %v3483_v17  ;;  %v979_v20 = vpop.f32.mrf.mxu0  ;;  %v2148_v22 = vpop.f32.mrf.mxu1 }
 0x34c   : > { %v3104_v23 = vpack.c.bf16 %v3010_v16, %v3009_v8  ;;  %v1899_v25 = vpack.c.bf16 %v1814_v15, %v1813_v7  ;;  %v1170_v29 = vpack.c.bf16 %v979_v20, %v979_v20  ;;  %v2366_v30 = vpack.c.bf16 %v2148_v22, %v2148_v22 }
 0x34d   : > { %v3862_v28 = vunpack.c.l.bf16 %v3730_v18 }
 0x34e   : > { %2187 = vmatmul.bf16.gmra.mxu1 %v1899_v25  ;;  %v1302_v38 = vunpack.c.l.bf16 %v1170_v29  ;;  %v2498_v39 = vunpack.c.l.bf16 %v2366_v30 }
 0x34f   : > { %v3991_v33 = vadd.f32 %v10228_v56, %v3862_v28  ;;  %9455 = vmatmul.msk.bf16.gmra.mxu2 %vm3159_vm2, %v3104_v23 }
 0x350   : > { %v1431_v60 = vadd.f32 %v9934_v43, %v1302_v38  ;;  %v2627_v61 = vadd.f32 %v9991_v53, %v2498_v39 }
 0x351   : > { %v4375_v37 = vmax.f32 %v3991_v33, 0.0 }
 0x352   : > { %v3486_v44 = vpop.f32.mrf.mxu2  ;;  %v1815_v7 = vmax.f32 %v1431_v60, 0.0  ;;  %v3011_v8 = vmax.f32 %v2627_v61, 0.0 }
 0x353   : > { %v981_v45 = vpop.f32.mrf.mxu0  ;;  %v2150_v46 = vpop.f32.mrf.mxu1  ;;  %v10339_v49 = vpack.c.bf16 %v4375_v37, %v4374_v36  ;;  %v3731_v58 = vpack.c.bf16 %v3486_v44, %v3486_v44  ;;  %9365 = vmatmul.msk.bf16.gmra.mxu3 %vm558_vm1, %v549_v34 }
 0x354   : > { %v1171_v52 = vpack.c.bf16 %v981_v45, %v981_v45  ;;  %v2367_v57 = vpack.c.bf16 %v2150_v46, %v2150_v46 }
 0x355   : > { %v3863_v6 = vunpack.c.l.bf16 %v3731_v58 }
 0x356   : > { %v1303_v62 = vunpack.c.l.bf16 %v1171_v52  ;;  %v2499_v2 = vunpack.c.l.bf16 %v2367_v57 }
 0x357   : > { %v3992_v27 = vadd.f32 %v10228_v56, %v3863_v6 }
 0x358   : > { %v1432_v3 = vadd.f32 %v9934_v43, %v1303_v62  ;;  %v2628_v4 = vadd.f32 %v9991_v53, %v2499_v2 }
 0x359   : > { %v4376_v36 = vmax.f32 %v3992_v27, 0.0 }
 0x35a   : > { %v1816_v15 = vmax.f32 %v1432_v3, 0.0  ;;  %v3012_v16 = vmax.f32 %v2628_v4, 0.0  ;;  %v3488_v17 = vpop.f32.mrf.mxu2 }
 0x35b   : > { %v3732_v18 = vpack.c.bf16 %v3488_v17, %v3488_v17  ;;  %v984_v20 = vpop.f32.mrf.mxu0  ;;  %v2153_v22 = vpop.f32.mrf.mxu1 }
 0x35c   : > { %v3105_v23 = vpack.c.bf16 %v3012_v16, %v3011_v8  ;;  %v1900_v25 = vpack.c.bf16 %v1816_v15, %v1815_v7  ;;  %v1172_v29 = vpack.c.bf16 %v984_v20, %v984_v20  ;;  %v2368_v30 = vpack.c.bf16 %v2153_v22, %v2153_v22 }
 0x35d   : > { %v3864_v28 = vunpack.c.l.bf16 %v3732_v18 }
 0x35e   : > { %2192 = vmatmul.bf16.gmra.mxu1 %v1900_v25  ;;  %v1304_v38 = vunpack.c.l.bf16 %v1172_v29  ;;  %v2500_v39 = vunpack.c.l.bf16 %v2368_v30 }
 0x35f   : > { %v3993_v33 = vadd.f32 %v10228_v56, %v3864_v28  ;;  %9456 = vmatmul.msk.bf16.gmra.mxu2 %vm3159_vm2, %v3105_v23 }
 0x360   : > { %v1433_v61 = vadd.f32 %v9934_v43, %v1304_v38  ;;  %v2629_v62 = vadd.f32 %v9991_v53, %v2500_v39 }
 0x361   : > { %v4377_v37 = vmax.f32 %v3993_v33, 0.0  ;;  %v479_v33 = vld [vmem:[%s9878_s28 + $0x388] sm:$0xff] }
 0x362   : > { %v3491_v44 = vpop.f32.mrf.mxu2  ;;  %v1817_v8 = vmax.f32 %v1433_v61, 0.0  ;;  %v3013_v15 = vmax.f32 %v2629_v62, 0.0 }
 0x363   : > { %v986_v45 = vpop.f32.mrf.mxu0  ;;  %v2155_v46 = vpop.f32.mrf.mxu1  ;;  %v10351_v52 = vpack.c.bf16 %v4377_v37, %v4376_v36  ;;  %v3733_v60 = vpack.c.bf16 %v3491_v44, %v3491_v44  ;;  %v550_v36 = vpack.c.bf16 %v479_v33, %v478_v32 }
 0x364   : > { %v1173_v57 = vpack.c.bf16 %v986_v45, %v986_v45  ;;  %v2369_v58 = vpack.c.bf16 %v2155_v46, %v2155_v46  ;;  %v10365_v62 = vpop.f32.mrf.mxu3 }
 0x365   : > { %v3865_v7 = vunpack.c.l.bf16 %v3733_v60  ;;  %9366 = vmatmul.msk.bf16.gmra.mxu3 %vm558_vm1, %v550_v36 }
 0x366   : > { %v1305_v2 = vunpack.c.l.bf16 %v1173_v57  ;;  %v2501_v3 = vunpack.c.l.bf16 %v2369_v58 }
 0x367   : > { %v3994_v28 = vadd.f32 %v10228_v56, %v3865_v7 }
 0x368   : > { %v1434_v4 = vadd.f32 %v9934_v43, %v1305_v2  ;;  %v2630_v6 = vadd.f32 %v9991_v53, %v2501_v3 }
 0x369   : > { %v4378_v37 = vmax.f32 %v3994_v28, 0.0 }
 0x36a   : > { %v1818_v16 = vmax.f32 %v1434_v4, 0.0  ;;  %v3014_v17 = vmax.f32 %v2630_v6, 0.0  ;;  %v3493_v18 = vpop.f32.mrf.mxu2 }
 0x36b   : > { %v3734_v20 = vpack.c.bf16 %v3493_v18, %v3493_v18  ;;  %v989_v22 = vpop.f32.mrf.mxu0  ;;  %v2158_v23 = vpop.f32.mrf.mxu1 }
 0x36c   : > { %v3106_v25 = vpack.c.bf16 %v3014_v17, %v3013_v15  ;;  %v1901_v27 = vpack.c.bf16 %v1818_v16, %v1817_v8  ;;  %v1174_v30 = vpack.c.bf16 %v989_v22, %v989_v22  ;;  %v2370_v31 = vpack.c.bf16 %v2158_v23, %v2158_v23 }
 0x36d   : > { %v3866_v29 = vunpack.c.l.bf16 %v3734_v20 }
 0x36e   : > { %2197 = vmatmul.bf16.gmra.mxu1 %v1901_v27  ;;  %v1306_v39 = vunpack.c.l.bf16 %v1174_v30  ;;  %v2502_v44 = vunpack.c.l.bf16 %v2370_v31  ;;  %v10371_v31 = vpop.f32.mrf.mxu3 }
 0x36f   : > { %v3995_v34 = vadd.f32 %v10228_v56, %v3866_v29  ;;  %9457 = vmatmul.msk.bf16.gmra.mxu2 %vm3159_vm2, %v3106_v25 }
 0x370   : > { %v1435_v3 = vadd.f32 %v9934_v43, %v1306_v39  ;;  %v2631_v4 = vadd.f32 %v9991_v53, %v2502_v44 }
 0x371   : > { %v4379_v38 = vmax.f32 %v3995_v34, 0.0 }
 0x372   : > { %v3496_v45 = vpop.f32.mrf.mxu2  ;;  %v1819_v17 = vmax.f32 %v1435_v3, 0.0  ;;  %v3015_v18 = vmax.f32 %v2631_v4, 0.0 }
 0x373   : > { %v991_v46 = vpop.f32.mrf.mxu0  ;;  %v2160_v57 = vpop.f32.mrf.mxu1  ;;  %v10363_v58 = vpack.c.bf16 %v4379_v38, %v4378_v37  ;;  %v3735_v2 = vpack.c.bf16 %v3496_v45, %v3496_v45  ;;  %v480_v37 = vld [vmem:[%s9878_s28 + $0x390] sm:$0xff]  ;;  %v481_v38 = vld [vmem:[%s9878_s28 + $0x398] sm:$0xff] }
 0x374   : > { %v1175_v60 = vpack.c.bf16 %v991_v46, %v991_v46  ;;  %v2371_v61 = vpack.c.bf16 %v2160_v57, %v2160_v57  ;;  %v551_v44 = vpack.c.bf16 %v481_v38, %v480_v37 }
 0x375   : > { %v3867_v16 = vunpack.c.l.bf16 %v3735_v2 }
 0x376   : > { %v1307_v6 = vunpack.c.l.bf16 %v1175_v60  ;;  %v2503_v7 = vunpack.c.l.bf16 %v2371_v61  ;;  %9367 = vmatmul.msk.bf16.gmra.mxu3 %vm558_vm1, %v551_v44 }
 0x377   : > { %v3996_v32 = vadd.f32 %v10228_v56, %v3867_v16 }
 0x378   : > { %v1436_v8 = vadd.f32 %v9934_v43, %v1307_v6  ;;  %v2632_v15 = vadd.f32 %v9991_v53, %v2503_v7 }
 0x379   : > { %v4380_v45 = vmax.f32 %v3996_v32, 0.0 }
 0x37a   : > { %v1820_v20 = vmax.f32 %v1436_v8, 0.0  ;;  %v3016_v22 = vmax.f32 %v2632_v15, 0.0  ;;  %v3498_v23 = vpop.f32.mrf.mxu2  ;;  %v10381_v8 = vpop.f32.mrf.mxu3 }
 0x37b   : > { %v3736_v25 = vpack.c.bf16 %v3498_v23, %v3498_v23  ;;  %v994_v27 = vpop.f32.mrf.mxu0  ;;  %v2163_v28 = vpop.f32.mrf.mxu1 }
 0x37c   : > { %v3107_v29 = vpack.c.bf16 %v3016_v22, %v3015_v18  ;;  %v1902_v30 = vpack.c.bf16 %v1820_v20, %v1819_v17  ;;  %v1176_v34 = vpack.c.bf16 %v994_v27, %v994_v27  ;;  %v2372_v36 = vpack.c.bf16 %v2163_v28, %v2163_v28 }
 0x37d   : > { %v3868_v33 = vunpack.c.l.bf16 %v3736_v25 }
 0x37e   : > { %2202 = vmatmul.bf16.gmra.mxu1 %v1902_v30  ;;  %v1308_v57 = vunpack.c.l.bf16 %v1176_v34  ;;  %v2504_v60 = vunpack.c.l.bf16 %v2372_v36 }
 0x37f   : > { %v3997_v39 = vadd.f32 %v10228_v56, %v3868_v33  ;;  %9458 = vmatmul.msk.bf16.gmra.mxu2 %vm3159_vm2, %v3107_v29 }
 0x380   : > { %v1437_v16 = vadd.f32 %v9934_v43, %v1308_v57  ;;  %v2633_v17 = vadd.f32 %v9991_v53, %v2504_v60  ;;  %v482_v60 = vld [vmem:[%s9878_s28 + $0x3a0] sm:$0xff] }
 0x381   : > { %v4381_v46 = vmax.f32 %v3997_v39, 0.0 }
 0x382   : > { %v3501_v61 = vpop.f32.mrf.mxu2  ;;  %v1821_v27 = vmax.f32 %v1437_v16, 0.0  ;;  %v3017_v28 = vmax.f32 %v2633_v17, 0.0  ;;  %v10387_v39 = vpop.f32.mrf.mxu3 }
 0x383   : > { %v996_v2 = vpop.f32.mrf.mxu0  ;;  %v2165_v3 = vpop.f32.mrf.mxu1  ;;  %v10379_v4 = vpack.c.bf16 %v4381_v46, %v4380_v45  ;;  %v3737_v15 = vpack.c.bf16 %v3501_v61, %v3501_v61  ;;  %v483_v61 = vld [vmem:[%s9878_s28 + $0x3a8] sm:$0xff] }
 0x384   : > { %v1177_v6 = vpack.c.bf16 %v996_v2, %v996_v2  ;;  %v2373_v7 = vpack.c.bf16 %v2165_v3, %v2165_v3  ;;  %v552_v3 = vpack.c.bf16 %v483_v61, %v482_v60 }
 0x385   : > { %v3869_v25 = vunpack.c.l.bf16 %v3737_v15 }
 0x386   : > { %v1309_v18 = vunpack.c.l.bf16 %v1177_v6  ;;  %v2505_v20 = vunpack.c.l.bf16 %v2373_v7  ;;  %9368 = vmatmul.msk.bf16.gmra.mxu3 %vm558_vm1, %v552_v3 }
 0x387   : > { %v3998_v44 = vadd.f32 %v10228_v56, %v3869_v25 }
 0x388   : > { %v1438_v22 = vadd.f32 %v9934_v43, %v1309_v18  ;;  %v2634_v23 = vadd.f32 %v9991_v53, %v2505_v20 }
 0x389   : > { %v4382_v6 = vmax.f32 %v3998_v44, 0.0 }
 0x38a   : > { %v1822_v29 = vmax.f32 %v1438_v22, 0.0  ;;  %v3018_v30 = vmax.f32 %v2634_v23, 0.0  ;;  %v3503_v32 = vpop.f32.mrf.mxu2 }
 0x38b   : > { %v3738_v33 = vpack.c.bf16 %v3503_v32, %v3503_v32  ;;  %v999_v34 = vpop.f32.mrf.mxu0  ;;  %v2168_v36 = vpop.f32.mrf.mxu1 }
 0x38c   : > { %v3108_v37 = vpack.c.bf16 %v3018_v30, %v3017_v28  ;;  %v1903_v38 = vpack.c.bf16 %v1822_v29, %v1821_v27  ;;  %v1178_v46 = vpack.c.bf16 %v999_v34, %v999_v34  ;;  %v2374_v57 = vpack.c.bf16 %v2168_v36, %v2168_v36  ;;  %v10397_v27 = vpop.f32.mrf.mxu3 }
 0x38d   : > { %v3870_v45 = vunpack.c.l.bf16 %v3738_v33 }
 0x38e   : > { %2207 = vmatmul.bf16.gmra.mxu1 %v1903_v38  ;;  %v1310_v15 = vunpack.c.l.bf16 %v1178_v46  ;;  %v2506_v16 = vunpack.c.l.bf16 %v2374_v57 }
 0x38f   : > { %v3999_v2 = vadd.f32 %v10228_v56, %v3870_v45  ;;  %9459 = vmatmul.msk.bf16.gmra.mxu2 %vm3159_vm2, %v3108_v37 }
 0x390   : > { %v1439_v29 = vadd.f32 %v9934_v43, %v1310_v15  ;;  %v2635_v30 = vadd.f32 %v9991_v53, %v2506_v16 }
 0x391   : > { %v4383_v7 = vmax.f32 %v3999_v2, 0.0  ;;  %v1180_v2 = vpack.c.bf16 %v10365_v62, %v10365_v62 }
 0x392   : > { %v3506_v17 = vpop.f32.mrf.mxu2  ;;  %v1823_v38 = vmax.f32 %v1439_v29, 0.0  ;;  %v3019_v44 = vmax.f32 %v2635_v30, 0.0 }
 0x393   : > { %v1001_v18 = vpop.f32.mrf.mxu0  ;;  %v2170_v20 = vpop.f32.mrf.mxu1  ;;  %v10395_v22 = vpack.c.bf16 %v4383_v7, %v4382_v6  ;;  %v3739_v28 = vpack.c.bf16 %v3506_v17, %v3506_v17  ;;  %v1181_v6 = vpack.c.bf16 %v10371_v31, %v10371_v31  ;;  %v1312_v62 = vunpack.c.l.bf16 %v1180_v2 }
 0x394   : > { %v1179_v23 = vpack.c.bf16 %v1001_v18, %v1001_v18  ;;  %v2375_v25 = vpack.c.bf16 %v2170_v20, %v2170_v20  ;;  %v10407_v15 = vpop.f32.mrf.mxu3  ;;  %v484_v20 = vld [vmem:[%s9878_s28 + $0x3b0] sm:$0xff] }
 0x395   : > { %v3871_v37 = vunpack.c.l.bf16 %v3739_v28  ;;  %v1313_v29 = vunpack.c.l.bf16 %v1181_v6 }
 0x396   : > { %v1311_v32 = vunpack.c.l.bf16 %v1179_v23  ;;  %v2507_v33 = vunpack.c.l.bf16 %v2375_v25  ;;  %v485_v23 = vld [vmem:[%s9878_s28 + $0x3b8] sm:$0xff] }
 0x397   : > { %v4000_v16 = vadd.f32 %v10228_v56, %v3871_v37  ;;  %v553_v28 = vpack.c.bf16 %v485_v23, %v484_v20  ;;  %v1441_v37 = vadd.f32 %v9934_v43, %v1312_v62  ;;  %v1182_v23 = vpack.c.bf16 %v10381_v8, %v10381_v8 }
 0x398   : > { %v1440_v34 = vadd.f32 %v9934_v43, %v1311_v32  ;;  %v2636_v36 = vadd.f32 %v9991_v53, %v2507_v33 }
 0x399   : > { %v4384_v30 = vmax.f32 %v4000_v16, 0.0  ;;  %9369 = vmatmul.msk.bf16.gmra.mxu3 %vm558_vm1, %v553_v28  ;;  %v1183_v28 = vpack.c.bf16 %v10387_v39, %v10387_v39  ;;  %v1314_v8 = vunpack.c.l.bf16 %v1182_v23 }
 0x39a   : > { %v1824_v45 = vmax.f32 %v1440_v34, 0.0  ;;  %v3020_v46 = vmax.f32 %v2636_v36, 0.0  ;;  %v3508_v57 = vpop.f32.mrf.mxu2 }
 0x39b   : > { %v3740_v60 = vpack.c.bf16 %v3508_v57, %v3508_v57  ;;  %v2173_v61 = vpop.f32.mrf.mxu1 }
 0x39c   : > { %v3109_v3 = vpack.c.bf16 %v3020_v46, %v3019_v44  ;;  %v1904_v7 = vpack.c.bf16 %v1824_v45, %v1823_v38  ;;  %v2376_v18 = vpack.c.bf16 %v2173_v61, %v2173_v61  ;;  %v1442_v38 = vadd.f32 %v9934_v43, %v1313_v29  ;;  %v10419_v45 = vpop.f32.mrf.mxu3 }
 0x39d   : > { %v3872_v17 = vunpack.c.l.bf16 %v3740_v60  ;;  %v1825_v61 = vmax.f32 %v1441_v37, 0.0 }
 0x39e   : > { %2212 = vmatmul.bf16.gmra.mxu1 %v1904_v7  ;;  %v2508_v31 = vunpack.c.l.bf16 %v2376_v18  ;;  %v1826_v2 = vmax.f32 %v1442_v38, 0.0 }
 0x39f   : > { %v4001_v25 = vadd.f32 %v10228_v56, %v3872_v17  ;;  %9460 = vmatmul.msk.bf16.gmra.mxu2 %vm3159_vm2, %v3109_v3 }
 0x3a0   : > { %v2637_v57 = vadd.f32 %v9991_v53, %v2508_v31  ;;  %v1905_v62 = vpack.c.bf16 %v1826_v2, %v1825_v61 }
 0x3a1   : > { %v4385_v32 = vmax.f32 %v4001_v25, 0.0 }
 0x3a2   : > { %v3511_v33 = vpop.f32.mrf.mxu2  ;;  %v3021_v7 = vmax.f32 %v2637_v57, 0.0 }
 0x3a3   : > { %v2175_v34 = vpop.f32.mrf.mxu1  ;;  %v10415_v36 = vpack.c.bf16 %v4385_v32, %v4384_v30  ;;  %v3741_v46 = vpack.c.bf16 %v3511_v33, %v3511_v33  ;;  %v486_v33 = vld [vmem:[%s9878_s28 + $0x3c0] sm:$0xff] }
 0x3a4   : > { %v2377_v44 = vpack.c.bf16 %v2175_v34, %v2175_v34  ;;  %v10427_v29 = vpop.f32.mrf.mxu3  ;;  %v487_v34 = vld [vmem:[%s9878_s28 + $0x3c8] sm:$0xff] }
 0x3a5   : > { %v3873_v6 = vunpack.c.l.bf16 %v3741_v46  ;;  %v554_v38 = vpack.c.bf16 %v487_v34, %v486_v33 }
 0x3a6   : > { %v2509_v60 = vunpack.c.l.bf16 %v2377_v44  ;;  %v1315_v44 = vunpack.c.l.bf16 %v1183_v28 }
 0x3a7   : > { %v4002_v30 = vadd.f32 %v10228_v56, %v3873_v6 }
 0x3a8   : > { %v2638_v3 = vadd.f32 %v9991_v53, %v2509_v60  ;;  %v1444_v6 = vadd.f32 %v9934_v43, %v1315_v44 }
 0x3a9   : > { %v4386_v46 = vmax.f32 %v4002_v30, 0.0  ;;  %9370 = vmatmul.msk.bf16.gmra.mxu3 %vm558_vm1, %v554_v38 }
 0x3aa   : > { %v3022_v16 = vmax.f32 %v2638_v3, 0.0  ;;  %v3513_v17 = vpop.f32.mrf.mxu2  ;;  %v1443_v3 = vadd.f32 %v9934_v43, %v1314_v8  ;;  %v1185_v8 = vpack.c.bf16 %v10407_v15, %v10407_v15 }
 0x3ab   : > { %v3742_v18 = vpack.c.bf16 %v3513_v17, %v3513_v17  ;;  %v2178_v20 = vpop.f32.mrf.mxu1 }
 0x3ac   : > { %v3110_v25 = vpack.c.bf16 %v3022_v16, %v3021_v7  ;;  %v2378_v31 = vpack.c.bf16 %v2178_v20, %v2178_v20  ;;  %v10439_v16 = vpop.f32.mrf.mxu3  ;;  %v1827_v23 = vmax.f32 %v1443_v3, 0.0  ;;  %v489_v3 = vld [vmem:[%s9878_s28 + $0x3d8] sm:$0xff] }
 0x3ad   : > { %v3874_v32 = vunpack.c.l.bf16 %v3742_v18 }
 0x3ae   : > { %2217 = vmatmul.bf16.gmra.mxu1 %v1905_v62  ;;  %v2510_v39 = vunpack.c.l.bf16 %v2378_v31 }
 0x3af   : > { %v4003_v37 = vadd.f32 %v10228_v56, %v3874_v32  ;;  %9461 = vmatmul.msk.bf16.gmra.mxu2 %vm3159_vm2, %v3110_v25  ;;  %v1828_v25 = vmax.f32 %v1444_v6, 0.0 }
 0x3b0   : > { %v2639_v18 = vadd.f32 %v9991_v53, %v2510_v39 }
 0x3b1   : > { %v4387_v57 = vmax.f32 %v4003_v37, 0.0  ;;  %v1184_v37 = vpack.c.bf16 %v10397_v27, %v10397_v27  ;;  %v1906_v44 = vpack.c.bf16 %v1828_v25, %v1827_v23 }
 0x3b2   : > { %v3516_v60 = vpop.f32.mrf.mxu2  ;;  %v3023_v30 = vmax.f32 %v2639_v18, 0.0 }
 0x3b3   : > { %v2180_v61 = vpop.f32.mrf.mxu1  ;;  %v10435_v2 = vpack.c.bf16 %v4387_v57, %v4386_v46  ;;  %v3743_v17 = vpack.c.bf16 %v3516_v60, %v3516_v60  ;;  %v1316_v27 = vunpack.c.l.bf16 %v1184_v37 }
 0x3b4   : > { %v2379_v7 = vpack.c.bf16 %v2180_v61, %v2180_v61  ;;  %v10447_v46 = vpop.f32.mrf.mxu3  ;;  %v488_v61 = vld [vmem:[%s9878_s28 + $0x3d0] sm:$0xff] }
 0x3b5   : > { %v3875_v62 = vunpack.c.l.bf16 %v3743_v17  ;;  %v1317_v17 = vunpack.c.l.bf16 %v1185_v8 }
 0x3b6   : > { %v2511_v20 = vunpack.c.l.bf16 %v2379_v7  ;;  %v555_v7 = vpack.c.bf16 %v489_v3, %v488_v61 }
 0x3b7   : > { %v4004_v57 = vadd.f32 %v10228_v56, %v3875_v62  ;;  %v1445_v62 = vadd.f32 %v9934_v43, %v1316_v27 }
 0x3b8   : > { %v2640_v28 = vadd.f32 %v9991_v53, %v2511_v20 }
 0x3b9   : > { %v4388_v18 = vmax.f32 %v4004_v57, 0.0  ;;  %9371 = vmatmul.msk.bf16.gmra.mxu3 %vm558_vm1, %v555_v7  ;;  %v1186_v7 = vpack.c.bf16 %v10419_v45, %v10419_v45 }
 0x3ba   : > { %v3024_v32 = vmax.f32 %v2640_v28, 0.0  ;;  %v3518_v31 = vpop.f32.mrf.mxu2 }
 0x3bb   : > { %v3744_v33 = vpack.c.bf16 %v3518_v31, %v3518_v31  ;;  %v2183_v34 = vpop.f32.mrf.mxu1  ;;  %v1318_v45 = vunpack.c.l.bf16 %v1186_v7 }
 0x3bc   : > { %v3111_v38 = vpack.c.bf16 %v3024_v32, %v3023_v30  ;;  %v2380_v60 = vpack.c.bf16 %v2183_v34, %v2183_v34  ;;  %v1446_v30 = vadd.f32 %v9934_v43, %v1317_v17  ;;  %v10459_v31 = vpop.f32.mrf.mxu3  ;;  %v1187_v17 = vpack.c.bf16 %v10427_v29, %v10427_v29 }
 0x3bd   : > { %v3876_v39 = vunpack.c.l.bf16 %v3744_v33 }
 0x3be   : > { %2222 = vmatmul.bf16.gmra.mxu1 %v1906_v44  ;;  %v2512_v15 = vunpack.c.l.bf16 %v2380_v60  ;;  %v1830_v8 = vmax.f32 %v1446_v30, 0.0  ;;  %v491_v30 = vld [vmem:[%s9878_s28 + $0x3e8] sm:$0xff] }
 0x3bf   : > { %v4005_v6 = vadd.f32 %v10228_v56, %v3876_v39  ;;  %9462 = vmatmul.msk.bf16.gmra.mxu2 %vm3159_vm2, %v3111_v38  ;;  %v1829_v38 = vmax.f32 %v1445_v62, 0.0  ;;  %v490_v62 = vld [vmem:[%s9878_s28 + $0x3e0] sm:$0xff] }
 0x3c0   : > { %v2641_v34 = vadd.f32 %v9991_v53, %v2512_v15 }
 0x3c1   : > { %v4389_v20 = vmax.f32 %v4005_v6, 0.0 }
 0x3c2   : > { %v3521_v23 = vpop.f32.mrf.mxu2  ;;  %v3025_v39 = vmax.f32 %v2641_v34, 0.0  ;;  %v1319_v34 = vunpack.c.l.bf16 %v1187_v17 }
 0x3c3   : > { %v2185_v25 = vpop.f32.mrf.mxu1  ;;  %v10455_v28 = vpack.c.bf16 %v4389_v20, %v4388_v18  ;;  %v3745_v33 = vpack.c.bf16 %v3521_v23, %v3521_v23  ;;  %v1907_v18 = vpack.c.bf16 %v1830_v8, %v1829_v38 }
 0x3c4   : > { %v2381_v32 = vpack.c.bf16 %v2185_v25, %v2185_v25  ;;  %v10467_v20 = vpop.f32.mrf.mxu3 }
 0x3c5   : > { %v3877_v57 = vunpack.c.l.bf16 %v3745_v33  ;;  %v556_v33 = vpack.c.bf16 %v491_v30, %v490_v62 }
 0x3c6   : > { %v2513_v37 = vunpack.c.l.bf16 %v2381_v32 }
 0x3c7   : > { %v4006_v15 = vadd.f32 %v10228_v56, %v3877_v57 }
 0x3c8   : > { %v2642_v44 = vadd.f32 %v9991_v53, %v2513_v37 }
 0x3c9   : > { %v4390_v37 = vmax.f32 %v4006_v15, 0.0  ;;  %9372 = vmatmul.msk.bf16.gmra.mxu3 %vm558_vm1, %v556_v33 }
 0x3ca   : > { %v3026_v60 = vmax.f32 %v2642_v44, 0.0  ;;  %v3523_v61 = vpop.f32.mrf.mxu2 }
 0x3cb   : > { %v3746_v3 = vpack.c.bf16 %v3523_v61, %v3523_v61  ;;  %v2188_v6 = vpop.f32.mrf.mxu1 }
 0x3cc   : > { %v3112_v27 = vpack.c.bf16 %v3026_v60, %v3025_v39  ;;  %v2382_v25 = vpack.c.bf16 %v2188_v6, %v2188_v6  ;;  %v1447_v39 = vadd.f32 %v9934_v43, %v1318_v45  ;;  %v1448_v60 = vadd.f32 %v9934_v43, %v1319_v34 }
 0x3cd   : > { %v3878_v23 = vunpack.c.l.bf16 %v3746_v3  ;;  %v10479_v3 = vpop.f32.mrf.mxu3  ;;  %v1188_v45 = vpack.c.bf16 %v10439_v16, %v10439_v16 }
 0x3ce   : > { %2227 = vmatmul.bf16.gmra.mxu1 %v1907_v18  ;;  %v2514_v29 = vunpack.c.l.bf16 %v2382_v25  ;;  %v1831_v17 = vmax.f32 %v1447_v39, 0.0  ;;  %v1832_v18 = vmax.f32 %v1448_v60, 0.0  ;;  %v492_v60 = vld [vmem:[%s9878_s28 + $0x3f0] sm:$0xff] }
 0x3cf   : > { %v4007_v32 = vadd.f32 %v10228_v56, %v3878_v23  ;;  %9463 = vmatmul.msk.bf16.gmra.mxu2 %vm3159_vm2, %v3112_v27  ;;  %v1320_v16 = vunpack.c.l.bf16 %v1188_v45 }
 0x3d0   : > { %v2643_v7 = vadd.f32 %v9991_v53, %v2514_v29 }
 0x3d1   : > { %v4391_v44 = vmax.f32 %v4007_v32, 0.0 }
 0x3d2   : > { %v3526_v38 = vpop.f32.mrf.mxu2  ;;  %v3027_v25 = vmax.f32 %v2643_v7, 0.0 }
 0x3d3   : > { %v2190_v8 = vpop.f32.mrf.mxu1  ;;  %v10475_v57 = vpack.c.bf16 %v4391_v44, %v4390_v37  ;;  %v3747_v6 = vpack.c.bf16 %v3526_v38, %v3526_v38  ;;  %v1189_v37 = vpack.c.bf16 %v10447_v46, %v10447_v46  ;;  %v1908_v44 = vpack.c.bf16 %v1832_v18, %v1831_v17 }
 0x3d4   : > { %v2383_v61 = vpack.c.bf16 %v2190_v8, %v2190_v8 }
 0x3d5   : > { %12024 = vst [vmem:[#allocation7_spill] sm:$0xff] %v10475_v57  ;;  %v3879_v23 = vunpack.c.l.bf16 %v3747_v6  ;;  %v10487_v29 = vpop.f32.mrf.mxu3 }
 0x3d6   : > { %v2515_v27 = vunpack.c.l.bf16 %v2383_v61  ;;  %v493_v61 = vld [vmem:[%s9878_s28 + $0x3f8] sm:$0xff] }
 0x3d7   : > { %v4008_v38 = vadd.f32 %v10228_v56, %v3879_v23  ;;  %v557_v7 = vpack.c.bf16 %v493_v61, %v492_v60 }
 0x3d8   : > { %v2644_v15 = vadd.f32 %v9991_v53, %v2515_v27  ;;  %v1321_v27 = vunpack.c.l.bf16 %v1189_v37 }
 0x3d9   : > { %9373 = vmatmul.msk.bf16.gmra.mxu3 %vm558_vm1, %v557_v7 }
 0x3da   : > { %v3028_v62 = vmax.f32 %v2644_v15, 0.0  ;;  %v3528_v30 = vpop.f32.mrf.mxu2  ;;  %v4392_v15 = vmax.f32 %v4008_v38, 0.0 }
 0x3db   : > { %v3748_v32 = vpack.c.bf16 %v3528_v30, %v3528_v30  ;;  %v2193_v33 = vpop.f32.mrf.mxu1  ;;  %v1450_v30 = vadd.f32 %v9934_v43, %v1321_v27 }
 0x3dc   : > { %v3113_v34 = vpack.c.bf16 %v3028_v62, %v3027_v25  ;;  %v2384_v39 = vpack.c.bf16 %v2193_v33, %v2193_v33  ;;  %v1449_v62 = vadd.f32 %v9934_v43, %v1320_v16  ;;  %v1190_v16 = vpack.c.bf16 %v10459_v31, %v10459_v31 }
 0x3dd   : > { %v3880_v8 = vunpack.c.l.bf16 %v3748_v32  ;;  %v10499_v33 = vpop.f32.mrf.mxu3  ;;  %v1834_v38 = vmax.f32 %v1450_v30, 0.0 }
 0x3de   : > { %2232 = vmatmul.bf16.gmra.mxu1 %v1908_v44  ;;  %v2516_v46 = vunpack.c.l.bf16 %v2384_v39  ;;  %v1833_v44 = vmax.f32 %v1449_v62, 0.0 }
 0x3df   : > { %v4009_v6 = vadd.f32 %v10228_v56, %v3880_v8  ;;  %9464 = vmatmul.msk.bf16.gmra.mxu2 %vm3159_vm2, %v3113_v34 }
 0x3e0   : > { %v2645_v45 = vadd.f32 %v9991_v53, %v2516_v46 }
 0x3e1   : > { %v4393_v25 = vmax.f32 %v4009_v6, 0.0 }
 0x3e2   : > { %v3531_v17 = vpop.f32.mrf.mxu2  ;;  %v3029_v60 = vmax.f32 %v2645_v45, 0.0 }
 0x3e3   : > { %v2195_v18 = vpop.f32.mrf.mxu1  ;;  %v10495_v23 = vpack.c.bf16 %v4393_v25, %v4392_v15  ;;  %v3749_v34 = vpack.c.bf16 %v3531_v17, %v3531_v17  ;;  %v1191_v25 = vpack.c.bf16 %v10467_v20, %v10467_v20  ;;  %v1909_v17 = vpack.c.bf16 %v1834_v38, %v1833_v44 }
 0x3e4   : > { %v2385_v32 = vpack.c.bf16 %v2195_v18, %v2195_v18 }
 0x3e5   : > { %12025 = vst [vmem:[#allocation8_spill] sm:$0xff] %v10495_v23  ;;  %v3881_v39 = vunpack.c.l.bf16 %v3749_v34  ;;  %v10507_v46 = vpop.f32.mrf.mxu3  ;;  %v1322_v34 = vunpack.c.l.bf16 %v1190_v16  ;;  %v1323_v45 = vunpack.c.l.bf16 %v1191_v25 }
 0x3e6   : > { %v2517_v37 = vunpack.c.l.bf16 %v2385_v32 }
 0x3e7   : > { %v4010_v18 = vadd.f32 %v10228_v56, %v3881_v39  ;;  %v1451_v44 = vadd.f32 %v9934_v43, %v1322_v34  ;;  %v1452_v38 = vadd.f32 %v9934_v43, %v1323_v45  ;;  %v1192_v34 = vpack.c.bf16 %v10479_v3, %v10479_v3 }
 0x3e8   : > { %v2646_v8 = vadd.f32 %v9991_v53, %v2517_v37 }
 0x3e9   : > { %v4394_v37 = vmax.f32 %v4010_v18, 0.0  ;;  %v1835_v16 = vmax.f32 %v1451_v44, 0.0  ;;  %v1836_v25 = vmax.f32 %v1452_v38, 0.0 }
 0x3ea   : > { %v3030_v61 = vmax.f32 %v2646_v8, 0.0  ;;  %v3533_v6 = vpop.f32.mrf.mxu2 }
 0x3eb   : > { %v3750_v7 = vpack.c.bf16 %v3533_v6, %v3533_v6  ;;  %v2198_v15 = vpop.f32.mrf.mxu1 }
 0x3ec   : > { %v3114_v27 = vpack.c.bf16 %v3030_v61, %v3029_v60  ;;  %v2386_v30 = vpack.c.bf16 %v2198_v15, %v2198_v15 }
 0x3ed   : > { %v3882_v62 = vunpack.c.l.bf16 %v3750_v7  ;;  %v10516_v6 = vpop.f32.mrf.mxu3 }
 0x3ee   : > { %2237 = vmatmul.bf16.gmra.mxu1 %v1909_v17  ;;  %v2518_v8 = vunpack.c.l.bf16 %v2386_v30 }
 0x3ef   : > { %v4011_v32 = vadd.f32 %v10228_v56, %v3882_v62  ;;  %9465 = vmatmul.msk.bf16.gmra.mxu2 %vm3159_vm2, %v3114_v27 }
 0x3f0   : > { %v2647_v15 = vadd.f32 %v9991_v53, %v2518_v8 }
 0x3f1   : > { %v4395_v31 = vmax.f32 %v4011_v32, 0.0 }
 0x3f2   : > { %v3536_v60 = vpop.f32.mrf.mxu2  ;;  %v3031_v62 = vmax.f32 %v2647_v15, 0.0  ;;  %v1324_v15 = vunpack.c.l.bf16 %v1192_v34 }
 0x3f3   : > { %v2200_v61 = vpop.f32.mrf.mxu1  ;;  %v10512_v20 = vpack.c.bf16 %v4395_v31, %v4394_v37  ;;  %v3751_v7 = vpack.c.bf16 %v3536_v60, %v3536_v60  ;;  %v1193_v60 = vpack.c.bf16 %v10487_v29, %v10487_v29 }
 0x3f4   : > { %v2387_v39 = vpack.c.bf16 %v2200_v61, %v2200_v61  ;;  %v1910_v61 = vpack.c.bf16 %v1836_v25, %v1835_v16  ;;  %v1453_v16 = vadd.f32 %v9934_v43, %v1324_v15  ;;  %v1194_v15 = vpack.c.bf16 %v10499_v33, %v10499_v33 }
 0x3f5   : > { %12026 = vst [vmem:[#allocation9_spill] sm:$0xff] %v10512_v20  ;;  %v3883_v18 = vunpack.c.l.bf16 %v3751_v7  ;;  %v10525_v38 = vpop.f32.mrf.mxu3 }
 0x3f6   : > { %v2519_v27 = vunpack.c.l.bf16 %v2387_v39  ;;  %v1837_v34 = vmax.f32 %v1453_v16, 0.0 }
 0x3f7   : > { %v4012_v8 = vadd.f32 %v10228_v56, %v3883_v18 }
 0x3f8   : > { %v2648_v17 = vadd.f32 %v9991_v53, %v2519_v27  ;;  %v1325_v27 = vunpack.c.l.bf16 %v1193_v60 }
 0x3fa   : > { %v3032_v30 = vmax.f32 %v2648_v17, 0.0  ;;  %v3538_v32 = vpop.f32.mrf.mxu2  ;;  %v4396_v17 = vmax.f32 %v4012_v8, 0.0  ;;  %v1454_v25 = vadd.f32 %v9934_v43, %v1325_v27 }
 0x3fb   : > { %v3752_v37 = vpack.c.bf16 %v3538_v32, %v3538_v32  ;;  %v2203_v31 = vpop.f32.mrf.mxu1 }
 0x3fc   : > { %v3115_v45 = vpack.c.bf16 %v3032_v30, %v3031_v62  ;;  %v2388_v39 = vpack.c.bf16 %v2203_v31, %v2203_v31 }
 0x3fd   : > { %v3884_v44 = vunpack.c.l.bf16 %v3752_v37 }
 0x3fe   : > { %2242 = vmatmul.bf16.gmra.mxu1 %v1910_v61  ;;  %v2520_v62 = vunpack.c.l.bf16 %v2388_v39 }
 0x3ff   : > { %v4013_v7 = vadd.f32 %v10228_v56, %v3884_v44  ;;  %9466 = vmatmul.msk.bf16.gmra.mxu2 %vm3159_vm2, %v3115_v45  ;;  %v10534_v44 = vpop.f32.mrf.mxu3  ;;  %v1838_v45 = vmax.f32 %v1454_v25, 0.0 }
 0x400   : > { %v2649_v31 = vadd.f32 %v9991_v53, %v2520_v62  ;;  %v1195_v62 = vpack.c.bf16 %v10507_v46, %v10507_v46 }
 0x401   : > { %v4397_v3 = vmax.f32 %v4013_v7, 0.0 }
 0x402   : > { %v3541_v30 = vpop.f32.mrf.mxu2  ;;  %v3033_v39 = vmax.f32 %v2649_v31, 0.0  ;;  %v1327_v31 = vunpack.c.l.bf16 %v1195_v62 }
 0x403   : > { %v2205_v32 = vpop.f32.mrf.mxu1  ;;  %v10529_v29 = vpack.c.bf16 %v4397_v3, %v4396_v17  ;;  %v3753_v37 = vpack.c.bf16 %v3541_v30, %v3541_v30  ;;  %v1911_v30 = vpack.c.bf16 %v1838_v45, %v1837_v34 }
 0x404   : > { %v2389_v18 = vpack.c.bf16 %v2205_v32, %v2205_v32 }
 0x405   : > { %12027 = vst [vmem:[#allocation10_spill] sm:$0xff] %v10529_v29  ;;  %v3885_v8 = vunpack.c.l.bf16 %v3753_v37  ;;  %v1326_v37 = vunpack.c.l.bf16 %v1194_v15 }
 0x406   : > { %v2521_v61 = vunpack.c.l.bf16 %v2389_v18 }
 0x407   : > { %v4014_v32 = vadd.f32 %v10228_v56, %v3885_v8  ;;  %v1455_v34 = vadd.f32 %v9934_v43, %v1326_v37  ;;  %v1196_v37 = vpack.c.bf16 %v10516_v6, %v10516_v6 }
 0x408   : > { %v2650_v60 = vadd.f32 %v9991_v53, %v2521_v61 }
 0x409   : > { %v4398_v61 = vmax.f32 %v4014_v32, 0.0  ;;  %v1839_v15 = vmax.f32 %v1455_v34, 0.0 }
 0x40a   : > { %v3034_v7 = vmax.f32 %v2650_v60, 0.0  ;;  %v3543_v17 = vpop.f32.mrf.mxu2 }
 0x40b   : > { %v3754_v3 = vpack.c.bf16 %v3543_v17, %v3543_v17  ;;  %v2208_v1 = vpop.f32.mrf.mxu1  ;;  %v10544_v17 = vpop.f32.mrf.mxu3 }
 0x40c   : > { %v3116_v27 = vpack.c.bf16 %v3034_v7, %v3033_v39  ;;  %v2390_v25 = vpack.c.bf16 %v2208_v1, %v2208_v1  ;;  %v1456_v1 = vadd.f32 %v9934_v43, %v1327_v31 }
 0x40d   : > { %v3886_v16 = vunpack.c.l.bf16 %v3754_v3 }
 0x40e   : > { %2247 = vmatmul.bf16.gmra.mxu1 %v1911_v30  ;;  %v2522_v33 = vunpack.c.l.bf16 %v2390_v25  ;;  %v1840_v62 = vmax.f32 %v1456_v1, 0.0 }
 0x40f   : > { %v4015_v18 = vadd.f32 %v10228_v56, %v3886_v16  ;;  %9467 = vmatmul.msk.bf16.gmra.mxu2 %vm3159_vm2, %v3116_v27 }
 0x410   : > { %v2651_v3 = vadd.f32 %v9991_v53, %v2522_v33  ;;  %v1197_v33 = vpack.c.bf16 %v10525_v38, %v10525_v38 }
 0x411   : > { %v4399_v60 = vmax.f32 %v4015_v18, 0.0 }
 0x412   : > { %v3546_v39 = vpop.f32.mrf.mxu2  ;;  %v3035_v16 = vmax.f32 %v2651_v3, 0.0  ;;  %v1329_v3 = vunpack.c.l.bf16 %v1197_v33 }
 0x413   : > { %v2210_v7 = vpop.f32.mrf.mxu1  ;;  %v10546_v46 = vpack.c.bf16 %v4399_v60, %v4398_v61  ;;  %v3755_v8 = vpack.c.bf16 %v3546_v39, %v3546_v39  ;;  %v10552_v60 = vpop.f32.mrf.mxu3  ;;  %v1912_v39 = vpack.c.bf16 %v1840_v62, %v1839_v15 }
 0x414   : > { %v2391_v45 = vpack.c.bf16 %v2210_v7, %v2210_v7  ;;  %v1458_v15 = vadd.f32 %v9934_v43, %v1329_v3 }
 0x415   : > { %v3887_v32 = vunpack.c.l.bf16 %v3755_v8  ;;  %v1328_v8 = vunpack.c.l.bf16 %v1196_v37 }
 0x416   : > { %v2523_v27 = vunpack.c.l.bf16 %v2391_v45  ;;  %v1842_v37 = vmax.f32 %v1458_v15, 0.0 }
 0x417   : > { %v4016_v7 = vadd.f32 %v10228_v56, %v3887_v32  ;;  %v1457_v38 = vadd.f32 %v9934_v43, %v1328_v8  ;;  %v1198_v8 = vpack.c.bf16 %v10534_v44, %v10534_v44 }
 0x418   : > { %v2652_v30 = vadd.f32 %v9991_v53, %v2523_v27 }
 0x419   : > { %v4400_v27 = vmax.f32 %v4016_v7, 0.0 }
 0x41a   : > { %v3036_v25 = vmax.f32 %v2652_v30, 0.0  ;;  %v3548_v18 = vpop.f32.mrf.mxu2 }
 0x41b   : > { %v3756_v57 = vpack.c.bf16 %v3548_v18, %v3548_v18  ;;  %v2213_v61 = vpop.f32.mrf.mxu1  ;;  %v1056_v32 = vpop.f32.mrf.mxu3 }
 0x41c   : > { %v3117_v31 = vpack.c.bf16 %v3036_v25, %v3035_v16  ;;  %v2392_v1 = vpack.c.bf16 %v2213_v61, %v2213_v61 }
 0x41d   : > { %v3888_v34 = vunpack.c.l.bf16 %v3756_v57 }
 0x41e   : > { %2252 = vmatmul.bf16.gmra.mxu1 %v1912_v39  ;;  %v2524_v18 = vunpack.c.l.bf16 %v2392_v1 }
 0x41f   : > { %v4017_v45 = vadd.f32 %v10228_v56, %v3888_v34  ;;  %9468 = vmatmul.msk.bf16.gmra.mxu2 %vm3159_vm2, %v3117_v31  ;;  %v1841_v31 = vmax.f32 %v1457_v38, 0.0 }
 0x420   : > { %v2653_v61 = vadd.f32 %v9991_v53, %v2524_v18 }
 0x421   : > { %v4401_v30 = vmax.f32 %v4017_v45, 0.0 }
 0x422   : > { %v3551_v6 = vpop.f32.mrf.mxu2  ;;  %v3037_v34 = vmax.f32 %v2653_v61, 0.0  ;;  %v1330_v61 = vunpack.c.l.bf16 %v1198_v8 }
 0x423   : > { %v2215_v16 = vpop.f32.mrf.mxu1  ;;  %v10561_v25 = vpack.c.bf16 %v4401_v30, %v4400_v27  ;;  %v3757_v62 = vpack.c.bf16 %v3551_v6, %v3551_v6  ;;  %v1199_v6 = vpack.c.bf16 %v10544_v17, %v10544_v17 }
 0x424   : > { %v2393_v57 = vpack.c.bf16 %v2215_v16, %v2215_v16  ;;  %v1913_v16 = vpack.c.bf16 %v1842_v37, %v1841_v31  ;;  %v1459_v31 = vadd.f32 %v9934_v43, %v1330_v61  ;;  %v1200_v61 = vpack.c.bf16 %v10552_v60, %v10552_v60 }
 0x425   : > { %v3889_v7 = vunpack.c.l.bf16 %v3757_v62  ;;  %v10574_v62 = vpop.f32.mrf.mxu3 }
 0x426   : > { %v2525_v39 = vunpack.c.l.bf16 %v2393_v57 }
 0x427   : > { %v4018_v18 = vadd.f32 %v10228_v56, %v3889_v7 }
 0x428   : > { %v2654_v33 = vadd.f32 %v9991_v53, %v2525_v39  ;;  %v1331_v39 = vunpack.c.l.bf16 %v1199_v6 }
 0x42a   : > { %v3038_v1 = vmax.f32 %v2654_v33, 0.0  ;;  %v3553_v45 = vpop.f32.mrf.mxu2  ;;  %v4402_v33 = vmax.f32 %v4018_v18, 0.0  ;;  %v1460_v37 = vadd.f32 %v9934_v43, %v1331_v39 }
 0x42b   : > { %v3758_v27 = vpack.c.bf16 %v3553_v45, %v3553_v45  ;;  %v2218_v30 = vpop.f32.mrf.mxu1 }
 0x42c   : > { %v3118_v3 = vpack.c.bf16 %v3038_v1, %v3037_v34  ;;  %v2394_v15 = vpack.c.bf16 %v2218_v30, %v2218_v30 }
 0x42d   : > { %v3890_v38 = vunpack.c.l.bf16 %v3758_v27  ;;  %v1061_v18 = vpop.f32.mrf.mxu3 }
 0x42e   : > { %2257 = vmatmul.bf16.gmra.mxu1 %v1913_v16  ;;  %v2526_v34 = vunpack.c.l.bf16 %v2394_v15  ;;  %v1843_v16 = vmax.f32 %v1459_v31, 0.0 }
 0x42f   : > { %v4019_v57 = vadd.f32 %v10228_v56, %v3890_v38  ;;  %9469 = vmatmul.msk.bf16.gmra.mxu2 %vm3159_vm2, %v3118_v3  ;;  %v1844_v38 = vmax.f32 %v1460_v37, 0.0 }
 0x430   : > { %v2655_v30 = vadd.f32 %v9991_v53, %v2526_v34 }
 0x431   : > { %v4403_v44 = vmax.f32 %v4019_v57, 0.0 }
 0x432   : > { %v3556_v1 = vpop.f32.mrf.mxu2  ;;  %v3039_v15 = vmax.f32 %v2655_v30, 0.0 }
 0x433   : > { %v2220_v45 = vpop.f32.mrf.mxu1  ;;  %v10576_v17 = vpack.c.bf16 %v4403_v44, %v4402_v33  ;;  %v3759_v27 = vpack.c.bf16 %v3556_v1, %v3556_v1  ;;  %v1914_v1 = vpack.c.bf16 %v1844_v38, %v1843_v16 }
 0x434   : > { %v2395_v7 = vpack.c.bf16 %v2220_v45, %v2220_v45  ;;  %v1201_v45 = vpack.c.bf16 %v1056_v32, %v1056_v32 }
 0x435   : > { %v3891_v6 = vunpack.c.l.bf16 %v3759_v27  ;;  %v1332_v27 = vunpack.c.l.bf16 %v1200_v61  ;;  %v1064_v60 = vpop.f32.mrf.mxu3 }
 0x436   : > { %v2527_v3 = vunpack.c.l.bf16 %v2395_v7  ;;  %v1333_v30 = vunpack.c.l.bf16 %v1201_v45 }
 0x437   : > { %v4020_v34 = vadd.f32 %v10228_v56, %v3891_v6  ;;  %v1461_v32 = vadd.f32 %v9934_v43, %v1332_v27  ;;  %v1202_v27 = vpack.c.bf16 %v10574_v62, %v10574_v62 }
 0x438   : > { %v2656_v8 = vadd.f32 %v9991_v53, %v2527_v3  ;;  %v1462_v16 = vadd.f32 %v9934_v43, %v1333_v30  ;;  %v1203_v30 = vpack.c.bf16 %v1061_v18, %v1061_v18 }
 0x439   : > { %v4404_v3 = vmax.f32 %v4020_v34, 0.0 }
 0x43a   : > { %v3040_v57 = vmax.f32 %v2656_v8, 0.0  ;;  %v3558_v23 = vpop.f32.mrf.mxu2  ;;  %v1846_v61 = vmax.f32 %v1462_v16, 0.0 }
 0x43b   : > { %v3760_v33 = vpack.c.bf16 %v3558_v23, %v3558_v23  ;;  %v2223_v44 = vpop.f32.mrf.mxu1 }
 0x43c   : > { %v3119_v39 = vpack.c.bf16 %v3040_v57, %v3039_v15  ;;  %v2396_v31 = vpack.c.bf16 %v2223_v44, %v2223_v44  ;;  %v1845_v44 = vmax.f32 %v1461_v32, 0.0 }
 0x43d   : > { %v3892_v7 = vunpack.c.l.bf16 %v3760_v33 }
 0x43e   : > { %2262 = vmatmul.bf16.gmra.mxu1 %v1914_v1  ;;  %v2528_v8 = vunpack.c.l.bf16 %v2396_v31 }
 0x43f   : > { %v4021_v37 = vadd.f32 %v10228_v56, %v3892_v7  ;;  %9470 = vmatmul.msk.bf16.gmra.mxu2 %vm3159_vm2, %v3119_v39 }
 0x440   : > { %v2657_v57 = vadd.f32 %v9991_v53, %v2528_v8  ;;  %v1066_v8 = vpop.f32.mrf.mxu3 }
 0x441   : > { %v4405_v23 = vmax.f32 %v4021_v37, 0.0 }
 0x442   : > { %v3561_v20 = vpop.f32.mrf.mxu2  ;;  %v3041_v1 = vmax.f32 %v2657_v57, 0.0 }
 0x443   : > { %v2225_v29 = vpop.f32.mrf.mxu1  ;;  %v10587_v15 = vpack.c.bf16 %v4405_v23, %v4404_v3  ;;  %v3761_v6 = vpack.c.bf16 %v3561_v20, %v3561_v20 }
 0x444   : > { %v2397_v38 = vpack.c.bf16 %v2225_v29, %v2225_v29  ;;  %v1915_v29 = vpack.c.bf16 %v1846_v61, %v1845_v44 }
 0x445   : > { %v3893_v45 = vunpack.c.l.bf16 %v3761_v6  ;;  %v1335_v6 = vunpack.c.l.bf16 %v1203_v30 }
 0x446   : > { %v2529_v33 = vunpack.c.l.bf16 %v2397_v38  ;;  %v1334_v38 = vunpack.c.l.bf16 %v1202_v27 }
 0x447   : > { %v4022_v20 = vadd.f32 %v10228_v56, %v3893_v45  ;;  %v1464_v44 = vadd.f32 %v9934_v43, %v1335_v6 }
 0x448   : > { %v2658_v39 = vadd.f32 %v9991_v53, %v2529_v33  ;;  %v1463_v18 = vadd.f32 %v9934_v43, %v1334_v38 }
 0x449   : > { %v4406_v57 = vmax.f32 %v4022_v20, 0.0  ;;  %v1848_v27 = vmax.f32 %v1464_v44, 0.0 }
 0x44a   : > { %v3042_v34 = vmax.f32 %v2658_v39, 0.0  ;;  %v3563_v7 = vpop.f32.mrf.mxu2 }
 0x44b   : > { %v3762_v31 = vpack.c.bf16 %v3563_v7, %v3563_v7  ;;  %v2228_v37 = vpop.f32.mrf.mxu1 }
 0x44c   : > { %v3120_v3 = vpack.c.bf16 %v3042_v34, %v3041_v1  ;;  %v2398_v32 = vpack.c.bf16 %v2228_v37, %v2228_v37  ;;  %v1069_v37 = vpop.f32.mrf.mxu3 }
 0x44d   : > { %v3894_v23 = vunpack.c.l.bf16 %v3762_v31 }
 0x44e   : > { %2267 = vmatmul.bf16.gmra.mxu1 %v1915_v29  ;;  %v2530_v39 = vunpack.c.l.bf16 %v2398_v32 }
 0x44f   : > { %v4023_v16 = vadd.f32 %v10228_v56, %v3894_v23  ;;  %9471 = vmatmul.msk.bf16.gmra.mxu2 %vm3159_vm2, %v3120_v3  ;;  %v1847_v3 = vmax.f32 %v1463_v18, 0.0 }
 0x450   : > { %v2659_v34 = vadd.f32 %v9991_v53, %v2530_v39 }
 0x451   : > { %v4407_v33 = vmax.f32 %v4023_v16, 0.0  ;;  %v1916_v6 = vpack.c.bf16 %v1848_v27, %v1847_v3 }
 0x452   : > { %v3566_v7 = vpop.f32.mrf.mxu2  ;;  %v3043_v20 = vmax.f32 %v2659_v34, 0.0 }
 0x453   : > { %v2230_v62 = vpop.f32.mrf.mxu1  ;;  %v10598_v1 = vpack.c.bf16 %v4407_v33, %v4406_v57  ;;  %v3763_v45 = vpack.c.bf16 %v3566_v7, %v3566_v7  ;;  %v1204_v33 = vpack.c.bf16 %v1064_v60, %v1064_v60 }
 0x454   : > { %v2399_v61 = vpack.c.bf16 %v2230_v62, %v2230_v62 }
 0x455   : > { %12028 = vst [vmem:[#allocation11_spill] sm:$0xff] %v10598_v1  ;;  %v3895_v29 = vunpack.c.l.bf16 %v3763_v45  ;;  %v1205_v1 = vpack.c.bf16 %v1066_v8, %v1066_v8  ;;  %v1336_v44 = vunpack.c.l.bf16 %v1204_v33 }
 0x456   : > { %v2531_v31 = vunpack.c.l.bf16 %v2399_v61 }
 0x457   : > { %v4024_v7 = vadd.f32 %v10228_v56, %v3895_v29  ;;  %v1337_v61 = vunpack.c.l.bf16 %v1205_v1  ;;  %v1465_v8 = vadd.f32 %v9934_v43, %v1336_v44 }
 0x458   : > { %v2660_v30 = vadd.f32 %v9991_v53, %v2531_v31  ;;  %v1071_v31 = vpop.f32.mrf.mxu3 }
 0x459   : > { %v4408_v45 = vmax.f32 %v4024_v7, 0.0  ;;  %v1466_v3 = vadd.f32 %v9934_v43, %v1337_v61 }
 0x45a   : > { %v3044_v23 = vmax.f32 %v2660_v30, 0.0  ;;  %v3568_v32 = vpop.f32.mrf.mxu2 }
 0x45b   : > { %v3764_v16 = vpack.c.bf16 %v3568_v32, %v3568_v32  ;;  %v2233_v57 = vpop.f32.mrf.mxu1  ;;  %v1850_v33 = vmax.f32 %v1466_v3, 0.0 }
 0x45c   : > { %v3121_v38 = vpack.c.bf16 %v3044_v23, %v3043_v20  ;;  %v2400_v39 = vpack.c.bf16 %v2233_v57, %v2233_v57  ;;  %v1849_v57 = vmax.f32 %v1465_v8, 0.0 }
 0x45d   : > { %v3896_v62 = vunpack.c.l.bf16 %v3764_v16 }
 0x45e   : > { %2272 = vmatmul.bf16.gmra.mxu1 %v1916_v6  ;;  %v2532_v30 = vunpack.c.l.bf16 %v2400_v39  ;;  %v1917_v61 = vpack.c.bf16 %v1850_v33, %v1849_v57 }
 0x45f   : > { %v4025_v18 = vadd.f32 %v10228_v56, %v3896_v62  ;;  %9472 = vmatmul.msk.bf16.gmra.mxu2 %vm3159_vm2, %v3121_v38 }
 0x460   : > { %v2661_v23 = vadd.f32 %v9991_v53, %v2532_v30 }
 0x461   : > { %v4409_v34 = vmax.f32 %v4025_v18, 0.0 }
 0x462   : > { %v3571_v32 = vpop.f32.mrf.mxu2  ;;  %v3045_v6 = vmax.f32 %v2661_v23, 0.0 }
 0x463   : > { %v2235_v60 = vpop.f32.mrf.mxu1  ;;  %v10607_v20 = vpack.c.bf16 %v4409_v34, %v4408_v45  ;;  %v3765_v29 = vpack.c.bf16 %v3571_v32, %v3571_v32  ;;  %v1074_v45 = vpop.f32.mrf.mxu3  ;;  %v1206_v34 = vpack.c.bf16 %v1069_v37, %v1069_v37 }
 0x464   : > { %v2401_v27 = vpack.c.bf16 %v2235_v60, %v2235_v60 }
 0x465   : > { %12029 = vst [vmem:[#allocation12_spill] sm:$0xff] %v10607_v20  ;;  %v3897_v38 = vunpack.c.l.bf16 %v3765_v29  ;;  %v1207_v20 = vpack.c.bf16 %v1071_v31, %v1071_v31  ;;  %v1338_v3 = vunpack.c.l.bf16 %v1206_v34 }
 0x466   : > { %v2533_v16 = vunpack.c.l.bf16 %v2401_v27 }
 0x467   : > { %v4026_v32 = vadd.f32 %v10228_v56, %v3897_v38  ;;  %v1339_v27 = vunpack.c.l.bf16 %v1207_v20  ;;  %v1467_v31 = vadd.f32 %v9934_v43, %v1338_v3 }
 0x468   : > { %v2662_v1 = vadd.f32 %v9991_v53, %v2533_v16 }
 0x469   : > { %v4410_v29 = vmax.f32 %v4026_v32, 0.0  ;;  %v1468_v57 = vadd.f32 %v9934_v43, %v1339_v27 }
 0x46a   : > { %v3046_v7 = vmax.f32 %v2662_v1, 0.0  ;;  %v3573_v62 = vpop.f32.mrf.mxu2 }
 0x46b   : > { %v3766_v39 = vpack.c.bf16 %v3573_v62, %v3573_v62  ;;  %v2238_v18 = vpop.f32.mrf.mxu1  ;;  %v1852_v34 = vmax.f32 %v1468_v57, 0.0 }
 0x46c   : > { %v3122_v44 = vpack.c.bf16 %v3046_v7, %v3045_v6  ;;  %v2402_v30 = vpack.c.bf16 %v2238_v18, %v2238_v18  ;;  %v1076_v6 = vpop.f32.mrf.mxu3  ;;  %v1851_v18 = vmax.f32 %v1467_v31, 0.0 }
 0x46d   : > { %v3898_v60 = vunpack.c.l.bf16 %v3766_v39 }
 0x46e   : > { %2277 = vmatmul.bf16.gmra.mxu1 %v1917_v61  ;;  %v2534_v16 = vunpack.c.l.bf16 %v2402_v30  ;;  %v1918_v27 = vpack.c.bf16 %v1852_v34, %v1851_v18 }
 0x46f   : > { %v4027_v8 = vadd.f32 %v10228_v56, %v3898_v60  ;;  %9473 = vmatmul.msk.bf16.gmra.mxu2 %vm3159_vm2, %v3122_v44 }
 0x470   : > { %v2663_v7 = vadd.f32 %v9991_v53, %v2534_v16 }
 0x471   : > { %v4411_v23 = vmax.f32 %v4027_v8, 0.0 }
 0x472   : > { %v3576_v1 = vpop.f32.mrf.mxu2  ;;  %v3047_v61 = vmax.f32 %v2663_v7, 0.0 }
 0x473   : > { %v2240_v62 = vpop.f32.mrf.mxu1  ;;  %v10616_v37 = vpack.c.bf16 %v4411_v23, %v4410_v29  ;;  %v3767_v38 = vpack.c.bf16 %v3576_v1, %v3576_v1  ;;  %v1208_v29 = vpack.c.bf16 %v1074_v45, %v1074_v45  ;;  %v1209_v23 = vpack.c.bf16 %v1076_v6, %v1076_v6 }
 0x474   : > { %v2403_v33 = vpack.c.bf16 %v2240_v62, %v2240_v62  ;;  %v1079_v31 = vpop.f32.mrf.mxu3 }
 0x475   : > { %12030 = vst [vmem:[#allocation13_spill] sm:$0xff] %v10616_v37  ;;  %v3899_v44 = vunpack.c.l.bf16 %v3767_v38  ;;  %v1340_v57 = vunpack.c.l.bf16 %v1208_v29 }
 0x476   : > { %v2535_v39 = vunpack.c.l.bf16 %v2403_v33  ;;  %v1341_v33 = vunpack.c.l.bf16 %v1209_v23 }
 0x477   : > { %v4028_v1 = vadd.f32 %v10228_v56, %v3899_v44  ;;  %v1469_v6 = vadd.f32 %v9934_v43, %v1340_v57 }
 0x478   : > { %v2664_v20 = vadd.f32 %v9991_v53, %v2535_v39  ;;  %v1470_v18 = vadd.f32 %v9934_v43, %v1341_v33 }
 0x479   : > { %v4412_v38 = vmax.f32 %v4028_v1, 0.0 }
 0x47a   : > { %v3048_v32 = vmax.f32 %v2664_v20, 0.0  ;;  %v3578_v60 = vpop.f32.mrf.mxu2 }
 0x47b   : > { %v3768_v30 = vpack.c.bf16 %v3578_v60, %v3578_v60  ;;  %v2243_v8 = vpop.f32.mrf.mxu1 }
 0x47c   : > { %v3123_v3 = vpack.c.bf16 %v3048_v32, %v3047_v61  ;;  %v2404_v37 = vpack.c.bf16 %v2243_v8, %v2243_v8  ;;  %v1854_v8 = vmax.f32 %v1470_v18, 0.0  ;;  %v1081_v23 = vpop.f32.mrf.mxu3 }
 0x47d   : > { %v3900_v62 = vunpack.c.l.bf16 %v3768_v30  ;;  %v1853_v30 = vmax.f32 %v1469_v6, 0.0 }
 0x47e   : > { %2282 = vmatmul.bf16.gmra.mxu1 %v1918_v27  ;;  %v2536_v39 = vunpack.c.l.bf16 %v2404_v37 }
 0x47f   : > { %v4029_v16 = vadd.f32 %v10228_v56, %v3900_v62  ;;  %9474 = vmatmul.msk.bf16.gmra.mxu2 %vm3159_vm2, %v3123_v3  ;;  %v1919_v33 = vpack.c.bf16 %v1854_v8, %v1853_v30 }
 0x480   : > { %v2665_v32 = vadd.f32 %v9991_v53, %v2536_v39 }
 0x481   : > { %v4413_v7 = vmax.f32 %v4029_v16, 0.0 }
 0x482   : > { %v3581_v20 = vpop.f32.mrf.mxu2  ;;  %v3049_v37 = vmax.f32 %v2665_v32, 0.0 }
 0x483   : > { %v2245_v45 = vpop.f32.mrf.mxu1  ;;  %v10625_v61 = vpack.c.bf16 %v4413_v7, %v4412_v38  ;;  %v3769_v44 = vpack.c.bf16 %v3581_v20, %v3581_v20  ;;  %v1210_v38 = vpack.c.bf16 %v1079_v31, %v1079_v31  ;;  %v1211_v7 = vpack.c.bf16 %v1081_v23, %v1081_v23 }
 0x484   : > { %v2405_v34 = vpack.c.bf16 %v2245_v45, %v2245_v45 }
 0x485   : > { %v3901_v3 = vunpack.c.l.bf16 %v3769_v44  ;;  %v1342_v18 = vunpack.c.l.bf16 %v1210_v38 }
 0x486   : > { %v2537_v60 = vunpack.c.l.bf16 %v2405_v34  ;;  %v1343_v34 = vunpack.c.l.bf16 %v1211_v7 }
 0x487   : > { %v4030_v20 = vadd.f32 %v10228_v56, %v3901_v3  ;;  %v1471_v30 = vadd.f32 %v9934_v43, %v1342_v18 }
 0x488   : > { %v2666_v29 = vadd.f32 %v9991_v53, %v2537_v60  ;;  %v1472_v8 = vadd.f32 %v9934_v43, %v1343_v34 }
 0x489   : > { %v4414_v44 = vmax.f32 %v4030_v20, 0.0 }
 0x48a   : > { %v3050_v27 = vmax.f32 %v2666_v29, 0.0  ;;  %v3583_v1 = vpop.f32.mrf.mxu2 }
 0x48b   : > { %v3770_v62 = vpack.c.bf16 %v3583_v1, %v3583_v1  ;;  %v2248_v16 = vpop.f32.mrf.mxu1 }
 0x48c   : > { %v3124_v57 = vpack.c.bf16 %v3050_v27, %v3049_v37  ;;  %v2406_v39 = vpack.c.bf16 %v2248_v16, %v2248_v16  ;;  %v1856_v16 = vmax.f32 %v1472_v8, 0.0 }
 0x48d   : > { %v3902_v45 = vunpack.c.l.bf16 %v3770_v62  ;;  %v1855_v62 = vmax.f32 %v1471_v30, 0.0 }
 0x48e   : > { %2287 = vmatmul.bf16.gmra.mxu1 %v1919_v33  ;;  %v2538_v60 = vunpack.c.l.bf16 %v2406_v39 }
 0x48f   : > { %v4031_v6 = vadd.f32 %v10228_v56, %v3902_v45  ;;  %9475 = vmatmul.msk.bf16.gmra.mxu2 %vm3159_vm2, %v3124_v57 }
 0x490   : > { %v2667_v37 = vadd.f32 %v9991_v53, %v2538_v60 }
 0x491   : > { %v4415_v32 = vmax.f32 %v4031_v6, 0.0 }
 0x492   : > { %v3586_v29 = vpop.f32.mrf.mxu2  ;;  %v3051_v7 = vmax.f32 %v2667_v37, 0.0 }
 0x493   : > { %v2250_v1 = vpop.f32.mrf.mxu1  ;;  %v10634_v31 = vpack.c.bf16 %v4415_v32, %v4414_v44  ;;  %v3771_v23 = vpack.c.bf16 %v3586_v29, %v3586_v29  ;;  %v1920_v44 = vpack.c.bf16 %v1856_v16, %v1855_v62 }
 0x494   : > { %v2407_v3 = vpack.c.bf16 %v2250_v1, %v2250_v1 }
 0x495   : > { %v3903_v57 = vunpack.c.l.bf16 %v3771_v23 }
 0x496   : > { %v2539_v27 = vunpack.c.l.bf16 %v2407_v3 }
 0x497   : > { %v4032_v18 = vadd.f32 %v10228_v56, %v3903_v57 }
 0x498   : > { %v2668_v38 = vadd.f32 %v9991_v53, %v2539_v27 }
 0x499   : > { %v4416_v29 = vmax.f32 %v4032_v18, 0.0 }
 0x49a   : > { %v3052_v33 = vmax.f32 %v2668_v38, 0.0  ;;  %v3588_v20 = vpop.f32.mrf.mxu2 }
 0x49b   : > { %v3772_v45 = vpack.c.bf16 %v3588_v20, %v3588_v20  ;;  %v2253_v39 = vpop.f32.mrf.mxu1 }
 0x49c   : > { %v3125_v6 = vpack.c.bf16 %v3052_v33, %v3051_v7  ;;  %v2408_v32 = vpack.c.bf16 %v2253_v39, %v2253_v39 }
 0x49d   : > { %v3904_v34 = vunpack.c.l.bf16 %v3772_v45 }
 0x49e   : > { %2292 = vmatmul.bf16.gmra.mxu1 %v1920_v44  ;;  %v2540_v30 = vunpack.c.l.bf16 %v2408_v32 }
 0x49f   : > { %v4033_v60 = vadd.f32 %v10228_v56, %v3904_v34  ;;  %9476 = vmatmul.msk.bf16.gmra.mxu2 %vm3159_vm2, %v3125_v6 }
 0x4a0   : > { %v2669_v62 = vadd.f32 %v9991_v53, %v2540_v30 }
 0x4a1   : > { %v4417_v1 = vmax.f32 %v4033_v60, 0.0 }
 0x4a2   : > { %v3591_v8 = vpop.f32.mrf.mxu2  ;;  %v3053_v7 = vmax.f32 %v2669_v62, 0.0 }
 0x4a3   : > { %v2255_v3 = vpop.f32.mrf.mxu1  ;;  %v10643_v23 = vpack.c.bf16 %v4417_v1, %v4416_v29  ;;  %v3773_v27 = vpack.c.bf16 %v3591_v8, %v3591_v8 }
 0x4a4   : > { %v2409_v37 = vpack.c.bf16 %v2255_v3, %v2255_v3 }
 0x4a5   : > { %v3905_v57 = vunpack.c.l.bf16 %v3773_v27 }
 0x4a6   : > { %v2541_v16 = vunpack.c.l.bf16 %v2409_v37 }
 0x4a7   : > { %v4034_v44 = vadd.f32 %v10228_v56, %v3905_v57 }
 0x4a8   : > { %v2670_v38 = vadd.f32 %v9991_v53, %v2541_v16 }
 0x4a9   : > { %v4418_v60 = vmax.f32 %v4034_v44, 0.0 }
 0x4aa   : > { %v3054_v33 = vmax.f32 %v2670_v38, 0.0  ;;  %v3593_v20 = vpop.f32.mrf.mxu2 }
 0x4ab   : > { %v3774_v45 = vpack.c.bf16 %v3593_v20, %v3593_v20  ;;  %v2258_v39 = vpop.f32.mrf.mxu1 }
 0x4ac   : > { %v3126_v6 = vpack.c.bf16 %v3054_v33, %v3053_v7  ;;  %v2410_v34 = vpack.c.bf16 %v2258_v39, %v2258_v39 }
 0x4ad   : > { %v3906_v18 = vunpack.c.l.bf16 %v3774_v45 }
 0x4ae   : > { %9422 = vmatmul.msk.bf16.vlgmr.msrb.gmra.mxu1 %vm3159_vm2, %v9999_v10  ;;  %v2542_v1 = vunpack.c.l.bf16 %v2410_v34 }
 0x4af   : > { %v4035_v32 = vadd.f32 %v10228_v56, %v3906_v18  ;;  %9477 = vmatmul.msk.bf16.gmra.mxu2 %vm3159_vm2, %v3126_v6 }
 0x4b0   : > { %v2671_v62 = vadd.f32 %v9991_v53, %v2542_v1 }
 0x4b1   : > { %v4419_v29 = vmax.f32 %v4035_v32, 0.0 }
 0x4b2   : > { %v3596_v30 = vpop.f32.mrf.mxu2  ;;  %v3055_v10 = vmax.f32 %v2671_v62, 0.0 }
 0x4b3   : > { %v2260_v8 = vpop.f32.mrf.mxu1  ;;  %v10652_v3 = vpack.c.bf16 %v4419_v29, %v4418_v60  ;;  %v3775_v27 = vpack.c.bf16 %v3596_v30, %v3596_v30 }
 0x4b4   : > { %v2411_v37 = vpack.c.bf16 %v2260_v8, %v2260_v8 }
 0x4b5   : > { %v3907_v57 = vunpack.c.l.bf16 %v3775_v27 }
 0x4b6   : > { %v2543_v16 = vunpack.c.l.bf16 %v2411_v37 }
 0x4b7   : > { %v4036_v6 = vadd.f32 %v10228_v56, %v3907_v57 }
 0x4b8   : > { %v2672_v38 = vadd.f32 %v9991_v53, %v2543_v16 }
 0x4b9   : > { %v4420_v32 = vmax.f32 %v4036_v6, 0.0 }
 0x4ba   : > { %v3056_v7 = vmax.f32 %v2672_v38, 0.0  ;;  %v3598_v33 = vpop.f32.mrf.mxu2 }
 0x4bb   : > { %v3776_v20 = vpack.c.bf16 %v3598_v33, %v3598_v33  ;;  %v2263_v45 = vpop.f32.mrf.mxu1 }
 0x4bc   : > { %v3127_v39 = vpack.c.bf16 %v3056_v7, %v3055_v10  ;;  %v2412_v18 = vpack.c.bf16 %v2263_v45, %v2263_v45 }
 0x4bd   : > { %v3908_v44 = vunpack.c.l.bf16 %v3776_v20 }
 0x4be   : > { %9423 = vmatmul.msk.bf16.gmra.mxu1 %vm3159_vm2, %v10008_v35  ;;  %v2544_v29 = vunpack.c.l.bf16 %v2412_v18 }
 0x4bf   : > { %v4037_v34 = vadd.f32 %v10228_v56, %v3908_v44  ;;  %9478 = vmatmul.msk.bf16.gmra.mxu2 %vm3159_vm2, %v3127_v39 }
 0x4c0   : > { %v2673_v62 = vadd.f32 %v9991_v53, %v2544_v29 }
 0x4c1   : > { %v4421_v60 = vmax.f32 %v4037_v34, 0.0 }
 0x4c2   : > { %v3601_v1 = vpop.f32.mrf.mxu2  ;;  %v3057_v35 = vmax.f32 %v2673_v62, 0.0 }
 0x4c3   : > { %v2265_v30 = vpop.f32.mrf.mxu1  ;;  %v10661_v8 = vpack.c.bf16 %v4421_v60, %v4420_v32  ;;  %v3777_v27 = vpack.c.bf16 %v3601_v1, %v3601_v1 }
 0x4c4   : > { %v2413_v37 = vpack.c.bf16 %v2265_v30, %v2265_v30 }
 0x4c5   : > { %v3909_v57 = vunpack.c.l.bf16 %v3777_v27 }
 0x4c6   : > { %v2545_v16 = vunpack.c.l.bf16 %v2413_v37 }
 0x4c7   : > { %v4038_v39 = vadd.f32 %v10228_v56, %v3909_v57 }
 0x4c8   : > { %v2674_v38 = vadd.f32 %v9991_v53, %v2545_v16 }
 0x4c9   : > { %v4422_v34 = vmax.f32 %v4038_v39, 0.0 }
 0x4ca   : > { %v3058_v10 = vmax.f32 %v2674_v38, 0.0  ;;  %v3603_v7 = vpop.f32.mrf.mxu2 }
 0x4cb   : > { %v3778_v33 = vpack.c.bf16 %v3603_v7, %v3603_v7  ;;  %v2268_v20 = vpop.f32.mrf.mxu1 }
 0x4cc   : > { %v3128_v45 = vpack.c.bf16 %v3058_v10, %v3057_v35  ;;  %v2414_v44 = vpack.c.bf16 %v2268_v20, %v2268_v20 }
 0x4cd   : > { %v3910_v6 = vunpack.c.l.bf16 %v3778_v33 }
 0x4ce   : > { %9424 = vmatmul.msk.bf16.gmra.mxu1 %vm3159_vm2, %v10017_v63  ;;  %v2546_v60 = vunpack.c.l.bf16 %v2414_v44 }
 0x4cf   : > { %v4039_v18 = vadd.f32 %v10228_v56, %v3910_v6  ;;  %9479 = vmatmul.msk.bf16.gmra.mxu2 %vm3159_vm2, %v3128_v45 }
 0x4d0   : > { %v2675_v62 = vadd.f32 %v9991_v53, %v2546_v60 }
 0x4d1   : > { %v4423_v32 = vmax.f32 %v4039_v18, 0.0 }
 0x4d2   : > { %v3606_v29 = vpop.f32.mrf.mxu2  ;;  %v3059_v63 = vmax.f32 %v2675_v62, 0.0 }
 0x4d3   : > { %v2270_v1 = vpop.f32.mrf.mxu1  ;;  %v10670_v30 = vpack.c.bf16 %v4423_v32, %v4422_v34  ;;  %v3779_v27 = vpack.c.bf16 %v3606_v29, %v3606_v29 }
 0x4d4   : > { %v2415_v37 = vpack.c.bf16 %v2270_v1, %v2270_v1 }
 0x4d5   : > { %v3911_v57 = vunpack.c.l.bf16 %v3779_v27 }
 0x4d6   : > { %v2547_v16 = vunpack.c.l.bf16 %v2415_v37 }
 0x4d7   : > { %v4040_v45 = vadd.f32 %v10228_v56, %v3911_v57 }
 0x4d8   : > { %v2676_v38 = vadd.f32 %v9991_v53, %v2547_v16 }
 0x4d9   : > { %v4424_v18 = vmax.f32 %v4040_v45, 0.0 }
 0x4da   : > { %v3060_v35 = vmax.f32 %v2676_v38, 0.0  ;;  %v3608_v10 = vpop.f32.mrf.mxu2 }
 0x4db   : > { %v3780_v7 = vpack.c.bf16 %v3608_v10, %v3608_v10  ;;  %v2273_v33 = vpop.f32.mrf.mxu1 }
 0x4dc   : > { %v3129_v20 = vpack.c.bf16 %v3060_v35, %v3059_v63  ;;  %v2416_v6 = vpack.c.bf16 %v2273_v33, %v2273_v33 }
 0x4dd   : > { %v3912_v39 = vunpack.c.l.bf16 %v3780_v7 }
 0x4de   : > { %9425 = vmatmul.msk.bf16.gmra.mxu1 %vm3159_vm2, %v10026_v26  ;;  %v2548_v32 = vunpack.c.l.bf16 %v2416_v6 }
 0x4df   : > { %v4041_v44 = vadd.f32 %v10228_v56, %v3912_v39  ;;  %9480 = vmatmul.msk.bf16.gmra.mxu2 %vm3159_vm2, %v3129_v20 }
 0x4e0   : > { %v2677_v62 = vadd.f32 %v9991_v53, %v2548_v32 }
 0x4e1   : > { %v4425_v34 = vmax.f32 %v4041_v44, 0.0 }
 0x4e2   : > { %v3611_v60 = vpop.f32.mrf.mxu2  ;;  %v3061_v26 = vmax.f32 %v2677_v62, 0.0 }
 0x4e3   : > { %v2275_v29 = vpop.f32.mrf.mxu1  ;;  %v10679_v1 = vpack.c.bf16 %v4425_v34, %v4424_v18  ;;  %v3781_v27 = vpack.c.bf16 %v3611_v60, %v3611_v60 }
 0x4e4   : > { %v2417_v37 = vpack.c.bf16 %v2275_v29, %v2275_v29 }
 0x4e5   : > { %v3913_v57 = vunpack.c.l.bf16 %v3781_v27 }
 0x4e6   : > { %v2549_v16 = vunpack.c.l.bf16 %v2417_v37 }
 0x4e7   : > { %v4042_v20 = vadd.f32 %v10228_v56, %v3913_v57 }
 0x4e8   : > { %v2678_v38 = vadd.f32 %v9991_v53, %v2549_v16 }
 0x4e9   : > { %v4426_v44 = vmax.f32 %v4042_v20, 0.0 }
 0x4ea   : > { %v3062_v63 = vmax.f32 %v2678_v38, 0.0  ;;  %v3613_v35 = vpop.f32.mrf.mxu2 }
 0x4eb   : > { %v3782_v10 = vpack.c.bf16 %v3613_v35, %v3613_v35  ;;  %v2278_v7 = vpop.f32.mrf.mxu1 }
 0x4ec   : > { %v3130_v33 = vpack.c.bf16 %v3062_v63, %v3061_v26  ;;  %v2418_v39 = vpack.c.bf16 %v2278_v7, %v2278_v7 }
 0x4ed   : > { %v3914_v45 = vunpack.c.l.bf16 %v3782_v10 }
 0x4ee   : > { %9426 = vmatmul.msk.bf16.gmra.mxu1 %vm3159_vm2, %v10035_v55  ;;  %v2550_v34 = vunpack.c.l.bf16 %v2418_v39 }
 0x4ef   : > { %v4043_v6 = vadd.f32 %v10228_v56, %v3914_v45  ;;  %9481 = vmatmul.msk.bf16.gmra.mxu2 %vm3159_vm2, %v3130_v33 }
 0x4f0   : > { %v2679_v62 = vadd.f32 %v9991_v53, %v2550_v34 }
 0x4f1   : > { %v4427_v18 = vmax.f32 %v4043_v6, 0.0 }
 0x4f2   : > { %v3616_v32 = vpop.f32.mrf.mxu2  ;;  %v3063_v55 = vmax.f32 %v2679_v62, 0.0 }
 0x4f3   : > { %v2280_v60 = vpop.f32.mrf.mxu1  ;;  %v10688_v29 = vpack.c.bf16 %v4427_v18, %v4426_v44  ;;  %v3783_v27 = vpack.c.bf16 %v3616_v32, %v3616_v32 }
 0x4f4   : > { %v2419_v37 = vpack.c.bf16 %v2280_v60, %v2280_v60 }
 0x4f5   : > { %v3915_v57 = vunpack.c.l.bf16 %v3783_v27 }
 0x4f6   : > { %v2551_v16 = vunpack.c.l.bf16 %v2419_v37 }
 0x4f7   : > { %v4044_v33 = vadd.f32 %v10228_v56, %v3915_v57 }
 0x4f8   : > { %v2680_v38 = vadd.f32 %v9991_v53, %v2551_v16 }
 0x4f9   : > { %v4428_v6 = vmax.f32 %v4044_v33, 0.0 }
 0x4fa   : > { %v3064_v26 = vmax.f32 %v2680_v38, 0.0  ;;  %v3618_v63 = vpop.f32.mrf.mxu2 }
 0x4fb   : > { %v3784_v35 = vpack.c.bf16 %v3618_v63, %v3618_v63  ;;  %v2283_v10 = vpop.f32.mrf.mxu1 }
 0x4fc   : > { %v3131_v7 = vpack.c.bf16 %v3064_v26, %v3063_v55  ;;  %v2420_v45 = vpack.c.bf16 %v2283_v10, %v2283_v10 }
 0x4fd   : > { %v3916_v20 = vunpack.c.l.bf16 %v3784_v35 }
 0x4fe   : > { %9427 = vmatmul.msk.bf16.gmra.mxu1 %vm3159_vm2, %v10044_v19  ;;  %v2552_v18 = vunpack.c.l.bf16 %v2420_v45 }
 0x4ff   : > { %v4045_v39 = vadd.f32 %v10228_v56, %v3916_v20  ;;  %9482 = vmatmul.msk.bf16.gmra.mxu2 %vm3159_vm2, %v3131_v7 }
 0x500   : > { %v2681_v37 = vadd.f32 %v9991_v53, %v2552_v18 }
 0x501   : > { %v4429_v44 = vmax.f32 %v4045_v39, 0.0 }
 0x502   : > { %v3065_v16 = vmax.f32 %v2681_v37, 0.0 }
 0x503   : > { %v2285_v34 = vpop.f32.mrf.mxu1  ;;  %v10697_v32 = vpack.c.bf16 %v4429_v44, %v4428_v6 }
 0x504   : > { %v2421_v60 = vpack.c.bf16 %v2285_v34, %v2285_v34 }
 0x506   : > { %v2553_v27 = vunpack.c.l.bf16 %v2421_v60 }
 0x508   : > { %v2682_v62 = vadd.f32 %v9991_v53, %v2553_v27 }
 0x50a   : > { %v3066_v38 = vmax.f32 %v2682_v62, 0.0 }
 0x50b   : > { %v2288_v57 = vpop.f32.mrf.mxu1 }
 0x50c   : > { %v3132_v19 = vpack.c.bf16 %v3066_v38, %v3065_v16  ;;  %v2422_v55 = vpack.c.bf16 %v2288_v57, %v2288_v57 }
 0x50e   : > { %9428 = vmatmul.msk.bf16.gmra.mxu1 %vm3159_vm2, %v10053_v48  ;;  %v2554_v26 = vunpack.c.l.bf16 %v2422_v55 }
 0x50f   : > { %9483 = vmatmul.msk.bf16.gmra.mxu2 %vm3159_vm2, %v3132_v19 }
 0x510   : > { %v2683_v10 = vadd.f32 %v9991_v53, %v2554_v26 }
 0x512   : > { %v3067_v20 = vmax.f32 %v2683_v10, 0.0 }
 0x513   : > { %v2290_v63 = vpop.f32.mrf.mxu1 }
 0x514   : > { %v2423_v35 = vpack.c.bf16 %v2290_v63, %v2290_v63 }
 0x516   : > { %v2555_v7 = vunpack.c.l.bf16 %v2423_v35 }
 0x518   : > { %v2684_v33 = vadd.f32 %v9991_v53, %v2555_v7 }
 0x51a   : > { %v3068_v45 = vmax.f32 %v2684_v33, 0.0 }
 0x51b   : > { %v2293_v39 = vpop.f32.mrf.mxu1 }
 0x51c   : > { %v3133_v6 = vpack.c.bf16 %v3068_v45, %v3067_v20  ;;  %v2424_v44 = vpack.c.bf16 %v2293_v39, %v2293_v39 }
 0x51e   : > { %9429 = vmatmul.msk.bf16.gmra.mxu1 %vm3159_vm2, %v10062_v14  ;;  %v2556_v48 = vunpack.c.l.bf16 %v2424_v44 }
 0x51f   : > { %9484 = vmatmul.msk.bf16.gmra.mxu2 %vm3159_vm2, %v3133_v6 }
 0x520   : > { %v2685_v60 = vadd.f32 %v9991_v53, %v2556_v48 }
 0x522   : > { %v3069_v62 = vmax.f32 %v2685_v60, 0.0 }
 0x523   : > { %v2295_v18 = vpop.f32.mrf.mxu1 }
 0x524   : > { %v2425_v34 = vpack.c.bf16 %v2295_v18, %v2295_v18 }
 0x526   : > { %v2557_v37 = vunpack.c.l.bf16 %v2425_v34 }
 0x528   : > { %v2686_v27 = vadd.f32 %v9991_v53, %v2557_v37 }
 0x52a   : > { %v3070_v16 = vmax.f32 %v2686_v27, 0.0 }
 0x52b   : > { %v3361_v38 = vpop.f32.mrf.mxu1 }
 0x52c   : > { %v3134_v57 = vpack.c.bf16 %v3070_v16, %v3069_v62  ;;  %v3681_v19 = vpack.c.bf16 %v3361_v38, %v3361_v38 }
 0x52e   : > { %9430 = vmatmul.msk.bf16.gmra.mxu1 %vm3159_vm2, %v10071_v42  ;;  %v3813_v14 = vunpack.c.l.bf16 %v3681_v19 }
 0x52f   : > { %9485 = vmatmul.msk.bf16.gmra.mxu2 %vm3159_vm2, %v3134_v57 }
 0x530   : > { %v3942_v63 = vadd.f32 %v10228_v56, %v3813_v14 }
 0x532   : > { %v4326_v7 = vmax.f32 %v3942_v63, 0.0 }
 0x533   : > { %v3363_v55 = vpop.f32.mrf.mxu1 }
 0x534   : > { %v3682_v26 = vpack.c.bf16 %v3363_v55, %v3363_v55 }
 0x536   : > { %v3814_v35 = vunpack.c.l.bf16 %v3682_v26 }
 0x538   : > { %v3943_v10 = vadd.f32 %v10228_v56, %v3814_v35 }
 0x53a   : > { %v4327_v33 = vmax.f32 %v3943_v10, 0.0 }
 0x53b   : > { %v3366_v20 = vpop.f32.mrf.mxu1 }
 0x53c   : > { %v10716_v45 = vpack.c.bf16 %v4327_v33, %v4326_v7  ;;  %v3683_v39 = vpack.c.bf16 %v3366_v20, %v3366_v20 }
 0x53e   : > { %9431 = vmatmul.msk.bf16.gmra.mxu1 %vm3159_vm2, %v10080_v11  ;;  %v3815_v42 = vunpack.c.l.bf16 %v3683_v39 }
 0x540   : > { %v3944_v48 = vadd.f32 %v10228_v56, %v3815_v42 }
 0x542   : > { %v4328_v60 = vmax.f32 %v3944_v48, 0.0 }
 0x543   : > { %v3368_v6 = vpop.f32.mrf.mxu1 }
 0x544   : > { %v3684_v44 = vpack.c.bf16 %v3368_v6, %v3368_v6 }
 0x546   : > { %v3816_v18 = vunpack.c.l.bf16 %v3684_v44 }
 0x548   : > { %v3945_v34 = vadd.f32 %v10228_v56, %v3816_v18 }
 0x54a   : > { %v4329_v37 = vmax.f32 %v3945_v34, 0.0 }
 0x54b   : > { %v3371_v27 = vpop.f32.mrf.mxu1 }
 0x54c   : > { %v10722_v62 = vpack.c.bf16 %v4329_v37, %v4328_v60  ;;  %v3685_v16 = vpack.c.bf16 %v3371_v27, %v3371_v27 }
 0x54e   : > { %9432 = vmatmul.msk.bf16.gmra.mxu1 %vm3159_vm2, %v10089_v40  ;;  %v3817_v38 = vunpack.c.l.bf16 %v3685_v16 }
 0x550   : > { %v3946_v19 = vadd.f32 %v10228_v56, %v3817_v38 }
 0x552   : > { %v4330_v26 = vmax.f32 %v3946_v19, 0.0 }
 0x553   : > { %v3373_v57 = vpop.f32.mrf.mxu1 }
 0x554   : > { %v3686_v11 = vpack.c.bf16 %v3373_v57, %v3373_v57 }
 0x556   : > { %v3818_v14 = vunpack.c.l.bf16 %v3686_v11 }
 0x558   : > { %v3947_v55 = vadd.f32 %v10228_v56, %v3818_v14 }
 0x55a   : > { %v4331_v63 = vmax.f32 %v3947_v55, 0.0 }
 0x55b   : > { %v3376_v35 = vpop.f32.mrf.mxu1 }
 0x55c   : > { %v10728_v10 = vpack.c.bf16 %v4331_v63, %v4330_v26  ;;  %v3687_v7 = vpack.c.bf16 %v3376_v35, %v3376_v35 }
 0x55e   : > { %9433 = vmatmul.msk.bf16.gmra.mxu1 %vm3159_vm2, %v10098_v9  ;;  %v3819_v33 = vunpack.c.l.bf16 %v3687_v7 }
 0x560   : > { %v3948_v39 = vadd.f32 %v10228_v56, %v3819_v33 }
 0x562   : > { %v4332_v44 = vmax.f32 %v3948_v39, 0.0 }
 0x563   : > { %v3378_v20 = vpop.f32.mrf.mxu1 }
 0x564   : > { %v3688_v40 = vpack.c.bf16 %v3378_v20, %v3378_v20 }
 0x566   : > { %v3820_v42 = vunpack.c.l.bf16 %v3688_v40 }
 0x568   : > { %v3949_v6 = vadd.f32 %v10228_v56, %v3820_v42 }
 0x56a   : > { %v4333_v48 = vmax.f32 %v3949_v6, 0.0 }
 0x56b   : > { %v3381_v18 = vpop.f32.mrf.mxu1 }
 0x56c   : > { %v4457_v34 = vpack.c.bf16 %v4333_v48, %v4332_v44 }
 0x56e   : > { %9434 = vmatmul.msk.bf16.gmra.mxu1 %vm3159_vm2, %v10107_v41 }
 0x573   : > { %v3383_v60 = vpop.f32.mrf.mxu1 }
 0x57b   : > { %v3386_v37 = vpop.f32.mrf.mxu1 }
 0x57e   : > { %9435 = vmatmul.msk.bf16.gmra.mxu1 %vm3159_vm2, %v10116_v13 }
 0x583   : > { %v3388_v9 = vpop.f32.mrf.mxu1 }
 0x584   : > { %v3692_v33 = vpack.c.bf16 %v3388_v9, %v3388_v9 }
 0x586   : > { %v3824_v44 = vunpack.c.l.bf16 %v3692_v33 }
 0x588   : > { %v3953_v9 = vadd.f32 %v10228_v56, %v3824_v44  ;;  %v4533_v44 = vsel %vm4519_vm3, %v4457_v34, 0 }
 0x58b   : > { %v3391_v27 = vpop.f32.mrf.mxu1 }
 0x58c   : > { %v3693_v41 = vpack.c.bf16 %v3391_v27, %v3391_v27 }
 0x58e   : > { %9436 = vmatmul.msk.bf16.gmra.mxu1 %vm3159_vm2, %v10134_v51  ;;  %v3825_v35 = vunpack.c.l.bf16 %v3693_v41 }
 0x590   : > { %v3954_v42 = vadd.f32 %v10228_v56, %v3825_v35 }
 0x593   : > { %v3393_v16 = vpop.f32.mrf.mxu1 }
 0x594   : > { %v3694_v11 = vpack.c.bf16 %v3393_v16, %v3393_v16 }
 0x596   : > { %v3826_v26 = vunpack.c.l.bf16 %v3694_v11 }
 0x598   : > { %v3955_v51 = vadd.f32 %v10228_v56, %v3826_v26  ;;  %v4337_v26 = vmax.f32 %v3953_v9, 0.0  ;;  %v4524_v9 = vsel %vm4519_vm3, %v10716_v45, 0 }
 0x59a   : > { %v4339_v27 = vmax.f32 %v3955_v51, 0.0 }
 0x59b   : > { %v3396_v38 = vpop.f32.mrf.mxu1 }
 0x59c   : > { %v3695_v57 = vpack.c.bf16 %v3396_v38, %v3396_v38  ;;  %v4338_v38 = vmax.f32 %v3954_v42, 0.0 }
 0x59e   : > { %9437 = vmatmul.msk.bf16.gmra.mxu1 %vm3159_vm2, %v10144_v21  ;;  %v3827_v19 = vunpack.c.l.bf16 %v3695_v57  ;;  %v3691_v21 = vpack.c.bf16 %v3386_v37, %v3386_v37  ;;  %v3690_v57 = vpack.c.bf16 %v3383_v60, %v3383_v60  ;;  %v4460_v11 = vpack.c.bf16 %v4339_v27, %v4338_v38 }
 0x59f   : > { %v4530_v27 = vsel %vm4519_vm3, %v10728_v10, 0  ;;  %v4527_v38 = vsel %vm4519_vm3, %v10722_v62, 0 }
 0x5a0   : > { %v3956_v63 = vadd.f32 %v10228_v56, %v3827_v19  ;;  %v3823_v16 = vunpack.c.l.bf16 %v3691_v21  ;;  %v3822_v41 = vunpack.c.l.bf16 %v3690_v57 }
 0x5a2   : > { %v4340_v20 = vmax.f32 %v3956_v63, 0.0  ;;  %v3952_v37 = vadd.f32 %v10228_v56, %v3823_v16  ;;  %v3951_v35 = vadd.f32 %v10228_v56, %v3822_v41 }
 0x5a3   : > { %v3398_v14 = vpop.f32.mrf.mxu1 }
 0x5a4   : > { %v3696_v55 = vpack.c.bf16 %v3398_v14, %v3398_v14  ;;  %v3689_v14 = vpack.c.bf16 %v3381_v18, %v3381_v18 }
 0x5a6   : > { %v3828_v13 = vunpack.c.l.bf16 %v3696_v55  ;;  %v4542_v55 = vsel %vm4519_vm3, %v4460_v11, 0  ;;  %v3821_v63 = vunpack.c.l.bf16 %v3689_v14 }
 0x5a8   : > { %v3957_v7 = vadd.f32 %v10228_v56, %v3828_v13  ;;  %v4336_v13 = vmax.f32 %v3952_v37, 0.0  ;;  %v3950_v60 = vadd.f32 %v10228_v56, %v3821_v63 }
 0x5aa   : > { %v4341_v40 = vmax.f32 %v3957_v7, 0.0  ;;  %v4459_v7 = vpack.c.bf16 %v4337_v26, %v4336_v13  ;;  %v4334_v18 = vmax.f32 %v3950_v60, 0.0 }
 0x5ab   : > { %v10745_v39 = vpop.f32.mrf.mxu1 }
 0x5ac   : > { %v4461_v6 = vpack.c.bf16 %v4341_v40, %v4340_v20  ;;  %v4539_v51 = vsel %vm4519_vm3, %v4459_v7, 0  ;;  %v4335_v20 = vmax.f32 %v3951_v35, 0.0 }
 0x5ae   : > { %v4545_v48 = vsel %vm4519_vm3, %v4461_v6, 0  ;;  %v4458_v40 = vpack.c.bf16 %v4335_v20, %v4334_v18 }
 0x5af   : > { %4715 = vmatpush.bf16.xpose.msrb.mxu3 %v4545_v48 }
 0x5b0   : > { %v4536_v42 = vsel %vm4519_vm3, %v4458_v40, 0 }
 0x5b3   : > { %v10750_v19 = vpop.f32.mrf.mxu1 }
 0x5b7   : > { %4716 = vmatpush.bf16.xpose.msrb.mxu3 %v4542_v55 }
 0x5bb   : > { %v10755_v33 = vpop.f32.mrf.mxu1 }
 0x5bf   : > { %4717 = vmatpush.bf16.xpose.msrb.mxu3 %v4539_v51 }
 0x5c3   : > { %v10759_v21 = vpop.f32.mrf.mxu1 }
 0x5c7   : > { %4718 = vmatpush.bf16.xpose.msrb.mxu3 %v4536_v42 }
 0x5cb   : > { %v10762_v6 = vpop.f32.mrf.mxu1 }
 0x5cf   : > { %4719 = vmatpush.bf16.xpose.msrb.mxu3 %v4533_v44 }
 0x5d3   : > { %v10765_v48 = vpop.f32.mrf.mxu1 }
 0x5d7   : > { %4720 = vmatpush.bf16.xpose.msrb.mxu3 %v4530_v27 }
 0x5db   : > { %v3416_v16 = vpop.f32.mrf.mxu1 }
 0x5df   : > { %4721 = vmatpush.bf16.xpose.msrb.mxu3 %v4527_v38 }
 0x5e3   : > { %v3418_v57 = vpop.f32.mrf.mxu1 }
 0x5e7   : > { %4722 = vmatpush.bf16.xpose.msrb.mxu3 %v4524_v9 }
 0x5eb   : > { %v3421_v11 = vpop.f32.mrf.mxu1 }
 0x5ec   : > { %v3705_v14 = vpack.c.bf16 %v3421_v11, %v3421_v11 }
 0x5ee   : > { %v3837_v34 = vunpack.c.l.bf16 %v3705_v14 }
 0x5f0   : > { %v3966_v55 = vadd.f32 %v10228_v56, %v3837_v34 }
 0x5f2   : > { %v4350_v63 = vmax.f32 %v3966_v55, 0.0 }
 0x5f3   : > { %v3423_v37 = vpop.f32.mrf.mxu1 }
 0x5f4   : > { %v3706_v41 = vpack.c.bf16 %v3423_v37, %v3423_v37 }
 0x5f6   : > { %v3838_v26 = vunpack.c.l.bf16 %v3706_v41 }
 0x5f8   : > { %v3967_v10 = vadd.f32 %v10228_v56, %v3838_v26 }
 0x5fa   : > { %v4351_v13 = vmax.f32 %v3967_v10, 0.0 }
 0x5fb   : > { %v3426_v35 = vpop.f32.mrf.mxu1 }
 0x5fc   : > { %v4466_v62 = vpack.c.bf16 %v4351_v13, %v4350_v63  ;;  %v3707_v10 = vpack.c.bf16 %v3426_v35, %v3426_v35  ;;  %v10786_v35 = vld [vmem:[%s12017_s7] sm:$0x1] }
 0x5fd   : > { %9486 = vmatmul.msk.bf16.vlgmr.msrb.gmra.mxu3 %vm4519_vm3, %v10786_v35 }
 0x603   : > { %v3428_v7 = vpop.f32.mrf.mxu1 }
 0x604   : > { %v3708_v37 = vpack.c.bf16 %v3428_v7, %v3428_v7 }
 0x60b   : > { %v3431_v60 = vpop.f32.mrf.mxu1 }
 0x60c   : > { %v3709_v44 = vpack.c.bf16 %v3431_v60, %v3431_v60 }
 0x60e   : > { %v3841_v14 = vunpack.c.l.bf16 %v3709_v44 }
 0x610   : > { %v3970_v63 = vadd.f32 %v10228_v56, %v3841_v14  ;;  %v3703_v14 = vpack.c.bf16 %v3416_v16, %v3416_v16 }
 0x613   : > { %v3433_v51 = vpop.f32.mrf.mxu1 }
 0x614   : > { %v3710_v18 = vpack.c.bf16 %v3433_v51, %v3433_v51  ;;  %v3840_v51 = vunpack.c.l.bf16 %v3708_v37 }
 0x616   : > { %v3842_v38 = vunpack.c.l.bf16 %v3710_v18  ;;  %v4354_v18 = vmax.f32 %v3970_v63, 0.0 }
 0x618   : > { %v3971_v41 = vadd.f32 %v10228_v56, %v3842_v38 }
 0x61b   : > { %v3436_v20 = vpop.f32.mrf.mxu1 }
 0x61c   : > { %v3711_v45 = vpack.c.bf16 %v3436_v20, %v3436_v20  ;;  %v4355_v20 = vmax.f32 %v3971_v41, 0.0  ;;  %v3835_v41 = vunpack.c.l.bf16 %v3703_v14 }
 0x61e   : > { %v3843_v40 = vunpack.c.l.bf16 %v3711_v45  ;;  %v3839_v45 = vunpack.c.l.bf16 %v3707_v10  ;;  %v3701_v10 = vpack.c.bf16 %v10762_v6, %v10762_v6  ;;  %v3964_v63 = vadd.f32 %v10228_v56, %v3835_v41 }
 0x620   : > { %v3972_v9 = vadd.f32 %v10228_v56, %v3843_v40  ;;  %v3969_v40 = vadd.f32 %v10228_v56, %v3840_v51  ;;  %v3968_v7 = vadd.f32 %v10228_v56, %v3839_v45  ;;  %v3833_v16 = vunpack.c.l.bf16 %v3701_v10 }
 0x622   : > { %v4356_v55 = vmax.f32 %v3972_v9, 0.0  ;;  %v4353_v44 = vmax.f32 %v3969_v40, 0.0  ;;  %v4352_v38 = vmax.f32 %v3968_v7, 0.0  ;;  %v3704_v9 = vpack.c.bf16 %v3418_v57, %v3418_v57 }
 0x623   : > { %v3438_v42 = vpop.f32.mrf.mxu1  ;;  %v4560_v57 = vsel %vm4519_vm3, %v4466_v62, 0  ;;  %v3962_v6 = vadd.f32 %v10228_v56, %v3833_v16  ;;  %v4590_v16 = vsel %vm4519_vm3, %v10315_v54, 0 }
 0x624   : > { %v3712_v27 = vpack.c.bf16 %v3438_v42, %v3438_v42  ;;  %v4468_v42 = vpack.c.bf16 %v4355_v20, %v4354_v18  ;;  %v4348_v20 = vmax.f32 %v3964_v63, 0.0  ;;  %v3699_v18 = vpack.c.bf16 %v10755_v33, %v10755_v33 }
 0x626   : > { %v3844_v11 = vunpack.c.l.bf16 %v3712_v27  ;;  %v4566_v27 = vsel %vm4519_vm3, %v4468_v42, 0  ;;  %v3831_v62 = vunpack.c.l.bf16 %v3699_v18 }
 0x628   : > { %v3973_v34 = vadd.f32 %v10228_v56, %v3844_v11  ;;  %v4467_v11 = vpack.c.bf16 %v4353_v44, %v4352_v38  ;;  %v4346_v44 = vmax.f32 %v3962_v6, 0.0  ;;  %v3960_v33 = vadd.f32 %v10228_v56, %v3831_v62 }
 0x62a   : > { %v4357_v26 = vmax.f32 %v3973_v34, 0.0  ;;  %v3836_v34 = vunpack.c.l.bf16 %v3704_v9  ;;  %v4563_v37 = vsel %vm4519_vm3, %v4467_v11, 0  ;;  %v3697_v9 = vpack.c.bf16 %v10745_v39, %v10745_v39 }
 0x62b   : > { %v4344_v41 = vmax.f32 %v3960_v33, 0.0  ;;  %v4632_v33 = vsel %vm4519_vm3, %v10546_v46, 0  ;;  %v12032_v46 = vld [vmem:[#allocation9_spill] sm:$0xff] }
 0x62c   : > { %v4469_v13 = vpack.c.bf16 %v4357_v26, %v4356_v55  ;;  %v3702_v55 = vpack.c.bf16 %v10765_v48, %v10765_v48  ;;  %v3965_v26 = vadd.f32 %v10228_v56, %v3836_v34 }
 0x62e   : > { %v4569_v60 = vsel %vm4519_vm3, %v4469_v13, 0  ;;  %v3834_v13 = vunpack.c.l.bf16 %v3702_v55  ;;  %v4349_v51 = vmax.f32 %v3965_v26, 0.0 }
 0x62f   : > { %4728 = vmatpush.bf16.xpose.msra.mxu3 %v4569_v60  ;;  %v3700_v60 = vpack.c.bf16 %v10759_v21, %v10759_v21 }
 0x630   : > { %v3963_v45 = vadd.f32 %v10228_v56, %v3834_v13  ;;  %v4465_v48 = vpack.c.bf16 %v4349_v51, %v4348_v20  ;;  %v4587_v20 = vsel %vm4519_vm3, %v10303_v59, 0  ;;  %v4575_v59 = vsel %vm4519_vm3, %v10246_v12, 0 }
 0x631   : > { %v3832_v40 = vunpack.c.l.bf16 %v3700_v60  ;;  %v4584_v60 = vsel %vm4519_vm3, %v10291_v0, 0  ;;  %v4572_v0 = vsel %vm4519_vm3, %v10234_v24, 0  ;;  %v4608_v24 = vsel %vm4519_vm3, %v10395_v22, 0 }
 0x632   : > { %v4347_v42 = vmax.f32 %v3963_v45, 0.0  ;;  %v4557_v7 = vsel %vm4519_vm3, %v4465_v48, 0  ;;  %v10826_v45 = vpop.f32.mrf.mxu2  ;;  %v4578_v48 = vsel %vm4519_vm3, %v10261_v5, 0  ;;  %v4614_v5 = vsel %vm4519_vm3, %v10435_v2, 0 }
 0x633   : > { %v3961_v21 = vadd.f32 %v10228_v56, %v3832_v40  ;;  %v4611_v40 = vsel %vm4519_vm3, %v10415_v36, 0  ;;  %v4602_v2 = vsel %vm4519_vm3, %v10363_v58, 0 }
 0x634   : > { %v4464_v38 = vpack.c.bf16 %v4347_v42, %v4346_v44  ;;  %v4605_v42 = vsel %vm4519_vm3, %v10379_v4, 0  ;;  %v4641_v4 = vsel %vm4519_vm3, %v10587_v15, 0 }
 0x635   : > { %v4345_v14 = vmax.f32 %v3961_v21, 0.0  ;;  %v4596_v21 = vsel %vm4519_vm3, %v10339_v49, 0 }
 0x636   : > { %v4554_v34 = vsel %vm4519_vm3, %v4464_v38, 0  ;;  %v4638_v38 = vsel %vm4519_vm3, %v10576_v17, 0 }
 0x637   : > { %4729 = vmatpush.bf16.xpose.msra.mxu3 %v4566_v27  ;;  %v3698_v27 = vpack.c.bf16 %v10750_v19, %v10750_v19  ;;  %v4463_v26 = vpack.c.bf16 %v4345_v14, %v4344_v41 }
 0x639   : > { %v3830_v11 = vunpack.c.l.bf16 %v3698_v27  ;;  %v4551_v63 = vsel %vm4519_vm3, %v4463_v26, 0  ;;  %v4599_v27 = vsel %vm4519_vm3, %v10351_v52, 0  ;;  %v4635_v52 = vsel %vm4519_vm3, %v10561_v25, 0 }
 0x63a   : > { %v10832_v54 = vpop.f32.mrf.mxu2 }
 0x63b   : > { %v3959_v55 = vadd.f32 %v10228_v56, %v3830_v11 }
 0x63d   : > { %v4343_v10 = vmax.f32 %v3959_v55, 0.0 }
 0x63f   : > { %4730 = vmatpush.bf16.xpose.msra.mxu3 %v4563_v37  ;;  %v3829_v37 = vunpack.c.l.bf16 %v3697_v9  ;;  %v10880_v9 = vstv %s365_s24  ;;  %s9243_s24 = sshll.u32 %s9239_s17, 4  ;;  %s9244_s24 = int_to_ptr.hbm [resolvable:$true] %s9243_s24 }
 0x640   : > { %s9715_s25 = sshra.s32 %s9244_s24, 4  ;;  %s9716_s25 = int_to_ptr.hbm [resolvable:$true] %s9715_s25 }
 0x641   : > { %v3958_v19 = vadd.f32 %v10228_v56, %v3829_v37  ;;  %v12031_v37 = vld [vmem:[#allocation10_spill] sm:$0xff]  ;;  %s9717_s26 = scalar_lea.hbm %s9716_s25, 16  ;;  %p9722_p0 = scmp.lt.s32.totalorder %s9716_s25, %s12019_s9 }
 0x642   : > { %v10836_v18 = vpop.f32.mrf.mxu2  ;;  %v4629_v41 = vsel %vm4519_vm3, %v12031_v37, 0  ;;  %p9718_p11 = scmp.ne.s32.totalorder %s9716_s25, %s9717_s26  ;;  %p9723_p1 = scmp.lt.s32.totalorder %s9721_s29, %s9717_s26 }
 0x643   : > { %v4342_v13 = vmax.f32 %v3958_v19, 0.0  ;;  %v4626_v19 = vsel %vm4519_vm3, %v12032_v46, 0 }
 0x644   : > { %p9719_p12 = pnand %p9718_p11, %p9856_p5  ;;  %p9724_p2 = por %p9723_p1, %p9722_p0 }
 0x645   : > { %v4462_v39 = vpack.c.bf16 %v4343_v10, %v4342_v13 }
 0x646   : > { %p9720_p13 = pneg %p9719_p12 }
 0x647   : > { %4731 = vmatpush.bf16.xpose.msra.mxu3 %v4560_v57  ;;  %v4548_v51 = vsel %vm4519_vm3, %v4462_v39, 0  ;;  %v4593_v57 = vsel %vm4519_vm3, %v10327_v50, 0  ;;  %v4581_v50 = vsel %vm4519_vm3, %v10276_v47, 0  ;;  %v4617_v47 = vsel %vm4519_vm3, %v10455_v28, 0  ;;  %v12034_v39 = vld [vmem:[#allocation7_spill] sm:$0xff] }
 0x648   : > { %p9725_p3 = pnand %p9724_p2, %p9720_p13 }
 0x64a   : > { %v10842_v6 = vpop.f32.mrf.mxu2 }
 0x64f   : > { %4732 = vmatpush.bf16.xpose.msra.mxu3 %v4557_v7 }
 0x652   : > { %v10848_v12 = vpop.f32.mrf.mxu2 }
 0x657   : > { %4733 = vmatpush.bf16.xpose.msra.mxu3 %v4554_v34 }
 0x65a   : > { %v10854_v28 = vpop.f32.mrf.mxu2 }
 0x65f   : > { %4734 = vmatpush.bf16.xpose.msra.mxu3 %v4551_v63  ;;  %v12033_v63 = vld [vmem:[#allocation8_spill] sm:$0xff] }
 0x660   : > { %v4623_v13 = vsel %vm4519_vm3, %v12033_v63, 0 }
 0x662   : > { %v10858_v62 = vpop.f32.mrf.mxu2 }
 0x667   : > { %4735 = vmatpush.bf16.xpose.msra.mxu3 %v4548_v51  ;;  %v4620_v51 = vsel %vm4519_vm3, %v12034_v39, 0 }
 0x66a   : > { %v3638_v36 = vpop.f32.mrf.mxu2 }
 0x66e   : > { %9487 = vmatmul.msk.bf16.vlgmr.msra.gmra.mxu3 %vm4519_vm3, %v10786_v35 }
 0x66f   : > { %4741 = vmatpush.bf16.xpose.msrb.mxu3 %v4593_v57  ;;  %v4665_v57 = vsel %vm4519_vm3, %v10661_v8, 0  ;;  %v4656_v8 = vsel %vm4519_vm3, %v10634_v31, 0 }
 0x672   : > { %v10864_v22 = vpop.f32.mrf.mxu2 }
 0x677   : > { %4742 = vmatpush.bf16.xpose.msrb.mxu3 %v4590_v16 }
 0x67a   : > { %v10872_v58 = vpop.f32.mrf.mxu2 }
 0x67f   : > { %4743 = vmatpush.bf16.xpose.msrb.mxu3 %v4587_v20  ;;  %v4662_v20 = vsel %vm4519_vm3, %v10652_v3, 0  ;;  %v3792_v3 = vpack.c.bf16 %v3638_v36, %v3638_v36 }
 0x680   : > { %v4724_v7 = vpop.f32.mrf.mxu3 }
 0x681   : > { %v4725_v17 = vadd.f32 %v4724_v7, %v10880_v9 }
 0x682   : > { %v10878_v49 = vpop.f32.mrf.mxu2 }
 0x687   : > { %4744 = vmatpush.bf16.xpose.msrb.mxu3 %v4584_v60 }
 0x688   : > { %v4726_v44 = vpop.f32.mrf.mxu3 }
 0x689   : > { %v3789_v44 = vpack.c.bf16 %v10848_v12, %v10848_v12  ;;  %v3787_v12 = vpack.c.bf16 %v10836_v18, %v10836_v18 }
 0x68a   : > { %v10886_v34 = vpop.f32.mrf.mxu2 }
 0x68f   : > { %4745 = vmatpush.bf16.xpose.msrb.mxu3 %v4581_v50  ;;  %v4659_v50 = vsel %vm4519_vm3, %v10643_v23, 0 }
 0x692   : > { %v10893_v26 = vpop.f32.mrf.mxu2 }
 0x697   : > { %4746 = vmatpush.bf16.xpose.msrb.mxu3 %v4578_v48 }
 0x69a   : > { %v10897_v10 = vpop.f32.mrf.mxu2 }
 0x69f   : > { %4747 = vmatpush.bf16.xpose.msrb.mxu3 %v4575_v59 }
 0x6a2   : > { %v10905_v16 = vpop.f32.mrf.mxu2 }
 0x6a7   : > { %4748 = vmatpush.bf16.xpose.msrb.mxu3 %v4572_v0  ;;  %v4653_v0 = vsel %vm4519_vm3, %v10625_v61, 0 }
 0x6aa   : > { %v10911_v60 = vpop.f32.mrf.mxu2 }
 0x6ae   : > { %9488 = vmatmul.msk.bf16.vlgmr.msrb.gmra.mxu3 %vm4519_vm3, %v10786_v35 }
 0x6af   : > { %4754 = vmatpush.bf16.xpose.msra.mxu3 %v4617_v47 }
 0x6b2   : > { %v10915_v48 = vpop.f32.mrf.mxu2 }
 0x6b7   : > { %4755 = vmatpush.bf16.xpose.msra.mxu3 %v4614_v5  ;;  %v3791_v5 = vpack.c.bf16 %v10858_v62, %v10858_v62  ;;  %v12036_v62 = vld [vmem:[#allocation12_spill] sm:$0xff] }
 0x6b9   : > { %v3923_v31 = vunpack.c.l.bf16 %v3791_v5 }
 0x6ba   : > { %v10919_v59 = vpop.f32.mrf.mxu2 }
 0x6bb   : > { %v4052_v36 = vadd.f32 %v10228_v56, %v3923_v31 }
 0x6bf   : > { %4756 = vmatpush.bf16.xpose.msra.mxu3 %v4611_v40  ;;  %v12035_v40 = vld [vmem:[#allocation13_spill] sm:$0xff] }
 0x6c0   : > { %v4650_v23 = vsel %vm4519_vm3, %v12035_v40, 0 }
 0x6c2   : > { %v10927_v7 = vpop.f32.mrf.mxu2 }
 0x6c7   : > { %4757 = vmatpush.bf16.xpose.msra.mxu3 %v4608_v24 }
 0x6cf   : > { %4758 = vmatpush.bf16.xpose.msra.mxu3 %v4605_v42  ;;  %v3924_v42 = vunpack.c.l.bf16 %v3792_v3 }
 0x6d1   : > { %v4053_v61 = vadd.f32 %v10228_v56, %v3924_v42 }
 0x6d7   : > { %4759 = vmatpush.bf16.xpose.msra.mxu3 %v4602_v2  ;;  %v3790_v2 = vpack.c.bf16 %v10854_v28, %v10854_v28  ;;  %v3788_v28 = vpack.c.bf16 %v10842_v6, %v10842_v6  ;;  %v3786_v6 = vpack.c.bf16 %v10832_v54, %v10832_v54 }
 0x6df   : > { %4760 = vmatpush.bf16.xpose.msra.mxu3 %v4599_v27  ;;  %v4647_v27 = vsel %vm4519_vm3, %v12036_v62, 0 }
 0x6e7   : > { %4761 = vmatpush.bf16.xpose.msra.mxu3 %v4596_v21  ;;  %v3922_v21 = vunpack.c.l.bf16 %v3790_v2 }
 0x6ee   : > { %9489 = vmatmul.msk.bf16.vlgmr.msra.gmra.mxu3 %vm4519_vm3, %v10786_v35 }
 0x6ef   : > { %4767 = vmatpush.bf16.xpose.msrb.mxu3 %v4641_v4  ;;  %v4437_v4 = vmax.f32 %v4053_v61, 0.0 }
 0x6f1   : > { %v4737_v15 = vpop.f32.mrf.mxu3 }
 0x6f2   : > { %v4738_v11 = vadd.f32 %v4737_v15, %v10880_v9  ;;  %v10937_v15 = vpop.f32.mrf.mxu2 }
 0x6f4   : > { %v4827_v14 = vrot.slane %v4738_v11, 7 }
 0x6f6   : > { %v10889_v25 = vsel %vm4834_vm4, %v4725_v17, %v4827_v14  ;;  %v12037_v14 = vld [vmem:[#allocation11_spill] sm:$0xff] }
 0x6f7   : > { %4768 = vmatpush.bf16.xpose.msrb.mxu3 %v4638_v38  ;;  %v3921_v38 = vunpack.c.l.bf16 %v3789_v44  ;;  %v4644_v37 = vsel %vm4519_vm3, %v12037_v14, 0 }
 0x6f9   : > { %v4739_v55 = vpop.f32.mrf.mxu3  ;;  %v4050_v17 = vadd.f32 %v10228_v56, %v3921_v38 }
 0x6fa   : > { %v3671_v39 = vpop.f32.mrf.mxu2 }
 0x6fb   : > { %v4434_v63 = vmax.f32 %v4050_v17, 0.0 }
 0x6ff   : > { %4769 = vmatpush.bf16.xpose.msrb.mxu3 %v4635_v52  ;;  %v4436_v52 = vmax.f32 %v4052_v36, 0.0 }
 0x701   : > { %v4509_v11 = vpack.c.bf16 %v4437_v4, %v4436_v52 }
 0x703   : > { %v4689_v46 = vsel %vm4519_vm3, %v4509_v11, 0 }
 0x707   : > { %4770 = vmatpush.bf16.xpose.msrb.mxu3 %v4632_v33  ;;  %v4051_v33 = vadd.f32 %v10228_v56, %v3922_v21 }
 0x709   : > { %v4435_v55 = vmax.f32 %v4051_v33, 0.0 }
 0x70b   : > { %v4508_v18 = vpack.c.bf16 %v4435_v55, %v4434_v63  ;;  %v3805_v55 = vpack.c.bf16 %v3671_v39, %v3671_v39 }
 0x70d   : > { %v3937_v63 = vunpack.c.l.bf16 %v3805_v55 }
 0x70f   : > { %4771 = vmatpush.bf16.xpose.msrb.mxu3 %v4629_v41  ;;  %v3920_v41 = vunpack.c.l.bf16 %v3788_v28  ;;  %v4066_v39 = vadd.f32 %v10228_v56, %v3937_v63  ;;  %v3794_v63 = vpack.c.bf16 %v10872_v58, %v10872_v58 }
 0x717   : > { %4772 = vmatpush.bf16.xpose.msrb.mxu3 %v4626_v19  ;;  %v3919_v19 = vunpack.c.l.bf16 %v3787_v12  ;;  %v4674_v12 = vsel %vm4519_vm3, %v10688_v29, 0  ;;  %v3804_v29 = vpack.c.bf16 %v10937_v15, %v10937_v15  ;;  %v3802_v15 = vpack.c.bf16 %v10919_v59, %v10919_v59 }
 0x718   : > { %v3800_v59 = vpack.c.bf16 %v10911_v60, %v10911_v60 }
 0x71f   : > { %4773 = vmatpush.bf16.xpose.msrb.mxu3 %v4623_v13  ;;  %v4049_v13 = vadd.f32 %v10228_v56, %v3920_v41 }
 0x727   : > { %4774 = vmatpush.bf16.xpose.msrb.mxu3 %v4620_v51  ;;  %v3785_v51 = vpack.c.bf16 %v10826_v45, %v10826_v45 }
 0x72e   : > { %9490 = vmatmul.msk.bf16.vlgmr.msrb.gmra.mxu3 %vm4519_vm3, %v10786_v35 }
 0x72f   : > { %4780 = vmatpush.bf16.xpose.msra.mxu3 %v4665_v57  ;;  %v4048_v57 = vadd.f32 %v10228_v56, %v3919_v19 }
 0x731   : > { %v4750_v47 = vpop.f32.mrf.mxu3  ;;  %v4432_v3 = vmax.f32 %v4048_v57, 0.0  ;;  %v4668_v57 = vsel %vm4519_vm3, %v10670_v30, 0  ;;  %v3934_v30 = vunpack.c.l.bf16 %v3802_v15 }
 0x732   : > { %v4751_v2 = vadd.f32 %v4750_v47, %v10880_v9  ;;  %v4677_v47 = vsel %vm4519_vm3, %v10697_v32, 0  ;;  %v4671_v32 = vsel %vm4519_vm3, %v10679_v1, 0  ;;  %v3936_v1 = vunpack.c.l.bf16 %v3804_v29 }
 0x733   : > { %v3793_v29 = vpack.c.bf16 %v10864_v22, %v10864_v22 }
 0x737   : > { %4781 = vmatpush.bf16.xpose.msra.mxu3 %v4662_v20  ;;  %v3918_v20 = vunpack.c.l.bf16 %v3786_v6 }
 0x739   : > { %v4752_v24 = vpop.f32.mrf.mxu3  ;;  %v4047_v54 = vadd.f32 %v10228_v56, %v3918_v20 }
 0x73b   : > { %v4431_v24 = vmax.f32 %v4047_v54, 0.0 }
 0x73f   : > { %4782 = vmatpush.bf16.xpose.msra.mxu3 %v4659_v50  ;;  %v4433_v50 = vmax.f32 %v4049_v13, 0.0 }
 0x741   : > { %v4507_v5 = vpack.c.bf16 %v4433_v50, %v4432_v3  ;;  %v4065_v3 = vadd.f32 %v10228_v56, %v3936_v1 }
 0x743   : > { %v4683_v45 = vsel %vm4519_vm3, %v4507_v5, 0 }
 0x747   : > { %4783 = vmatpush.bf16.xpose.msra.mxu3 %v4656_v8  ;;  %v4686_v8 = vsel %vm4519_vm3, %v4508_v18, 0 }
 0x74f   : > { %4784 = vmatpush.bf16.xpose.msra.mxu3 %v4653_v0  ;;  %v3917_v0 = vunpack.c.l.bf16 %v3785_v51  ;;  %v3803_v51 = vpack.c.bf16 %v10927_v7, %v10927_v7  ;;  %v3801_v7 = vpack.c.bf16 %v10915_v48, %v10915_v48  ;;  %v3799_v48 = vpack.c.bf16 %v10905_v16, %v10905_v16 }
 0x751   : > { %v4046_v40 = vadd.f32 %v10228_v56, %v3917_v0  ;;  %v4450_v0 = vmax.f32 %v4066_v39, 0.0 }
 0x753   : > { %v4430_v42 = vmax.f32 %v4046_v40, 0.0  ;;  %v4449_v40 = vmax.f32 %v4065_v3, 0.0 }
 0x755   : > { %v4506_v31 = vpack.c.bf16 %v4431_v24, %v4430_v42  ;;  %v3933_v24 = vunpack.c.l.bf16 %v3801_v7  ;;  %v4063_v42 = vadd.f32 %v10228_v56, %v3934_v30  ;;  %v9694_v7 = vld [vmem:[%s12015_s5 + $0x18] sm:$0xff]  ;;  %v4849_v30 = vld [vmem:[%s9878_s28 + $0x400] sm:$0xff] }
 0x757   : > { %4785 = vmatpush.bf16.xpose.msra.mxu3 %v4650_v23  ;;  %v3673_v23 = vpop.f32.mrf.mxu2  ;;  %v4680_v36 = vsel %vm4519_vm3, %v4506_v31, 0 }
 0x75f   : > { %4786 = vmatpush.bf16.xpose.msra.mxu3 %v4647_v27  ;;  %v3676_v61 = vpop.f32.mrf.mxu2  ;;  %v4828_v27 = vrot.slane %v4751_v2, 6  ;;  %v4062_v2 = vadd.f32 %v10228_v56, %v3933_v24  ;;  %v9697_v24 = vld [vmem:[%s12015_s5] sm:$0xff] }
 0x760   : > { %v3807_v11 = vpack.c.bf16 %v3676_v61, %v3676_v61  ;;  %v3932_v61 = vunpack.c.l.bf16 %v3800_v59 }
 0x762   : > { %v3939_v14 = vunpack.c.l.bf16 %v3807_v11  ;;  %v4061_v60 = vadd.f32 %v10228_v56, %v3932_v61  ;;  %v4851_v61 = vld [vmem:[%s9878_s28 + $0x410] sm:$0xff] }
 0x767   : > { %4787 = vmatpush.bf16.xpose.msra.mxu3 %v4644_v37  ;;  %v3678_v28 = vpop.f32.mrf.mxu2  ;;  %v3806_v37 = vpack.c.bf16 %v3673_v23, %v3673_v23 }
 0x768   : > { %v3808_v33 = vpack.c.bf16 %v3678_v28, %v3678_v28  ;;  %v4445_v28 = vmax.f32 %v4061_v60, 0.0 }
 0x76a   : > { %v3940_v17 = vunpack.c.l.bf16 %v3808_v33 }
 0x76c   : > { %v4069_v41 = vadd.f32 %v10228_v56, %v3940_v17  ;;  %v3796_v17 = vpack.c.bf16 %v10886_v34, %v10886_v34 }
 0x76e   : > { %9491 = vmatmul.msk.bf16.vlgmr.msra.gmra.mxu3 %vm4519_vm3, %v10786_v35  ;;  %v4453_v19 = vmax.f32 %v4069_v41, 0.0  ;;  %v3928_v41 = vunpack.c.l.bf16 %v3796_v17  ;;  %v4859_v17 = vld [vmem:[%s9878_s28 + $0x450] sm:$0xff] }
 0x76f   : > { %4793 = vmatpush.bf16.xpose.msrb.mxu3 %v4689_v46  ;;  %v3938_v46 = vunpack.c.l.bf16 %v3806_v37  ;;  %v3795_v37 = vpack.c.bf16 %v10878_v49, %v10878_v49 }
 0x770   : > { %v4057_v34 = vadd.f32 %v10228_v56, %v3928_v41 }
 0x771   : > { %v4763_v44 = vpop.f32.mrf.mxu3  ;;  %v4067_v13 = vadd.f32 %v10228_v56, %v3938_v46  ;;  %v3927_v46 = vunpack.c.l.bf16 %v3795_v37  ;;  %v4861_v37 = vld [vmem:[%s9878_s28 + $0x460] sm:$0xff] }
 0x772   : > { %v4764_v62 = vadd.f32 %v4763_v44, %v10880_v9  ;;  %v4447_v44 = vmax.f32 %v4063_v42, 0.0 }
 0x773   : > { %v4451_v20 = vmax.f32 %v4067_v13, 0.0  ;;  %v4056_v49 = vadd.f32 %v10228_v56, %v3927_v46  ;;  %v3926_v13 = vunpack.c.l.bf16 %v3794_v63 }
 0x774   : > { %v4829_v21 = vrot.slane %v4764_v62, 5  ;;  %v3931_v62 = vunpack.c.l.bf16 %v3799_v48 }
 0x775   : > { %v4516_v54 = vpack.c.bf16 %v4451_v20, %v4450_v0  ;;  %v4440_v1 = vmax.f32 %v4056_v49, 0.0  ;;  %v4055_v20 = vadd.f32 %v10228_v56, %v3926_v13  ;;  %v4865_v13 = vld [vmem:[%s9878_s28 + $0x480] sm:$0xff] }
 0x776   : > { %v4837_v4 = vsel %vm4836_vm5, %v4828_v27, %v4829_v21  ;;  %v4446_v27 = vmax.f32 %v4062_v2, 0.0  ;;  %v3798_v21 = vpack.c.bf16 %v10897_v10, %v10897_v10  ;;  %v4060_v16 = vadd.f32 %v10228_v56, %v3931_v62 }
 0x777   : > { %4794 = vmatpush.bf16.xpose.msrb.mxu3 %v4686_v8  ;;  %v10966_v38 = vsel %vm4838_vm6, %v10889_v25, %v4837_v4  ;;  %v4068_v25 = vadd.f32 %v10228_v56, %v3939_v14  ;;  %v3935_v8 = vunpack.c.l.bf16 %v3803_v51  ;;  %v4710_v23 = vsel %vm4519_vm3, %v4516_v54, 0  ;;  %v12038_v54 = vld [vmem:[#allocation6_spill] sm:$0xff] }
 0x778   : > { %v4514_v4 = vpack.c.bf16 %v4447_v44, %v4446_v27  ;;  %v4852_v44 = vld [vmem:[%s9878_s28 + $0x418] sm:$0xff]  ;;  %v4853_v27 = vld [vmem:[%s9878_s28 + $0x420] sm:$0xff] }
 0x779   : > { %v4765_v52 = vpop.f32.mrf.mxu3  ;;  %v4452_v6 = vmax.f32 %v4068_v25, 0.0  ;;  %v4064_v5 = vadd.f32 %v10228_v56, %v3935_v8  ;;  %v4439_v8 = vmax.f32 %v4055_v20, 0.0  ;;  %v4978_v62 = vpack.c.bf16 %v4852_v44, %v4851_v61 }
 0x77a   : > { %v3930_v52 = vunpack.c.l.bf16 %v3798_v21  ;;  %v4704_v33 = vsel %vm4519_vm3, %v4514_v4, 0  ;;  %v4854_v21 = vld [vmem:[%s9878_s28 + $0x428] sm:$0xff]  ;;  %v4855_v4 = vld [vmem:[%s9878_s28 + $0x430] sm:$0xff] }
 0x77b   : > { %v4517_v18 = vpack.c.bf16 %v4453_v19, %v4452_v6  ;;  %v4979_v60 = vpack.c.bf16 %v4854_v21, %v4853_v27 }
 0x77c   : > { %v4059_v10 = vadd.f32 %v10228_v56, %v3930_v52  ;;  %v4857_v52 = vld [vmem:[%s9878_s28 + $0x440] sm:$0xff] }
 0x77d   : > { %v4713_v50 = vsel %vm4519_vm3, %v4517_v18, 0  ;;  %v4441_v18 = vmax.f32 %v4057_v34, 0.0 }
 0x77e   : > { %v4443_v55 = vmax.f32 %v4059_v10, 0.0  ;;  %v4860_v10 = vld [vmem:[%s9878_s28 + $0x458] sm:$0xff] }
 0x77f   : > { %4795 = vmatpush.bf16.xpose.msrb.mxu3 %v4683_v45  ;;  %v4448_v45 = vmax.f32 %v4064_v5, 0.0  ;;  %v4511_v58 = vpack.c.bf16 %v4441_v18, %v4440_v1  ;;  %v9695_v5 = vld [vmem:[%s12015_s5 + $0x10] sm:$0xff]  ;;  %v4866_v18 = vld [vmem:[%s9878_s28 + $0x488] sm:$0xff] }
 0x781   : > { %v4515_v31 = vpack.c.bf16 %v4449_v40, %v4448_v45  ;;  %v4695_v22 = vsel %vm4519_vm3, %v4511_v58, 0  ;;  %v4850_v40 = vld [vmem:[%s9878_s28 + $0x408] sm:$0xff]  ;;  %v4867_v58 = vld [vmem:[%s9878_s28 + $0x490] sm:$0xff] }
 0x787   : > { %4796 = vmatpush.bf16.xpose.msrb.mxu3 %v4680_v36  ;;  %v4707_v36 = vsel %vm4519_vm3, %v4515_v31, 0 }
 0x78f   : > { %4797 = vmatpush.bf16.xpose.msrb.mxu3 %v4677_v47  ;;  %v3797_v47 = vpack.c.bf16 %v10893_v26, %v10893_v26 }
 0x791   : > { %v3929_v11 = vunpack.c.l.bf16 %v3797_v47  ;;  %v4856_v47 = vld [vmem:[%s9878_s28 + $0x438] sm:$0xff] }
 0x793   : > { %v4058_v26 = vadd.f32 %v10228_v56, %v3929_v11 }
 0x795   : > { %v4442_v19 = vmax.f32 %v4058_v26, 0.0  ;;  %v4862_v26 = vld [vmem:[%s9878_s28 + $0x468] sm:$0xff] }
 0x796   : > { %v4983_v41 = vpack.c.bf16 %v4862_v26, %v4861_v37 }
 0x797   : > { %4798 = vmatpush.bf16.xpose.msrb.mxu3 %v4674_v12  ;;  %v4444_v12 = vmax.f32 %v4060_v16, 0.0  ;;  %v4512_v6 = vpack.c.bf16 %v4443_v55, %v4442_v19  ;;  %v4980_v16 = vpack.c.bf16 %v4856_v47, %v4855_v4  ;;  %v4863_v55 = vld [vmem:[%s9878_s28 + $0x470] sm:$0xff]  ;;  %v4872_v4 = vld [vmem:[%s9878_s28 + $0x4b8] sm:$0xff] }
 0x799   : > { %v4513_v14 = vpack.c.bf16 %v4445_v28, %v4444_v12  ;;  %v4698_v51 = vsel %vm4519_vm3, %v4512_v6, 0  ;;  %v4858_v28 = vld [vmem:[%s9878_s28 + $0x448] sm:$0xff] }
 0x79a   : > { %v4981_v11 = vpack.c.bf16 %v4858_v28, %v4857_v52 }
 0x79b   : > { %v4701_v25 = vsel %vm4519_vm3, %v4513_v14, 0  ;;  %v4982_v14 = vpack.c.bf16 %v4860_v10, %v4859_v17 }
 0x79f   : > { %4799 = vmatpush.bf16.xpose.msrb.mxu3 %v4671_v32 }
 0x7a7   : > { %4800 = vmatpush.bf16.xpose.msrb.mxu3 %v4668_v57  ;;  %v3925_v57 = vunpack.c.l.bf16 %v3793_v29 }
 0x7ae   : > { %9492 = vmatmul.msk.bf16.vlgmr.msrb.gmra.mxu3 %vm4519_vm3, %v10786_v35 }
 0x7af   : > { %4806 = vmatpush.bf16.xpose.msra.mxu3 %v4713_v50  ;;  %v4054_v50 = vadd.f32 %v10228_v56, %v3925_v57  ;;  %v4985_v57 = vpack.c.bf16 %v4866_v18, %v4865_v13 }
 0x7b1   : > { %v4776_v32 = vpop.f32.mrf.mxu3  ;;  %v4438_v0 = vmax.f32 %v4054_v50, 0.0  ;;  %v4868_v50 = vld [vmem:[%s9878_s28 + $0x498] sm:$0xff] }
 0x7b2   : > { %v4777_v45 = vadd.f32 %v4776_v32, %v10880_v9 }
 0x7b3   : > { %v4510_v15 = vpack.c.bf16 %v4439_v8, %v4438_v0 }
 0x7b4   : > { %v4830_v31 = vrot.slane %v4777_v45, 4 }
 0x7b5   : > { %v4692_v3 = vsel %vm4519_vm3, %v4510_v15, 0  ;;  %v4986_v15 = vpack.c.bf16 %v4868_v50, %v4867_v58 }
 0x7b7   : > { %4807 = vmatpush.bf16.xpose.msra.mxu3 %v4710_v23  ;;  %v9696_v23 = vld [vmem:[%s12015_s5 + $0x8] sm:$0xff] }
 0x7b9   : > { %v4778_v39 = vpop.f32.mrf.mxu3 }
 0x7bf   : > { %4808 = vmatpush.bf16.xpose.msra.mxu3 %v4707_v36 }
 0x7c7   : > { %4809 = vmatpush.bf16.xpose.msra.mxu3 %v4704_v33 }
 0x7cf   : > { %4810 = vmatpush.bf16.xpose.msra.mxu3 %v4701_v25  ;;  %v4864_v25 = vld [vmem:[%s9878_s28 + $0x478] sm:$0xff] }
 0x7d0   : > { %v4984_v32 = vpack.c.bf16 %v4864_v25, %v4863_v55  ;;  %v4874_v55 = vld [vmem:[%s9878_s28 + $0x4c8] sm:$0xff] }
 0x7d7   : > { %4811 = vmatpush.bf16.xpose.msra.mxu3 %v4698_v51 }
 0x7df   : > { %4812 = vmatpush.bf16.xpose.msra.mxu3 %v4695_v22 }
 0x7e7   : > { %4813 = vmatpush.bf16.xpose.msra.mxu3 %v4692_v3 }
 0x7ee   : > { %9493 = vmatmul.msk.bf16.vlgmr.msra.gmra.mxu3 %vm4519_vm3, %v10786_v35  ;;  %v4977_v35 = vpack.c.bf16 %v4850_v40, %v4849_v30 }
 0x7ef   : > { %5240 = vmatpush.bf16.msrb.mxu3 %v12038_v54 }
 0x7f1   : > { %v4789_v59 = vpop.f32.mrf.mxu3 }
 0x7f2   : > { %v4790_v42 = vadd.f32 %v4789_v59, %v10880_v9 }
 0x7f3   : > { %9651 = vmatpush.bf16.msra.mxu3 %v9694_v7 }
 0x7f4   : > { %v4831_v48 = vrot.slane %v4790_v42, 3 }
 0x7f6   : > { %v4841_v2 = vsel %vm4840_vm7, %v4830_v31, %v4831_v48 }
 0x7f7   : > { %9652 = vmatpush.bf16.msra.mxu3 %v9695_v5 }
 0x7f9   : > { %v4791_v36 = vpop.f32.mrf.mxu3 }
 0x7fb   : > { %9653 = vmatpush.bf16.msra.mxu3 %v9696_v23 }
 0x7fe   : > { %9494 = vmatmul.msk.bf16.vlgmr.msrb.gmra.mxu3 %vm558_vm1, %v4977_v35  ;;  %v4869_v35 = vld [vmem:[%s9878_s28 + $0x4a0] sm:$0xff] }
 0x7ff   : > { %9654 = vmatpush.bf16.msra.mxu3 %v9697_v24  ;;  %v4870_v24 = vld [vmem:[%s9878_s28 + $0x4a8] sm:$0xff] }
 0x800   : > { %v4987_v31 = vpack.c.bf16 %v4870_v24, %v4869_v35 }
 0x80e   : > { %9495 = vmatmul.msk.bf16.gmra.mxu3 %vm558_vm1, %v4978_v62 }
 0x81e   : > { %9496 = vmatmul.msk.bf16.gmra.mxu3 %vm558_vm1, %v4979_v60  ;;  %v4871_v60 = vld [vmem:[%s9878_s28 + $0x4b0] sm:$0xff] }
 0x81f   : > { %v4988_v28 = vpack.c.bf16 %v4872_v4, %v4871_v60 }
 0x82e   : > { %9497 = vmatmul.msk.bf16.gmra.mxu3 %vm558_vm1, %v4980_v16 }
 0x831   : > { %v4802_v33 = vpop.f32.mrf.mxu3 }
 0x832   : > { %v4803_v46 = vadd.f32 %v4802_v33, %v10880_v9 }
 0x834   : > { %v4832_v34 = vrot.slane %v4803_v46, 2 }
 0x839   : > { %v4804_v12 = vpop.f32.mrf.mxu3 }
 0x83e   : > { %9498 = vmatmul.msk.bf16.gmra.mxu3 %vm558_vm1, %v4981_v11 }
 0x84e   : > { %9499 = vmatmul.msk.bf16.gmra.mxu3 %vm558_vm1, %v4982_v14 }
 0x85e   : > { %9500 = vmatmul.msk.bf16.gmra.mxu3 %vm558_vm1, %v4983_v41  ;;  %v4873_v41 = vld [vmem:[%s9878_s28 + $0x4c0] sm:$0xff] }
 0x86e   : > { %9501 = vmatmul.msk.bf16.gmra.mxu3 %vm558_vm1, %v4984_v32 }
 0x871   : > { %v4815_v19 = vpop.f32.mrf.mxu3 }
 0x872   : > { %v4816_v63 = vadd.f32 %v4815_v19, %v10880_v9  ;;  %v4989_v19 = vpack.c.bf16 %v4874_v55, %v4873_v41 }
 0x874   : > { %v4833_v6 = vrot.slane %v4816_v63, 1 }
 0x876   : > { %v4843_v29 = vsel %vm4842_vm8, %v4832_v34, %v4833_v6 }
 0x877   : > { %v4845_v49 = vsel %vm4844_vm9, %v4841_v2, %v4843_v29 }
 0x878   : > { %v4846_v51 = vsel %vm751_vm0, %v10966_v38, %v4845_v49 }
 0x879   : > { %v4817_v39 = vpop.f32.mrf.mxu3  ;;  %4848 = vst [vmem:[%s11079_s23] sm:$0xff] %v4846_v51 }
 0x87a   : > { %v4875_v39 = vld [vmem:[%s9878_s28 + $0x4d0] sm:$0xff] }
 0x87e   : > { %9502 = vmatmul.msk.bf16.gmra.mxu3 %vm558_vm1, %v4985_v57  ;;  %v4876_v57 = vld [vmem:[%s9878_s28 + $0x4d8] sm:$0xff] }
 0x87f   : > { %v4990_v50 = vpack.c.bf16 %v4876_v57, %v4875_v39 }
 0x881   : > { %v5242_v1 = vpop.f32.mrf.mxu3 }
 0x882   : > { %v5562_v20 = vpack.c.bf16 %v5242_v1, %v5242_v1 }
 0x884   : > { %v5690_v8 = vunpack.c.l.bf16 %v5562_v20 }
 0x886   : > { %v5818_v38 = vadd.f32 %v5690_v8, %v9934_v43 }
 0x888   : > { %v6202_v7 = vmax.f32 %v5818_v38, 0.0 }
 0x889   : > { %v5244_v22 = vpop.f32.mrf.mxu3 }
 0x88a   : > { %v5563_v0 = vpack.c.bf16 %v5244_v22, %v5244_v22 }
 0x88c   : > { %v5691_v3 = vunpack.c.l.bf16 %v5563_v0 }
 0x88e   : > { %v5819_v54 = vadd.f32 %v5691_v3, %v9934_v43  ;;  %9503 = vmatmul.msk.bf16.gmra.mxu3 %vm558_vm1, %v4986_v15 }
 0x890   : > { %v6203_v5 = vmax.f32 %v5819_v54, 0.0 }
 0x891   : > { %v5247_v30 = vpop.f32.mrf.mxu3 }
 0x892   : > { %v6330_v40 = vpack.c.bf16 %v6203_v5, %v6202_v7  ;;  %v5564_v23 = vpack.c.bf16 %v5247_v30, %v5247_v30  ;;  %v4877_v5 = vld [vmem:[%s9878_s28 + $0x4e0] sm:$0xff]  ;;  %v4878_v30 = vld [vmem:[%s9878_s28 + $0x4e8] sm:$0xff] }
 0x893   : > { %v4991_v24 = vpack.c.bf16 %v4878_v30, %v4877_v5 }
 0x894   : > { %6402 = vmatmul.bf16.vlgmr.msrb.gmra.mxu0 %v6330_v40  ;;  %v5692_v45 = vunpack.c.l.bf16 %v5564_v23 }
 0x896   : > { %v5820_v48 = vadd.f32 %v5692_v45, %v9934_v43 }
 0x898   : > { %v6204_v44 = vmax.f32 %v5820_v48, 0.0 }
 0x899   : > { %v5249_v59 = vpop.f32.mrf.mxu3 }
 0x89a   : > { %v5565_v42 = vpack.c.bf16 %v5249_v59, %v5249_v59 }
 0x89c   : > { %v5693_v2 = vunpack.c.l.bf16 %v5565_v42 }
 0x89e   : > { %v5821_v61 = vadd.f32 %v5693_v2, %v9934_v43  ;;  %9504 = vmatmul.msk.bf16.gmra.mxu3 %vm558_vm1, %v4987_v31 }
 0x8a0   : > { %v6205_v36 = vmax.f32 %v5821_v61, 0.0 }
 0x8a1   : > { %v5252_v62 = vpop.f32.mrf.mxu3 }
 0x8a2   : > { %v6331_v27 = vpack.c.bf16 %v6205_v36, %v6204_v44  ;;  %v5566_v21 = vpack.c.bf16 %v5252_v62, %v5252_v62  ;;  %v4879_v36 = vld [vmem:[%s9878_s28 + $0x4f0] sm:$0xff]  ;;  %v4880_v62 = vld [vmem:[%s9878_s28 + $0x4f8] sm:$0xff] }
 0x8a3   : > { %v4992_v4 = vpack.c.bf16 %v4880_v62, %v4879_v36 }
 0x8a4   : > { %6407 = vmatmul.bf16.gmra.mxu0 %v6331_v27  ;;  %v5694_v47 = vunpack.c.l.bf16 %v5566_v21 }
 0x8a6   : > { %v5822_v33 = vadd.f32 %v5694_v47, %v9934_v43 }
 0x8a8   : > { %v6206_v17 = vmax.f32 %v5822_v33, 0.0 }
 0x8a9   : > { %v5254_v16 = vpop.f32.mrf.mxu3 }
 0x8aa   : > { %v5567_v52 = vpack.c.bf16 %v5254_v16, %v5254_v16 }
 0x8ac   : > { %v5695_v11 = vunpack.c.l.bf16 %v5567_v52 }
 0x8ae   : > { %v5823_v12 = vadd.f32 %v5695_v11, %v9934_v43  ;;  %9505 = vmatmul.msk.bf16.gmra.mxu3 %vm558_vm1, %v4988_v28 }
 0x8b0   : > { %v6207_v10 = vmax.f32 %v5823_v12, 0.0 }
 0x8b1   : > { %v5257_v14 = vpop.f32.mrf.mxu3 }
 0x8b2   : > { %v6332_v37 = vpack.c.bf16 %v6207_v10, %v6206_v17  ;;  %v5568_v26 = vpack.c.bf16 %v5257_v14, %v5257_v14  ;;  %v4881_v10 = vld [vmem:[%s9878_s28 + $0x500] sm:$0xff]  ;;  %v4882_v14 = vld [vmem:[%s9878_s28 + $0x508] sm:$0xff] }
 0x8b3   : > { %v4993_v55 = vpack.c.bf16 %v4882_v14, %v4881_v10 }
 0x8b4   : > { %6412 = vmatmul.bf16.gmra.mxu0 %v6332_v37  ;;  %v5696_v25 = vunpack.c.l.bf16 %v5568_v26 }
 0x8b6   : > { %v5824_v63 = vadd.f32 %v5696_v25, %v9934_v43 }
 0x8b8   : > { %v6208_v29 = vmax.f32 %v5824_v63, 0.0 }
 0x8b9   : > { %v5259_v32 = vpop.f32.mrf.mxu3 }
 0x8ba   : > { %v5569_v46 = vpack.c.bf16 %v5259_v32, %v5259_v32 }
 0x8bc   : > { %v5697_v34 = vunpack.c.l.bf16 %v5569_v46 }
 0x8be   : > { %v5825_v6 = vadd.f32 %v5697_v34, %v9934_v43  ;;  %9506 = vmatmul.msk.bf16.gmra.mxu3 %vm558_vm1, %v4989_v19 }
 0x8c0   : > { %v6209_v49 = vmax.f32 %v5825_v6, 0.0 }
 0x8c1   : > { %v5262_v13 = vpop.f32.mrf.mxu3 }
 0x8c2   : > { %v6333_v18 = vpack.c.bf16 %v6209_v49, %v6208_v29  ;;  %v5570_v51 = vpack.c.bf16 %v5262_v13, %v5262_v13  ;;  %v4883_v49 = vld [vmem:[%s9878_s28 + $0x510] sm:$0xff]  ;;  %v4884_v13 = vld [vmem:[%s9878_s28 + $0x518] sm:$0xff] }
 0x8c3   : > { %v4994_v57 = vpack.c.bf16 %v4884_v13, %v4883_v49 }
 0x8c4   : > { %6417 = vmatmul.bf16.gmra.mxu0 %v6333_v18  ;;  %v5698_v1 = vunpack.c.l.bf16 %v5570_v51 }
 0x8c6   : > { %v5826_v8 = vadd.f32 %v5698_v1, %v9934_v43 }
 0x8c8   : > { %v6210_v15 = vmax.f32 %v5826_v8, 0.0 }
 0x8c9   : > { %v5264_v20 = vpop.f32.mrf.mxu3 }
 0x8ca   : > { %v5571_v58 = vpack.c.bf16 %v5264_v20, %v5264_v20 }
 0x8cc   : > { %v5699_v22 = vunpack.c.l.bf16 %v5571_v58 }
 0x8ce   : > { %v5827_v0 = vadd.f32 %v5699_v22, %v9934_v43  ;;  %9507 = vmatmul.msk.bf16.gmra.mxu3 %vm558_vm1, %v4990_v50 }
 0x8d0   : > { %v6211_v38 = vmax.f32 %v5827_v0, 0.0 }
 0x8d1   : > { %v5267_v3 = vpop.f32.mrf.mxu3 }
 0x8d2   : > { %v6334_v54 = vpack.c.bf16 %v6211_v38, %v6210_v15  ;;  %v5572_v7 = vpack.c.bf16 %v5267_v3, %v5267_v3 }
 0x8d4   : > { %6422 = vmatmul.bf16.gmra.mxu0 %v6334_v54  ;;  %v5700_v40 = vunpack.c.l.bf16 %v5572_v7  ;;  %v4885_v54 = vld [vmem:[%s9878_s28 + $0x520] sm:$0xff]  ;;  %v4886_v7 = vld [vmem:[%s9878_s28 + $0x528] sm:$0xff] }
 0x8d6   : > { %v5828_v45 = vadd.f32 %v5700_v40, %v9934_v43 }
 0x8d8   : > { %v6212_v31 = vmax.f32 %v5828_v45, 0.0  ;;  %v4995_v45 = vpack.c.bf16 %v4886_v7, %v4885_v54 }
 0x8d9   : > { %v5269_v23 = vpop.f32.mrf.mxu3 }
 0x8da   : > { %v5573_v35 = vpack.c.bf16 %v5269_v23, %v5269_v23 }
 0x8dc   : > { %v5701_v59 = vunpack.c.l.bf16 %v5573_v35 }
 0x8de   : > { %v5829_v42 = vadd.f32 %v5701_v59, %v9934_v43  ;;  %9508 = vmatmul.msk.bf16.gmra.mxu3 %vm558_vm1, %v4991_v24 }
 0x8e0   : > { %v6213_v48 = vmax.f32 %v5829_v42, 0.0 }
 0x8e1   : > { %v5272_v2 = vpop.f32.mrf.mxu3 }
 0x8e2   : > { %v6335_v61 = vpack.c.bf16 %v6213_v48, %v6212_v31  ;;  %v5574_v44 = vpack.c.bf16 %v5272_v2, %v5272_v2 }
 0x8e4   : > { %6427 = vmatmul.bf16.gmra.mxu0 %v6335_v61  ;;  %v5702_v27 = vunpack.c.l.bf16 %v5574_v44 }
 0x8e6   : > { %v5830_v47 = vadd.f32 %v5702_v27, %v9934_v43 }
 0x8e8   : > { %v6214_v28 = vmax.f32 %v5830_v47, 0.0 }
 0x8e9   : > { %v5274_v21 = vpop.f32.mrf.mxu3 }
 0x8ea   : > { %v5575_v60 = vpack.c.bf16 %v5274_v21, %v5274_v21 }
 0x8ec   : > { %v5703_v16 = vunpack.c.l.bf16 %v5575_v60 }
 0x8ee   : > { %v5831_v52 = vadd.f32 %v5703_v16, %v9934_v43  ;;  %9509 = vmatmul.msk.bf16.gmra.mxu3 %vm558_vm1, %v4992_v4 }
 0x8f0   : > { %v6215_v33 = vmax.f32 %v5831_v52, 0.0 }
 0x8f1   : > { %v5277_v11 = vpop.f32.mrf.mxu3 }
 0x8f2   : > { %v6336_v12 = vpack.c.bf16 %v6215_v33, %v6214_v28  ;;  %v5576_v17 = vpack.c.bf16 %v5277_v11, %v5277_v11  ;;  %v4887_v28 = vld [vmem:[%s9878_s28 + $0x530] sm:$0xff]  ;;  %v4888_v33 = vld [vmem:[%s9878_s28 + $0x538] sm:$0xff] }
 0x8f4   : > { %6432 = vmatmul.bf16.gmra.mxu0 %v6336_v12  ;;  %v5704_v37 = vunpack.c.l.bf16 %v5576_v17 }
 0x8f6   : > { %v5832_v25 = vadd.f32 %v5704_v37, %v9934_v43 }
 0x8f8   : > { %v6216_v19 = vmax.f32 %v5832_v25, 0.0 }
 0x8f9   : > { %v5279_v26 = vpop.f32.mrf.mxu3 }
 0x8fa   : > { %v5577_v41 = vpack.c.bf16 %v5279_v26, %v5279_v26  ;;  %v4996_v26 = vpack.c.bf16 %v4888_v33, %v4887_v28 }
 0x8fc   : > { %v5705_v32 = vunpack.c.l.bf16 %v5577_v41 }
 0x8fe   : > { %v5833_v46 = vadd.f32 %v5705_v32, %v9934_v43  ;;  %9510 = vmatmul.msk.bf16.gmra.mxu3 %vm558_vm1, %v4993_v55 }
 0x900   : > { %v6217_v63 = vmax.f32 %v5833_v46, 0.0 }
 0x901   : > { %v5282_v34 = vpop.f32.mrf.mxu3 }
 0x902   : > { %v6337_v6 = vpack.c.bf16 %v6217_v63, %v6216_v19  ;;  %v5578_v29 = vpack.c.bf16 %v5282_v34, %v5282_v34 }
 0x904   : > { %6437 = vmatmul.bf16.gmra.mxu0 %v6337_v6  ;;  %v5706_v18 = vunpack.c.l.bf16 %v5578_v29 }
 0x906   : > { %v5834_v1 = vadd.f32 %v5706_v18, %v9934_v43 }
 0x908   : > { %v6218_v50 = vmax.f32 %v5834_v1, 0.0  ;;  %v4889_v1 = vld [vmem:[%s9878_s28 + $0x540] sm:$0xff] }
 0x909   : > { %v5284_v51 = vpop.f32.mrf.mxu3 }
 0x90a   : > { %v5579_v39 = vpack.c.bf16 %v5284_v51, %v5284_v51 }
 0x90c   : > { %v5707_v20 = vunpack.c.l.bf16 %v5579_v39 }
 0x90e   : > { %v5835_v58 = vadd.f32 %v5707_v20, %v9934_v43  ;;  %9511 = vmatmul.msk.bf16.gmra.mxu3 %vm558_vm1, %v4994_v57  ;;  %v4890_v20 = vld [vmem:[%s9878_s28 + $0x548] sm:$0xff] }
 0x910   : > { %v6219_v8 = vmax.f32 %v5835_v58, 0.0 }
 0x911   : > { %v5287_v22 = vpop.f32.mrf.mxu3  ;;  %v6403_v0 = vpop.f32.mrf.mxu0 }
 0x912   : > { %v6338_v15 = vpack.c.bf16 %v6219_v8, %v6218_v50  ;;  %v5580_v38 = vpack.c.bf16 %v5287_v22, %v5287_v22  ;;  %v6723_v3 = vpack.c.bf16 %v6403_v0, %v6403_v0 }
 0x914   : > { %6442 = vmatmul.bf16.gmra.mxu0 %v6338_v15  ;;  %v5708_v5 = vunpack.c.l.bf16 %v5580_v38  ;;  %v6851_v30 = vunpack.c.l.bf16 %v6723_v3  ;;  %v4997_v38 = vpack.c.bf16 %v4890_v20, %v4889_v1 }
 0x916   : > { %v5836_v59 = vadd.f32 %v5708_v5, %v9934_v43  ;;  %v6979_v42 = vadd.f32 %v6851_v30, %v9991_v53 }
 0x918   : > { %v6220_v44 = vmax.f32 %v5836_v59, 0.0  ;;  %v7363_v36 = vmax.f32 %v6979_v42, 0.0 }
 0x919   : > { %v5289_v40 = vpop.f32.mrf.mxu3  ;;  %v6405_v23 = vpop.f32.mrf.mxu0 }
 0x91a   : > { %v5581_v35 = vpack.c.bf16 %v5289_v40, %v5289_v40  ;;  %v6724_v24 = vpack.c.bf16 %v6405_v23, %v6405_v23 }
 0x91c   : > { %v5709_v31 = vunpack.c.l.bf16 %v5581_v35  ;;  %v6852_v48 = vunpack.c.l.bf16 %v6724_v24 }
 0x91e   : > { %v5837_v2 = vadd.f32 %v5709_v31, %v9934_v43  ;;  %v6980_v61 = vadd.f32 %v6852_v48, %v9991_v53  ;;  %9512 = vmatmul.msk.bf16.gmra.mxu3 %vm558_vm1, %v4995_v45 }
 0x920   : > { %v6221_v62 = vmax.f32 %v5837_v2, 0.0  ;;  %v7364_v27 = vmax.f32 %v6980_v61, 0.0 }
 0x921   : > { %v5292_v21 = vpop.f32.mrf.mxu3  ;;  %v6408_v60 = vpop.f32.mrf.mxu0 }
 0x922   : > { %v7491_v4 = vpack.c.bf16 %v7364_v27, %v7363_v36  ;;  %v6339_v47 = vpack.c.bf16 %v6221_v62, %v6220_v44  ;;  %v5582_v16 = vpack.c.bf16 %v5292_v21, %v5292_v21  ;;  %v6725_v52 = vpack.c.bf16 %v6408_v60, %v6408_v60  ;;  %v4891_v44 = vld [vmem:[%s9878_s28 + $0x550] sm:$0xff]  ;;  %v4892_v36 = vld [vmem:[%s9878_s28 + $0x558] sm:$0xff] }
 0x924   : > { %6447 = vmatmul.bf16.gmra.mxu0 %v6339_v47  ;;  %9558 = vmatmul.msk.bf16.vlgmr.msrb.gmra.mxu2 %vm3159_vm2, %v7491_v4  ;;  %v5710_v11 = vunpack.c.l.bf16 %v5582_v16  ;;  %v6853_v12 = vunpack.c.l.bf16 %v6725_v52  ;;  %v4998_v16 = vpack.c.bf16 %v4892_v36, %v4891_v44 }
 0x926   : > { %v5838_v41 = vadd.f32 %v5710_v11, %v9934_v43  ;;  %v6981_v55 = vadd.f32 %v6853_v12, %v9991_v53 }
 0x928   : > { %v6222_v63 = vmax.f32 %v5838_v41, 0.0  ;;  %v7365_v34 = vmax.f32 %v6981_v55, 0.0 }
 0x929   : > { %v5294_v17 = vpop.f32.mrf.mxu3  ;;  %v6410_v10 = vpop.f32.mrf.mxu0 }
 0x92a   : > { %v5583_v14 = vpack.c.bf16 %v5294_v17, %v5294_v17  ;;  %v6726_v37 = vpack.c.bf16 %v6410_v10, %v6410_v10 }
 0x92c   : > { %v5711_v25 = vunpack.c.l.bf16 %v5583_v14  ;;  %v6854_v32 = vunpack.c.l.bf16 %v6726_v37 }
 0x92e   : > { %v5839_v46 = vadd.f32 %v5711_v25, %v9934_v43  ;;  %v6982_v19 = vadd.f32 %v6854_v32, %v9991_v53  ;;  %9513 = vmatmul.msk.bf16.gmra.mxu3 %vm558_vm1, %v4996_v26 }
 0x930   : > { %v6223_v6 = vmax.f32 %v5839_v46, 0.0  ;;  %v7366_v29 = vmax.f32 %v6982_v19, 0.0 }
 0x931   : > { %v5297_v49 = vpop.f32.mrf.mxu3  ;;  %v6413_v13 = vpop.f32.mrf.mxu0 }
 0x932   : > { %v7492_v18 = vpack.c.bf16 %v7366_v29, %v7365_v34  ;;  %v6340_v51 = vpack.c.bf16 %v6223_v6, %v6222_v63  ;;  %v5584_v39 = vpack.c.bf16 %v5297_v49, %v5297_v49  ;;  %v6727_v57 = vpack.c.bf16 %v6413_v13, %v6413_v13  ;;  %v4893_v63 = vld [vmem:[%s9878_s28 + $0x560] sm:$0xff]  ;;  %v4894_v34 = vld [vmem:[%s9878_s28 + $0x568] sm:$0xff] }
 0x934   : > { %6452 = vmatmul.bf16.gmra.mxu0 %v6340_v51  ;;  %9559 = vmatmul.msk.bf16.gmra.mxu2 %vm3159_vm2, %v7492_v18  ;;  %v5712_v58 = vunpack.c.l.bf16 %v5584_v39  ;;  %v6855_v50 = vunpack.c.l.bf16 %v6727_v57  ;;  %v4999_v39 = vpack.c.bf16 %v4894_v34, %v4893_v63 }
 0x936   : > { %v5840_v3 = vadd.f32 %v5712_v58, %v9934_v43  ;;  %v6983_v54 = vadd.f32 %v6855_v50, %v9991_v53 }
 0x938   : > { %v6224_v23 = vmax.f32 %v5840_v3, 0.0  ;;  %v7367_v35 = vmax.f32 %v6983_v54, 0.0 }
 0x939   : > { %v5299_v8 = vpop.f32.mrf.mxu3  ;;  %v6415_v22 = vpop.f32.mrf.mxu0 }
 0x93a   : > { %v5585_v0 = vpack.c.bf16 %v5299_v8, %v5299_v8  ;;  %v6728_v15 = vpack.c.bf16 %v6415_v22, %v6415_v22 }
 0x93c   : > { %v5713_v7 = vunpack.c.l.bf16 %v5585_v0  ;;  %v6856_v5 = vunpack.c.l.bf16 %v6728_v15 }
 0x93e   : > { %v5841_v30 = vadd.f32 %v5713_v7, %v9934_v43  ;;  %v6984_v40 = vadd.f32 %v6856_v5, %v9991_v53  ;;  %9514 = vmatmul.msk.bf16.gmra.mxu3 %vm558_vm1, %v4997_v38 }
 0x940   : > { %v6225_v24 = vmax.f32 %v5841_v30, 0.0  ;;  %v7368_v45 = vmax.f32 %v6984_v40, 0.0 }
 0x941   : > { %v5302_v59 = vpop.f32.mrf.mxu3  ;;  %v6418_v42 = vpop.f32.mrf.mxu0 }
 0x942   : > { %v7493_v31 = vpack.c.bf16 %v7368_v45, %v7367_v35  ;;  %v6341_v48 = vpack.c.bf16 %v6225_v24, %v6224_v23  ;;  %v5586_v2 = vpack.c.bf16 %v5302_v59, %v5302_v59  ;;  %v6729_v61 = vpack.c.bf16 %v6418_v42, %v6418_v42  ;;  %v4895_v23 = vld [vmem:[%s9878_s28 + $0x570] sm:$0xff]  ;;  %v4896_v35 = vld [vmem:[%s9878_s28 + $0x578] sm:$0xff] }
 0x944   : > { %6457 = vmatmul.bf16.gmra.mxu0 %v6341_v48  ;;  %9560 = vmatmul.msk.bf16.gmra.mxu2 %vm3159_vm2, %v7493_v31  ;;  %v5714_v62 = vunpack.c.l.bf16 %v5586_v2  ;;  %v6857_v27 = vunpack.c.l.bf16 %v6729_v61  ;;  %v5000_v2 = vpack.c.bf16 %v4896_v35, %v4895_v23 }
 0x946   : > { %v5842_v52 = vadd.f32 %v5714_v62, %v9934_v43  ;;  %v6985_v28 = vadd.f32 %v6857_v27, %v9991_v53 }
 0x948   : > { %v6226_v10 = vmax.f32 %v5842_v52, 0.0  ;;  %v7369_v14 = vmax.f32 %v6985_v28, 0.0 }
 0x949   : > { %v5304_v21 = vpop.f32.mrf.mxu3  ;;  %v6420_v60 = vpop.f32.mrf.mxu0 }
 0x94a   : > { %v5587_v4 = vpack.c.bf16 %v5304_v21, %v5304_v21  ;;  %v6730_v47 = vpack.c.bf16 %v6420_v60, %v6420_v60 }
 0x94c   : > { %v5715_v33 = vunpack.c.l.bf16 %v5587_v4  ;;  %v6858_v11 = vunpack.c.l.bf16 %v6730_v47 }
 0x94e   : > { %v5843_v12 = vadd.f32 %v5715_v33, %v9934_v43  ;;  %v6986_v17 = vadd.f32 %v6858_v11, %v9991_v53  ;;  %9515 = vmatmul.msk.bf16.gmra.mxu3 %vm558_vm1, %v4998_v16 }
 0x950   : > { %v6227_v37 = vmax.f32 %v5843_v12, 0.0  ;;  %v7370_v26 = vmax.f32 %v6986_v17, 0.0 }
 0x951   : > { %v5307_v41 = vpop.f32.mrf.mxu3  ;;  %v6423_v55 = vpop.f32.mrf.mxu0 }
 0x952   : > { %v7494_v25 = vpack.c.bf16 %v7370_v26, %v7369_v14  ;;  %v6342_v32 = vpack.c.bf16 %v6227_v37, %v6226_v10  ;;  %v5588_v46 = vpack.c.bf16 %v5307_v41, %v5307_v41  ;;  %v6731_v19 = vpack.c.bf16 %v6423_v55, %v6423_v55  ;;  %v4897_v10 = vld [vmem:[%s9878_s28 + $0x580] sm:$0xff]  ;;  %v4898_v14 = vld [vmem:[%s9878_s28 + $0x588] sm:$0xff] }
 0x954   : > { %6462 = vmatmul.bf16.gmra.mxu0 %v6342_v32  ;;  %9561 = vmatmul.msk.bf16.gmra.mxu2 %vm3159_vm2, %v7494_v25  ;;  %v5716_v6 = vunpack.c.l.bf16 %v5588_v46  ;;  %v6859_v29 = vunpack.c.l.bf16 %v6731_v19  ;;  %v5001_v46 = vpack.c.bf16 %v4898_v14, %v4897_v10 }
 0x956   : > { %v5844_v57 = vadd.f32 %v5716_v6, %v9934_v43  ;;  %v6987_v1 = vadd.f32 %v6859_v29, %v9991_v53 }
 0x958   : > { %v6228_v22 = vmax.f32 %v5844_v57, 0.0  ;;  %v7371_v0 = vmax.f32 %v6987_v1, 0.0 }
 0x959   : > { %v5309_v49 = vpop.f32.mrf.mxu3  ;;  %v6425_v13 = vpop.f32.mrf.mxu0 }
 0x95a   : > { %v5589_v18 = vpack.c.bf16 %v5309_v49, %v5309_v49  ;;  %v6732_v51 = vpack.c.bf16 %v6425_v13, %v6425_v13 }
 0x95c   : > { %v5717_v20 = vunpack.c.l.bf16 %v5589_v18  ;;  %v6860_v58 = vunpack.c.l.bf16 %v6732_v51 }
 0x95e   : > { %v5845_v50 = vadd.f32 %v5717_v20, %v9934_v43  ;;  %v6988_v8 = vadd.f32 %v6860_v58, %v9991_v53  ;;  %9516 = vmatmul.msk.bf16.gmra.mxu3 %vm558_vm1, %v4999_v39 }
 0x960   : > { %v6229_v15 = vmax.f32 %v5845_v50, 0.0  ;;  %v7372_v38 = vmax.f32 %v6988_v8, 0.0 }
 0x961   : > { %v5312_v3 = vpop.f32.mrf.mxu3  ;;  %v6428_v54 = vpop.f32.mrf.mxu0 }
 0x962   : > { %v7495_v7 = vpack.c.bf16 %v7372_v38, %v7371_v0  ;;  %v6343_v5 = vpack.c.bf16 %v6229_v15, %v6228_v22  ;;  %v5590_v30 = vpack.c.bf16 %v5312_v3, %v5312_v3  ;;  %v6733_v40 = vpack.c.bf16 %v6428_v54, %v6428_v54  ;;  %v4899_v22 = vld [vmem:[%s9878_s28 + $0x590] sm:$0xff]  ;;  %v4900_v0 = vld [vmem:[%s9878_s28 + $0x598] sm:$0xff] }
 0x964   : > { %6467 = vmatmul.bf16.gmra.mxu0 %v6343_v5  ;;  %9562 = vmatmul.msk.bf16.gmra.mxu2 %vm3159_vm2, %v7495_v7  ;;  %v5718_v24 = vunpack.c.l.bf16 %v5590_v30  ;;  %v6861_v45 = vunpack.c.l.bf16 %v6733_v40  ;;  %v5002_v30 = vpack.c.bf16 %v4900_v0, %v4899_v22 }
 0x966   : > { %v5846_v61 = vadd.f32 %v5718_v24, %v9934_v43  ;;  %v6989_v44 = vadd.f32 %v6861_v45, %v9991_v53 }
 0x968   : > { %v6230_v60 = vmax.f32 %v5846_v61, 0.0  ;;  %v7373_v4 = vmax.f32 %v6989_v44, 0.0 }
 0x969   : > { %v5314_v59 = vpop.f32.mrf.mxu3  ;;  %v6430_v42 = vpop.f32.mrf.mxu0 }
 0x96a   : > { %v5591_v31 = vpack.c.bf16 %v5314_v59, %v5314_v59  ;;  %v6734_v48 = vpack.c.bf16 %v6430_v42, %v6430_v42 }
 0x96c   : > { %v5719_v36 = vunpack.c.l.bf16 %v5591_v31  ;;  %v6862_v62 = vunpack.c.l.bf16 %v6734_v48 }
 0x96e   : > { %v5847_v27 = vadd.f32 %v5719_v36, %v9934_v43  ;;  %v6990_v21 = vadd.f32 %v6862_v62, %v9991_v53  ;;  %9517 = vmatmul.msk.bf16.gmra.mxu3 %vm558_vm1, %v5000_v2 }
 0x970   : > { %v6231_v47 = vmax.f32 %v5847_v27, 0.0  ;;  %v7374_v16 = vmax.f32 %v6990_v21, 0.0 }
 0x971   : > { %v5317_v52 = vpop.f32.mrf.mxu3  ;;  %v6433_v28 = vpop.f32.mrf.mxu0 }
 0x972   : > { %v7496_v33 = vpack.c.bf16 %v7374_v16, %v7373_v4  ;;  %v6344_v11 = vpack.c.bf16 %v6231_v47, %v6230_v60  ;;  %v5592_v12 = vpack.c.bf16 %v5317_v52, %v5317_v52  ;;  %v6735_v17 = vpack.c.bf16 %v6433_v28, %v6433_v28  ;;  %v4901_v60 = vld [vmem:[%s9878_s28 + $0x5a0] sm:$0xff]  ;;  %v4902_v4 = vld [vmem:[%s9878_s28 + $0x5a8] sm:$0xff] }
 0x974   : > { %6472 = vmatmul.bf16.gmra.mxu0 %v6344_v11  ;;  %9563 = vmatmul.msk.bf16.gmra.mxu2 %vm3159_vm2, %v7496_v33  ;;  %v5720_v37 = vunpack.c.l.bf16 %v5592_v12  ;;  %v6863_v26 = vunpack.c.l.bf16 %v6735_v17  ;;  %v5003_v12 = vpack.c.bf16 %v4902_v4, %v4901_v60  ;;  %v4905_v4 = vld [vmem:[%s9878_s28 + $0x5c0] sm:$0xff] }
 0x976   : > { %v5848_v19 = vadd.f32 %v5720_v37, %v9934_v43  ;;  %v6991_v63 = vadd.f32 %v6863_v26, %v9991_v53 }
 0x978   : > { %v6232_v13 = vmax.f32 %v5848_v19, 0.0  ;;  %v7375_v18 = vmax.f32 %v6991_v63, 0.0 }
 0x979   : > { %v5319_v41 = vpop.f32.mrf.mxu3  ;;  %v6435_v55 = vpop.f32.mrf.mxu0 }
 0x97a   : > { %v5593_v25 = vpack.c.bf16 %v5319_v41, %v5319_v41  ;;  %v6736_v32 = vpack.c.bf16 %v6435_v55, %v6435_v55 }
 0x97c   : > { %v5721_v34 = vunpack.c.l.bf16 %v5593_v25  ;;  %v6864_v6 = vunpack.c.l.bf16 %v6736_v32 }
 0x97e   : > { %v5849_v29 = vadd.f32 %v5721_v34, %v9934_v43  ;;  %v6992_v49 = vadd.f32 %v6864_v6, %v9991_v53  ;;  %9518 = vmatmul.msk.bf16.gmra.mxu3 %vm558_vm1, %v5001_v46 }
 0x980   : > { %v6233_v51 = vmax.f32 %v5849_v29, 0.0  ;;  %v7376_v39 = vmax.f32 %v6992_v49, 0.0 }
 0x981   : > { %v5322_v57 = vpop.f32.mrf.mxu3  ;;  %v6438_v1 = vpop.f32.mrf.mxu0 }
 0x982   : > { %v7497_v20 = vpack.c.bf16 %v7376_v39, %v7375_v18  ;;  %v6345_v58 = vpack.c.bf16 %v6233_v51, %v6232_v13  ;;  %v5594_v50 = vpack.c.bf16 %v5322_v57, %v5322_v57  ;;  %v6737_v8 = vpack.c.bf16 %v6438_v1, %v6438_v1  ;;  %v4903_v18 = vld [vmem:[%s9878_s28 + $0x5b0] sm:$0xff]  ;;  %v4904_v51 = vld [vmem:[%s9878_s28 + $0x5b8] sm:$0xff] }
 0x983   : > { %v5004_v22 = vpack.c.bf16 %v4904_v51, %v4903_v18 }
 0x984   : > { %6477 = vmatmul.bf16.gmra.mxu0 %v6345_v58  ;;  %9564 = vmatmul.msk.bf16.gmra.mxu2 %vm3159_vm2, %v7497_v20  ;;  %v5722_v15 = vunpack.c.l.bf16 %v5594_v50  ;;  %v6865_v38 = vunpack.c.l.bf16 %v6737_v8 }
 0x986   : > { %v5850_v40 = vadd.f32 %v5722_v15, %v9934_v43  ;;  %v6993_v23 = vadd.f32 %v6865_v38, %v9991_v53 }
 0x988   : > { %v6234_v42 = vmax.f32 %v5850_v40, 0.0  ;;  %v7377_v31 = vmax.f32 %v6993_v23, 0.0 }
 0x989   : > { %v5324_v3 = vpop.f32.mrf.mxu3  ;;  %v6440_v54 = vpop.f32.mrf.mxu0 }
 0x98a   : > { %v5595_v7 = vpack.c.bf16 %v5324_v3, %v5324_v3  ;;  %v6738_v5 = vpack.c.bf16 %v6440_v54, %v6440_v54 }
 0x98c   : > { %v5723_v35 = vunpack.c.l.bf16 %v5595_v7  ;;  %v6866_v24 = vunpack.c.l.bf16 %v6738_v5 }
 0x98e   : > { %v5851_v45 = vadd.f32 %v5723_v35, %v9934_v43  ;;  %v6994_v59 = vadd.f32 %v6866_v24, %v9991_v53  ;;  %9519 = vmatmul.msk.bf16.gmra.mxu3 %vm558_vm1, %v5002_v30 }
 0x990   : > { %v6235_v48 = vmax.f32 %v5851_v45, 0.0  ;;  %v7378_v2 = vmax.f32 %v6994_v59, 0.0 }
 0x991   : > { %v5327_v61 = vpop.f32.mrf.mxu3  ;;  %v6443_v44 = vpop.f32.mrf.mxu0 }
 0x992   : > { %v7498_v36 = vpack.c.bf16 %v7378_v2, %v7377_v31  ;;  %v6346_v62 = vpack.c.bf16 %v6235_v48, %v6234_v42  ;;  %v5596_v27 = vpack.c.bf16 %v5327_v61, %v5327_v61  ;;  %v6739_v21 = vpack.c.bf16 %v6443_v44, %v6443_v44 }
 0x994   : > { %6482 = vmatmul.bf16.gmra.mxu0 %v6346_v62  ;;  %9565 = vmatmul.msk.bf16.gmra.mxu2 %vm3159_vm2, %v7498_v36  ;;  %v5724_v47 = vunpack.c.l.bf16 %v5596_v27  ;;  %v6867_v16 = vunpack.c.l.bf16 %v6739_v21 }
 0x996   : > { %v5852_v17 = vadd.f32 %v5724_v47, %v9934_v43  ;;  %v6995_v10 = vadd.f32 %v6867_v16, %v9991_v53  ;;  %v4906_v47 = vld [vmem:[%s9878_s28 + $0x5c8] sm:$0xff] }
 0x998   : > { %v6236_v55 = vmax.f32 %v5852_v17, 0.0  ;;  %v7379_v25 = vmax.f32 %v6995_v10, 0.0 }
 0x999   : > { %v5329_v52 = vpop.f32.mrf.mxu3  ;;  %v6445_v28 = vpop.f32.mrf.mxu0 }
 0x99a   : > { %v5597_v33 = vpack.c.bf16 %v5329_v52, %v5329_v52  ;;  %v6740_v11 = vpack.c.bf16 %v6445_v28, %v6445_v28 }
 0x99c   : > { %v5725_v14 = vunpack.c.l.bf16 %v5597_v33  ;;  %v6868_v37 = vunpack.c.l.bf16 %v6740_v11 }
 0x99e   : > { %v5853_v26 = vadd.f32 %v5725_v14, %v9934_v43  ;;  %v6996_v41 = vadd.f32 %v6868_v37, %v9991_v53  ;;  %9520 = vmatmul.msk.bf16.gmra.mxu3 %vm558_vm1, %v5003_v12  ;;  %v5005_v14 = vpack.c.bf16 %v4906_v47, %v4905_v4 }
 0x9a0   : > { %v6237_v32 = vmax.f32 %v5853_v26, 0.0  ;;  %v7380_v46 = vmax.f32 %v6996_v41, 0.0 }
 0x9a1   : > { %v5332_v19 = vpop.f32.mrf.mxu3  ;;  %v6448_v63 = vpop.f32.mrf.mxu0 }
 0x9a2   : > { %v7499_v34 = vpack.c.bf16 %v7380_v46, %v7379_v25  ;;  %v6347_v6 = vpack.c.bf16 %v6237_v32, %v6236_v55  ;;  %v6741_v29 = vpack.c.bf16 %v6448_v63, %v6448_v63  ;;  %v5598_v49 = vpack.c.bf16 %v5332_v19, %v5332_v19 }
 0x9a4   : > { %6487 = vmatmul.bf16.gmra.mxu0 %v6347_v6  ;;  %9566 = vmatmul.msk.bf16.gmra.mxu2 %vm3159_vm2, %v7499_v34  ;;  %v6869_v39 = vunpack.c.l.bf16 %v6741_v29  ;;  %v5726_v57 = vunpack.c.l.bf16 %v5598_v49 }
 0x9a6   : > { %v6997_v0 = vadd.f32 %v6869_v39, %v9991_v53  ;;  %v5854_v3 = vadd.f32 %v5726_v57, %v9934_v43 }
 0x9a7   : > { %v7756_v13 = vpop.f32.mrf.mxu2 }
 0x9a8   : > { %v8076_v58 = vpack.c.bf16 %v7756_v13, %v7756_v13  ;;  %v7381_v40 = vmax.f32 %v6997_v0, 0.0  ;;  %v6238_v45 = vmax.f32 %v5854_v3, 0.0 }
 0x9a9   : > { %v5334_v1 = vpop.f32.mrf.mxu3  ;;  %v6450_v20 = vpop.f32.mrf.mxu0 }
 0x9aa   : > { %v5599_v50 = vpack.c.bf16 %v5334_v1, %v5334_v1  ;;  %v6742_v8 = vpack.c.bf16 %v6450_v20, %v6450_v20  ;;  %v8204_v54 = vunpack.c.l.bf16 %v8076_v58 }
 0x9ac   : > { %v5727_v15 = vunpack.c.l.bf16 %v5599_v50  ;;  %v6870_v38 = vunpack.c.l.bf16 %v6742_v8  ;;  %v8332_v31 = vadd.f32 %v8204_v54, %v10228_v56 }
 0x9ae   : > { %v5855_v7 = vadd.f32 %v5727_v15, %v9934_v43  ;;  %v6998_v5 = vadd.f32 %v6870_v38, %v9991_v53  ;;  %9521 = vmatmul.msk.bf16.gmra.mxu3 %vm558_vm1, %v5004_v22  ;;  %v8716_v27 = vmax.f32 %v8332_v31, 0.0  ;;  %v4907_v15 = vld [vmem:[%s9878_s28 + $0x5d0] sm:$0xff]  ;;  %v4908_v38 = vld [vmem:[%s9878_s28 + $0x5d8] sm:$0xff] }
 0x9af   : > { %v7758_v30 = vpop.f32.mrf.mxu2 }
 0x9b0   : > { %v6239_v23 = vmax.f32 %v5855_v7, 0.0  ;;  %v7382_v35 = vmax.f32 %v6998_v5, 0.0  ;;  %v8077_v24 = vpack.c.bf16 %v7758_v30, %v7758_v30 }
 0x9b1   : > { %v5337_v59 = vpop.f32.mrf.mxu3  ;;  %v6453_v42 = vpop.f32.mrf.mxu0 }
 0x9b2   : > { %v7500_v48 = vpack.c.bf16 %v7382_v35, %v7381_v40  ;;  %v8205_v2 = vunpack.c.l.bf16 %v8077_v24  ;;  %v6348_v61 = vpack.c.bf16 %v6239_v23, %v6238_v45  ;;  %v6743_v36 = vpack.c.bf16 %v6453_v42, %v6453_v42 }
 0x9b3   : > { %v5600_v62 = vpack.c.bf16 %v5337_v59, %v5337_v59  ;;  %v5006_v24 = vpack.c.bf16 %v4908_v38, %v4907_v15 }
 0x9b4   : > { %v8333_v44 = vadd.f32 %v8205_v2, %v10228_v56  ;;  %9567 = vmatmul.msk.bf16.gmra.mxu2 %vm3159_vm2, %v7500_v48  ;;  %6492 = vmatmul.bf16.gmra.mxu0 %v6348_v61  ;;  %v6871_v16 = vunpack.c.l.bf16 %v6743_v36 }
 0x9b5   : > { %v5728_v28 = vunpack.c.l.bf16 %v5600_v62 }
 0x9b6   : > { %v8717_v21 = vmax.f32 %v8333_v44, 0.0  ;;  %v6999_v37 = vadd.f32 %v6871_v16, %v9991_v53 }
 0x9b7   : > { %v7761_v60 = vpop.f32.mrf.mxu2  ;;  %v5856_v55 = vadd.f32 %v5728_v28, %v9934_v43 }
 0x9b8   : > { %v11212_v52 = vpack.c.bf16 %v8717_v21, %v8716_v27  ;;  %v8078_v12 = vpack.c.bf16 %v7761_v60, %v7761_v60  ;;  %v7383_v63 = vmax.f32 %v6999_v37, 0.0 }
 0x9b9   : > { %v5339_v33 = vpop.f32.mrf.mxu3  ;;  %v6455_v11 = vpop.f32.mrf.mxu0  ;;  %v6240_v49 = vmax.f32 %v5856_v55, 0.0  ;;  %v4910_v55 = vld [vmem:[%s9878_s28 + $0x5e8] sm:$0xff] }
 0x9ba   : > { %v5601_v17 = vpack.c.bf16 %v5339_v33, %v5339_v33  ;;  %v6744_v10 = vpack.c.bf16 %v6455_v11, %v6455_v11  ;;  %v8206_v25 = vunpack.c.l.bf16 %v8078_v12 }
 0x9bc   : > { %v5729_v26 = vunpack.c.l.bf16 %v5601_v17  ;;  %v6872_v41 = vunpack.c.l.bf16 %v6744_v10  ;;  %v8334_v51 = vadd.f32 %v8206_v25, %v10228_v56 }
 0x9be   : > { %v5857_v32 = vadd.f32 %v5729_v26, %v9934_v43  ;;  %v7000_v46 = vadd.f32 %v6872_v41, %v9991_v53  ;;  %9522 = vmatmul.msk.bf16.gmra.mxu3 %vm558_vm1, %v5005_v14  ;;  %v8718_v8 = vmax.f32 %v8334_v51, 0.0  ;;  %v4909_v41 = vld [vmem:[%s9878_s28 + $0x5e0] sm:$0xff] }
 0x9bf   : > { %v7763_v19 = vpop.f32.mrf.mxu2 }
 0x9c0   : > { %v6241_v34 = vmax.f32 %v5857_v32, 0.0  ;;  %v7384_v6 = vmax.f32 %v7000_v46, 0.0  ;;  %v8079_v29 = vpack.c.bf16 %v7763_v19, %v7763_v19 }
 0x9c1   : > { %v5342_v13 = vpop.f32.mrf.mxu3  ;;  %v6458_v18 = vpop.f32.mrf.mxu0 }
 0x9c2   : > { %v7501_v39 = vpack.c.bf16 %v7384_v6, %v7383_v63  ;;  %v8207_v57 = vunpack.c.l.bf16 %v8079_v29  ;;  %v6349_v1 = vpack.c.bf16 %v6241_v34, %v6240_v49  ;;  %v6745_v58 = vpack.c.bf16 %v6458_v18, %v6458_v18 }
 0x9c3   : > { %v5602_v50 = vpack.c.bf16 %v5342_v13, %v5342_v13  ;;  %v5007_v49 = vpack.c.bf16 %v4910_v55, %v4909_v41 }
 0x9c4   : > { %v8335_v20 = vadd.f32 %v8207_v57, %v10228_v56  ;;  %9568 = vmatmul.msk.bf16.gmra.mxu2 %vm3159_vm2, %v7501_v39  ;;  %6497 = vmatmul.bf16.gmra.mxu0 %v6349_v1  ;;  %v6873_v3 = vunpack.c.l.bf16 %v6745_v58 }
 0x9c5   : > { %v5730_v7 = vunpack.c.l.bf16 %v5602_v50 }
 0x9c6   : > { %v8719_v22 = vmax.f32 %v8335_v20, 0.0  ;;  %v7001_v45 = vadd.f32 %v6873_v3, %v9991_v53 }
 0x9c7   : > { %v7766_v0 = vpop.f32.mrf.mxu2  ;;  %v5858_v31 = vadd.f32 %v5730_v7, %v9934_v43 }
 0x9c8   : > { %v11224_v54 = vpack.c.bf16 %v8719_v22, %v8718_v8  ;;  %v8080_v40 = vpack.c.bf16 %v7766_v0, %v7766_v0  ;;  %v7385_v36 = vmax.f32 %v7001_v45, 0.0 }
 0x9c9   : > { %v5344_v5 = vpop.f32.mrf.mxu3  ;;  %v6460_v30 = vpop.f32.mrf.mxu0  ;;  %v6242_v60 = vmax.f32 %v5858_v31, 0.0  ;;  %v4911_v31 = vld [vmem:[%s9878_s28 + $0x5f0] sm:$0xff] }
 0x9ca   : > { %v5603_v23 = vpack.c.bf16 %v5344_v5, %v5344_v5  ;;  %v6746_v35 = vpack.c.bf16 %v6460_v30, %v6460_v30  ;;  %v8208_v48 = vunpack.c.l.bf16 %v8080_v40 }
 0x9cc   : > { %v5731_v59 = vunpack.c.l.bf16 %v5603_v23  ;;  %v6874_v42 = vunpack.c.l.bf16 %v6746_v35  ;;  %v8336_v16 = vadd.f32 %v8208_v48, %v10228_v56  ;;  %v4912_v48 = vld [vmem:[%s9878_s28 + $0x5f8] sm:$0xff] }
 0x9ce   : > { %v5859_v2 = vadd.f32 %v5731_v59, %v9934_v43  ;;  %v7002_v61 = vadd.f32 %v6874_v42, %v9991_v53  ;;  %9523 = vmatmul.msk.bf16.gmra.mxu3 %vm558_vm1, %v5006_v24  ;;  %v8720_v14 = vmax.f32 %v8336_v16, 0.0 }
 0x9cf   : > { %v7768_v44 = vpop.f32.mrf.mxu2 }
 0x9d0   : > { %v6243_v62 = vmax.f32 %v5859_v2, 0.0  ;;  %v7386_v27 = vmax.f32 %v7002_v61, 0.0  ;;  %v8081_v21 = vpack.c.bf16 %v7768_v44, %v7768_v44 }
 0x9d1   : > { %v5347_v4 = vpop.f32.mrf.mxu3  ;;  %v6463_v47 = vpop.f32.mrf.mxu0 }
 0x9d2   : > { %v7502_v28 = vpack.c.bf16 %v7386_v27, %v7385_v36  ;;  %v8209_v33 = vunpack.c.l.bf16 %v8081_v21  ;;  %v6350_v11 = vpack.c.bf16 %v6243_v62, %v6242_v60  ;;  %v6747_v17 = vpack.c.bf16 %v6463_v47, %v6463_v47 }
 0x9d3   : > { %v5604_v10 = vpack.c.bf16 %v5347_v4, %v5347_v4  ;;  %v5008_v4 = vpack.c.bf16 %v4912_v48, %v4911_v31 }
 0x9d4   : > { %v8337_v12 = vadd.f32 %v8209_v33, %v10228_v56  ;;  %9569 = vmatmul.msk.bf16.gmra.mxu2 %vm3159_vm2, %v7502_v28  ;;  %6502 = vmatmul.bf16.gmra.mxu0 %v6350_v11  ;;  %v6875_v25 = vunpack.c.l.bf16 %v6747_v17 }
 0x9d5   : > { %v5732_v46 = vunpack.c.l.bf16 %v5604_v10 }
 0x9d6   : > { %v8721_v37 = vmax.f32 %v8337_v12, 0.0  ;;  %v7003_v13 = vadd.f32 %v6875_v25, %v9991_v53 }
 0x9d7   : > { %v7771_v26 = vpop.f32.mrf.mxu2  ;;  %v5860_v39 = vadd.f32 %v5732_v46, %v9934_v43 }
 0x9d8   : > { %v11236_v32 = vpack.c.bf16 %v8721_v37, %v8720_v14  ;;  %v8082_v34 = vpack.c.bf16 %v7771_v26, %v7771_v26  ;;  %v7387_v50 = vmax.f32 %v7003_v13, 0.0 }
 0x9d9   : > { %v5349_v19 = vpop.f32.mrf.mxu3  ;;  %v6465_v63 = vpop.f32.mrf.mxu0  ;;  %v6244_v15 = vmax.f32 %v5860_v39, 0.0 }
 0x9da   : > { %v5605_v6 = vpack.c.bf16 %v5349_v19, %v5349_v19  ;;  %v6748_v29 = vpack.c.bf16 %v6465_v63, %v6465_v63  ;;  %v8210_v57 = vunpack.c.l.bf16 %v8082_v34 }
 0x9dc   : > { %v5733_v18 = vunpack.c.l.bf16 %v5605_v6  ;;  %v6876_v51 = vunpack.c.l.bf16 %v6748_v29  ;;  %v8338_v7 = vadd.f32 %v8210_v57, %v10228_v56  ;;  %v4913_v57 = vld [vmem:[%s9878_s28 + $0x600] sm:$0xff] }
 0x9de   : > { %v5861_v1 = vadd.f32 %v5733_v18, %v9934_v43  ;;  %v7004_v20 = vadd.f32 %v6876_v51, %v9991_v53  ;;  %9524 = vmatmul.msk.bf16.gmra.mxu3 %vm558_vm1, %v5007_v49  ;;  %v8722_v45 = vmax.f32 %v8338_v7, 0.0 }
 0x9df   : > { %v7773_v58 = vpop.f32.mrf.mxu2 }
 0x9e0   : > { %v6245_v8 = vmax.f32 %v5861_v1, 0.0  ;;  %v7388_v22 = vmax.f32 %v7004_v20, 0.0  ;;  %v8083_v0 = vpack.c.bf16 %v7773_v58, %v7773_v58  ;;  %v4914_v1 = vld [vmem:[%s9878_s28 + $0x608] sm:$0xff] }
 0x9e1   : > { %v5352_v38 = vpop.f32.mrf.mxu3  ;;  %v6468_v3 = vpop.f32.mrf.mxu0 }
 0x9e2   : > { %v7503_v5 = vpack.c.bf16 %v7388_v22, %v7387_v50  ;;  %v8211_v30 = vunpack.c.l.bf16 %v8083_v0  ;;  %v6351_v40 = vpack.c.bf16 %v6245_v8, %v6244_v15  ;;  %v6749_v35 = vpack.c.bf16 %v6468_v3, %v6468_v3 }
 0x9e3   : > { %v5606_v24 = vpack.c.bf16 %v5352_v38, %v5352_v38  ;;  %v5009_v38 = vpack.c.bf16 %v4914_v1, %v4913_v57  ;;  %v4917_v57 = vld [vmem:[%s9878_s28 + $0x620] sm:$0xff]  ;;  %v4918_v1 = vld [vmem:[%s9878_s28 + $0x628] sm:$0xff] }
 0x9e4   : > { %v8339_v23 = vadd.f32 %v8211_v30, %v10228_v56  ;;  %9570 = vmatmul.msk.bf16.gmra.mxu2 %vm3159_vm2, %v7503_v5  ;;  %6507 = vmatmul.bf16.gmra.mxu0 %v6351_v40  ;;  %v6877_v2 = vunpack.c.l.bf16 %v6749_v35 }
 0x9e5   : > { %v5734_v44 = vunpack.c.l.bf16 %v5606_v24 }
 0x9e6   : > { %v8723_v59 = vmax.f32 %v8339_v23, 0.0  ;;  %v7005_v47 = vadd.f32 %v6877_v2, %v9991_v53 }
 0x9e7   : > { %v7776_v42 = vpop.f32.mrf.mxu2  ;;  %v5862_v33 = vadd.f32 %v5734_v44, %v9934_v43 }
 0x9e8   : > { %v11248_v61 = vpack.c.bf16 %v8723_v59, %v8722_v45  ;;  %v8084_v27 = vpack.c.bf16 %v7776_v42, %v7776_v42  ;;  %v7389_v14 = vmax.f32 %v7005_v47, 0.0 }
 0x9e9   : > { %v5354_v36 = vpop.f32.mrf.mxu3  ;;  %v6470_v62 = vpop.f32.mrf.mxu0  ;;  %v6246_v55 = vmax.f32 %v5862_v33, 0.0 }
 0x9ea   : > { %v5607_v21 = vpack.c.bf16 %v5354_v36, %v5354_v36  ;;  %v6750_v60 = vpack.c.bf16 %v6470_v62, %v6470_v62  ;;  %v8212_v11 = vunpack.c.l.bf16 %v8084_v27 }
 0x9ec   : > { %v5735_v16 = vunpack.c.l.bf16 %v5607_v21  ;;  %v6878_v28 = vunpack.c.l.bf16 %v6750_v60  ;;  %v8340_v19 = vadd.f32 %v8212_v11, %v10228_v56  ;;  %v4915_v21 = vld [vmem:[%s9878_s28 + $0x610] sm:$0xff]  ;;  %v4916_v60 = vld [vmem:[%s9878_s28 + $0x618] sm:$0xff] }
 0x9ee   : > { %v5863_v12 = vadd.f32 %v5735_v16, %v9934_v43  ;;  %v7006_v17 = vadd.f32 %v6878_v28, %v9991_v53  ;;  %9525 = vmatmul.msk.bf16.gmra.mxu3 %vm558_vm1, %v5008_v4  ;;  %v8724_v18 = vmax.f32 %v8340_v19, 0.0 }
 0x9ef   : > { %v7778_v10 = vpop.f32.mrf.mxu2 }
 0x9f0   : > { %v6247_v37 = vmax.f32 %v5863_v12, 0.0  ;;  %v7390_v26 = vmax.f32 %v7006_v17, 0.0  ;;  %v8085_v41 = vpack.c.bf16 %v7778_v10, %v7778_v10  ;;  %v5010_v12 = vpack.c.bf16 %v4916_v60, %v4915_v21 }
 0x9f1   : > { %v5357_v25 = vpop.f32.mrf.mxu3  ;;  %v6473_v46 = vpop.f32.mrf.mxu0 }
 0x9f2   : > { %v7504_v63 = vpack.c.bf16 %v7390_v26, %v7389_v14  ;;  %v8213_v34 = vunpack.c.l.bf16 %v8085_v41  ;;  %v6352_v6 = vpack.c.bf16 %v6247_v37, %v6246_v55  ;;  %v6751_v49 = vpack.c.bf16 %v6473_v46, %v6473_v46 }
 0x9f3   : > { %v5608_v13 = vpack.c.bf16 %v5357_v25, %v5357_v25 }
 0x9f4   : > { %v8341_v29 = vadd.f32 %v8213_v34, %v10228_v56  ;;  %9571 = vmatmul.msk.bf16.gmra.mxu2 %vm3159_vm2, %v7504_v63  ;;  %6512 = vmatmul.bf16.gmra.mxu0 %v6352_v6  ;;  %v6879_v20 = vunpack.c.l.bf16 %v6751_v49 }
 0x9f5   : > { %v5736_v50 = vunpack.c.l.bf16 %v5608_v13 }
 0x9f6   : > { %v8725_v51 = vmax.f32 %v8341_v29, 0.0  ;;  %v7007_v3 = vadd.f32 %v6879_v20, %v9991_v53 }
 0x9f7   : > { %v11258_v39 = vpop.f32.mrf.mxu2  ;;  %v5864_v30 = vadd.f32 %v5736_v50, %v9934_v43 }
 0x9f8   : > { %v11262_v58 = vpack.c.bf16 %v8725_v51, %v8724_v18  ;;  %v7391_v24 = vmax.f32 %v7007_v3, 0.0  ;;  %v5011_v3 = vpack.c.bf16 %v4918_v1, %v4917_v57 }
 0x9f9   : > { %v5359_v8 = vpop.f32.mrf.mxu3  ;;  %v6475_v22 = vpop.f32.mrf.mxu0  ;;  %v6248_v42 = vmax.f32 %v5864_v30, 0.0 }
 0x9fa   : > { %v5609_v0 = vpack.c.bf16 %v5359_v8, %v5359_v8  ;;  %v6752_v15 = vpack.c.bf16 %v6475_v22, %v6475_v22 }
 0x9fc   : > { %v5737_v7 = vunpack.c.l.bf16 %v5609_v0  ;;  %v6880_v5 = vunpack.c.l.bf16 %v6752_v15 }
 0x9fe   : > { %v5865_v40 = vadd.f32 %v5737_v7, %v9934_v43  ;;  %v7008_v23 = vadd.f32 %v6880_v5, %v9991_v53  ;;  %9526 = vmatmul.msk.bf16.gmra.mxu3 %vm558_vm1, %v5009_v38 }
 0x9ff   : > { %v11269_v35 = vpop.f32.mrf.mxu2 }
 0xa00   : > { %v6249_v45 = vmax.f32 %v5865_v40, 0.0  ;;  %v7392_v59 = vmax.f32 %v7008_v23, 0.0 }
 0xa01   : > { %v5362_v31 = vpop.f32.mrf.mxu3  ;;  %v6478_v48 = vpop.f32.mrf.mxu0 }
 0xa02   : > { %v7505_v2 = vpack.c.bf16 %v7392_v59, %v7391_v24  ;;  %v6353_v44 = vpack.c.bf16 %v6249_v45, %v6248_v42  ;;  %v6753_v36 = vpack.c.bf16 %v6478_v48, %v6478_v48  ;;  %v5610_v62 = vpack.c.bf16 %v5362_v31, %v5362_v31 }
 0xa04   : > { %9572 = vmatmul.msk.bf16.gmra.mxu2 %vm3159_vm2, %v7505_v2  ;;  %6517 = vmatmul.bf16.gmra.mxu0 %v6353_v44  ;;  %v6881_v4 = vunpack.c.l.bf16 %v6753_v36  ;;  %v5738_v47 = vunpack.c.l.bf16 %v5610_v62 }
 0xa06   : > { %v7009_v17 = vadd.f32 %v6881_v4, %v9991_v53  ;;  %v5866_v37 = vadd.f32 %v5738_v47, %v9934_v43 }
 0xa07   : > { %v11272_v27 = vpop.f32.mrf.mxu2 }
 0xa08   : > { %v7393_v25 = vmax.f32 %v7009_v17, 0.0  ;;  %v6250_v63 = vmax.f32 %v5866_v37, 0.0  ;;  %v8088_v42 = vpack.c.bf16 %v11272_v27, %v11272_v27 }
 0xa09   : > { %v5364_v16 = vpop.f32.mrf.mxu3  ;;  %v6480_v28 = vpop.f32.mrf.mxu0 }
 0xa0a   : > { %v5611_v33 = vpack.c.bf16 %v5364_v16, %v5364_v16  ;;  %v6754_v11 = vpack.c.bf16 %v6480_v28, %v6480_v28 }
 0xa0c   : > { %v5739_v10 = vunpack.c.l.bf16 %v5611_v33  ;;  %v6882_v14 = vunpack.c.l.bf16 %v6754_v11  ;;  %v8216_v33 = vunpack.c.l.bf16 %v8088_v42 }
 0xa0e   : > { %v5867_v26 = vadd.f32 %v5739_v10, %v9934_v43  ;;  %v7010_v41 = vadd.f32 %v6882_v14, %v9991_v53  ;;  %9527 = vmatmul.msk.bf16.gmra.mxu3 %vm558_vm1, %v5010_v12  ;;  %v8087_v10 = vpack.c.bf16 %v11269_v35, %v11269_v35 }
 0xa0f   : > { %v7788_v55 = vpop.f32.mrf.mxu2 }
 0xa10   : > { %v6251_v46 = vmax.f32 %v5867_v26, 0.0  ;;  %v7394_v19 = vmax.f32 %v7010_v41, 0.0  ;;  %v8089_v40 = vpack.c.bf16 %v7788_v55, %v7788_v55  ;;  %v4919_v41 = vld [vmem:[%s9878_s28 + $0x630] sm:$0xff]  ;;  %v4920_v55 = vld [vmem:[%s9878_s28 + $0x638] sm:$0xff] }
 0xa11   : > { %v5367_v34 = vpop.f32.mrf.mxu3  ;;  %v6483_v6 = vpop.f32.mrf.mxu0 }
 0xa12   : > { %v7506_v29 = vpack.c.bf16 %v7394_v19, %v7393_v25  ;;  %v6354_v49 = vpack.c.bf16 %v6251_v46, %v6250_v63  ;;  %v6755_v13 = vpack.c.bf16 %v6483_v6, %v6483_v6  ;;  %v5612_v18 = vpack.c.bf16 %v5367_v34, %v5367_v34 }
 0xa13   : > { %v8217_v62 = vunpack.c.l.bf16 %v8089_v40  ;;  %v8086_v25 = vpack.c.bf16 %v11258_v39, %v11258_v39  ;;  %v8344_v46 = vadd.f32 %v8216_v33, %v10228_v56 }
 0xa14   : > { %9573 = vmatmul.msk.bf16.gmra.mxu2 %vm3159_vm2, %v7506_v29  ;;  %6522 = vmatmul.bf16.gmra.mxu0 %v6354_v49  ;;  %v6883_v20 = vunpack.c.l.bf16 %v6755_v13  ;;  %v5740_v50 = vunpack.c.l.bf16 %v5612_v18  ;;  %v8215_v29 = vunpack.c.l.bf16 %v8087_v10  ;;  %v5012_v18 = vpack.c.bf16 %v4920_v55, %v4919_v41  ;;  %v4921_v10 = vld [vmem:[%s9878_s28 + $0x640] sm:$0xff] }
 0xa15   : > { %v8345_v14 = vadd.f32 %v8217_v62, %v10228_v56 }
 0xa16   : > { %v7011_v7 = vadd.f32 %v6883_v20, %v9991_v53  ;;  %v5868_v23 = vadd.f32 %v5740_v50, %v9934_v43  ;;  %v8214_v50 = vunpack.c.l.bf16 %v8086_v25 }
 0xa17   : > { %v7791_v51 = vpop.f32.mrf.mxu2  ;;  %v8729_v49 = vmax.f32 %v8345_v14, 0.0  ;;  %v4922_v14 = vld [vmem:[%s9878_s28 + $0x648] sm:$0xff] }
 0xa18   : > { %v8090_v0 = vpack.c.bf16 %v7791_v51, %v7791_v51  ;;  %v7395_v48 = vmax.f32 %v7011_v7, 0.0  ;;  %v6252_v21 = vmax.f32 %v5868_v23, 0.0  ;;  %v8342_v40 = vadd.f32 %v8214_v50, %v10228_v56 }
 0xa19   : > { %v5369_v8 = vpop.f32.mrf.mxu3  ;;  %v6485_v22 = vpop.f32.mrf.mxu0 }
 0xa1a   : > { %v5613_v15 = vpack.c.bf16 %v5369_v8, %v5369_v8  ;;  %v6756_v38 = vpack.c.bf16 %v6485_v22, %v6485_v22  ;;  %v8218_v24 = vunpack.c.l.bf16 %v8090_v0  ;;  %v8728_v8 = vmax.f32 %v8344_v46, 0.0 }
 0xa1c   : > { %v5741_v5 = vunpack.c.l.bf16 %v5613_v15  ;;  %v6884_v30 = vunpack.c.l.bf16 %v6756_v38  ;;  %v8346_v47 = vadd.f32 %v8218_v24, %v10228_v56  ;;  %v8343_v38 = vadd.f32 %v8215_v29, %v10228_v56 }
 0xa1e   : > { %v5869_v45 = vadd.f32 %v5741_v5, %v9934_v43  ;;  %v7012_v59 = vadd.f32 %v6884_v30, %v9991_v53  ;;  %9528 = vmatmul.msk.bf16.gmra.mxu3 %vm558_vm1, %v5011_v3  ;;  %v8730_v37 = vmax.f32 %v8346_v47, 0.0  ;;  %v8850_v3 = vpack.c.bf16 %v8729_v49, %v8728_v8 }
 0xa1f   : > { %v7793_v31 = vpop.f32.mrf.mxu2  ;;  %v8726_v47 = vmax.f32 %v8342_v40, 0.0 }
 0xa20   : > { %v6253_v2 = vmax.f32 %v5869_v45, 0.0  ;;  %v7396_v44 = vmax.f32 %v7012_v59, 0.0  ;;  %v8091_v36 = vpack.c.bf16 %v7793_v31, %v7793_v31 }
 0xa21   : > { %v5372_v60 = vpop.f32.mrf.mxu3  ;;  %v6488_v4 = vpop.f32.mrf.mxu0 }
 0xa22   : > { %v7507_v16 = vpack.c.bf16 %v7396_v44, %v7395_v48  ;;  %v8219_v28 = vunpack.c.l.bf16 %v8091_v36  ;;  %v5614_v11 = vpack.c.bf16 %v5372_v60, %v5372_v60  ;;  %v6355_v12 = vpack.c.bf16 %v6253_v2, %v6252_v21 }
 0xa23   : > { %v6757_v17 = vpack.c.bf16 %v6488_v4, %v6488_v4  ;;  %v8727_v48 = vmax.f32 %v8343_v38, 0.0  ;;  %v8927_v44 = vsel %vm4519_vm3, %v8850_v3, 0 }
 0xa24   : > { %v8347_v27 = vadd.f32 %v8219_v28, %v10228_v56  ;;  %9574 = vmatmul.msk.bf16.gmra.mxu2 %vm3159_vm2, %v7507_v16  ;;  %6527 = vmatmul.bf16.gmra.mxu0 %v6355_v12  ;;  %v5742_v19 = vunpack.c.l.bf16 %v5614_v11 }
 0xa25   : > { %v6885_v34 = vunpack.c.l.bf16 %v6757_v17 }
 0xa26   : > { %v8731_v26 = vmax.f32 %v8347_v27, 0.0  ;;  %v5870_v39 = vadd.f32 %v5742_v19, %v9934_v43  ;;  %v8849_v27 = vpack.c.bf16 %v8727_v48, %v8726_v47  ;;  %v4924_v48 = vld [vmem:[%s9878_s28 + $0x658] sm:$0xff] }
 0xa27   : > { %v7796_v63 = vpop.f32.mrf.mxu2  ;;  %v7013_v22 = vadd.f32 %v6885_v34, %v9991_v53  ;;  %v5013_v34 = vpack.c.bf16 %v4922_v14, %v4921_v10 }
 0xa28   : > { %v8851_v6 = vpack.c.bf16 %v8731_v26, %v8730_v37  ;;  %v8092_v51 = vpack.c.bf16 %v7796_v63, %v7796_v63  ;;  %v6254_v23 = vmax.f32 %v5870_v39, 0.0  ;;  %v8924_v63 = vsel %vm4519_vm3, %v8849_v27, 0 }
 0xa29   : > { %v5374_v13 = vpop.f32.mrf.mxu3  ;;  %v6490_v35 = vpop.f32.mrf.mxu0  ;;  %v7397_v45 = vmax.f32 %v7013_v22, 0.0 }
 0xa2a   : > { %v5615_v57 = vpack.c.bf16 %v5374_v13, %v5374_v13  ;;  %v6758_v1 = vpack.c.bf16 %v6490_v35, %v6490_v35  ;;  %v8930_v20 = vsel %vm4519_vm3, %v8851_v6, 0  ;;  %v8220_v7 = vunpack.c.l.bf16 %v8092_v51 }
 0xa2b   : > { %9100 = vmatpush.bf16.xpose.msra.mxu1 %v8930_v20 }
 0xa2c   : > { %v5743_v0 = vunpack.c.l.bf16 %v5615_v57  ;;  %v6886_v15 = vunpack.c.l.bf16 %v6758_v1  ;;  %v8348_v36 = vadd.f32 %v8220_v7, %v10228_v56  ;;  %v8921_v7 = vsel %vm4519_vm3, %v11262_v58, 0 }
 0xa2e   : > { %v5871_v5 = vadd.f32 %v5743_v0, %v9934_v43  ;;  %v7014_v30 = vadd.f32 %v6886_v15, %v9991_v53  ;;  %9529 = vmatmul.msk.bf16.gmra.mxu3 %vm558_vm1, %v5012_v18  ;;  %v8732_v11 = vmax.f32 %v8348_v36, 0.0 }
 0xa2f   : > { %v7798_v24 = vpop.f32.mrf.mxu2 }
 0xa30   : > { %v6255_v59 = vmax.f32 %v5871_v5, 0.0  ;;  %v7398_v42 = vmax.f32 %v7014_v30, 0.0  ;;  %v8093_v31 = vpack.c.bf16 %v7798_v24, %v7798_v24 }
 0xa31   : > { %v5377_v2 = vpop.f32.mrf.mxu3  ;;  %v6493_v60 = vpop.f32.mrf.mxu0 }
 0xa32   : > { %v7508_v62 = vpack.c.bf16 %v7398_v42, %v7397_v45  ;;  %v8221_v21 = vunpack.c.l.bf16 %v8093_v31  ;;  %v6356_v4 = vpack.c.bf16 %v6255_v59, %v6254_v23  ;;  %v5616_v28 = vpack.c.bf16 %v5377_v2, %v5377_v2  ;;  %v4923_v31 = vld [vmem:[%s9878_s28 + $0x650] sm:$0xff] }
 0xa33   : > { %9101 = vmatpush.bf16.xpose.msra.mxu1 %v8927_v44  ;;  %v6759_v33 = vpack.c.bf16 %v6493_v60, %v6493_v60  ;;  %v5014_v47 = vpack.c.bf16 %v4924_v48, %v4923_v31 }
 0xa34   : > { %v8349_v16 = vadd.f32 %v8221_v21, %v10228_v56  ;;  %9575 = vmatmul.msk.bf16.gmra.mxu2 %vm3159_vm2, %v7508_v62  ;;  %6532 = vmatmul.bf16.gmra.mxu0 %v6356_v4  ;;  %v5744_v37 = vunpack.c.l.bf16 %v5616_v28  ;;  %v8918_v4 = vsel %vm4519_vm3, %v11248_v61, 0 }
 0xa35   : > { %v6887_v41 = vunpack.c.l.bf16 %v6759_v33 }
 0xa36   : > { %v8733_v12 = vmax.f32 %v8349_v16, 0.0  ;;  %v5872_v29 = vadd.f32 %v5744_v37, %v9934_v43 }
 0xa37   : > { %v7801_v17 = vpop.f32.mrf.mxu2  ;;  %v7015_v13 = vadd.f32 %v6887_v41, %v9991_v53 }
 0xa38   : > { %v11316_v26 = vpack.c.bf16 %v8733_v12, %v8732_v11  ;;  %v8094_v25 = vpack.c.bf16 %v7801_v17, %v7801_v17  ;;  %v6256_v20 = vmax.f32 %v5872_v29, 0.0 }
 0xa39   : > { %v5379_v55 = vpop.f32.mrf.mxu3  ;;  %v6495_v19 = vpop.f32.mrf.mxu0  ;;  %v7399_v39 = vmax.f32 %v7015_v13, 0.0 }
 0xa3a   : > { %v5617_v46 = vpack.c.bf16 %v5379_v55, %v5379_v55  ;;  %v6760_v6 = vpack.c.bf16 %v6495_v19, %v6495_v19  ;;  %v8222_v18 = vunpack.c.l.bf16 %v8094_v25 }
 0xa3b   : > { %9102 = vmatpush.bf16.xpose.msra.mxu1 %v8924_v63 }
 0xa3c   : > { %v5745_v49 = vunpack.c.l.bf16 %v5617_v46  ;;  %v6888_v35 = vunpack.c.l.bf16 %v6760_v6  ;;  %v8350_v15 = vadd.f32 %v8222_v18, %v10228_v56  ;;  %v8915_v6 = vsel %vm4519_vm3, %v11236_v32, 0 }
 0xa3e   : > { %v5873_v51 = vadd.f32 %v5745_v49, %v9934_v43  ;;  %9530 = vmatmul.msk.bf16.gmra.mxu3 %vm558_vm1, %v5013_v34  ;;  %v7016_v57 = vadd.f32 %v6888_v35, %v9991_v53  ;;  %v8734_v45 = vmax.f32 %v8350_v15, 0.0 }
 0xa3f   : > { %v7803_v1 = vpop.f32.mrf.mxu2 }
 0xa40   : > { %v6257_v50 = vmax.f32 %v5873_v51, 0.0  ;;  %v8095_v8 = vpack.c.bf16 %v7803_v1, %v7803_v1  ;;  %v7400_v22 = vmax.f32 %v7016_v57, 0.0 }
 0xa41   : > { %v5382_v0 = vpop.f32.mrf.mxu3  ;;  %v6498_v3 = vpop.f32.mrf.mxu0 }
 0xa42   : > { %v8223_v38 = vunpack.c.l.bf16 %v8095_v8  ;;  %v6357_v5 = vpack.c.bf16 %v6257_v50, %v6256_v20  ;;  %v7509_v30 = vpack.c.bf16 %v7400_v22, %v7399_v39  ;;  %v5618_v23 = vpack.c.bf16 %v5382_v0, %v5382_v0  ;;  %v4925_v20 = vld [vmem:[%s9878_s28 + $0x660] sm:$0xff]  ;;  %v4926_v50 = vld [vmem:[%s9878_s28 + $0x668] sm:$0xff] }
 0xa43   : > { %9103 = vmatpush.bf16.xpose.msra.mxu1 %v8921_v7  ;;  %v6761_v24 = vpack.c.bf16 %v6498_v3, %v6498_v3  ;;  %v8912_v3 = vsel %vm4519_vm3, %v11224_v54, 0  ;;  %v5015_v7 = vpack.c.bf16 %v4926_v50, %v4925_v20 }
 0xa44   : > { %v8351_v40 = vadd.f32 %v8223_v38, %v10228_v56  ;;  %6537 = vmatmul.bf16.gmra.mxu0 %v6357_v5  ;;  %9576 = vmatmul.msk.bf16.gmra.mxu2 %vm3159_vm2, %v7509_v30  ;;  %v5746_v2 = vunpack.c.l.bf16 %v5618_v23 }
 0xa45   : > { %v6889_v36 = vunpack.c.l.bf16 %v6761_v24 }
 0xa46   : > { %v8735_v59 = vmax.f32 %v8351_v40, 0.0  ;;  %v5874_v28 = vadd.f32 %v5746_v2, %v9934_v43 }
 0xa47   : > { %v7806_v42 = vpop.f32.mrf.mxu2  ;;  %v7017_v11 = vadd.f32 %v6889_v36, %v9991_v53 }
 0xa48   : > { %v11331_v44 = vpack.c.bf16 %v8735_v59, %v8734_v45  ;;  %v8096_v62 = vpack.c.bf16 %v7806_v42, %v7806_v42  ;;  %v6258_v37 = vmax.f32 %v5874_v28, 0.0 }
 0xa49   : > { %v5384_v58 = vpop.f32.mrf.mxu3  ;;  %v6500_v60 = vpop.f32.mrf.mxu0  ;;  %v7401_v55 = vmax.f32 %v7017_v11, 0.0 }
 0xa4a   : > { %v5619_v21 = vpack.c.bf16 %v5384_v58, %v5384_v58  ;;  %v6762_v16 = vpack.c.bf16 %v6500_v60, %v6500_v60  ;;  %v8224_v27 = vunpack.c.l.bf16 %v8096_v62 }
 0xa4b   : > { %9104 = vmatpush.bf16.xpose.msra.mxu1 %v8918_v4 }
 0xa4c   : > { %v5747_v33 = vunpack.c.l.bf16 %v5619_v21  ;;  %v6890_v12 = vunpack.c.l.bf16 %v6762_v16  ;;  %v8352_v19 = vadd.f32 %v8224_v27, %v10228_v56 }
 0xa4e   : > { %v5875_v17 = vadd.f32 %v5747_v33, %v9934_v43  ;;  %9531 = vmatmul.msk.bf16.gmra.mxu3 %vm558_vm1, %v5014_v47  ;;  %v7018_v10 = vadd.f32 %v6890_v12, %v9991_v53  ;;  %v8736_v51 = vmax.f32 %v8352_v19, 0.0  ;;  %v8909_v47 = vsel %vm4519_vm3, %v11212_v52, 0 }
 0xa4f   : > { %v7808_v14 = vpop.f32.mrf.mxu2 }
 0xa50   : > { %v6259_v41 = vmax.f32 %v5875_v17, 0.0  ;;  %v8097_v61 = vpack.c.bf16 %v7808_v14, %v7808_v14  ;;  %v7402_v25 = vmax.f32 %v7018_v10, 0.0  ;;  %v4927_v14 = vld [vmem:[%s9878_s28 + $0x670] sm:$0xff] }
 0xa51   : > { %v5387_v46 = vpop.f32.mrf.mxu3  ;;  %v6503_v34 = vpop.f32.mrf.mxu0 }
 0xa52   : > { %v8225_v63 = vunpack.c.l.bf16 %v8097_v61  ;;  %v6358_v29 = vpack.c.bf16 %v6259_v41, %v6258_v37  ;;  %v7510_v49 = vpack.c.bf16 %v7402_v25, %v7401_v55  ;;  %v5620_v35 = vpack.c.bf16 %v5387_v46, %v5387_v46  ;;  %v4928_v37 = vld [vmem:[%s9878_s28 + $0x678] sm:$0xff] }
 0xa53   : > { %9105 = vmatpush.bf16.xpose.msra.mxu1 %v8915_v6  ;;  %v6763_v18 = vpack.c.bf16 %v6503_v34, %v6503_v34  ;;  %v11368_v34 = vld [vmem:[%s12017_s7] sm:$0x1] }
 0xa54   : > { %v8353_v13 = vadd.f32 %v8225_v63, %v10228_v56  ;;  %6542 = vmatmul.bf16.gmra.mxu0 %v6358_v29  ;;  %9577 = vmatmul.msk.bf16.gmra.mxu2 %vm3159_vm2, %v7510_v49  ;;  %v5748_v8 = vunpack.c.l.bf16 %v5620_v35  ;;  %v5016_v63 = vpack.c.bf16 %v4928_v37, %v4927_v14 }
 0xa55   : > { %v6891_v22 = vunpack.c.l.bf16 %v6763_v18 }
 0xa56   : > { %v8737_v57 = vmax.f32 %v8353_v13, 0.0  ;;  %v5876_v30 = vadd.f32 %v5748_v8, %v9934_v43 }
 0xa57   : > { %v7811_v1 = vpop.f32.mrf.mxu2  ;;  %v7019_v23 = vadd.f32 %v6891_v22, %v9991_v53 }
 0xa58   : > { %v11347_v39 = vpack.c.bf16 %v8737_v57, %v8736_v51  ;;  %v8098_v0 = vpack.c.bf16 %v7811_v1, %v7811_v1  ;;  %v6260_v48 = vmax.f32 %v5876_v30, 0.0 }
 0xa59   : > { %v5389_v32 = vpop.f32.mrf.mxu3  ;;  %v6505_v38 = vpop.f32.mrf.mxu0  ;;  %v7403_v36 = vmax.f32 %v7019_v23, 0.0 }
 0xa5a   : > { %v5621_v15 = vpack.c.bf16 %v5389_v32, %v5389_v32  ;;  %v6764_v5 = vpack.c.bf16 %v6505_v38, %v6505_v38  ;;  %v8226_v45 = vunpack.c.l.bf16 %v8098_v0 }
 0xa5b   : > { %9106 = vmatpush.bf16.xpose.msra.mxu1 %v8912_v3 }
 0xa5c   : > { %v5749_v40 = vunpack.c.l.bf16 %v5621_v15  ;;  %v6892_v24 = vunpack.c.l.bf16 %v6764_v5  ;;  %v8354_v21 = vadd.f32 %v8226_v45, %v10228_v56 }
 0xa5e   : > { %v5877_v59 = vadd.f32 %v5749_v40, %v9934_v43  ;;  %9532 = vmatmul.msk.bf16.gmra.mxu3 %vm558_vm1, %v5015_v7  ;;  %v7020_v42 = vadd.f32 %v6892_v24, %v9991_v53  ;;  %v8738_v27 = vmax.f32 %v8354_v21, 0.0 }
 0xa5f   : > { %v7813_v31 = vpop.f32.mrf.mxu2 }
 0xa60   : > { %v6261_v2 = vmax.f32 %v5877_v59, 0.0  ;;  %v8099_v54 = vpack.c.bf16 %v7813_v31, %v7813_v31  ;;  %v7404_v58 = vmax.f32 %v7020_v42, 0.0  ;;  %v4929_v42 = vld [vmem:[%s9878_s28 + $0x680] sm:$0xff]  ;;  %v4930_v31 = vld [vmem:[%s9878_s28 + $0x688] sm:$0xff] }
 0xa61   : > { %v5392_v62 = vpop.f32.mrf.mxu3  ;;  %v6508_v4 = vpop.f32.mrf.mxu0  ;;  %v5017_v21 = vpack.c.bf16 %v4930_v31, %v4929_v42  ;;  %v4933_v31 = vld [vmem:[%s9878_s28 + $0x6a0] sm:$0xff] }
 0xa62   : > { %v8227_v60 = vunpack.c.l.bf16 %v8099_v54  ;;  %v6359_v16 = vpack.c.bf16 %v6261_v2, %v6260_v48  ;;  %v7511_v28 = vpack.c.bf16 %v7404_v58, %v7403_v36  ;;  %v5622_v11 = vpack.c.bf16 %v5392_v62, %v5392_v62 }
 0xa63   : > { %9107 = vmatpush.bf16.xpose.msra.mxu1 %v8909_v47  ;;  %v6765_v12 = vpack.c.bf16 %v6508_v4, %v6508_v4 }
 0xa64   : > { %v8355_v33 = vadd.f32 %v8227_v60, %v10228_v56  ;;  %6547 = vmatmul.bf16.gmra.mxu0 %v6359_v16  ;;  %9578 = vmatmul.msk.bf16.gmra.mxu2 %vm3159_vm2, %v7511_v28  ;;  %v5750_v41 = vunpack.c.l.bf16 %v5622_v11 }
 0xa65   : > { %v6893_v55 = vunpack.c.l.bf16 %v6765_v12 }
 0xa66   : > { %v8739_v17 = vmax.f32 %v8355_v33, 0.0  ;;  %v5878_v29 = vadd.f32 %v5750_v41, %v9934_v43 }
 0xa67   : > { %v7816_v10 = vpop.f32.mrf.mxu2  ;;  %v7021_v13 = vadd.f32 %v6893_v55, %v9991_v53 }
 0xa68   : > { %v11363_v61 = vpack.c.bf16 %v8739_v17, %v8738_v27  ;;  %v8100_v25 = vpack.c.bf16 %v7816_v10, %v7816_v10  ;;  %v6262_v20 = vmax.f32 %v5878_v29, 0.0 }
 0xa69   : > { %v5394_v52 = vpop.f32.mrf.mxu3  ;;  %v6510_v19 = vpop.f32.mrf.mxu0  ;;  %v7405_v22 = vmax.f32 %v7021_v13, 0.0 }
 0xa6a   : > { %v5623_v46 = vpack.c.bf16 %v5394_v52, %v5394_v52  ;;  %9622 = vmatmul.msk.bf16.vlgmr.msra.gmra.mxu1 %vm4519_vm3, %v11368_v34  ;;  %v6766_v6 = vpack.c.bf16 %v6510_v19, %v6510_v19  ;;  %v8228_v18 = vunpack.c.l.bf16 %v8100_v25 }
 0xa6c   : > { %v5751_v49 = vunpack.c.l.bf16 %v5623_v46  ;;  %v6894_v35 = vunpack.c.l.bf16 %v6766_v6  ;;  %v8356_v15 = vadd.f32 %v8228_v18, %v10228_v56  ;;  %v4932_v6 = vld [vmem:[%s9878_s28 + $0x698] sm:$0xff] }
 0xa6e   : > { %v5879_v51 = vadd.f32 %v5751_v49, %v9934_v43  ;;  %9533 = vmatmul.msk.bf16.gmra.mxu3 %vm558_vm1, %v5016_v63  ;;  %v7022_v57 = vadd.f32 %v6894_v35, %v9991_v53  ;;  %v8740_v24 = vmax.f32 %v8356_v15, 0.0  ;;  %v4931_v63 = vld [vmem:[%s9878_s28 + $0x690] sm:$0xff] }
 0xa6f   : > { %v7818_v1 = vpop.f32.mrf.mxu2 }
 0xa70   : > { %v6263_v50 = vmax.f32 %v5879_v51, 0.0  ;;  %v8101_v8 = vpack.c.bf16 %v7818_v1, %v7818_v1  ;;  %v7406_v32 = vmax.f32 %v7022_v57, 0.0  ;;  %v5018_v51 = vpack.c.bf16 %v4932_v6, %v4931_v63 }
 0xa71   : > { %v5397_v0 = vpop.f32.mrf.mxu3  ;;  %v6513_v3 = vpop.f32.mrf.mxu0 }
 0xa72   : > { %v8229_v38 = vunpack.c.l.bf16 %v8101_v8  ;;  %v6360_v7 = vpack.c.bf16 %v6263_v50, %v6262_v20  ;;  %v7512_v5 = vpack.c.bf16 %v7406_v32, %v7405_v22  ;;  %v5624_v40 = vpack.c.bf16 %v5397_v0, %v5397_v0 }
 0xa73   : > { %v6767_v23 = vpack.c.bf16 %v6513_v3, %v6513_v3 }
 0xa74   : > { %v8357_v30 = vadd.f32 %v8229_v38, %v10228_v56  ;;  %6552 = vmatmul.bf16.gmra.mxu0 %v6360_v7  ;;  %9579 = vmatmul.msk.bf16.gmra.mxu2 %vm3159_vm2, %v7512_v5  ;;  %v5752_v48 = vunpack.c.l.bf16 %v5624_v40 }
 0xa75   : > { %v6895_v54 = vunpack.c.l.bf16 %v6767_v23 }
 0xa76   : > { %v8741_v45 = vmax.f32 %v8357_v30, 0.0  ;;  %v5880_v4 = vadd.f32 %v5752_v48, %v9934_v43  ;;  %v4934_v48 = vld [vmem:[%s9878_s28 + $0x6a8] sm:$0xff] }
 0xa77   : > { %v11380_v59 = vpop.f32.mrf.mxu2  ;;  %v7023_v16 = vadd.f32 %v6895_v54, %v9991_v53 }
 0xa78   : > { %v11384_v2 = vpack.c.bf16 %v8741_v45, %v8740_v24  ;;  %v6264_v27 = vmax.f32 %v5880_v4, 0.0  ;;  %v5019_v4 = vpack.c.bf16 %v4934_v48, %v4933_v31 }
 0xa79   : > { %v5399_v36 = vpop.f32.mrf.mxu3  ;;  %v6515_v62 = vpop.f32.mrf.mxu0  ;;  %v7407_v10 = vmax.f32 %v7023_v16, 0.0 }
 0xa7a   : > { %v5625_v58 = vpack.c.bf16 %v5399_v36, %v5399_v36  ;;  %v6768_v60 = vpack.c.bf16 %v6515_v62, %v6515_v62 }
 0xa7c   : > { %v5753_v47 = vunpack.c.l.bf16 %v5625_v58  ;;  %v6896_v28 = vunpack.c.l.bf16 %v6768_v60 }
 0xa7e   : > { %v5881_v33 = vadd.f32 %v5753_v47, %v9934_v43  ;;  %9534 = vmatmul.msk.bf16.gmra.mxu3 %vm558_vm1, %v5017_v21  ;;  %v7024_v11 = vadd.f32 %v6896_v28, %v9991_v53 }
 0xa7f   : > { %v11391_v12 = vpop.f32.mrf.mxu2 }
 0xa80   : > { %v6265_v17 = vmax.f32 %v5881_v33, 0.0  ;;  %v7408_v14 = vmax.f32 %v7024_v11, 0.0 }
 0xa81   : > { %v5402_v37 = vpop.f32.mrf.mxu3  ;;  %v6518_v41 = vpop.f32.mrf.mxu0 }
 0xa82   : > { %v6361_v55 = vpack.c.bf16 %v6265_v17, %v6264_v27  ;;  %v7513_v52 = vpack.c.bf16 %v7408_v14, %v7407_v10  ;;  %v5626_v25 = vpack.c.bf16 %v5402_v37, %v5402_v37  ;;  %v6769_v46 = vpack.c.bf16 %v6518_v41, %v6518_v41 }
 0xa84   : > { %6557 = vmatmul.bf16.gmra.mxu0 %v6361_v55  ;;  %9580 = vmatmul.msk.bf16.gmra.mxu2 %vm3159_vm2, %v7513_v52  ;;  %v5754_v29 = vunpack.c.l.bf16 %v5626_v25  ;;  %v6897_v49 = vunpack.c.l.bf16 %v6769_v46 }
 0xa86   : > { %v5882_v1 = vadd.f32 %v5754_v29, %v9934_v43  ;;  %v7025_v50 = vadd.f32 %v6897_v49, %v9991_v53 }
 0xa87   : > { %v11394_v19 = vpop.f32.mrf.mxu2 }
 0xa88   : > { %v6266_v15 = vmax.f32 %v5882_v1, 0.0  ;;  %v7409_v3 = vmax.f32 %v7025_v50, 0.0  ;;  %v8104_v41 = vpack.c.bf16 %v11394_v19, %v11394_v19  ;;  %v8103_v19 = vpack.c.bf16 %v11391_v12, %v11391_v12 }
 0xa89   : > { %v5404_v13 = vpop.f32.mrf.mxu3  ;;  %v6520_v18 = vpop.f32.mrf.mxu0 }
 0xa8a   : > { %v5627_v35 = vpack.c.bf16 %v5404_v13, %v5404_v13  ;;  %v6770_v57 = vpack.c.bf16 %v6520_v18, %v6520_v18 }
 0xa8c   : > { %v5755_v20 = vunpack.c.l.bf16 %v5627_v35  ;;  %v6898_v8 = vunpack.c.l.bf16 %v6770_v57  ;;  %v8232_v57 = vunpack.c.l.bf16 %v8104_v41 }
 0xa8e   : > { %v5883_v22 = vadd.f32 %v5755_v20, %v9934_v43  ;;  %9535 = vmatmul.msk.bf16.gmra.mxu3 %vm558_vm1, %v5018_v51  ;;  %v7026_v32 = vadd.f32 %v6898_v8, %v9991_v53 }
 0xa8f   : > { %v7828_v0 = vpop.f32.mrf.mxu2 }
 0xa90   : > { %v6267_v38 = vmax.f32 %v5883_v22, 0.0  ;;  %v7410_v7 = vmax.f32 %v7026_v32, 0.0  ;;  %v8105_v27 = vpack.c.bf16 %v7828_v0, %v7828_v0  ;;  %v4935_v0 = vld [vmem:[%s9878_s28 + $0x6b0] sm:$0xff] }
 0xa91   : > { %v5407_v5 = vpop.f32.mrf.mxu3  ;;  %v6523_v30 = vpop.f32.mrf.mxu0 }
 0xa92   : > { %v6362_v40 = vpack.c.bf16 %v6267_v38, %v6266_v15  ;;  %v7514_v23 = vpack.c.bf16 %v7410_v7, %v7409_v3  ;;  %v5628_v24 = vpack.c.bf16 %v5407_v5, %v5407_v5  ;;  %v6771_v45 = vpack.c.bf16 %v6523_v30, %v6523_v30  ;;  %v4936_v15 = vld [vmem:[%s9878_s28 + $0x6b8] sm:$0xff] }
 0xa93   : > { %v8233_v29 = vunpack.c.l.bf16 %v8105_v27  ;;  %v8102_v3 = vpack.c.bf16 %v11380_v59, %v11380_v59  ;;  %v8360_v7 = vadd.f32 %v8232_v57, %v10228_v56 }
 0xa94   : > { %6562 = vmatmul.bf16.gmra.mxu0 %v6362_v40  ;;  %9581 = vmatmul.msk.bf16.gmra.mxu2 %vm3159_vm2, %v7514_v23  ;;  %v5756_v54 = vunpack.c.l.bf16 %v5628_v24  ;;  %v6899_v36 = vunpack.c.l.bf16 %v6771_v45  ;;  %v8231_v40 = vunpack.c.l.bf16 %v8103_v19  ;;  %v5020_v24 = vpack.c.bf16 %v4936_v15, %v4935_v0 }
 0xa95   : > { %v8361_v8 = vadd.f32 %v8233_v29, %v10228_v56 }
 0xa96   : > { %v5884_v16 = vadd.f32 %v5756_v54, %v9934_v43  ;;  %v7027_v33 = vadd.f32 %v6899_v36, %v9991_v53 }
 0xa97   : > { %v7831_v42 = vpop.f32.mrf.mxu2  ;;  %v8745_v45 = vmax.f32 %v8361_v8, 0.0  ;;  %v4937_v8 = vld [vmem:[%s9878_s28 + $0x6c0] sm:$0xff] }
 0xa98   : > { %v8106_v62 = vpack.c.bf16 %v7831_v42, %v7831_v42  ;;  %v6268_v55 = vmax.f32 %v5884_v16, 0.0  ;;  %v7411_v46 = vmax.f32 %v7027_v33, 0.0 }
 0xa99   : > { %v5409_v58 = vpop.f32.mrf.mxu3  ;;  %v6525_v60 = vpop.f32.mrf.mxu0 }
 0xa9a   : > { %v5629_v21 = vpack.c.bf16 %v5409_v58, %v5409_v58  ;;  %v6772_v47 = vpack.c.bf16 %v6525_v60, %v6525_v60  ;;  %v8234_v17 = vunpack.c.l.bf16 %v8106_v62  ;;  %v8230_v58 = vunpack.c.l.bf16 %v8102_v3 }
 0xa9b   : > { %v8744_v62 = vmax.f32 %v8360_v7, 0.0  ;;  %v8359_v60 = vadd.f32 %v8231_v40, %v10228_v56 }
 0xa9c   : > { %v5757_v28 = vunpack.c.l.bf16 %v5629_v21  ;;  %v6900_v11 = vunpack.c.l.bf16 %v6772_v47  ;;  %v8362_v49 = vadd.f32 %v8234_v17, %v10228_v56  ;;  %v8358_v17 = vadd.f32 %v8230_v58, %v10228_v56 }
 0xa9d   : > { %v8858_v33 = vpack.c.bf16 %v8745_v45, %v8744_v62  ;;  %v8743_v41 = vmax.f32 %v8359_v60, 0.0 }
 0xa9e   : > { %v5885_v10 = vadd.f32 %v5757_v28, %v9934_v43  ;;  %9536 = vmatmul.msk.bf16.gmra.mxu3 %vm558_vm1, %v5019_v4  ;;  %v7028_v14 = vadd.f32 %v6900_v11, %v9991_v53  ;;  %v8746_v22 = vmax.f32 %v8362_v49, 0.0 }
 0xa9f   : > { %v7833_v37 = vpop.f32.mrf.mxu2  ;;  %v8951_v29 = vsel %vm4519_vm3, %v8858_v33, 0  ;;  %v8945_v33 = vsel %vm4519_vm3, %v11384_v2, 0 }
 0xaa0   : > { %v6269_v52 = vmax.f32 %v5885_v10, 0.0  ;;  %v8107_v25 = vpack.c.bf16 %v7833_v37, %v7833_v37  ;;  %v7412_v63 = vmax.f32 %v7028_v14, 0.0 }
 0xaa1   : > { %v5412_v6 = vpop.f32.mrf.mxu3  ;;  %v6528_v35 = vpop.f32.mrf.mxu0 }
 0xaa2   : > { %v8235_v13 = vunpack.c.l.bf16 %v8107_v25  ;;  %v6363_v18 = vpack.c.bf16 %v6269_v52, %v6268_v55  ;;  %v7515_v51 = vpack.c.bf16 %v7412_v63, %v7411_v46  ;;  %v5630_v20 = vpack.c.bf16 %v5412_v6, %v5412_v6 }
 0xaa3   : > { %v6773_v50 = vpack.c.bf16 %v6528_v35, %v6528_v35  ;;  %v8742_v35 = vmax.f32 %v8358_v17, 0.0 }
 0xaa4   : > { %v8363_v1 = vadd.f32 %v8235_v13, %v10228_v56  ;;  %6567 = vmatmul.bf16.gmra.mxu0 %v6363_v18  ;;  %9582 = vmatmul.msk.bf16.gmra.mxu2 %vm3159_vm2, %v7515_v51  ;;  %v5758_v5 = vunpack.c.l.bf16 %v5630_v20 }
 0xaa5   : > { %v6901_v12 = vunpack.c.l.bf16 %v6773_v50  ;;  %v8857_v19 = vpack.c.bf16 %v8743_v41, %v8742_v35 }
 0xaa6   : > { %v8747_v32 = vmax.f32 %v8363_v1, 0.0  ;;  %v5886_v59 = vadd.f32 %v5758_v5, %v9934_v43 }
 0xaa7   : > { %v7836_v38 = vpop.f32.mrf.mxu2  ;;  %v7029_v4 = vadd.f32 %v6901_v12, %v9991_v53 }
 0xaa8   : > { %v8859_v30 = vpack.c.bf16 %v8747_v32, %v8746_v22  ;;  %v8108_v42 = vpack.c.bf16 %v7836_v38, %v7836_v38  ;;  %v6270_v10 = vmax.f32 %v5886_v59, 0.0  ;;  %v4938_v22 = vld [vmem:[%s9878_s28 + $0x6c8] sm:$0xff] }
 0xaa9   : > { %v5414_v23 = vpop.f32.mrf.mxu3  ;;  %v6530_v48 = vpop.f32.mrf.mxu0  ;;  %v7413_v55 = vmax.f32 %v7029_v4, 0.0  ;;  %v5021_v40 = vpack.c.bf16 %v4938_v22, %v4937_v8 }
 0xaaa   : > { %v5631_v31 = vpack.c.bf16 %v5414_v23, %v5414_v23  ;;  %v8954_v54 = vsel %vm4519_vm3, %v8859_v30, 0  ;;  %v6774_v36 = vpack.c.bf16 %v6530_v48, %v6530_v48  ;;  %v8236_v16 = vunpack.c.l.bf16 %v8108_v42 }
 0xaab   : > { %9113 = vmatpush.bf16.xpose.msrb.mxu1 %v8954_v54  ;;  %v8948_v30 = vsel %vm4519_vm3, %v8857_v19, 0 }
 0xaac   : > { %v5759_v21 = vunpack.c.l.bf16 %v5631_v31  ;;  %v6902_v47 = vunpack.c.l.bf16 %v6774_v36  ;;  %v8364_v46 = vadd.f32 %v8236_v16, %v10228_v56 }
 0xaae   : > { %v5887_v28 = vadd.f32 %v5759_v21, %v9934_v43  ;;  %9537 = vmatmul.msk.bf16.gmra.mxu3 %vm558_vm1, %v5020_v24  ;;  %v7030_v11 = vadd.f32 %v6902_v47, %v9991_v53  ;;  %v8748_v1 = vmax.f32 %v8364_v46, 0.0 }
 0xaaf   : > { %v7838_v27 = vpop.f32.mrf.mxu2 }
 0xab0   : > { %v6271_v14 = vmax.f32 %v5887_v28, 0.0  ;;  %v8109_v37 = vpack.c.bf16 %v7838_v27, %v7838_v27  ;;  %v7414_v52 = vmax.f32 %v7030_v11, 0.0 }
 0xab1   : > { %v5417_v25 = vpop.f32.mrf.mxu3  ;;  %v6533_v6 = vpop.f32.mrf.mxu0 }
 0xab2   : > { %v8237_v63 = vunpack.c.l.bf16 %v8109_v37  ;;  %v6364_v49 = vpack.c.bf16 %v6271_v14, %v6270_v10  ;;  %v7516_v13 = vpack.c.bf16 %v7414_v52, %v7413_v55  ;;  %v5632_v51 = vpack.c.bf16 %v5417_v25, %v5417_v25  ;;  %v4939_v55 = vld [vmem:[%s9878_s28 + $0x6d0] sm:$0xff]  ;;  %v4940_v52 = vld [vmem:[%s9878_s28 + $0x6d8] sm:$0xff] }
 0xab3   : > { %9114 = vmatpush.bf16.xpose.msrb.mxu1 %v8951_v29  ;;  %v6775_v57 = vpack.c.bf16 %v6533_v6, %v6533_v6  ;;  %v5022_v35 = vpack.c.bf16 %v4940_v52, %v4939_v55 }
 0xab4   : > { %v8365_v18 = vadd.f32 %v8237_v63, %v10228_v56  ;;  %6572 = vmatmul.bf16.gmra.mxu0 %v6364_v49  ;;  %9583 = vmatmul.msk.bf16.gmra.mxu2 %vm3159_vm2, %v7516_v13  ;;  %v5760_v32 = vunpack.c.l.bf16 %v5632_v51  ;;  %v8942_v13 = vsel %vm4519_vm3, %v11363_v61, 0 }
 0xab5   : > { %v6903_v15 = vunpack.c.l.bf16 %v6775_v57 }
 0xab6   : > { %v8749_v20 = vmax.f32 %v8365_v18, 0.0  ;;  %v5888_v23 = vadd.f32 %v5760_v32, %v9934_v43 }
 0xab7   : > { %v7841_v50 = vpop.f32.mrf.mxu2  ;;  %v7031_v45 = vadd.f32 %v6903_v15, %v9991_v53 }
 0xab8   : > { %v11438_v0 = vpack.c.bf16 %v8749_v20, %v8748_v1  ;;  %v8110_v3 = vpack.c.bf16 %v7841_v50, %v7841_v50  ;;  %v6272_v58 = vmax.f32 %v5888_v23, 0.0 }
 0xab9   : > { %v5419_v38 = vpop.f32.mrf.mxu3  ;;  %v6535_v5 = vpop.f32.mrf.mxu0  ;;  %v7415_v21 = vmax.f32 %v7031_v45, 0.0 }
 0xaba   : > { %v5633_v7 = vpack.c.bf16 %v5419_v38, %v5419_v38  ;;  %v6776_v12 = vpack.c.bf16 %v6535_v5, %v6535_v5  ;;  %v8238_v31 = vunpack.c.l.bf16 %v8110_v3 }
 0xabb   : > { %9115 = vmatpush.bf16.xpose.msrb.mxu1 %v8948_v30 }
 0xabc   : > { %v5761_v24 = vunpack.c.l.bf16 %v5633_v7  ;;  %v6904_v42 = vunpack.c.l.bf16 %v6776_v12  ;;  %v8366_v47 = vadd.f32 %v8238_v31, %v10228_v56 }
 0xabe   : > { %v5889_v48 = vadd.f32 %v5761_v24, %v9934_v43  ;;  %9538 = vmatmul.msk.bf16.gmra.mxu3 %vm558_vm1, %v5021_v40  ;;  %v7032_v54 = vadd.f32 %v6904_v42, %v9991_v53  ;;  %v8750_v37 = vmax.f32 %v8366_v47, 0.0  ;;  %v8939_v40 = vsel %vm4519_vm3, %v11347_v39, 0 }
 0xabf   : > { %v7843_v36 = vpop.f32.mrf.mxu2 }
 0xac0   : > { %v6273_v62 = vmax.f32 %v5889_v48, 0.0  ;;  %v8111_v59 = vpack.c.bf16 %v7843_v36, %v7843_v36  ;;  %v7416_v60 = vmax.f32 %v7032_v54, 0.0 }
 0xac1   : > { %v5422_v4 = vpop.f32.mrf.mxu3  ;;  %v6538_v28 = vpop.f32.mrf.mxu0 }
 0xac2   : > { %v8239_v16 = vunpack.c.l.bf16 %v8111_v59  ;;  %v6365_v11 = vpack.c.bf16 %v6273_v62, %v6272_v58  ;;  %v7517_v27 = vpack.c.bf16 %v7416_v60, %v7415_v21  ;;  %v5634_v10 = vpack.c.bf16 %v5422_v4, %v5422_v4  ;;  %v4941_v58 = vld [vmem:[%s9878_s28 + $0x6e0] sm:$0xff]  ;;  %v4942_v62 = vld [vmem:[%s9878_s28 + $0x6e8] sm:$0xff] }
 0xac3   : > { %9116 = vmatpush.bf16.xpose.msrb.mxu1 %v8945_v33  ;;  %v6777_v14 = vpack.c.bf16 %v6538_v28, %v6538_v28  ;;  %v8936_v28 = vsel %vm4519_vm3, %v11331_v44, 0  ;;  %v5023_v33 = vpack.c.bf16 %v4942_v62, %v4941_v58 }
 0xac4   : > { %v8367_v17 = vadd.f32 %v8239_v16, %v10228_v56  ;;  %6577 = vmatmul.bf16.gmra.mxu0 %v6365_v11  ;;  %9584 = vmatmul.msk.bf16.gmra.mxu2 %vm3159_vm2, %v7517_v27  ;;  %v5762_v25 = vunpack.c.l.bf16 %v5634_v10 }
 0xac5   : > { %v6905_v6 = vunpack.c.l.bf16 %v6777_v14 }
 0xac6   : > { %v8751_v41 = vmax.f32 %v8367_v17, 0.0  ;;  %v5890_v57 = vadd.f32 %v5762_v25, %v9934_v43 }
 0xac7   : > { %v7846_v46 = vpop.f32.mrf.mxu2  ;;  %v7033_v20 = vadd.f32 %v6905_v6, %v9991_v53 }
 0xac8   : > { %v11453_v63 = vpack.c.bf16 %v8751_v41, %v8750_v37  ;;  %v8112_v18 = vpack.c.bf16 %v7846_v46, %v7846_v46  ;;  %v6274_v32 = vmax.f32 %v5890_v57, 0.0 }
 0xac9   : > { %v5424_v2 = vpop.f32.mrf.mxu3  ;;  %v6540_v49 = vpop.f32.mrf.mxu0  ;;  %v7417_v38 = vmax.f32 %v7033_v20, 0.0 }
 0xaca   : > { %v5635_v29 = vpack.c.bf16 %v5424_v2, %v5424_v2  ;;  %v6778_v51 = vpack.c.bf16 %v6540_v49, %v6540_v49  ;;  %v8240_v8 = vunpack.c.l.bf16 %v8112_v18 }
 0xacb   : > { %9117 = vmatpush.bf16.xpose.msrb.mxu1 %v8942_v13 }
 0xacc   : > { %v5763_v1 = vunpack.c.l.bf16 %v5635_v29  ;;  %v6906_v19 = vunpack.c.l.bf16 %v6778_v51  ;;  %v8368_v23 = vadd.f32 %v8240_v8, %v10228_v56 }
 0xace   : > { %v5891_v50 = vadd.f32 %v5763_v1, %v9934_v43  ;;  %9539 = vmatmul.msk.bf16.gmra.mxu3 %vm558_vm1, %v5022_v35  ;;  %v7034_v22 = vadd.f32 %v6906_v19, %v9991_v53  ;;  %v8752_v54 = vmax.f32 %v8368_v23, 0.0  ;;  %v8933_v35 = vsel %vm4519_vm3, %v11316_v26, 0 }
 0xacf   : > { %v7848_v61 = vpop.f32.mrf.mxu2 }
 0xad0   : > { %v6275_v15 = vmax.f32 %v5891_v50, 0.0  ;;  %v7418_v3 = vmax.f32 %v7034_v22, 0.0  ;;  %v8113_v7 = vpack.c.bf16 %v7848_v61, %v7848_v61 }
 0xad1   : > { %v5427_v5 = vpop.f32.mrf.mxu3  ;;  %v6543_v30 = vpop.f32.mrf.mxu0 }
 0xad2   : > { %v6366_v12 = vpack.c.bf16 %v6275_v15, %v6274_v32  ;;  %v7518_v24 = vpack.c.bf16 %v7418_v3, %v7417_v38  ;;  %v8241_v45 = vunpack.c.l.bf16 %v8113_v7  ;;  %v5636_v42 = vpack.c.bf16 %v5427_v5, %v5427_v5  ;;  %v4943_v32 = vld [vmem:[%s9878_s28 + $0x6f0] sm:$0xff]  ;;  %v4944_v15 = vld [vmem:[%s9878_s28 + $0x6f8] sm:$0xff] }
 0xad3   : > { %9118 = vmatpush.bf16.xpose.msrb.mxu1 %v8939_v40  ;;  %v6779_v48 = vpack.c.bf16 %v6543_v30, %v6543_v30  ;;  %v5024_v40 = vpack.c.bf16 %v4944_v15, %v4943_v32 }
 0xad4   : > { %v8369_v31 = vadd.f32 %v8241_v45, %v10228_v56  ;;  %6582 = vmatmul.bf16.gmra.mxu0 %v6366_v12  ;;  %9585 = vmatmul.msk.bf16.gmra.mxu2 %vm3159_vm2, %v7518_v24  ;;  %v5764_v59 = vunpack.c.l.bf16 %v5636_v42 }
 0xad5   : > { %v6907_v39 = vunpack.c.l.bf16 %v6779_v48 }
 0xad6   : > { %v8753_v36 = vmax.f32 %v8369_v31, 0.0  ;;  %v5892_v17 = vadd.f32 %v5764_v59, %v9934_v43 }
 0xad7   : > { %v7851_v21 = vpop.f32.mrf.mxu2  ;;  %v7035_v14 = vadd.f32 %v6907_v39, %v9991_v53 }
 0xad8   : > { %v11469_v4 = vpack.c.bf16 %v8753_v36, %v8752_v54  ;;  %v8114_v11 = vpack.c.bf16 %v7851_v21, %v7851_v21  ;;  %v6276_v25 = vmax.f32 %v5892_v17, 0.0 }
 0xad9   : > { %v5429_v60 = vpop.f32.mrf.mxu3  ;;  %v6545_v16 = vpop.f32.mrf.mxu0  ;;  %v7419_v6 = vmax.f32 %v7035_v14, 0.0 }
 0xada   : > { %v5637_v47 = vpack.c.bf16 %v5429_v60, %v5429_v60  ;;  %v6780_v27 = vpack.c.bf16 %v6545_v16, %v6545_v16  ;;  %v8242_v55 = vunpack.c.l.bf16 %v8114_v11 }
 0xadb   : > { %9119 = vmatpush.bf16.xpose.msrb.mxu1 %v8936_v28 }
 0xadc   : > { %v5765_v10 = vunpack.c.l.bf16 %v5637_v47  ;;  %v6908_v37 = vunpack.c.l.bf16 %v6780_v27  ;;  %v8370_v51 = vadd.f32 %v8242_v55, %v10228_v56  ;;  %v4946_v55 = vld [vmem:[%s9878_s28 + $0x708] sm:$0xff] }
 0xade   : > { %v5893_v41 = vadd.f32 %v5765_v10, %v9934_v43  ;;  %9540 = vmatmul.msk.bf16.gmra.mxu3 %vm558_vm1, %v5023_v33  ;;  %v7036_v52 = vadd.f32 %v6908_v37, %v9991_v53  ;;  %v8754_v8 = vmax.f32 %v8370_v51, 0.0 }
 0xadf   : > { %v7853_v44 = vpop.f32.mrf.mxu2 }
 0xae0   : > { %v6277_v46 = vmax.f32 %v5893_v41, 0.0  ;;  %v7420_v2 = vmax.f32 %v7036_v52, 0.0  ;;  %v8115_v29 = vpack.c.bf16 %v7853_v44, %v7853_v44  ;;  %v4945_v41 = vld [vmem:[%s9878_s28 + $0x700] sm:$0xff] }
 0xae1   : > { %v5432_v49 = vpop.f32.mrf.mxu3  ;;  %v6548_v13 = vpop.f32.mrf.mxu0 }
 0xae2   : > { %v6367_v18 = vpack.c.bf16 %v6277_v46, %v6276_v25  ;;  %v7519_v57 = vpack.c.bf16 %v7420_v2, %v7419_v6  ;;  %v8243_v1 = vunpack.c.l.bf16 %v8115_v29  ;;  %v5638_v20 = vpack.c.bf16 %v5432_v49, %v5432_v49 }
 0xae3   : > { %9120 = vmatpush.bf16.xpose.msrb.mxu1 %v8933_v35  ;;  %v6781_v50 = vpack.c.bf16 %v6548_v13, %v6548_v13  ;;  %v5025_v49 = vpack.c.bf16 %v4946_v55, %v4945_v41  ;;  %v4950_v41 = vld [vmem:[%s9878_s28 + $0x728] sm:$0xff] }
 0xae4   : > { %v8371_v19 = vadd.f32 %v8243_v1, %v10228_v56  ;;  %6587 = vmatmul.bf16.gmra.mxu0 %v6367_v18  ;;  %9586 = vmatmul.msk.bf16.gmra.mxu2 %vm3159_vm2, %v7519_v57  ;;  %v5766_v61 = vunpack.c.l.bf16 %v5638_v20 }
 0xae5   : > { %v6909_v26 = vunpack.c.l.bf16 %v6781_v50 }
 0xae6   : > { %v8755_v22 = vmax.f32 %v8371_v19, 0.0  ;;  %v5894_v24 = vadd.f32 %v5766_v61, %v9934_v43 }
 0xae7   : > { %v7856_v38 = vpop.f32.mrf.mxu2  ;;  %v7037_v42 = vadd.f32 %v6909_v26, %v9991_v53 }
 0xae8   : > { %v11485_v7 = vpack.c.bf16 %v8755_v22, %v8754_v8  ;;  %v8116_v12 = vpack.c.bf16 %v7856_v38, %v7856_v38  ;;  %v6278_v58 = vmax.f32 %v5894_v24, 0.0 }
 0xae9   : > { %v5434_v3 = vpop.f32.mrf.mxu3  ;;  %v6550_v30 = vpop.f32.mrf.mxu0  ;;  %v7421_v21 = vmax.f32 %v7037_v42, 0.0 }
 0xaea   : > { %v5639_v5 = vpack.c.bf16 %v5434_v3, %v5434_v3  ;;  %9623 = vmatmul.msk.bf16.vlgmr.msrb.gmra.mxu1 %vm4519_vm3, %v11368_v34  ;;  %v6782_v23 = vpack.c.bf16 %v6550_v30, %v6550_v30  ;;  %v8244_v54 = vunpack.c.l.bf16 %v8116_v12  ;;  %v4947_v30 = vld [vmem:[%s9878_s28 + $0x710] sm:$0xff] }
 0xaec   : > { %v5767_v45 = vunpack.c.l.bf16 %v5639_v5  ;;  %v6910_v31 = vunpack.c.l.bf16 %v6782_v23  ;;  %v8372_v28 = vadd.f32 %v8244_v54, %v10228_v56 }
 0xaee   : > { %v5895_v48 = vadd.f32 %v5767_v45, %v9934_v43  ;;  %9541 = vmatmul.msk.bf16.gmra.mxu3 %vm558_vm1, %v5024_v40  ;;  %v7038_v36 = vadd.f32 %v6910_v31, %v9991_v53  ;;  %v8756_v14 = vmax.f32 %v8372_v28, 0.0  ;;  %v4948_v40 = vld [vmem:[%s9878_s28 + $0x718] sm:$0xff] }
 0xaef   : > { %v7858_v59 = vpop.f32.mrf.mxu2 }
 0xaf0   : > { %v6279_v62 = vmax.f32 %v5895_v48, 0.0  ;;  %v7422_v34 = vmax.f32 %v7038_v36, 0.0  ;;  %v8117_v39 = vpack.c.bf16 %v7858_v59, %v7858_v59  ;;  %v5026_v48 = vpack.c.bf16 %v4948_v40, %v4947_v30 }
 0xaf1   : > { %v5437_v60 = vpop.f32.mrf.mxu3  ;;  %v6553_v47 = vpop.f32.mrf.mxu0 }
 0xaf2   : > { %v6368_v16 = vpack.c.bf16 %v6279_v62, %v6278_v58  ;;  %v7520_v33 = vpack.c.bf16 %v7422_v34, %v7421_v21  ;;  %v8245_v11 = vunpack.c.l.bf16 %v8117_v39  ;;  %v5640_v27 = vpack.c.bf16 %v5437_v60, %v5437_v60 }
 0xaf3   : > { %v6783_v10 = vpack.c.bf16 %v6553_v47, %v6553_v47 }
 0xaf4   : > { %v8373_v17 = vadd.f32 %v8245_v11, %v10228_v56  ;;  %6592 = vmatmul.bf16.gmra.mxu0 %v6368_v16  ;;  %9587 = vmatmul.msk.bf16.gmra.mxu2 %vm3159_vm2, %v7520_v33  ;;  %v5768_v52 = vunpack.c.l.bf16 %v5640_v27 }
 0xaf5   : > { %v6911_v46 = vunpack.c.l.bf16 %v6783_v10 }
 0xaf6   : > { %v8757_v37 = vmax.f32 %v8373_v17, 0.0  ;;  %v5896_v35 = vadd.f32 %v5768_v52, %v9934_v43 }
 0xaf7   : > { %v11499_v25 = vpop.f32.mrf.mxu2  ;;  %v7039_v51 = vadd.f32 %v6911_v46, %v9991_v53 }
 0xaf8   : > { %v11501_v6 = vpack.c.bf16 %v8757_v37, %v8756_v14  ;;  %v6280_v19 = vmax.f32 %v5896_v35, 0.0  ;;  %v4949_v37 = vld [vmem:[%s9878_s28 + $0x720] sm:$0xff] }
 0xaf9   : > { %v5439_v44 = vpop.f32.mrf.mxu3  ;;  %v6555_v29 = vpop.f32.mrf.mxu0  ;;  %v7423_v22 = vmax.f32 %v7039_v51, 0.0 }
 0xafa   : > { %v5641_v2 = vpack.c.bf16 %v5439_v44, %v5439_v44  ;;  %v6784_v13 = vpack.c.bf16 %v6555_v29, %v6555_v29 }
 0xafc   : > { %v5769_v18 = vunpack.c.l.bf16 %v5641_v2  ;;  %v6912_v57 = vunpack.c.l.bf16 %v6784_v13 }
 0xafe   : > { %v5897_v1 = vadd.f32 %v5769_v18, %v9934_v43  ;;  %9542 = vmatmul.msk.bf16.gmra.mxu3 %vm558_vm1, %v5025_v49  ;;  %v7040_v20 = vadd.f32 %v6912_v57, %v9991_v53  ;;  %v5027_v49 = vpack.c.bf16 %v4950_v41, %v4949_v37 }
 0xaff   : > { %v11508_v8 = vpop.f32.mrf.mxu2 }
 0xb00   : > { %v6281_v50 = vmax.f32 %v5897_v1, 0.0  ;;  %v7424_v32 = vmax.f32 %v7040_v20, 0.0 }
 0xb01   : > { %v5442_v15 = vpop.f32.mrf.mxu3  ;;  %v6558_v61 = vpop.f32.mrf.mxu0 }
 0xb02   : > { %v6369_v38 = vpack.c.bf16 %v6281_v50, %v6280_v19  ;;  %v7521_v26 = vpack.c.bf16 %v7424_v32, %v7423_v22  ;;  %v5642_v3 = vpack.c.bf16 %v5442_v15, %v5442_v15  ;;  %v6785_v5 = vpack.c.bf16 %v6558_v61, %v6558_v61 }
 0xb04   : > { %6597 = vmatmul.bf16.gmra.mxu0 %v6369_v38  ;;  %9588 = vmatmul.msk.bf16.gmra.mxu2 %vm3159_vm2, %v7521_v26  ;;  %v5770_v12 = vunpack.c.l.bf16 %v5642_v3  ;;  %v6913_v24 = vunpack.c.l.bf16 %v6785_v5 }
 0xb06   : > { %v5898_v36 = vadd.f32 %v5770_v12, %v9934_v43  ;;  %v7041_v62 = vadd.f32 %v6913_v24, %v9991_v53 }
 0xb07   : > { %v7866_v23 = vpop.f32.mrf.mxu2 }
 0xb08   : > { %v6282_v39 = vmax.f32 %v5898_v36, 0.0  ;;  %v7425_v16 = vmax.f32 %v7041_v62, 0.0  ;;  %v8120_v38 = vpack.c.bf16 %v7866_v23, %v7866_v23  ;;  %v8119_v23 = vpack.c.bf16 %v11508_v8, %v11508_v8 }
 0xb09   : > { %v5444_v45 = vpop.f32.mrf.mxu3  ;;  %v6560_v31 = vpop.f32.mrf.mxu0 }
 0xb0a   : > { %v5643_v42 = vpack.c.bf16 %v5444_v45, %v5444_v45  ;;  %v6786_v54 = vpack.c.bf16 %v6560_v31, %v6560_v31 }
 0xb0c   : > { %v5771_v58 = vunpack.c.l.bf16 %v5643_v42  ;;  %v6914_v59 = vunpack.c.l.bf16 %v6786_v54  ;;  %v8248_v54 = vunpack.c.l.bf16 %v8120_v38 }
 0xb0e   : > { %v5899_v21 = vadd.f32 %v5771_v58, %v9934_v43  ;;  %9543 = vmatmul.msk.bf16.gmra.mxu3 %vm558_vm1, %v5026_v48  ;;  %v7042_v34 = vadd.f32 %v6914_v59, %v9991_v53 }
 0xb0f   : > { %v7868_v47 = vpop.f32.mrf.mxu2 }
 0xb10   : > { %v6283_v60 = vmax.f32 %v5899_v21, 0.0  ;;  %v7426_v28 = vmax.f32 %v7042_v34, 0.0  ;;  %v8121_v19 = vpack.c.bf16 %v7868_v47, %v7868_v47  ;;  %v4951_v34 = vld [vmem:[%s9878_s28 + $0x730] sm:$0xff] }
 0xb11   : > { %v5447_v33 = vpop.f32.mrf.mxu3  ;;  %v6563_v11 = vpop.f32.mrf.mxu0 }
 0xb12   : > { %v6370_v27 = vpack.c.bf16 %v6283_v60, %v6282_v39  ;;  %v7522_v17 = vpack.c.bf16 %v7426_v28, %v7425_v16  ;;  %v5644_v10 = vpack.c.bf16 %v5447_v33, %v5447_v33  ;;  %v6787_v14 = vpack.c.bf16 %v6563_v11, %v6563_v11  ;;  %v4952_v39 = vld [vmem:[%s9878_s28 + $0x738] sm:$0xff] }
 0xb13   : > { %v8249_v24 = vunpack.c.l.bf16 %v8121_v19  ;;  %v8118_v16 = vpack.c.bf16 %v11499_v25, %v11499_v25  ;;  %v8376_v28 = vadd.f32 %v8248_v54, %v10228_v56  ;;  %v5028_v8 = vpack.c.bf16 %v4952_v39, %v4951_v34 }
 0xb14   : > { %6602 = vmatmul.bf16.gmra.mxu0 %v6370_v27  ;;  %9589 = vmatmul.msk.bf16.gmra.mxu2 %vm3159_vm2, %v7522_v17  ;;  %v5772_v55 = vunpack.c.l.bf16 %v5644_v10  ;;  %v6915_v46 = vunpack.c.l.bf16 %v6787_v14  ;;  %v8247_v17 = vunpack.c.l.bf16 %v8119_v23  ;;  %v4954_v23 = vld [vmem:[%s9878_s28 + $0x748] sm:$0xff] }
 0xb15   : > { %v8377_v62 = vadd.f32 %v8249_v24, %v10228_v56  ;;  %v8760_v25 = vmax.f32 %v8376_v28, 0.0 }
 0xb16   : > { %v5900_v18 = vadd.f32 %v5772_v55, %v9934_v43  ;;  %v7043_v57 = vadd.f32 %v6915_v46, %v9991_v53 }
 0xb17   : > { %v7871_v52 = vpop.f32.mrf.mxu2  ;;  %v8761_v37 = vmax.f32 %v8377_v62, 0.0 }
 0xb18   : > { %v8122_v13 = vpack.c.bf16 %v7871_v52, %v7871_v52  ;;  %v6284_v32 = vmax.f32 %v5900_v18, 0.0  ;;  %v7427_v26 = vmax.f32 %v7043_v57, 0.0 }
 0xb19   : > { %v5449_v44 = vpop.f32.mrf.mxu3  ;;  %v6565_v29 = vpop.f32.mrf.mxu0  ;;  %v8866_v57 = vpack.c.bf16 %v8761_v37, %v8760_v25 }
 0xb1a   : > { %v5645_v2 = vpack.c.bf16 %v5449_v44, %v5449_v44  ;;  %v6788_v35 = vpack.c.bf16 %v6565_v29, %v6565_v29  ;;  %v8250_v50 = vunpack.c.l.bf16 %v8122_v13  ;;  %v8375_v13 = vadd.f32 %v8247_v17, %v10228_v56 }
 0xb1c   : > { %v5773_v51 = vunpack.c.l.bf16 %v5645_v2  ;;  %v6916_v1 = vunpack.c.l.bf16 %v6788_v35  ;;  %v8378_v45 = vadd.f32 %v8250_v50, %v10228_v56  ;;  %v8246_v2 = vunpack.c.l.bf16 %v8118_v16 }
 0xb1d   : > { %v8759_v38 = vmax.f32 %v8375_v13, 0.0 }
 0xb1e   : > { %v5901_v20 = vadd.f32 %v5773_v51, %v9934_v43  ;;  %9544 = vmatmul.msk.bf16.gmra.mxu3 %vm558_vm1, %v5027_v49  ;;  %v7044_v22 = vadd.f32 %v6916_v1, %v9991_v53  ;;  %v8762_v59 = vmax.f32 %v8378_v45, 0.0  ;;  %v8374_v50 = vadd.f32 %v8246_v2, %v10228_v56 }
 0xb1f   : > { %v7873_v61 = vpop.f32.mrf.mxu2 }
 0xb20   : > { %v6285_v15 = vmax.f32 %v5901_v20, 0.0  ;;  %v7428_v3 = vmax.f32 %v7044_v22, 0.0  ;;  %v8123_v5 = vpack.c.bf16 %v7873_v61, %v7873_v61  ;;  %v8758_v45 = vmax.f32 %v8374_v50, 0.0 }
 0xb21   : > { %v5452_v30 = vpop.f32.mrf.mxu3  ;;  %v6568_v40 = vpop.f32.mrf.mxu0 }
 0xb22   : > { %v6371_v12 = vpack.c.bf16 %v6285_v15, %v6284_v32  ;;  %v7523_v42 = vpack.c.bf16 %v7428_v3, %v7427_v26  ;;  %v8251_v31 = vunpack.c.l.bf16 %v8123_v5  ;;  %v5646_v48 = vpack.c.bf16 %v5452_v30, %v5452_v30 }
 0xb23   : > { %v6789_v58 = vpack.c.bf16 %v6568_v40, %v6568_v40 }
 0xb24   : > { %v8379_v36 = vadd.f32 %v8251_v31, %v10228_v56  ;;  %6607 = vmatmul.bf16.gmra.mxu0 %v6371_v12  ;;  %9590 = vmatmul.msk.bf16.gmra.mxu2 %vm3159_vm2, %v7523_v42  ;;  %v5774_v60 = vunpack.c.l.bf16 %v5646_v48  ;;  %v8975_v12 = vsel %vm4519_vm3, %v8866_v57, 0  ;;  %v8969_v57 = vsel %vm4519_vm3, %v11501_v6, 0 }
 0xb25   : > { %v6917_v33 = vunpack.c.l.bf16 %v6789_v58  ;;  %v4953_v58 = vld [vmem:[%s9878_s28 + $0x740] sm:$0xff] }
 0xb26   : > { %v8763_v21 = vmax.f32 %v8379_v36, 0.0  ;;  %v5902_v46 = vadd.f32 %v5774_v60, %v9934_v43  ;;  %v8865_v36 = vpack.c.bf16 %v8759_v38, %v8758_v45  ;;  %v5029_v16 = vpack.c.bf16 %v4954_v23, %v4953_v58 }
 0xb27   : > { %v7876_v47 = vpop.f32.mrf.mxu2  ;;  %v7045_v29 = vadd.f32 %v6917_v33, %v9991_v53  ;;  %v8966_v45 = vsel %vm4519_vm3, %v11485_v7, 0 }
 0xb28   : > { %v8867_v27 = vpack.c.bf16 %v8763_v21, %v8762_v59  ;;  %v8124_v41 = vpack.c.bf16 %v7876_v47, %v7876_v47  ;;  %v6286_v1 = vmax.f32 %v5902_v46, 0.0 }
 0xb29   : > { %v5454_v11 = vpop.f32.mrf.mxu3  ;;  %v6570_v14 = vpop.f32.mrf.mxu0  ;;  %v7429_v22 = vmax.f32 %v7045_v29, 0.0 }
 0xb2a   : > { %v5647_v10 = vpack.c.bf16 %v5454_v11, %v5454_v11  ;;  %v6790_v55 = vpack.c.bf16 %v6570_v14, %v6570_v14  ;;  %v8978_v52 = vsel %vm4519_vm3, %v8867_v27, 0  ;;  %v8252_v18 = vunpack.c.l.bf16 %v8124_v41 }
 0xb2b   : > { %9126 = vmatpush.bf16.xpose.msra.mxu1 %v8978_v52  ;;  %v8972_v11 = vsel %vm4519_vm3, %v8865_v36, 0 }
 0xb2c   : > { %v5775_v44 = vunpack.c.l.bf16 %v5647_v10  ;;  %v6918_v49 = vunpack.c.l.bf16 %v6790_v55  ;;  %v8380_v5 = vadd.f32 %v8252_v18, %v10228_v56 }
 0xb2e   : > { %v5903_v35 = vadd.f32 %v5775_v44, %v9934_v43  ;;  %9545 = vmatmul.msk.bf16.gmra.mxu3 %vm558_vm1, %v5028_v8  ;;  %v7046_v51 = vadd.f32 %v6918_v49, %v9991_v53  ;;  %v8764_v48 = vmax.f32 %v8380_v5, 0.0 }
 0xb2f   : > { %v7878_v19 = vpop.f32.mrf.mxu2 }
 0xb30   : > { %v6287_v20 = vmax.f32 %v5903_v35, 0.0  ;;  %v7430_v32 = vmax.f32 %v7046_v51, 0.0  ;;  %v8125_v15 = vpack.c.bf16 %v7878_v19, %v7878_v19 }
 0xb31   : > { %v5457_v61 = vpop.f32.mrf.mxu3  ;;  %v6573_v26 = vpop.f32.mrf.mxu0 }
 0xb32   : > { %v6372_v3 = vpack.c.bf16 %v6287_v20, %v6286_v1  ;;  %v7524_v30 = vpack.c.bf16 %v7430_v32, %v7429_v22  ;;  %v8253_v40 = vunpack.c.l.bf16 %v8125_v15  ;;  %v5648_v24 = vpack.c.bf16 %v5457_v61, %v5457_v61  ;;  %v4955_v32 = vld [vmem:[%s9878_s28 + $0x750] sm:$0xff]  ;;  %v4956_v15 = vld [vmem:[%s9878_s28 + $0x758] sm:$0xff] }
 0xb33   : > { %9127 = vmatpush.bf16.xpose.msra.mxu1 %v8975_v12  ;;  %v6791_v31 = vpack.c.bf16 %v6573_v26, %v6573_v26 }
 0xb34   : > { %v8381_v42 = vadd.f32 %v8253_v40, %v10228_v56  ;;  %6612 = vmatmul.bf16.gmra.mxu0 %v6372_v3  ;;  %9591 = vmatmul.msk.bf16.gmra.mxu2 %vm3159_vm2, %v7524_v30  ;;  %v5776_v62 = vunpack.c.l.bf16 %v5648_v24  ;;  %v5030_v40 = vpack.c.bf16 %v4956_v15, %v4955_v32 }
 0xb35   : > { %v6919_v21 = vunpack.c.l.bf16 %v6791_v31 }
 0xb36   : > { %v8765_v54 = vmax.f32 %v8381_v42, 0.0  ;;  %v5904_v27 = vadd.f32 %v5776_v62, %v9934_v43 }
 0xb37   : > { %v7881_v59 = vpop.f32.mrf.mxu2  ;;  %v7047_v10 = vadd.f32 %v6919_v21, %v9991_v53 }
 0xb38   : > { %v11551_v39 = vpack.c.bf16 %v8765_v54, %v8764_v48  ;;  %v8126_v28 = vpack.c.bf16 %v7881_v59, %v7881_v59  ;;  %v6288_v55 = vmax.f32 %v5904_v27, 0.0 }
 0xb39   : > { %v5459_v34 = vpop.f32.mrf.mxu3  ;;  %v6575_v47 = vpop.f32.mrf.mxu0  ;;  %v7431_v44 = vmax.f32 %v7047_v10, 0.0 }
 0xb3a   : > { %v5649_v60 = vpack.c.bf16 %v5459_v34, %v5459_v34  ;;  %v6792_v33 = vpack.c.bf16 %v6575_v47, %v6575_v47  ;;  %v8254_v37 = vunpack.c.l.bf16 %v8126_v28 }
 0xb3b   : > { %9128 = vmatpush.bf16.xpose.msra.mxu1 %v8972_v11 }
 0xb3c   : > { %v5777_v17 = vunpack.c.l.bf16 %v5649_v60  ;;  %v6920_v14 = vunpack.c.l.bf16 %v6792_v33  ;;  %v8382_v35 = vadd.f32 %v8254_v37, %v10228_v56 }
 0xb3e   : > { %v5905_v8 = vadd.f32 %v5777_v17, %v9934_v43  ;;  %9546 = vmatmul.msk.bf16.gmra.mxu3 %vm558_vm1, %v5029_v16  ;;  %v7048_v41 = vadd.f32 %v6920_v14, %v9991_v53  ;;  %v8766_v50 = vmax.f32 %v8382_v35, 0.0  ;;  %v8963_v17 = vsel %vm4519_vm3, %v11469_v4, 0 }
 0xb3f   : > { %v7883_v46 = vpop.f32.mrf.mxu2 }
 0xb40   : > { %v6289_v52 = vmax.f32 %v5905_v8, 0.0  ;;  %v7432_v2 = vmax.f32 %v7048_v41, 0.0  ;;  %v8127_v25 = vpack.c.bf16 %v7883_v46, %v7883_v46 }
 0xb41   : > { %v5462_v29 = vpop.f32.mrf.mxu3  ;;  %v6578_v49 = vpop.f32.mrf.mxu0 }
 0xb42   : > { %v6373_v13 = vpack.c.bf16 %v6289_v52, %v6288_v55  ;;  %v7525_v18 = vpack.c.bf16 %v7432_v2, %v7431_v44  ;;  %v8255_v51 = vunpack.c.l.bf16 %v8127_v25  ;;  %v5650_v1 = vpack.c.bf16 %v5462_v29, %v5462_v29  ;;  %v4957_v55 = vld [vmem:[%s9878_s28 + $0x760] sm:$0xff]  ;;  %v4958_v52 = vld [vmem:[%s9878_s28 + $0x768] sm:$0xff] }
 0xb43   : > { %9129 = vmatpush.bf16.xpose.msra.mxu1 %v8969_v57  ;;  %v6793_v19 = vpack.c.bf16 %v6578_v49, %v6578_v49 }
 0xb44   : > { %v8383_v20 = vadd.f32 %v8255_v51, %v10228_v56  ;;  %6617 = vmatmul.bf16.gmra.mxu0 %v6373_v13  ;;  %9592 = vmatmul.msk.bf16.gmra.mxu2 %vm3159_vm2, %v7525_v18  ;;  %v5778_v61 = vunpack.c.l.bf16 %v5650_v1  ;;  %v5031_v13 = vpack.c.bf16 %v4958_v52, %v4957_v55  ;;  %v8960_v51 = vsel %vm4519_vm3, %v11453_v63, 0 }
 0xb45   : > { %v6921_v26 = vunpack.c.l.bf16 %v6793_v19 }
 0xb46   : > { %v8767_v22 = vmax.f32 %v8383_v20, 0.0  ;;  %v5906_v42 = vadd.f32 %v5778_v61, %v9934_v43 }
 0xb47   : > { %v7886_v38 = vpop.f32.mrf.mxu2  ;;  %v7049_v48 = vadd.f32 %v6921_v26, %v9991_v53 }
 0xb48   : > { %v11566_v5 = vpack.c.bf16 %v8767_v22, %v8766_v50  ;;  %v8128_v12 = vpack.c.bf16 %v7886_v38, %v7886_v38  ;;  %v6290_v62 = vmax.f32 %v5906_v42, 0.0  ;;  %v8957_v42 = vsel %vm4519_vm3, %v11438_v0, 0 }
 0xb49   : > { %v5464_v3 = vpop.f32.mrf.mxu3  ;;  %v6580_v6 = vpop.f32.mrf.mxu0  ;;  %v7433_v34 = vmax.f32 %v7049_v48, 0.0 }
 0xb4a   : > { %v5651_v30 = vpack.c.bf16 %v5464_v3, %v5464_v3  ;;  %v6794_v24 = vpack.c.bf16 %v6580_v6, %v6580_v6  ;;  %v8256_v58 = vunpack.c.l.bf16 %v8128_v12 }
 0xb4b   : > { %9130 = vmatpush.bf16.xpose.msra.mxu1 %v8966_v45 }
 0xb4c   : > { %v5779_v31 = vunpack.c.l.bf16 %v5651_v30  ;;  %v6922_v54 = vunpack.c.l.bf16 %v6794_v24  ;;  %v8384_v33 = vadd.f32 %v8256_v58, %v10228_v56 }
 0xb4e   : > { %v5907_v36 = vadd.f32 %v5779_v31, %v9934_v43  ;;  %9547 = vmatmul.msk.bf16.gmra.mxu3 %vm558_vm1, %v5030_v40  ;;  %v7050_v23 = vadd.f32 %v6922_v54, %v9991_v53  ;;  %v8768_v37 = vmax.f32 %v8384_v33, 0.0 }
 0xb4f   : > { %v7888_v21 = vpop.f32.mrf.mxu2 }
 0xb50   : > { %v6291_v59 = vmax.f32 %v5907_v36, 0.0  ;;  %v7434_v60 = vmax.f32 %v7050_v23, 0.0  ;;  %v8129_v7 = vpack.c.bf16 %v7888_v21, %v7888_v21  ;;  %v4959_v23 = vld [vmem:[%s9878_s28 + $0x770] sm:$0xff] }
 0xb51   : > { %v5467_v47 = vpop.f32.mrf.mxu3  ;;  %v6583_v16 = vpop.f32.mrf.mxu0 }
 0xb52   : > { %v6374_v28 = vpack.c.bf16 %v6291_v59, %v6290_v62  ;;  %v7526_v11 = vpack.c.bf16 %v7434_v60, %v7433_v34  ;;  %v8257_v27 = vunpack.c.l.bf16 %v8129_v7  ;;  %v5652_v10 = vpack.c.bf16 %v5467_v47, %v5467_v47  ;;  %v4960_v62 = vld [vmem:[%s9878_s28 + $0x778] sm:$0xff] }
 0xb53   : > { %9131 = vmatpush.bf16.xpose.msra.mxu1 %v8963_v17  ;;  %v6795_v8 = vpack.c.bf16 %v6583_v16, %v6583_v16  ;;  %v5032_v16 = vpack.c.bf16 %v4960_v62, %v4959_v23 }
 0xb54   : > { %v8385_v14 = vadd.f32 %v8257_v27, %v10228_v56  ;;  %6622 = vmatmul.bf16.gmra.mxu0 %v6374_v28  ;;  %9593 = vmatmul.msk.bf16.gmra.mxu2 %vm3159_vm2, %v7526_v11  ;;  %v5780_v46 = vunpack.c.l.bf16 %v5652_v10  ;;  %v11603_v11 = vld [vmem:[%s12017_s7] sm:$0x1] }
 0xb55   : > { %v6923_v2 = vunpack.c.l.bf16 %v6795_v8 }
 0xb56   : > { %v8769_v41 = vmax.f32 %v8385_v14, 0.0  ;;  %v5908_v57 = vadd.f32 %v5780_v46, %v9934_v43 }
 0xb57   : > { %v7891_v44 = vpop.f32.mrf.mxu2  ;;  %v7051_v20 = vadd.f32 %v6923_v2, %v9991_v53 }
 0xb58   : > { %v11582_v29 = vpack.c.bf16 %v8769_v41, %v8768_v37  ;;  %v8130_v35 = vpack.c.bf16 %v7891_v44, %v7891_v44  ;;  %v6292_v15 = vmax.f32 %v5908_v57, 0.0 }
 0xb59   : > { %v5469_v25 = vpop.f32.mrf.mxu3  ;;  %v6585_v4 = vpop.f32.mrf.mxu0  ;;  %v7435_v26 = vmax.f32 %v7051_v20, 0.0 }
 0xb5a   : > { %v5653_v49 = vpack.c.bf16 %v5469_v25, %v5469_v25  ;;  %v6796_v18 = vpack.c.bf16 %v6585_v4, %v6585_v4  ;;  %v8258_v22 = vunpack.c.l.bf16 %v8130_v35 }
 0xb5b   : > { %9132 = vmatpush.bf16.xpose.msra.mxu1 %v8960_v51 }
 0xb5c   : > { %v5781_v1 = vunpack.c.l.bf16 %v5653_v49  ;;  %v6924_v19 = vunpack.c.l.bf16 %v6796_v18  ;;  %v8386_v12 = vadd.f32 %v8258_v22, %v10228_v56  ;;  %v4961_v22 = vld [vmem:[%s9878_s28 + $0x780] sm:$0xff] }
 0xb5e   : > { %v5909_v50 = vadd.f32 %v5781_v1, %v9934_v43  ;;  %9548 = vmatmul.msk.bf16.gmra.mxu3 %vm558_vm1, %v5031_v13  ;;  %v7052_v32 = vadd.f32 %v6924_v19, %v9991_v53  ;;  %v8770_v36 = vmax.f32 %v8386_v12, 0.0 }
 0xb5f   : > { %v7893_v38 = vpop.f32.mrf.mxu2 }
 0xb60   : > { %v6293_v61 = vmax.f32 %v5909_v50, 0.0  ;;  %v7436_v3 = vmax.f32 %v7052_v32, 0.0  ;;  %v8131_v63 = vpack.c.bf16 %v7893_v38, %v7893_v38  ;;  %v4962_v32 = vld [vmem:[%s9878_s28 + $0x788] sm:$0xff] }
 0xb61   : > { %v5472_v30 = vpop.f32.mrf.mxu3  ;;  %v6588_v6 = vpop.f32.mrf.mxu0 }
 0xb62   : > { %v6375_v40 = vpack.c.bf16 %v6293_v61, %v6292_v15  ;;  %v7527_v24 = vpack.c.bf16 %v7436_v3, %v7435_v26  ;;  %v8259_v45 = vunpack.c.l.bf16 %v8131_v63  ;;  %v5654_v31 = vpack.c.bf16 %v5472_v30, %v5472_v30 }
 0xb63   : > { %9133 = vmatpush.bf16.xpose.msra.mxu1 %v8957_v42  ;;  %v6797_v54 = vpack.c.bf16 %v6588_v6, %v6588_v6  ;;  %v5033_v6 = vpack.c.bf16 %v4962_v32, %v4961_v22  ;;  %v4965_v22 = vld [vmem:[%s9878_s28 + $0x7a0] sm:$0xff]  ;;  %v4966_v32 = vld [vmem:[%s9878_s28 + $0x7a8] sm:$0xff] }
 0xb64   : > { %v8387_v48 = vadd.f32 %v8259_v45, %v10228_v56  ;;  %6627 = vmatmul.bf16.gmra.mxu0 %v6375_v40  ;;  %9594 = vmatmul.msk.bf16.gmra.mxu2 %vm3159_vm2, %v7527_v24  ;;  %v5782_v59 = vunpack.c.l.bf16 %v5654_v31 }
 0xb65   : > { %v6925_v34 = vunpack.c.l.bf16 %v6797_v54 }
 0xb66   : > { %v8771_v58 = vmax.f32 %v8387_v48, 0.0  ;;  %v5910_v27 = vadd.f32 %v5782_v59, %v9934_v43 }
 0xb67   : > { %v7896_v21 = vpop.f32.mrf.mxu2  ;;  %v7053_v10 = vadd.f32 %v6925_v34, %v9991_v53 }
 0xb68   : > { %v11598_v7 = vpack.c.bf16 %v8771_v58, %v8770_v36  ;;  %v8132_v28 = vpack.c.bf16 %v7896_v21, %v7896_v21  ;;  %v6294_v55 = vmax.f32 %v5910_v27, 0.0 }
 0xb69   : > { %v5474_v60 = vpop.f32.mrf.mxu3  ;;  %v6590_v0 = vpop.f32.mrf.mxu0  ;;  %v7437_v44 = vmax.f32 %v7053_v10, 0.0 }
 0xb6a   : > { %v5655_v47 = vpack.c.bf16 %v5474_v60, %v5474_v60  ;;  %v6798_v33 = vpack.c.bf16 %v6590_v0, %v6590_v0  ;;  %9624 = vmatmul.msk.bf16.vlgmr.msra.gmra.mxu1 %vm4519_vm3, %v11603_v11  ;;  %v8260_v37 = vunpack.c.l.bf16 %v8132_v28  ;;  %v4964_v28 = vld [vmem:[%s9878_s28 + $0x798] sm:$0xff] }
 0xb6c   : > { %v5783_v17 = vunpack.c.l.bf16 %v5655_v47  ;;  %v6926_v14 = vunpack.c.l.bf16 %v6798_v33  ;;  %v8388_v35 = vadd.f32 %v8260_v37, %v10228_v56 }
 0xb6e   : > { %v5911_v8 = vadd.f32 %v5783_v17, %v9934_v43  ;;  %9549 = vmatmul.msk.bf16.gmra.mxu3 %vm558_vm1, %v5032_v16  ;;  %v7054_v41 = vadd.f32 %v6926_v14, %v9991_v53  ;;  %v8772_v19 = vmax.f32 %v8388_v35, 0.0  ;;  %v4963_v16 = vld [vmem:[%s9878_s28 + $0x790] sm:$0xff] }
 0xb6f   : > { %v7898_v46 = vpop.f32.mrf.mxu2  ;;  %v5034_v37 = vpack.c.bf16 %v4964_v28, %v4963_v16 }
 0xb70   : > { %v6295_v52 = vmax.f32 %v5911_v8, 0.0  ;;  %v7438_v2 = vmax.f32 %v7054_v41, 0.0  ;;  %v8133_v25 = vpack.c.bf16 %v7898_v46, %v7898_v46 }
 0xb71   : > { %v5477_v49 = vpop.f32.mrf.mxu3  ;;  %v6593_v4 = vpop.f32.mrf.mxu0 }
 0xb72   : > { %v6376_v13 = vpack.c.bf16 %v6295_v52, %v6294_v55  ;;  %v7528_v18 = vpack.c.bf16 %v7438_v2, %v7437_v44  ;;  %v8261_v51 = vunpack.c.l.bf16 %v8133_v25  ;;  %v5656_v57 = vpack.c.bf16 %v5477_v49, %v5477_v49 }
 0xb73   : > { %v6799_v20 = vpack.c.bf16 %v6593_v4, %v6593_v4 }
 0xb74   : > { %v8389_v1 = vadd.f32 %v8261_v51, %v10228_v56  ;;  %6632 = vmatmul.bf16.gmra.mxu0 %v6376_v13  ;;  %9595 = vmatmul.msk.bf16.gmra.mxu2 %vm3159_vm2, %v7528_v18  ;;  %v5784_v15 = vunpack.c.l.bf16 %v5656_v57 }
 0xb75   : > { %v6927_v38 = vunpack.c.l.bf16 %v6799_v20 }
 0xb76   : > { %v8773_v50 = vmax.f32 %v8389_v1, 0.0  ;;  %v5912_v12 = vadd.f32 %v5784_v15, %v9934_v43 }
 0xb77   : > { %v11617_v61 = vpop.f32.mrf.mxu2  ;;  %v7055_v45 = vadd.f32 %v6927_v38, %v9991_v53 }
 0xb78   : > { %v11619_v3 = vpack.c.bf16 %v8773_v50, %v8772_v19  ;;  %v6296_v54 = vmax.f32 %v5912_v12, 0.0 }
 0xb79   : > { %v5479_v26 = vpop.f32.mrf.mxu3  ;;  %v6595_v30 = vpop.f32.mrf.mxu0  ;;  %v7439_v23 = vmax.f32 %v7055_v45, 0.0 }
 0xb7a   : > { %v5657_v63 = vpack.c.bf16 %v5479_v26, %v5479_v26  ;;  %v6800_v40 = vpack.c.bf16 %v6595_v30, %v6595_v30 }
 0xb7c   : > { %v5785_v24 = vunpack.c.l.bf16 %v5657_v63  ;;  %v6928_v42 = vunpack.c.l.bf16 %v6800_v40  ;;  %v5035_v40 = vpack.c.bf16 %v4966_v32, %v4965_v22 }
 0xb7e   : > { %v5913_v31 = vadd.f32 %v5785_v24, %v9934_v43  ;;  %9550 = vmatmul.msk.bf16.gmra.mxu3 %vm558_vm1, %v5033_v6  ;;  %v7056_v48 = vadd.f32 %v6928_v42, %v9991_v53 }
 0xb7f   : > { %v11626_v58 = vpop.f32.mrf.mxu2 }
 0xb80   : > { %v6297_v36 = vmax.f32 %v5913_v31, 0.0  ;;  %v7440_v62 = vmax.f32 %v7056_v48, 0.0 }
 0xb81   : > { %v5482_v59 = vpop.f32.mrf.mxu3  ;;  %v6598_v21 = vpop.f32.mrf.mxu0 }
 0xb82   : > { %v6377_v34 = vpack.c.bf16 %v6297_v36, %v6296_v54  ;;  %v7529_v60 = vpack.c.bf16 %v7440_v62, %v7439_v23  ;;  %v5658_v47 = vpack.c.bf16 %v5482_v59, %v5482_v59  ;;  %v6801_v0 = vpack.c.bf16 %v6598_v21, %v6598_v21 }
 0xb84   : > { %6637 = vmatmul.bf16.gmra.mxu0 %v6377_v34  ;;  %9596 = vmatmul.msk.bf16.gmra.mxu2 %vm3159_vm2, %v7529_v60  ;;  %v5786_v33 = vunpack.c.l.bf16 %v5658_v47  ;;  %v6929_v17 = vunpack.c.l.bf16 %v6801_v0 }
 0xb86   : > { %v5914_v55 = vadd.f32 %v5786_v33, %v9934_v43  ;;  %v7057_v46 = vadd.f32 %v6929_v17, %v9991_v53 }
 0xb87   : > { %v7906_v27 = vpop.f32.mrf.mxu2 }
 0xb88   : > { %v6298_v49 = vmax.f32 %v5914_v55, 0.0  ;;  %v7441_v35 = vmax.f32 %v7057_v46, 0.0  ;;  %v8136_v60 = vpack.c.bf16 %v7906_v27, %v7906_v27  ;;  %v8135_v27 = vpack.c.bf16 %v11626_v58, %v11626_v58 }
 0xb89   : > { %v5484_v10 = vpop.f32.mrf.mxu3  ;;  %v6600_v8 = vpop.f32.mrf.mxu0 }
 0xb8a   : > { %v5659_v14 = vpack.c.bf16 %v5484_v10, %v5484_v10  ;;  %v6802_v41 = vpack.c.bf16 %v6600_v8, %v6600_v8  ;;  %v8264_v55 = vunpack.c.l.bf16 %v8136_v60 }
 0xb8c   : > { %v5787_v52 = vunpack.c.l.bf16 %v5659_v14  ;;  %v6930_v44 = vunpack.c.l.bf16 %v6802_v41 }
 0xb8e   : > { %v5915_v2 = vadd.f32 %v5787_v52, %v9934_v43  ;;  %9551 = vmatmul.msk.bf16.gmra.mxu3 %vm558_vm1, %v5034_v37  ;;  %v7058_v25 = vadd.f32 %v6930_v44, %v9991_v53 }
 0xb8f   : > { %v7908_v13 = vpop.f32.mrf.mxu2 }
 0xb90   : > { %v6299_v4 = vmax.f32 %v5915_v2, 0.0  ;;  %v7442_v18 = vmax.f32 %v7058_v25, 0.0  ;;  %v8137_v36 = vpack.c.bf16 %v7908_v13, %v7908_v13 }
 0xb91   : > { %v5487_v51 = vpop.f32.mrf.mxu3  ;;  %v6603_v57 = vpop.f32.mrf.mxu0 }
 0xb92   : > { %v6378_v1 = vpack.c.bf16 %v6299_v4, %v6298_v49  ;;  %v7530_v20 = vpack.c.bf16 %v7442_v18, %v7441_v35  ;;  %v5660_v19 = vpack.c.bf16 %v5487_v51, %v5487_v51  ;;  %v6803_v50 = vpack.c.bf16 %v6603_v57, %v6603_v57  ;;  %v4967_v49 = vld [vmem:[%s9878_s28 + $0x7b0] sm:$0xff]  ;;  %v4968_v4 = vld [vmem:[%s9878_s28 + $0x7b8] sm:$0xff] }
 0xb93   : > { %v8265_v10 = vunpack.c.l.bf16 %v8137_v36  ;;  %v8134_v18 = vpack.c.bf16 %v11617_v61, %v11617_v61  ;;  %v8392_v51 = vadd.f32 %v8264_v55, %v10228_v56  ;;  %v5036_v58 = vpack.c.bf16 %v4968_v4, %v4967_v49 }
 0xb94   : > { %6642 = vmatmul.bf16.gmra.mxu0 %v6378_v1  ;;  %9597 = vmatmul.msk.bf16.gmra.mxu2 %vm3159_vm2, %v7530_v20  ;;  %v5788_v15 = vunpack.c.l.bf16 %v5660_v19  ;;  %v6931_v26 = vunpack.c.l.bf16 %v6803_v50  ;;  %v8263_v19 = vunpack.c.l.bf16 %v8135_v27  ;;  %v4969_v27 = vld [vmem:[%s9878_s28 + $0x7c0] sm:$0xff] }
 0xb95   : > { %v8393_v44 = vadd.f32 %v8265_v10, %v10228_v56  ;;  %v8776_v61 = vmax.f32 %v8392_v51, 0.0 }
 0xb96   : > { %v5916_v45 = vadd.f32 %v5788_v15, %v9934_v43  ;;  %v7059_v31 = vadd.f32 %v6931_v26, %v9991_v53 }
 0xb97   : > { %v7911_v38 = vpop.f32.mrf.mxu2  ;;  %v8777_v32 = vmax.f32 %v8393_v44, 0.0  ;;  %v4970_v44 = vld [vmem:[%s9878_s28 + $0x7c8] sm:$0xff] }
 0xb98   : > { %v8138_v12 = vpack.c.bf16 %v7911_v38, %v7911_v38  ;;  %v6300_v59 = vmax.f32 %v5916_v45, 0.0  ;;  %v7443_v47 = vmax.f32 %v7059_v31, 0.0  ;;  %v5037_v51 = vpack.c.bf16 %v4970_v44, %v4969_v27 }
 0xb99   : > { %v5489_v63 = vpop.f32.mrf.mxu3  ;;  %v6605_v6 = vpop.f32.mrf.mxu0 }
 0xb9a   : > { %v5661_v30 = vpack.c.bf16 %v5489_v63, %v5489_v63  ;;  %v6804_v24 = vpack.c.bf16 %v6605_v6, %v6605_v6  ;;  %v8266_v23 = vunpack.c.l.bf16 %v8138_v12  ;;  %v8262_v6 = vunpack.c.l.bf16 %v8134_v18 }
 0xb9c   : > { %v5789_v42 = vunpack.c.l.bf16 %v5661_v30  ;;  %v6932_v48 = vunpack.c.l.bf16 %v6804_v24  ;;  %v8394_v14 = vadd.f32 %v8266_v23, %v10228_v56  ;;  %v8391_v24 = vadd.f32 %v8263_v19, %v10228_v56 }
 0xb9e   : > { %v5917_v54 = vadd.f32 %v5789_v42, %v9934_v43  ;;  %9552 = vmatmul.msk.bf16.gmra.mxu3 %vm558_vm1, %v5035_v40  ;;  %v7060_v62 = vadd.f32 %v6932_v48, %v9991_v53  ;;  %v8778_v2 = vmax.f32 %v8394_v14, 0.0  ;;  %v8874_v48 = vpack.c.bf16 %v8777_v32, %v8776_v61 }
 0xb9f   : > { %v7913_v34 = vpop.f32.mrf.mxu2 }
 0xba0   : > { %v6301_v21 = vmax.f32 %v5917_v54, 0.0  ;;  %v7444_v0 = vmax.f32 %v7060_v62, 0.0  ;;  %v8139_v16 = vpack.c.bf16 %v7913_v34, %v7913_v34  ;;  %v8390_v62 = vadd.f32 %v8262_v6, %v10228_v56 }
 0xba1   : > { %v5492_v28 = vpop.f32.mrf.mxu3  ;;  %v6608_v33 = vpop.f32.mrf.mxu0  ;;  %v8999_v10 = vsel %vm4519_vm3, %v8874_v48, 0 }
 0xba2   : > { %v6379_v17 = vpack.c.bf16 %v6301_v21, %v6300_v59  ;;  %v7531_v8 = vpack.c.bf16 %v7444_v0, %v7443_v47  ;;  %v8267_v37 = vunpack.c.l.bf16 %v8139_v16  ;;  %v5662_v41 = vpack.c.bf16 %v5492_v28, %v5492_v28 }
 0xba3   : > { %v6805_v46 = vpack.c.bf16 %v6608_v33, %v6608_v33  ;;  %v8775_v47 = vmax.f32 %v8391_v24, 0.0 }
 0xba4   : > { %v8395_v52 = vadd.f32 %v8267_v37, %v10228_v56  ;;  %6647 = vmatmul.bf16.gmra.mxu0 %v6379_v17  ;;  %9598 = vmatmul.msk.bf16.gmra.mxu2 %vm3159_vm2, %v7531_v8  ;;  %v5790_v13 = vunpack.c.l.bf16 %v5662_v41  ;;  %v8774_v8 = vmax.f32 %v8390_v62, 0.0 }
 0xba5   : > { %v6933_v57 = vunpack.c.l.bf16 %v6805_v46 }
 0xba6   : > { %v8779_v25 = vmax.f32 %v8395_v52, 0.0  ;;  %v5918_v63 = vadd.f32 %v5790_v13, %v9934_v43  ;;  %v8873_v46 = vpack.c.bf16 %v8775_v47, %v8774_v8 }
 0xba7   : > { %v7916_v35 = vpop.f32.mrf.mxu2  ;;  %v7061_v40 = vadd.f32 %v6933_v57, %v9991_v53 }
 0xba8   : > { %v8875_v20 = vpack.c.bf16 %v8779_v25, %v8778_v2  ;;  %v8140_v15 = vpack.c.bf16 %v7916_v35, %v7916_v35  ;;  %v6302_v54 = vmax.f32 %v5918_v63, 0.0 }
 0xba9   : > { %v5494_v1 = vpop.f32.mrf.mxu3  ;;  %v6610_v22 = vpop.f32.mrf.mxu0  ;;  %v7445_v59 = vmax.f32 %v7061_v40, 0.0 }
 0xbaa   : > { %v5663_v50 = vpack.c.bf16 %v5494_v1, %v5494_v1  ;;  %v6806_v38 = vpack.c.bf16 %v6610_v22, %v6610_v22  ;;  %v9002_v26 = vsel %vm4519_vm3, %v8875_v20, 0  ;;  %v8268_v42 = vunpack.c.l.bf16 %v8140_v15 }
 0xbab   : > { %9139 = vmatpush.bf16.xpose.msrb.mxu1 %v9002_v26  ;;  %v8996_v20 = vsel %vm4519_vm3, %v8873_v46, 0 }
 0xbac   : > { %v5791_v30 = vunpack.c.l.bf16 %v5663_v50  ;;  %v6934_v12 = vunpack.c.l.bf16 %v6806_v38  ;;  %v8396_v28 = vadd.f32 %v8268_v42, %v10228_v56 }
 0xbae   : > { %v5919_v45 = vadd.f32 %v5791_v30, %v9934_v43  ;;  %9553 = vmatmul.msk.bf16.gmra.mxu3 %vm558_vm1, %v5036_v58  ;;  %v7062_v31 = vadd.f32 %v6934_v12, %v9991_v53  ;;  %v8780_v55 = vmax.f32 %v8396_v28, 0.0 }
 0xbaf   : > { %v7918_v23 = vpop.f32.mrf.mxu2 }
 0xbb0   : > { %v6303_v36 = vmax.f32 %v5919_v45, 0.0  ;;  %v7446_v21 = vmax.f32 %v7062_v31, 0.0  ;;  %v8141_v34 = vpack.c.bf16 %v7918_v23, %v7918_v23 }
 0xbb1   : > { %v5497_v60 = vpop.f32.mrf.mxu3  ;;  %v6613_v0 = vpop.f32.mrf.mxu0 }
 0xbb2   : > { %v6380_v16 = vpack.c.bf16 %v6303_v36, %v6302_v54  ;;  %v7532_v33 = vpack.c.bf16 %v7446_v21, %v7445_v59  ;;  %v8269_v17 = vunpack.c.l.bf16 %v8141_v34  ;;  %v5664_v14 = vpack.c.bf16 %v5497_v60, %v5497_v60  ;;  %v4971_v34 = vld [vmem:[%s9878_s28 + $0x7d0] sm:$0xff]  ;;  %v4972_v60 = vld [vmem:[%s9878_s28 + $0x7d8] sm:$0xff] }
 0xbb3   : > { %9140 = vmatpush.bf16.xpose.msrb.mxu1 %v8999_v10  ;;  %v6807_v41 = vpack.c.bf16 %v6613_v0, %v6613_v0  ;;  %v8993_v54 = vsel %vm4519_vm3, %v11619_v3, 0  ;;  %v5038_v10 = vpack.c.bf16 %v4972_v60, %v4971_v34 }
 0xbb4   : > { %v8397_v37 = vadd.f32 %v8269_v17, %v10228_v56  ;;  %6652 = vmatmul.bf16.gmra.mxu0 %v6380_v16  ;;  %9599 = vmatmul.msk.bf16.gmra.mxu2 %vm3159_vm2, %v7532_v33  ;;  %v5792_v2 = vunpack.c.l.bf16 %v5664_v14 }
 0xbb5   : > { %v6935_v49 = vunpack.c.l.bf16 %v6807_v41 }
 0xbb6   : > { %v8781_v52 = vmax.f32 %v8397_v37, 0.0  ;;  %v5920_v19 = vadd.f32 %v5792_v2, %v9934_v43  ;;  %v8990_v37 = vsel %vm4519_vm3, %v11598_v7, 0 }
 0xbb7   : > { %v7921_v25 = vpop.f32.mrf.mxu2  ;;  %v7063_v22 = vadd.f32 %v6935_v49, %v9991_v53 }
 0xbb8   : > { %v11669_v13 = vpack.c.bf16 %v8781_v52, %v8780_v55  ;;  %v8142_v57 = vpack.c.bf16 %v7921_v25, %v7921_v25  ;;  %v6304_v26 = vmax.f32 %v5920_v19, 0.0 }
 0xbb9   : > { %v5499_v4 = vpop.f32.mrf.mxu3  ;;  %v6615_v18 = vpop.f32.mrf.mxu0  ;;  %v7447_v6 = vmax.f32 %v7063_v22, 0.0  ;;  %v8987_v22 = vsel %vm4519_vm3, %v11582_v29, 0 }
 0xbba   : > { %v5665_v35 = vpack.c.bf16 %v5499_v4, %v5499_v4  ;;  %v6808_v1 = vpack.c.bf16 %v6615_v18, %v6615_v18  ;;  %v8270_v15 = vunpack.c.l.bf16 %v8142_v57 }
 0xbbb   : > { %9141 = vmatpush.bf16.xpose.msrb.mxu1 %v8996_v20 }
 0xbbc   : > { %v5793_v50 = vunpack.c.l.bf16 %v5665_v35  ;;  %v6936_v58 = vunpack.c.l.bf16 %v6808_v1  ;;  %v8398_v42 = vadd.f32 %v8270_v15, %v10228_v56 }
 0xbbe   : > { %v5921_v32 = vadd.f32 %v5793_v50, %v9934_v43  ;;  %9554 = vmatmul.msk.bf16.gmra.mxu3 %vm558_vm1, %v5037_v51  ;;  %v7064_v38 = vadd.f32 %v6936_v58, %v9991_v53  ;;  %v8782_v59 = vmax.f32 %v8398_v42, 0.0 }
 0xbbf   : > { %v7923_v30 = vpop.f32.mrf.mxu2 }
 0xbc0   : > { %v6305_v63 = vmax.f32 %v5921_v32, 0.0  ;;  %v7448_v61 = vmax.f32 %v7064_v38, 0.0  ;;  %v8143_v40 = vpack.c.bf16 %v7923_v30, %v7923_v30  ;;  %v4974_v30 = vld [vmem:[%s9878_s28 + $0x7e8] sm:$0xff] }
 0xbc1   : > { %v5502_v12 = vpop.f32.mrf.mxu3  ;;  %v6618_v24 = vpop.f32.mrf.mxu0 }
 0xbc2   : > { %v6381_v45 = vpack.c.bf16 %v6305_v63, %v6304_v26  ;;  %v7533_v31 = vpack.c.bf16 %v7448_v61, %v7447_v6  ;;  %v8271_v48 = vunpack.c.l.bf16 %v8143_v40  ;;  %v5666_v36 = vpack.c.bf16 %v5502_v12, %v5502_v12  ;;  %v4973_v63 = vld [vmem:[%s9878_s28 + $0x7e0] sm:$0xff] }
 0xbc3   : > { %9142 = vmatpush.bf16.xpose.msrb.mxu1 %v8993_v54  ;;  %v6809_v62 = vpack.c.bf16 %v6618_v24, %v6618_v24  ;;  %v5039_v42 = vpack.c.bf16 %v4974_v30, %v4973_v63  ;;  %v8984_v54 = vsel %vm4519_vm3, %v11566_v5, 0 }
 0xbc4   : > { %v8399_v23 = vadd.f32 %v8271_v48, %v10228_v56  ;;  %6657 = vmatmul.bf16.gmra.mxu0 %v6381_v45  ;;  %9600 = vmatmul.msk.bf16.gmra.mxu2 %vm3159_vm2, %v7533_v31  ;;  %v5794_v47 = vunpack.c.l.bf16 %v5666_v36 }
 0xbc5   : > { %v6937_v16 = vunpack.c.l.bf16 %v6809_v62 }
 0xbc6   : > { %v8783_v21 = vmax.f32 %v8399_v23, 0.0  ;;  %v5922_v41 = vadd.f32 %v5794_v47, %v9934_v43 }
 0xbc7   : > { %v7926_v0 = vpop.f32.mrf.mxu2  ;;  %v7065_v52 = vadd.f32 %v6937_v16, %v9991_v53 }
 0xbc8   : > { %v11684_v33 = vpack.c.bf16 %v8783_v21, %v8782_v59  ;;  %v8144_v14 = vpack.c.bf16 %v7926_v0, %v7926_v0  ;;  %v6306_v25 = vmax.f32 %v5922_v41, 0.0 }
 0xbc9   : > { %v5504_v28 = vpop.f32.mrf.mxu3  ;;  %v6620_v3 = vpop.f32.mrf.mxu0  ;;  %v7449_v35 = vmax.f32 %v7065_v52, 0.0 }
 0xbca   : > { %v5667_v17 = vpack.c.bf16 %v5504_v28, %v5504_v28  ;;  %v6810_v8 = vpack.c.bf16 %v6620_v3, %v6620_v3  ;;  %v8272_v44 = vunpack.c.l.bf16 %v8144_v14 }
 0xbcb   : > { %9143 = vmatpush.bf16.xpose.msrb.mxu1 %v8990_v37 }
 0xbcc   : > { %v5795_v55 = vunpack.c.l.bf16 %v5667_v17  ;;  %v6938_v46 = vunpack.c.l.bf16 %v6810_v8  ;;  %v8400_v20 = vadd.f32 %v8272_v44, %v10228_v56 }
 0xbce   : > { %v5923_v27 = vadd.f32 %v5795_v55, %v9934_v43  ;;  %9555 = vmatmul.msk.bf16.gmra.mxu3 %vm558_vm1, %v5038_v10  ;;  %v7066_v2 = vadd.f32 %v6938_v46, %v9991_v53  ;;  %v8784_v38 = vmax.f32 %v8400_v20, 0.0  ;;  %v8981_v55 = vsel %vm4519_vm3, %v11551_v39, 0 }
 0xbcf   : > { %v7928_v4 = vpop.f32.mrf.mxu2 }
 0xbd0   : > { %v6307_v49 = vmax.f32 %v5923_v27, 0.0  ;;  %v7450_v18 = vmax.f32 %v7066_v2, 0.0  ;;  %v8145_v7 = vpack.c.bf16 %v7928_v4, %v7928_v4 }
 0xbd1   : > { %v5507_v51 = vpop.f32.mrf.mxu3  ;;  %v6623_v57 = vpop.f32.mrf.mxu0 }
 0xbd2   : > { %v6382_v1 = vpack.c.bf16 %v6307_v49, %v6306_v25  ;;  %v7534_v19 = vpack.c.bf16 %v7450_v18, %v7449_v35  ;;  %v8273_v50 = vunpack.c.l.bf16 %v8145_v7  ;;  %v5668_v58 = vpack.c.bf16 %v5507_v51, %v5507_v51  ;;  %v4975_v25 = vld [vmem:[%s9878_s28 + $0x7f0] sm:$0xff]  ;;  %v4976_v49 = vld [vmem:[%s9878_s28 + $0x7f8] sm:$0xff] }
 0xbd3   : > { %9144 = vmatpush.bf16.xpose.msrb.mxu1 %v8987_v22  ;;  %v6811_v15 = vpack.c.bf16 %v6623_v57, %v6623_v57 }
 0xbd4   : > { %v8401_v32 = vadd.f32 %v8273_v50, %v10228_v56  ;;  %6662 = vmatmul.bf16.gmra.mxu0 %v6382_v1  ;;  %9601 = vmatmul.msk.bf16.gmra.mxu2 %vm3159_vm2, %v7534_v19  ;;  %v5796_v6 = vunpack.c.l.bf16 %v5668_v58  ;;  %v5040_v1 = vpack.c.bf16 %v4976_v49, %v4975_v25 }
 0xbd5   : > { %v6939_v40 = vunpack.c.l.bf16 %v6811_v15 }
 0xbd6   : > { %v8785_v26 = vmax.f32 %v8401_v32, 0.0  ;;  %v5924_v36 = vadd.f32 %v5796_v6, %v9934_v43 }
 0xbd7   : > { %v7931_v61 = vpop.f32.mrf.mxu2  ;;  %v7067_v62 = vadd.f32 %v6939_v40, %v9991_v53 }
 0xbd8   : > { %v11700_v24 = vpack.c.bf16 %v8785_v26, %v8784_v38  ;;  %v8146_v31 = vpack.c.bf16 %v7931_v61, %v7931_v61  ;;  %v6308_v47 = vmax.f32 %v5924_v36, 0.0 }
 0xbd9   : > { %v5509_v12 = vpop.f32.mrf.mxu3  ;;  %v6625_v29 = vpop.f32.mrf.mxu0  ;;  %v7451_v28 = vmax.f32 %v7067_v62, 0.0 }
 0xbda   : > { %v5669_v45 = vpack.c.bf16 %v5509_v12, %v5509_v12  ;;  %v6812_v48 = vpack.c.bf16 %v6625_v29, %v6625_v29  ;;  %v8274_v34 = vunpack.c.l.bf16 %v8146_v31 }
 0xbdb   : > { %9145 = vmatpush.bf16.xpose.msrb.mxu1 %v8984_v54 }
 0xbdc   : > { %v5797_v23 = vunpack.c.l.bf16 %v5669_v45  ;;  %v6940_v59 = vunpack.c.l.bf16 %v6812_v48  ;;  %v8402_v8 = vadd.f32 %v8274_v34, %v10228_v56 }
 0xbde   : > { %v5925_v21 = vadd.f32 %v5797_v23, %v9934_v43  ;;  %9556 = vmatmul.msk.bf16.gmra.mxu3 %vm558_vm1, %v5039_v42  ;;  %v7068_v60 = vadd.f32 %v6940_v59, %v9991_v53  ;;  %v8786_v44 = vmax.f32 %v8402_v8, 0.0 }
 0xbdf   : > { %v7933_v16 = vpop.f32.mrf.mxu2 }
 0xbe0   : > { %v6309_v0 = vmax.f32 %v5925_v21, 0.0  ;;  %v7452_v17 = vmax.f32 %v7068_v60, 0.0  ;;  %v8147_v5 = vpack.c.bf16 %v7933_v16, %v7933_v16 }
 0xbe1   : > { %v5512_v3 = vpop.f32.mrf.mxu3  ;;  %v6628_v10 = vpop.f32.mrf.mxu0 }
 0xbe2   : > { %v6383_v14 = vpack.c.bf16 %v6309_v0, %v6308_v47  ;;  %v7535_v37 = vpack.c.bf16 %v7452_v17, %v7451_v28  ;;  %v8275_v41 = vunpack.c.l.bf16 %v8147_v5  ;;  %v5670_v52 = vpack.c.bf16 %v5512_v3, %v5512_v3 }
 0xbe3   : > { %9146 = vmatpush.bf16.xpose.msrb.mxu1 %v8981_v55  ;;  %v6813_v27 = vpack.c.bf16 %v6628_v10, %v6628_v10 }
 0xbe4   : > { %v8403_v46 = vadd.f32 %v8275_v41, %v10228_v56  ;;  %6667 = vmatmul.bf16.gmra.mxu0 %v6383_v14  ;;  %9602 = vmatmul.msk.bf16.gmra.mxu2 %vm3159_vm2, %v7535_v37  ;;  %v5798_v4 = vunpack.c.l.bf16 %v5670_v52 }
 0xbe5   : > { %v6941_v18 = vunpack.c.l.bf16 %v6813_v27 }
 0xbe6   : > { %v8787_v2 = vmax.f32 %v8403_v46, 0.0  ;;  %v5926_v50 = vadd.f32 %v5798_v4, %v9934_v43 }
 0xbe7   : > { %v7936_v35 = vpop.f32.mrf.mxu2  ;;  %v7069_v58 = vadd.f32 %v6941_v18, %v9991_v53 }
 0xbe8   : > { %v11716_v51 = vpack.c.bf16 %v8787_v2, %v8786_v44  ;;  %v8148_v20 = vpack.c.bf16 %v7936_v35, %v7936_v35  ;;  %v6310_v63 = vmax.f32 %v5926_v50, 0.0 }
 0xbe9   : > { %v5514_v7 = vpop.f32.mrf.mxu3  ;;  %v6630_v39 = vpop.f32.mrf.mxu0  ;;  %v7453_v61 = vmax.f32 %v7069_v58, 0.0 }
 0xbea   : > { %v5671_v57 = vpack.c.bf16 %v5514_v7, %v5514_v7  ;;  %v6814_v19 = vpack.c.bf16 %v6630_v39, %v6630_v39  ;;  %9625 = vmatmul.msk.bf16.vlgmr.msrb.gmra.mxu1 %vm4519_vm3, %v11603_v11  ;;  %v8276_v38 = vunpack.c.l.bf16 %v8148_v20 }
 0xbec   : > { %v5799_v22 = vunpack.c.l.bf16 %v5671_v57  ;;  %v6942_v32 = vunpack.c.l.bf16 %v6814_v19  ;;  %v8404_v42 = vadd.f32 %v8276_v38, %v10228_v56 }
 0xbee   : > { %v5927_v15 = vadd.f32 %v5799_v22, %v9934_v43  ;;  %9557 = vmatmul.msk.bf16.gmra.mxu3 %vm558_vm1, %v5040_v1  ;;  %v7070_v26 = vadd.f32 %v6942_v32, %v9991_v53  ;;  %v8788_v62 = vmax.f32 %v8404_v42, 0.0 }
 0xbef   : > { %v7938_v6 = vpop.f32.mrf.mxu2 }
 0xbf0   : > { %v6311_v30 = vmax.f32 %v5927_v15, 0.0  ;;  %v7454_v40 = vmax.f32 %v7070_v26, 0.0  ;;  %v8149_v12 = vpack.c.bf16 %v7938_v6, %v7938_v6 }
 0xbf1   : > { %v5517_v11 = vpop.f32.mrf.mxu3  ;;  %v6633_v45 = vpop.f32.mrf.mxu0 }
 0xbf2   : > { %v6384_v29 = vpack.c.bf16 %v6311_v30, %v6310_v63  ;;  %v7536_v31 = vpack.c.bf16 %v7454_v40, %v7453_v61  ;;  %v8277_v48 = vunpack.c.l.bf16 %v8149_v12  ;;  %v5672_v54 = vpack.c.bf16 %v5517_v11, %v5517_v11 }
 0xbf3   : > { %v6815_v23 = vpack.c.bf16 %v6633_v45, %v6633_v45 }
 0xbf4   : > { %v8405_v36 = vadd.f32 %v8277_v48, %v10228_v56  ;;  %6672 = vmatmul.bf16.gmra.mxu0 %v6384_v29  ;;  %9603 = vmatmul.msk.bf16.gmra.mxu2 %vm3159_vm2, %v7536_v31  ;;  %v5800_v21 = vunpack.c.l.bf16 %v5672_v54 }
 0xbf5   : > { %v6943_v60 = vunpack.c.l.bf16 %v6815_v23 }
 0xbf6   : > { %v8789_v59 = vmax.f32 %v8405_v36, 0.0  ;;  %v5928_v5 = vadd.f32 %v5800_v21, %v9934_v43 }
 0xbf7   : > { %v11728_v34 = vpop.f32.mrf.mxu2  ;;  %v7071_v10 = vadd.f32 %v6943_v60, %v9991_v53 }
 0xbf8   : > { %v11730_v0 = vpack.c.bf16 %v8789_v59, %v8788_v62  ;;  %v6312_v41 = vmax.f32 %v5928_v5, 0.0 }
 0xbf9   : > { %v5519_v47 = vpop.f32.mrf.mxu3  ;;  %v6635_v28 = vpop.f32.mrf.mxu0  ;;  %v7455_v46 = vmax.f32 %v7071_v10, 0.0 }
 0xbfa   : > { %v5673_v16 = vpack.c.bf16 %v5519_v47, %v5519_v47  ;;  %v6816_v17 = vpack.c.bf16 %v6635_v28, %v6635_v28 }
 0xbfc   : > { %v5801_v3 = vunpack.c.l.bf16 %v5673_v16  ;;  %v6944_v14 = vunpack.c.l.bf16 %v6816_v17 }
 0xbfe   : > { %v5929_v8 = vadd.f32 %v5801_v3, %v9934_v43  ;;  %v7072_v37 = vadd.f32 %v6944_v14, %v9991_v53 }
 0xbff   : > { %v11736_v52 = vpop.f32.mrf.mxu2 }
 0xc00   : > { %v6313_v55 = vmax.f32 %v5929_v8, 0.0  ;;  %v7456_v27 = vmax.f32 %v7072_v37, 0.0 }
 0xc01   : > { %v5522_v44 = vpop.f32.mrf.mxu3  ;;  %v6638_v2 = vpop.f32.mrf.mxu0 }
 0xc02   : > { %v6385_v25 = vpack.c.bf16 %v6313_v55, %v6312_v41  ;;  %v7537_v49 = vpack.c.bf16 %v7456_v27, %v7455_v46  ;;  %v5674_v4 = vpack.c.bf16 %v5522_v44, %v5522_v44  ;;  %v6817_v35 = vpack.c.bf16 %v6638_v2, %v6638_v2 }
 0xc04   : > { %6677 = vmatmul.bf16.gmra.mxu0 %v6385_v25  ;;  %9604 = vmatmul.msk.bf16.gmra.mxu2 %vm3159_vm2, %v7537_v49  ;;  %v5802_v18 = vunpack.c.l.bf16 %v5674_v4  ;;  %v6945_v57 = vunpack.c.l.bf16 %v6817_v35 }
 0xc06   : > { %v5930_v50 = vadd.f32 %v5802_v18, %v9934_v43  ;;  %v7073_v58 = vadd.f32 %v6945_v57, %v9991_v53 }
 0xc07   : > { %v7946_v7 = vpop.f32.mrf.mxu2 }
 0xc08   : > { %v6314_v26 = vmax.f32 %v5930_v50, 0.0  ;;  %v7457_v6 = vmax.f32 %v7073_v58, 0.0  ;;  %v8152_v41 = vpack.c.bf16 %v7946_v7, %v7946_v7  ;;  %v8151_v7 = vpack.c.bf16 %v11736_v52, %v11736_v52 }
 0xc09   : > { %v5524_v39 = vpop.f32.mrf.mxu3  ;;  %v6640_v20 = vpop.f32.mrf.mxu0 }
 0xc0a   : > { %v5675_v1 = vpack.c.bf16 %v5524_v39, %v5524_v39  ;;  %v6818_v19 = vpack.c.bf16 %v6640_v20, %v6640_v20  ;;  %v8280_v39 = vunpack.c.l.bf16 %v8152_v41 }
 0xc0c   : > { %v5803_v22 = vunpack.c.l.bf16 %v5675_v1  ;;  %v6946_v32 = vunpack.c.l.bf16 %v6818_v19 }
 0xc0e   : > { %v5931_v15 = vadd.f32 %v5803_v22, %v9934_v43  ;;  %v7074_v38 = vadd.f32 %v6946_v32, %v9991_v53 }
 0xc0f   : > { %v7948_v30 = vpop.f32.mrf.mxu2 }
 0xc10   : > { %v6315_v63 = vmax.f32 %v5931_v15, 0.0  ;;  %v7458_v61 = vmax.f32 %v7074_v38, 0.0  ;;  %v8153_v5 = vpack.c.bf16 %v7948_v30, %v7948_v30  ;;  %v8150_v15 = vpack.c.bf16 %v11728_v34, %v11728_v34 }
 0xc11   : > { %v5527_v40 = vpop.f32.mrf.mxu3  ;;  %v6643_v12 = vpop.f32.mrf.mxu0  ;;  %v8408_v38 = vadd.f32 %v8280_v39, %v10228_v56 }
 0xc12   : > { %v6386_v11 = vpack.c.bf16 %v6315_v63, %v6314_v26  ;;  %v7538_v45 = vpack.c.bf16 %v7458_v61, %v7457_v6  ;;  %v5676_v29 = vpack.c.bf16 %v5527_v40, %v5527_v40  ;;  %v6819_v42 = vpack.c.bf16 %v6643_v12, %v6643_v12 }
 0xc13   : > { %v8281_v49 = vunpack.c.l.bf16 %v8153_v5  ;;  %v8279_v6 = vunpack.c.l.bf16 %v8151_v7 }
 0xc14   : > { %6682 = vmatmul.bf16.gmra.mxu0 %v6386_v11  ;;  %9605 = vmatmul.msk.bf16.gmra.mxu2 %vm3159_vm2, %v7538_v45  ;;  %v5804_v31 = vunpack.c.l.bf16 %v5676_v29  ;;  %v6947_v54 = vunpack.c.l.bf16 %v6819_v42 }
 0xc15   : > { %v8409_v19 = vadd.f32 %v8281_v49, %v10228_v56 }
 0xc16   : > { %v5932_v60 = vadd.f32 %v5804_v31, %v9934_v43  ;;  %v7075_v16 = vadd.f32 %v6947_v54, %v9991_v53  ;;  %v8278_v31 = vunpack.c.l.bf16 %v8150_v15 }
 0xc17   : > { %v7951_v48 = vpop.f32.mrf.mxu2  ;;  %v8793_v12 = vmax.f32 %v8409_v19, 0.0 }
 0xc18   : > { %v8154_v59 = vpack.c.bf16 %v7951_v48, %v7951_v48  ;;  %v6316_v14 = vmax.f32 %v5932_v60, 0.0  ;;  %v7459_v55 = vmax.f32 %v7075_v16, 0.0  ;;  %v8792_v48 = vmax.f32 %v8408_v38, 0.0 }
 0xc19   : > { %v5529_v36 = vpop.f32.mrf.mxu3  ;;  %v6645_v62 = vpop.f32.mrf.mxu0 }
 0xc1a   : > { %v5677_v23 = vpack.c.bf16 %v5529_v36, %v5529_v36  ;;  %v6820_v21 = vpack.c.bf16 %v6645_v62, %v6645_v62  ;;  %v8282_v3 = vunpack.c.l.bf16 %v8154_v59  ;;  %v8407_v36 = vadd.f32 %v8279_v6, %v10228_v56 }
 0xc1c   : > { %v5805_v47 = vunpack.c.l.bf16 %v5677_v23  ;;  %v6948_v28 = vunpack.c.l.bf16 %v6820_v21  ;;  %v8410_v4 = vadd.f32 %v8282_v3, %v10228_v56  ;;  %v8882_v21 = vpack.c.bf16 %v8793_v12, %v8792_v48 }
 0xc1e   : > { %v5933_v17 = vadd.f32 %v5805_v47, %v9934_v43  ;;  %v7076_v10 = vadd.f32 %v6948_v28, %v9991_v53  ;;  %v8794_v50 = vmax.f32 %v8410_v4, 0.0  ;;  %v8406_v28 = vadd.f32 %v8278_v31, %v10228_v56 }
 0xc1f   : > { %v7953_v37 = vpop.f32.mrf.mxu2 }
 0xc20   : > { %v6317_v8 = vmax.f32 %v5933_v17, 0.0  ;;  %v7460_v46 = vmax.f32 %v7076_v10, 0.0  ;;  %v8155_v27 = vpack.c.bf16 %v7953_v37, %v7953_v37 }
 0xc21   : > { %v5532_v44 = vpop.f32.mrf.mxu3  ;;  %v6648_v2 = vpop.f32.mrf.mxu0 }
 0xc22   : > { %v6387_v25 = vpack.c.bf16 %v6317_v8, %v6316_v14  ;;  %v7539_v35 = vpack.c.bf16 %v7460_v46, %v7459_v55  ;;  %v8283_v18 = vunpack.c.l.bf16 %v8155_v27  ;;  %v5678_v57 = vpack.c.bf16 %v5532_v44, %v5532_v44 }
 0xc23   : > { %v6821_v20 = vpack.c.bf16 %v6648_v2, %v6648_v2  ;;  %v8791_v14 = vmax.f32 %v8407_v36, 0.0  ;;  %v9023_v27 = vsel %vm4519_vm3, %v8882_v21, 0  ;;  %v8790_v2 = vmax.f32 %v8406_v28, 0.0 }
 0xc24   : > { %v8411_v1 = vadd.f32 %v8283_v18, %v10228_v56  ;;  %6687 = vmatmul.bf16.gmra.mxu0 %v6387_v25  ;;  %9606 = vmatmul.msk.bf16.gmra.mxu2 %vm3159_vm2, %v7539_v35  ;;  %v5806_v58 = vunpack.c.l.bf16 %v5678_v57 }
 0xc25   : > { %v6949_v26 = vunpack.c.l.bf16 %v6821_v20  ;;  %v8881_v18 = vpack.c.bf16 %v8791_v14, %v8790_v2 }
 0xc26   : > { %v8795_v22 = vmax.f32 %v8411_v1, 0.0  ;;  %v5934_v29 = vadd.f32 %v5806_v58, %v9934_v43 }
 0xc27   : > { %v7956_v32 = vpop.f32.mrf.mxu2  ;;  %v7077_v34 = vadd.f32 %v6949_v26, %v9991_v53 }
 0xc28   : > { %v8883_v30 = vpack.c.bf16 %v8795_v22, %v8794_v50  ;;  %v8156_v11 = vpack.c.bf16 %v7956_v32, %v7956_v32  ;;  %v6318_v60 = vmax.f32 %v5934_v29, 0.0  ;;  %v9020_v32 = vsel %vm4519_vm3, %v8881_v18, 0 }
 0xc29   : > { %v5534_v63 = vpop.f32.mrf.mxu3  ;;  %v6650_v40 = vpop.f32.mrf.mxu0  ;;  %v7461_v17 = vmax.f32 %v7077_v34, 0.0 }
 0xc2a   : > { %v5679_v61 = vpack.c.bf16 %v5534_v63, %v5534_v63  ;;  %v6822_v52 = vpack.c.bf16 %v6650_v40, %v6650_v40  ;;  %v9026_v45 = vsel %vm4519_vm3, %v8883_v30, 0  ;;  %v8284_v62 = vunpack.c.l.bf16 %v8156_v11 }
 0xc2b   : > { %9152 = vmatpush.bf16.xpose.msra.mxu1 %v9026_v45 }
 0xc2c   : > { %v5807_v42 = vunpack.c.l.bf16 %v5679_v61  ;;  %v6950_v54 = vunpack.c.l.bf16 %v6822_v52  ;;  %v8412_v41 = vadd.f32 %v8284_v62, %v10228_v56 }
 0xc2e   : > { %v5935_v23 = vadd.f32 %v5807_v42, %v9934_v43  ;;  %v7078_v59 = vadd.f32 %v6950_v54, %v9991_v53  ;;  %v8796_v4 = vmax.f32 %v8412_v41, 0.0 }
 0xc2f   : > { %v7958_v16 = vpop.f32.mrf.mxu2 }
 0xc30   : > { %v6319_v47 = vmax.f32 %v5935_v23, 0.0  ;;  %v7462_v5 = vmax.f32 %v7078_v59, 0.0  ;;  %v8157_v3 = vpack.c.bf16 %v7958_v16, %v7958_v16  ;;  %v9017_v23 = vsel %vm4519_vm3, %v11730_v0, 0 }
 0xc31   : > { %v5537_v10 = vpop.f32.mrf.mxu3  ;;  %v6653_v8 = vpop.f32.mrf.mxu0 }
 0xc32   : > { %v6388_v37 = vpack.c.bf16 %v6319_v47, %v6318_v60  ;;  %v7540_v55 = vpack.c.bf16 %v7462_v5, %v7461_v17  ;;  %v8285_v46 = vunpack.c.l.bf16 %v8157_v3  ;;  %v5680_v44 = vpack.c.bf16 %v5537_v10, %v5537_v10 }
 0xc33   : > { %9153 = vmatpush.bf16.xpose.msra.mxu1 %v9023_v27  ;;  %v6823_v49 = vpack.c.bf16 %v6653_v8, %v6653_v8 }
 0xc34   : > { %v8413_v25 = vadd.f32 %v8285_v46, %v10228_v56  ;;  %6692 = vmatmul.bf16.gmra.mxu0 %v6388_v37  ;;  %9607 = vmatmul.msk.bf16.gmra.mxu2 %vm3159_vm2, %v7540_v55  ;;  %v5808_v57 = vunpack.c.l.bf16 %v5680_v44  ;;  %v9014_v37 = vsel %vm4519_vm3, %v11716_v51, 0 }
 0xc35   : > { %v6951_v1 = vunpack.c.l.bf16 %v6823_v49 }
 0xc36   : > { %v8797_v35 = vmax.f32 %v8413_v25, 0.0  ;;  %v5936_v15 = vadd.f32 %v5808_v57, %v9934_v43 }
 0xc37   : > { %v7961_v39 = vpop.f32.mrf.mxu2  ;;  %v7079_v26 = vadd.f32 %v6951_v1, %v9991_v53 }
 0xc38   : > { %v11768_v7 = vpack.c.bf16 %v8797_v35, %v8796_v4  ;;  %v8158_v22 = vpack.c.bf16 %v7961_v39, %v7961_v39  ;;  %v6320_v40 = vmax.f32 %v5936_v15, 0.0 }
 0xc39   : > { %v5539_v20 = vpop.f32.mrf.mxu3  ;;  %v6655_v50 = vpop.f32.mrf.mxu0  ;;  %v7463_v52 = vmax.f32 %v7079_v26, 0.0 }
 0xc3a   : > { %v5681_v19 = vpack.c.bf16 %v5539_v20, %v5539_v20  ;;  %v6824_v58 = vpack.c.bf16 %v6655_v50, %v6655_v50  ;;  %v8286_v6 = vunpack.c.l.bf16 %v8158_v22 }
 0xc3b   : > { %9154 = vmatpush.bf16.xpose.msra.mxu1 %v9020_v32 }
 0xc3c   : > { %v5809_v38 = vunpack.c.l.bf16 %v5681_v19  ;;  %v6952_v63 = vunpack.c.l.bf16 %v6824_v58  ;;  %v8414_v34 = vadd.f32 %v8286_v6, %v10228_v56  ;;  %v9011_v58 = vsel %vm4519_vm3, %v11700_v24, 0 }
 0xc3e   : > { %v5937_v30 = vadd.f32 %v5809_v38, %v9934_v43  ;;  %v7080_v61 = vadd.f32 %v6952_v63, %v9991_v53  ;;  %v8798_v60 = vmax.f32 %v8414_v34, 0.0 }
 0xc3f   : > { %v7963_v11 = vpop.f32.mrf.mxu2 }
 0xc40   : > { %v6321_v12 = vmax.f32 %v5937_v30, 0.0  ;;  %v7464_v45 = vmax.f32 %v7080_v61, 0.0  ;;  %v8159_v29 = vpack.c.bf16 %v7963_v11, %v7963_v11 }
 0xc41   : > { %v5542_v42 = vpop.f32.mrf.mxu3  ;;  %v6658_v31 = vpop.f32.mrf.mxu0 }
 0xc42   : > { %v6389_v48 = vpack.c.bf16 %v6321_v12, %v6320_v40  ;;  %v7541_v54 = vpack.c.bf16 %v7464_v45, %v7463_v52  ;;  %v8287_v36 = vunpack.c.l.bf16 %v8159_v29  ;;  %v5682_v62 = vpack.c.bf16 %v5542_v42, %v5542_v42 }
 0xc43   : > { %9155 = vmatpush.bf16.xpose.msra.mxu1 %v9017_v23  ;;  %v6825_v21 = vpack.c.bf16 %v6658_v31, %v6658_v31  ;;  %v9008_v29 = vsel %vm4519_vm3, %v11684_v33, 0 }
 0xc44   : > { %v8415_v59 = vadd.f32 %v8287_v36, %v10228_v56  ;;  %6697 = vmatmul.bf16.gmra.mxu0 %v6389_v48  ;;  %9608 = vmatmul.msk.bf16.gmra.mxu2 %vm3159_vm2, %v7541_v54  ;;  %v5810_v16 = vunpack.c.l.bf16 %v5682_v62 }
 0xc45   : > { %v6953_v17 = vunpack.c.l.bf16 %v6825_v21 }
 0xc46   : > { %v8799_v47 = vmax.f32 %v8415_v59, 0.0  ;;  %v5938_v41 = vadd.f32 %v5810_v16, %v9934_v43 }
 0xc47   : > { %v7966_v28 = vpop.f32.mrf.mxu2  ;;  %v7081_v46 = vadd.f32 %v6953_v17, %v9991_v53 }
 0xc48   : > { %v11780_v3 = vpack.c.bf16 %v8799_v47, %v8798_v60  ;;  %v8160_v8 = vpack.c.bf16 %v7966_v28, %v7966_v28  ;;  %v6322_v49 = vmax.f32 %v5938_v41, 0.0 }
 0xc49   : > { %v5544_v5 = vpop.f32.mrf.mxu3  ;;  %v6660_v14 = vpop.f32.mrf.mxu0  ;;  %v7465_v18 = vmax.f32 %v7081_v46, 0.0 }
 0xc4a   : > { %v5683_v10 = vpack.c.bf16 %v5544_v5, %v5544_v5  ;;  %v6826_v0 = vpack.c.bf16 %v6660_v14, %v6660_v14  ;;  %v8288_v2 = vunpack.c.l.bf16 %v8160_v8  ;;  %v9005_v8 = vsel %vm4519_vm3, %v11669_v13, 0 }
 0xc4b   : > { %9156 = vmatpush.bf16.xpose.msra.mxu1 %v9014_v37 }
 0xc4c   : > { %v5811_v55 = vunpack.c.l.bf16 %v5683_v10  ;;  %v6954_v27 = vunpack.c.l.bf16 %v6826_v0  ;;  %v8416_v19 = vadd.f32 %v8288_v2, %v10228_v56 }
 0xc4e   : > { %v5939_v44 = vadd.f32 %v5811_v55, %v9934_v43  ;;  %v7082_v25 = vadd.f32 %v6954_v27, %v9991_v53  ;;  %v8800_v26 = vmax.f32 %v8416_v19, 0.0 }
 0xc4f   : > { %v7968_v35 = vpop.f32.mrf.mxu2 }
 0xc50   : > { %v6323_v4 = vmax.f32 %v5939_v44, 0.0  ;;  %v7466_v57 = vmax.f32 %v7082_v25, 0.0  ;;  %v8161_v39 = vpack.c.bf16 %v7968_v35, %v7968_v35 }
 0xc51   : > { %v5547_v1 = vpop.f32.mrf.mxu3  ;;  %v6663_v51 = vpop.f32.mrf.mxu0 }
 0xc52   : > { %v6390_v20 = vpack.c.bf16 %v6323_v4, %v6322_v49  ;;  %v7542_v50 = vpack.c.bf16 %v7466_v57, %v7465_v18  ;;  %v8289_v22 = vunpack.c.l.bf16 %v8161_v39  ;;  %v5684_v32 = vpack.c.bf16 %v5547_v1, %v5547_v1  ;;  %v11811_v57 = vld [vmem:[%s12017_s7] sm:$0x1] }
 0xc53   : > { %9157 = vmatpush.bf16.xpose.msra.mxu1 %v9011_v58  ;;  %v6827_v38 = vpack.c.bf16 %v6663_v51, %v6663_v51 }
 0xc54   : > { %v8417_v15 = vadd.f32 %v8289_v22, %v10228_v56  ;;  %6702 = vmatmul.bf16.gmra.mxu0 %v6390_v20  ;;  %9609 = vmatmul.msk.bf16.gmra.mxu2 %vm3159_vm2, %v7542_v50  ;;  %v5812_v30 = vunpack.c.l.bf16 %v5684_v32 }
 0xc55   : > { %v6955_v61 = vunpack.c.l.bf16 %v6827_v38 }
 0xc56   : > { %v8801_v63 = vmax.f32 %v8417_v15, 0.0  ;;  %v5940_v42 = vadd.f32 %v5812_v30, %v9934_v43 }
 0xc57   : > { %v7971_v6 = vpop.f32.mrf.mxu2  ;;  %v7083_v48 = vadd.f32 %v6955_v61, %v9991_v53 }
 0xc58   : > { %v11793_v12 = vpack.c.bf16 %v8801_v63, %v8800_v26  ;;  %v8162_v45 = vpack.c.bf16 %v7971_v6, %v7971_v6  ;;  %v6324_v62 = vmax.f32 %v5940_v42, 0.0 }
 0xc59   : > { %v5549_v40 = vpop.f32.mrf.mxu3  ;;  %v6665_v52 = vpop.f32.mrf.mxu0  ;;  %v7467_v60 = vmax.f32 %v7083_v48, 0.0 }
 0xc5a   : > { %v5685_v11 = vpack.c.bf16 %v5549_v40, %v5549_v40  ;;  %v6828_v24 = vpack.c.bf16 %v6665_v52, %v6665_v52  ;;  %v8290_v36 = vunpack.c.l.bf16 %v8162_v45 }
 0xc5b   : > { %9158 = vmatpush.bf16.xpose.msra.mxu1 %v9008_v29 }
 0xc5c   : > { %v5813_v31 = vunpack.c.l.bf16 %v5685_v11  ;;  %v6956_v34 = vunpack.c.l.bf16 %v6828_v24  ;;  %v8418_v5 = vadd.f32 %v8290_v36, %v10228_v56 }
 0xc5e   : > { %v5941_v54 = vadd.f32 %v5813_v31, %v9934_v43  ;;  %v7084_v23 = vadd.f32 %v6956_v34, %v9991_v53  ;;  %v8802_v55 = vmax.f32 %v8418_v5, 0.0 }
 0xc5f   : > { %v7973_v21 = vpop.f32.mrf.mxu2 }
 0xc60   : > { %v6325_v59 = vmax.f32 %v5941_v54, 0.0  ;;  %v7468_v47 = vmax.f32 %v7084_v23, 0.0  ;;  %v8163_v16 = vpack.c.bf16 %v7973_v21, %v7973_v21 }
 0xc61   : > { %v5552_v28 = vpop.f32.mrf.mxu3  ;;  %v6668_v33 = vpop.f32.mrf.mxu0 }
 0xc62   : > { %v6391_v17 = vpack.c.bf16 %v6325_v59, %v6324_v62  ;;  %v7543_v10 = vpack.c.bf16 %v7468_v47, %v7467_v60  ;;  %v8291_v14 = vunpack.c.l.bf16 %v8163_v16  ;;  %v5686_v0 = vpack.c.bf16 %v5552_v28, %v5552_v28 }
 0xc63   : > { %9159 = vmatpush.bf16.xpose.msra.mxu1 %v9005_v8  ;;  %v6829_v41 = vpack.c.bf16 %v6668_v33, %v6668_v33 }
 0xc64   : > { %v8419_v37 = vadd.f32 %v8291_v14, %v10228_v56  ;;  %6707 = vmatmul.bf16.gmra.mxu0 %v6391_v17  ;;  %9610 = vmatmul.msk.bf16.gmra.mxu2 %vm3159_vm2, %v7543_v10  ;;  %v5814_v27 = vunpack.c.l.bf16 %v5686_v0 }
 0xc65   : > { %v6957_v2 = vunpack.c.l.bf16 %v6829_v41 }
 0xc66   : > { %v8803_v46 = vmax.f32 %v8419_v37, 0.0  ;;  %v5942_v39 = vadd.f32 %v5814_v27, %v9934_v43 }
 0xc67   : > { %v7976_v44 = vpop.f32.mrf.mxu2  ;;  %v7085_v51 = vadd.f32 %v6957_v2, %v9991_v53 }
 0xc68   : > { %v11806_v49 = vpack.c.bf16 %v8803_v46, %v8802_v55  ;;  %v8164_v18 = vpack.c.bf16 %v7976_v44, %v7976_v44  ;;  %v6326_v58 = vmax.f32 %v5942_v39, 0.0 }
 0xc69   : > { %v5554_v25 = vpop.f32.mrf.mxu3  ;;  %v6670_v35 = vpop.f32.mrf.mxu0  ;;  %v7469_v38 = vmax.f32 %v7085_v51, 0.0 }
 0xc6a   : > { %v5687_v4 = vpack.c.bf16 %v5554_v25, %v5554_v25  ;;  %v6830_v13 = vpack.c.bf16 %v6670_v35, %v6670_v35  ;;  %9626 = vmatmul.msk.bf16.vlgmr.msra.gmra.mxu1 %vm4519_vm3, %v11811_v57  ;;  %v8292_v50 = vunpack.c.l.bf16 %v8164_v18 }
 0xc6c   : > { %v5815_v1 = vunpack.c.l.bf16 %v5687_v4  ;;  %v6958_v20 = vunpack.c.l.bf16 %v6830_v13  ;;  %v8420_v40 = vadd.f32 %v8292_v50, %v10228_v56 }
 0xc6e   : > { %v5943_v19 = vadd.f32 %v5815_v1, %v9934_v43  ;;  %v7086_v22 = vadd.f32 %v6958_v20, %v9991_v53  ;;  %v8804_v42 = vmax.f32 %v8420_v40, 0.0 }
 0xc6f   : > { %v7978_v15 = vpop.f32.mrf.mxu2 }
 0xc70   : > { %v6327_v32 = vmax.f32 %v5943_v19, 0.0  ;;  %v7470_v26 = vmax.f32 %v7086_v22, 0.0  ;;  %v8165_v63 = vpack.c.bf16 %v7978_v15, %v7978_v15 }
 0xc71   : > { %v5557_v30 = vpop.f32.mrf.mxu3  ;;  %v6673_v6 = vpop.f32.mrf.mxu0 }
 0xc72   : > { %v6392_v61 = vpack.c.bf16 %v6327_v32, %v6326_v58  ;;  %v7544_v11 = vpack.c.bf16 %v7470_v26, %v7469_v38  ;;  %v8293_v52 = vunpack.c.l.bf16 %v8165_v63  ;;  %v5688_v45 = vpack.c.bf16 %v5557_v30, %v5557_v30 }
 0xc73   : > { %v6831_v29 = vpack.c.bf16 %v6673_v6, %v6673_v6 }
 0xc74   : > { %v8421_v24 = vadd.f32 %v8293_v52, %v10228_v56  ;;  %6712 = vmatmul.bf16.gmra.mxu0 %v6392_v61  ;;  %9611 = vmatmul.msk.bf16.gmra.mxu2 %vm3159_vm2, %v7544_v11  ;;  %v5816_v48 = vunpack.c.l.bf16 %v5688_v45 }
 0xc75   : > { %v6959_v54 = vunpack.c.l.bf16 %v6831_v29 }
 0xc76   : > { %v8805_v31 = vmax.f32 %v8421_v24, 0.0  ;;  %v5944_v60 = vadd.f32 %v5816_v48, %v9934_v43 }
 0xc77   : > { %v11822_v34 = vpop.f32.mrf.mxu2  ;;  %v7087_v16 = vadd.f32 %v6959_v54, %v9991_v53 }
 0xc78   : > { %v11824_v23 = vpack.c.bf16 %v8805_v31, %v8804_v42  ;;  %v6328_v5 = vmax.f32 %v5944_v60, 0.0 }
 0xc79   : > { %v5559_v36 = vpop.f32.mrf.mxu3  ;;  %v6675_v59 = vpop.f32.mrf.mxu0  ;;  %v7471_v8 = vmax.f32 %v7087_v16, 0.0  ;;  %v8166_v16 = vpack.c.bf16 %v11822_v34, %v11822_v34 }
 0xc7a   : > { %v5689_v62 = vpack.c.bf16 %v5559_v36, %v5559_v36  ;;  %v6832_v21 = vpack.c.bf16 %v6675_v59, %v6675_v59 }
 0xc7c   : > { %v5817_v47 = vunpack.c.l.bf16 %v5689_v62  ;;  %v6960_v28 = vunpack.c.l.bf16 %v6832_v21 }
 0xc7e   : > { %v5945_v33 = vadd.f32 %v5817_v47, %v9934_v43  ;;  %v7088_v17 = vadd.f32 %v6960_v28, %v9991_v53 }
 0xc7f   : > { %v7983_v14 = vpop.f32.mrf.mxu2 }
 0xc80   : > { %v6329_v10 = vmax.f32 %v5945_v33, 0.0  ;;  %v7472_v0 = vmax.f32 %v7088_v17, 0.0  ;;  %v8167_v62 = vpack.c.bf16 %v7983_v14, %v7983_v14  ;;  %v8294_v14 = vunpack.c.l.bf16 %v8166_v16 }
 0xc81   : > { %v6678_v37 = vpop.f32.mrf.mxu0 }
 0xc82   : > { %v6393_v41 = vpack.c.bf16 %v6329_v10, %v6328_v5  ;;  %v7545_v55 = vpack.c.bf16 %v7472_v0, %v7471_v8  ;;  %v6833_v46 = vpack.c.bf16 %v6678_v37, %v6678_v37  ;;  %v8295_v5 = vunpack.c.l.bf16 %v8167_v62 }
 0xc84   : > { %6717 = vmatmul.bf16.gmra.mxu0 %v6393_v41  ;;  %9612 = vmatmul.msk.bf16.gmra.mxu2 %vm3159_vm2, %v7545_v55  ;;  %v6961_v44 = vunpack.c.l.bf16 %v6833_v46 }
 0xc86   : > { %v7089_v43 = vadd.f32 %v6961_v44, %v9991_v53  ;;  %v8423_v44 = vadd.f32 %v8295_v5, %v10228_v56 }
 0xc87   : > { %v7986_v27 = vpop.f32.mrf.mxu2 }
 0xc88   : > { %v7473_v13 = vmax.f32 %v7089_v43, 0.0  ;;  %v8168_v61 = vpack.c.bf16 %v7986_v27, %v7986_v27 }
 0xc89   : > { %v6680_v2 = vpop.f32.mrf.mxu0 }
 0xc8a   : > { %v6834_v25 = vpack.c.bf16 %v6680_v2, %v6680_v2  ;;  %v8296_v48 = vunpack.c.l.bf16 %v8168_v61 }
 0xc8c   : > { %v6962_v4 = vunpack.c.l.bf16 %v6834_v25  ;;  %v8424_v28 = vadd.f32 %v8296_v48, %v10228_v56 }
 0xc8e   : > { %v7090_v35 = vadd.f32 %v6962_v4, %v9991_v53  ;;  %v8808_v55 = vmax.f32 %v8424_v28, 0.0  ;;  %v8422_v4 = vadd.f32 %v8294_v14, %v10228_v56  ;;  %v9041_v28 = vsel %vm4519_vm3, %v11824_v23, 0 }
 0xc8f   : > { %v7988_v18 = vpop.f32.mrf.mxu2 }
 0xc90   : > { %v7474_v39 = vmax.f32 %v7090_v35, 0.0  ;;  %v8169_v26 = vpack.c.bf16 %v7988_v18, %v7988_v18 }
 0xc91   : > { %v6683_v1 = vpop.f32.mrf.mxu0 }
 0xc92   : > { %v7546_v51 = vpack.c.bf16 %v7474_v39, %v7473_v13  ;;  %v6835_v20 = vpack.c.bf16 %v6683_v1, %v6683_v1  ;;  %v8297_v24 = vunpack.c.l.bf16 %v8169_v26  ;;  %v8807_v39 = vmax.f32 %v8423_v44, 0.0 }
 0xc94   : > { %9613 = vmatmul.msk.bf16.gmra.mxu2 %vm3159_vm2, %v7546_v51  ;;  %v6963_v50 = vunpack.c.l.bf16 %v6835_v20  ;;  %v8425_v59 = vadd.f32 %v8297_v24, %v10228_v56 }
 0xc96   : > { %v7091_v15 = vadd.f32 %v6963_v50, %v9991_v53  ;;  %v8809_v8 = vmax.f32 %v8425_v59, 0.0 }
 0xc97   : > { %v7991_v19 = vpop.f32.mrf.mxu2 }
 0xc98   : > { %v8170_v58 = vpack.c.bf16 %v7991_v19, %v7991_v19  ;;  %v7475_v40 = vmax.f32 %v7091_v15, 0.0  ;;  %v8890_v25 = vpack.c.bf16 %v8809_v8, %v8808_v55 }
 0xc99   : > { %v6685_v22 = vpop.f32.mrf.mxu0 }
 0xc9a   : > { %v6836_v32 = vpack.c.bf16 %v6685_v22, %v6685_v22  ;;  %v8298_v63 = vunpack.c.l.bf16 %v8170_v58  ;;  %v9047_v50 = vsel %vm4519_vm3, %v8890_v25, 0  ;;  %v8806_v22 = vmax.f32 %v8422_v4, 0.0 }
 0xc9c   : > { %v6964_v38 = vunpack.c.l.bf16 %v6836_v32  ;;  %v8426_v29 = vadd.f32 %v8298_v63, %v10228_v56  ;;  %v8889_v26 = vpack.c.bf16 %v8807_v39, %v8806_v22 }
 0xc9e   : > { %v7092_v30 = vadd.f32 %v6964_v38, %v9991_v53  ;;  %v8810_v21 = vmax.f32 %v8426_v29, 0.0 }
 0xc9f   : > { %v7993_v6 = vpop.f32.mrf.mxu2 }
 0xca0   : > { %v7476_v11 = vmax.f32 %v7092_v30, 0.0  ;;  %v8171_v52 = vpack.c.bf16 %v7993_v6, %v7993_v6 }
 0xca1   : > { %v6688_v45 = vpop.f32.mrf.mxu0 }
 0xca2   : > { %v7547_v42 = vpack.c.bf16 %v7476_v11, %v7475_v40  ;;  %v8299_v31 = vunpack.c.l.bf16 %v8171_v52  ;;  %v6837_v36 = vpack.c.bf16 %v6688_v45, %v6688_v45  ;;  %v9109_v40 = vpop.f32.mrf.mxu1  ;;  %v9044_v45 = vsel %vm4519_vm3, %v8889_v26, 0 }
 0xca3   : > { %v9110_v39 = vadd.f32 %v9109_v40, %v10880_v9 }
 0xca4   : > { %v8427_v54 = vadd.f32 %v8299_v31, %v10228_v56  ;;  %9614 = vmatmul.msk.bf16.gmra.mxu2 %vm3159_vm2, %v7547_v42  ;;  %v6965_v33 = vunpack.c.l.bf16 %v6837_v36 }
 0xca6   : > { %v8811_v60 = vmax.f32 %v8427_v54, 0.0  ;;  %v7093_v46 = vadd.f32 %v6965_v33, %v9991_v53 }
 0xca7   : > { %v7996_v47 = vpop.f32.mrf.mxu2 }
 0xca8   : > { %v8891_v17 = vpack.c.bf16 %v8811_v60, %v8810_v21  ;;  %v8172_v0 = vpack.c.bf16 %v7996_v47, %v7996_v47  ;;  %v7477_v35 = vmax.f32 %v7093_v46, 0.0 }
 0xca9   : > { %v6690_v10 = vpop.f32.mrf.mxu0 }
 0xcaa   : > { %v6838_v37 = vpack.c.bf16 %v6690_v10, %v6690_v10  ;;  %v9050_v41 = vsel %vm4519_vm3, %v8891_v17, 0  ;;  %v8300_v34 = vunpack.c.l.bf16 %v8172_v0  ;;  %v9111_v21 = vpop.f32.mrf.mxu1 }
 0xcab   : > { %9165 = vmatpush.bf16.xpose.msrb.mxu1 %v9050_v41 }
 0xcac   : > { %v6966_v27 = vunpack.c.l.bf16 %v6838_v37  ;;  %v8428_v51 = vadd.f32 %v8300_v34, %v10228_v56 }
 0xcae   : > { %v7094_v2 = vadd.f32 %v6966_v27, %v9991_v53  ;;  %v8812_v15 = vmax.f32 %v8428_v51, 0.0  ;;  %v9038_v27 = vsel %vm4519_vm3, %v11806_v49, 0 }
 0xcaf   : > { %v7998_v43 = vpop.f32.mrf.mxu2 }
 0xcb0   : > { %v7478_v18 = vmax.f32 %v7094_v2, 0.0  ;;  %v8173_v13 = vpack.c.bf16 %v7998_v43, %v7998_v43 }
 0xcb1   : > { %v6693_v1 = vpop.f32.mrf.mxu0 }
 0xcb2   : > { %v7548_v20 = vpack.c.bf16 %v7478_v18, %v7477_v35  ;;  %v8301_v19 = vunpack.c.l.bf16 %v8173_v13  ;;  %v6839_v32 = vpack.c.bf16 %v6693_v1, %v6693_v1  ;;  %v9122_v14 = vpop.f32.mrf.mxu1  ;;  %v9035_v13 = vsel %vm4519_vm3, %v11793_v12, 0 }
 0xcb3   : > { %9166 = vmatpush.bf16.xpose.msrb.mxu1 %v9047_v50 }
 0xcb4   : > { %v8429_v58 = vadd.f32 %v8301_v19, %v10228_v56  ;;  %9615 = vmatmul.msk.bf16.gmra.mxu2 %vm3159_vm2, %v7548_v20  ;;  %v6967_v30 = vunpack.c.l.bf16 %v6839_v32  ;;  %v9123_v19 = vadd.f32 %v9122_v14, %v10880_v9 }
 0xcb6   : > { %v8813_v38 = vmax.f32 %v8429_v58, 0.0  ;;  %v7095_v24 = vadd.f32 %v6967_v30, %v9991_v53  ;;  %v9212_v58 = vrot.slane %v9123_v19, 7 }
 0xcb7   : > { %v8001_v63 = vpop.f32.mrf.mxu2 }
 0xcb8   : > { %v11852_v6 = vpack.c.bf16 %v8813_v38, %v8812_v15  ;;  %v8174_v11 = vpack.c.bf16 %v8001_v63, %v8001_v63  ;;  %v7479_v54 = vmax.f32 %v7095_v24, 0.0  ;;  %v9219_v12 = vsel %vm4834_vm4, %v9110_v39, %v9212_v58 }
 0xcb9   : > { %v6695_v61 = vpop.f32.mrf.mxu0 }
 0xcba   : > { %v6840_v52 = vpack.c.bf16 %v6695_v61, %v6695_v61  ;;  %v8302_v42 = vunpack.c.l.bf16 %v8174_v11  ;;  %v9124_v1 = vpop.f32.mrf.mxu1 }
 0xcbb   : > { %9167 = vmatpush.bf16.xpose.msrb.mxu1 %v9044_v45 }
 0xcbc   : > { %v6968_v29 = vunpack.c.l.bf16 %v6840_v52  ;;  %v8430_v60 = vadd.f32 %v8302_v42, %v10228_v56  ;;  %v9032_v52 = vsel %vm4519_vm3, %v11780_v3, 0  ;;  %v9029_v3 = vsel %vm4519_vm3, %v11768_v7, 0 }
 0xcbe   : > { %v7096_v31 = vadd.f32 %v6968_v29, %v9991_v53  ;;  %v8814_v5 = vmax.f32 %v8430_v60, 0.0 }
 0xcbf   : > { %v8003_v48 = vpop.f32.mrf.mxu2 }
 0xcc0   : > { %v7480_v36 = vmax.f32 %v7096_v31, 0.0  ;;  %v8175_v62 = vpack.c.bf16 %v8003_v48, %v8003_v48 }
 0xcc1   : > { %v6698_v59 = vpop.f32.mrf.mxu0 }
 0xcc2   : > { %v7549_v47 = vpack.c.bf16 %v7480_v36, %v7479_v54  ;;  %v8303_v16 = vunpack.c.l.bf16 %v8175_v62  ;;  %v6841_v17 = vpack.c.bf16 %v6698_v59, %v6698_v59  ;;  %v9135_v61 = vpop.f32.mrf.mxu1 }
 0xcc3   : > { %9168 = vmatpush.bf16.xpose.msrb.mxu1 %v9041_v28 }
 0xcc4   : > { %v8431_v33 = vadd.f32 %v8303_v16, %v10228_v56  ;;  %9616 = vmatmul.msk.bf16.gmra.mxu2 %vm3159_vm2, %v7549_v47  ;;  %v6969_v0 = vunpack.c.l.bf16 %v6841_v17 }
 0xcc6   : > { %v8815_v10 = vmax.f32 %v8431_v33, 0.0  ;;  %v7097_v23 = vadd.f32 %v6969_v0, %v9991_v53 }
 0xcc7   : > { %v8006_v8 = vpop.f32.mrf.mxu2 }
 0xcc8   : > { %v11862_v37 = vpack.c.bf16 %v8815_v10, %v8814_v5  ;;  %v8176_v55 = vpack.c.bf16 %v8006_v8, %v8006_v8  ;;  %v7481_v43 = vmax.f32 %v7097_v23, 0.0  ;;  %v9136_v5 = vadd.f32 %v9135_v61, %v10880_v9 }
 0xcc9   : > { %v6700_v41 = vpop.f32.mrf.mxu0 }
 0xcca   : > { %v6842_v46 = vpack.c.bf16 %v6700_v41, %v6700_v41  ;;  %v8304_v34 = vunpack.c.l.bf16 %v8176_v55  ;;  %v9137_v59 = vpop.f32.mrf.mxu1 }
 0xccb   : > { %9169 = vmatpush.bf16.xpose.msrb.mxu1 %v9038_v27  ;;  %v9213_v27 = vrot.slane %v9136_v5, 6 }
 0xccc   : > { %v6970_v44 = vunpack.c.l.bf16 %v6842_v46  ;;  %v8432_v49 = vadd.f32 %v8304_v34, %v10228_v56 }
 0xcce   : > { %v7098_v2 = vadd.f32 %v6970_v44, %v9991_v53  ;;  %v8816_v32 = vmax.f32 %v8432_v49, 0.0 }
 0xccf   : > { %v8008_v25 = vpop.f32.mrf.mxu2 }
 0xcd0   : > { %v7482_v4 = vmax.f32 %v7098_v2, 0.0  ;;  %v8177_v35 = vpack.c.bf16 %v8008_v25, %v8008_v25 }
 0xcd1   : > { %v6703_v18 = vpop.f32.mrf.mxu0 }
 0xcd2   : > { %v7550_v51 = vpack.c.bf16 %v7482_v4, %v7481_v43  ;;  %v8305_v20 = vunpack.c.l.bf16 %v8177_v35  ;;  %v6843_v22 = vpack.c.bf16 %v6703_v18, %v6703_v18  ;;  %v9148_v14 = vpop.f32.mrf.mxu1 }
 0xcd3   : > { %9170 = vmatpush.bf16.xpose.msrb.mxu1 %v9035_v13  ;;  %v9149_v7 = vadd.f32 %v9148_v14, %v10880_v9 }
 0xcd4   : > { %v8433_v50 = vadd.f32 %v8305_v20, %v10228_v56  ;;  %9617 = vmatmul.msk.bf16.gmra.mxu2 %vm3159_vm2, %v7550_v51  ;;  %v6971_v26 = vunpack.c.l.bf16 %v6843_v22 }
 0xcd5   : > { %v9214_v34 = vrot.slane %v9149_v7, 5 }
 0xcd6   : > { %v8817_v15 = vmax.f32 %v8433_v50, 0.0  ;;  %v7099_v45 = vadd.f32 %v6971_v26, %v9991_v53 }
 0xcd7   : > { %v8011_v38 = vpop.f32.mrf.mxu2  ;;  %v9220_v43 = vsel %vm4836_vm5, %v9213_v27, %v9214_v34 }
 0xcd8   : > { %v11876_v63 = vpack.c.bf16 %v8817_v15, %v8816_v32  ;;  %v8178_v40 = vpack.c.bf16 %v8011_v38, %v8011_v38  ;;  %v7483_v48 = vmax.f32 %v7099_v45, 0.0  ;;  %v11897_v35 = vsel %vm4838_vm6, %v9219_v12, %v9220_v43 }
 0xcd9   : > { %v6705_v30 = vpop.f32.mrf.mxu0 }
 0xcda   : > { %v6844_v11 = vpack.c.bf16 %v6705_v30, %v6705_v30  ;;  %v8306_v29 = vunpack.c.l.bf16 %v8178_v40  ;;  %v9150_v49 = vpop.f32.mrf.mxu1 }
 0xcdb   : > { %9171 = vmatpush.bf16.xpose.msrb.mxu1 %v9032_v52 }
 0xcdc   : > { %v6972_v24 = vunpack.c.l.bf16 %v6844_v11  ;;  %v8434_v21 = vadd.f32 %v8306_v29, %v10228_v56 }
 0xcde   : > { %v7100_v42 = vadd.f32 %v6972_v24, %v9991_v53  ;;  %v8818_v33 = vmax.f32 %v8434_v21, 0.0 }
 0xcdf   : > { %v8013_v31 = vpop.f32.mrf.mxu2 }
 0xce0   : > { %v7484_v54 = vmax.f32 %v7100_v42, 0.0  ;;  %v8179_v36 = vpack.c.bf16 %v8013_v31, %v8013_v31 }
 0xce1   : > { %v6708_v62 = vpop.f32.mrf.mxu0 }
 0xce2   : > { %v7551_v60 = vpack.c.bf16 %v7484_v54, %v7483_v48  ;;  %v8307_v47 = vunpack.c.l.bf16 %v8179_v36  ;;  %v6845_v28 = vpack.c.bf16 %v6708_v62, %v6708_v62 }
 0xce3   : > { %9172 = vmatpush.bf16.xpose.msrb.mxu1 %v9029_v3 }
 0xce4   : > { %v8435_v16 = vadd.f32 %v8307_v47, %v10228_v56  ;;  %9618 = vmatmul.msk.bf16.gmra.mxu2 %vm3159_vm2, %v7551_v60  ;;  %v6973_v8 = vunpack.c.l.bf16 %v6845_v28 }
 0xce6   : > { %v8819_v17 = vmax.f32 %v8435_v16, 0.0  ;;  %v7101_v23 = vadd.f32 %v6973_v8, %v9991_v53 }
 0xce7   : > { %v8016_v10 = vpop.f32.mrf.mxu2 }
 0xce8   : > { %v11888_v0 = vpack.c.bf16 %v8819_v17, %v8818_v33  ;;  %v8180_v55 = vpack.c.bf16 %v8016_v10, %v8016_v10  ;;  %v7485_v18 = vmax.f32 %v7101_v23, 0.0 }
 0xce9   : > { %v6710_v41 = vpop.f32.mrf.mxu0 }
 0xcea   : > { %v6846_v46 = vpack.c.bf16 %v6710_v41, %v6710_v41  ;;  %9627 = vmatmul.msk.bf16.vlgmr.msrb.gmra.mxu1 %vm4519_vm3, %v11811_v57  ;;  %v8308_v2 = vunpack.c.l.bf16 %v8180_v55 }
 0xcec   : > { %v6974_v44 = vunpack.c.l.bf16 %v6846_v46  ;;  %v8436_v51 = vadd.f32 %v8308_v2, %v10228_v56 }
 0xcee   : > { %v7102_v25 = vadd.f32 %v6974_v44, %v9991_v53  ;;  %v8820_v58 = vmax.f32 %v8436_v51, 0.0 }
 0xcef   : > { %v8018_v4 = vpop.f32.mrf.mxu2 }
 0xcf0   : > { %v7486_v13 = vmax.f32 %v7102_v25, 0.0  ;;  %v8181_v39 = vpack.c.bf16 %v8018_v4, %v8018_v4 }
 0xcf1   : > { %v6713_v1 = vpop.f32.mrf.mxu0 }
 0xcf2   : > { %v7552_v20 = vpack.c.bf16 %v7486_v13, %v7485_v18  ;;  %v8309_v19 = vunpack.c.l.bf16 %v8181_v39  ;;  %v6847_v22 = vpack.c.bf16 %v6713_v1, %v6713_v1 }
 0xcf4   : > { %v8437_v50 = vadd.f32 %v8309_v19, %v10228_v56  ;;  %9619 = vmatmul.msk.bf16.gmra.mxu2 %vm3159_vm2, %v7552_v20  ;;  %v6975_v38 = vunpack.c.l.bf16 %v6847_v22 }
 0xcf6   : > { %v8821_v32 = vmax.f32 %v8437_v50, 0.0  ;;  %v7103_v61 = vadd.f32 %v6975_v38, %v9991_v53 }
 0xcf7   : > { %v8021_v15 = vpop.f32.mrf.mxu2 }
 0xcf8   : > { %v11902_v12 = vpack.c.bf16 %v8821_v32, %v8820_v58  ;;  %v7487_v45 = vmax.f32 %v7103_v61, 0.0  ;;  %v8182_v43 = vpack.c.bf16 %v8021_v15, %v8021_v15 }
 0xcf9   : > { %v6715_v26 = vpop.f32.mrf.mxu0 }
 0xcfa   : > { %v6848_v30 = vpack.c.bf16 %v6715_v26, %v6715_v26  ;;  %v8310_v51 = vunpack.c.l.bf16 %v8182_v43 }
 0xcfc   : > { %v6976_v40 = vunpack.c.l.bf16 %v6848_v30  ;;  %v8438_v32 = vadd.f32 %v8310_v51, %v10228_v56 }
 0xcfe   : > { %v7104_v11 = vadd.f32 %v6976_v40, %v9991_v53  ;;  %v8822_v40 = vmax.f32 %v8438_v32, 0.0 }
 0xcff   : > { %v8023_v52 = vpop.f32.mrf.mxu2 }
 0xd00   : > { %v7488_v24 = vmax.f32 %v7104_v11, 0.0  ;;  %v8183_v23 = vpack.c.bf16 %v8023_v52, %v8023_v52 }
 0xd01   : > { %v6718_v29 = vpop.f32.mrf.mxu0 }
 0xd02   : > { %v7553_v42 = vpack.c.bf16 %v7488_v24, %v7487_v45  ;;  %v6849_v31 = vpack.c.bf16 %v6718_v29, %v6718_v29  ;;  %v8311_v13 = vunpack.c.l.bf16 %v8183_v23 }
 0xd04   : > { %9620 = vmatmul.msk.bf16.gmra.mxu2 %vm3159_vm2, %v7553_v42  ;;  %v6977_v54 = vunpack.c.l.bf16 %v6849_v31  ;;  %v8439_v19 = vadd.f32 %v8311_v13, %v10228_v56 }
 0xd06   : > { %v7105_v59 = vadd.f32 %v6977_v54, %v9991_v53  ;;  %v8823_v15 = vmax.f32 %v8439_v19, 0.0 }
 0xd07   : > { %v8026_v48 = vpop.f32.mrf.mxu2 }
 0xd08   : > { %v7489_v3 = vmax.f32 %v7105_v59, 0.0  ;;  %v8184_v41 = vpack.c.bf16 %v8026_v48, %v8026_v48  ;;  %v8897_v24 = vpack.c.bf16 %v8823_v15, %v8822_v40 }
 0xd09   : > { %v6720_v36 = vpop.f32.mrf.mxu0 }
 0xd0a   : > { %v6850_v62 = vpack.c.bf16 %v6720_v36, %v6720_v36  ;;  %v8312_v7 = vunpack.c.l.bf16 %v8184_v41  ;;  %v9068_v48 = vsel %vm4519_vm3, %v8897_v24, 0 }
 0xd0c   : > { %v6978_v21 = vunpack.c.l.bf16 %v6850_v62  ;;  %v8440_v4 = vadd.f32 %v8312_v7, %v10228_v56 }
 0xd0e   : > { %v7106_v60 = vadd.f32 %v6978_v21, %v9991_v53  ;;  %v8824_v20 = vmax.f32 %v8440_v4, 0.0 }
 0xd0f   : > { %v8028_v47 = vpop.f32.mrf.mxu2 }
 0xd10   : > { %v7490_v16 = vmax.f32 %v7106_v60, 0.0  ;;  %v8185_v5 = vpack.c.bf16 %v8028_v47, %v8028_v47  ;;  %v9065_v60 = vsel %vm4519_vm3, %v11902_v12, 0  ;;  %v9059_v12 = vsel %vm4519_vm3, %v11876_v63, 0 }
 0xd11   : > { %v9053_v63 = vsel %vm4519_vm3, %v11852_v6, 0 }
 0xd12   : > { %v7554_v28 = vpack.c.bf16 %v7490_v16, %v7489_v3  ;;  %v8313_v55 = vunpack.c.l.bf16 %v8185_v5  ;;  %v9062_v5 = vsel %vm4519_vm3, %v11888_v0, 0  ;;  %v9056_v0 = vsel %vm4519_vm3, %v11862_v37, 0 }
 0xd14   : > { %9621 = vmatmul.msk.bf16.vlgmr.msra.gmra.mxu3 %vm3159_vm2, %v7554_v28  ;;  %v8441_v44 = vadd.f32 %v8313_v55, %v10228_v56 }
 0xd16   : > { %v8825_v39 = vmax.f32 %v8441_v44, 0.0 }
 0xd17   : > { %v8031_v33 = vpop.f32.mrf.mxu2 }
 0xd18   : > { %v8186_v17 = vpack.c.bf16 %v8031_v33, %v8031_v33  ;;  %v8898_v22 = vpack.c.bf16 %v8825_v39, %v8824_v20 }
 0xd1a   : > { %v8314_v10 = vunpack.c.l.bf16 %v8186_v17  ;;  %v9071_v61 = vsel %vm4519_vm3, %v8898_v22, 0 }
 0xd1c   : > { %v8442_v46 = vadd.f32 %v8314_v10, %v10228_v56 }
 0xd1e   : > { %v8826_v34 = vmax.f32 %v8442_v46, 0.0 }
 0xd1f   : > { %v8033_v8 = vpop.f32.mrf.mxu2 }
 0xd20   : > { %v8187_v14 = vpack.c.bf16 %v8033_v8, %v8033_v8 }
 0xd22   : > { %v8315_v27 = vunpack.c.l.bf16 %v8187_v14 }
 0xd24   : > { %v8443_v53 = vadd.f32 %v8315_v27, %v10228_v56 }
 0xd26   : > { %v8827_v2 = vmax.f32 %v8443_v53, 0.0 }
 0xd27   : > { %v8036_v25 = vpop.f32.mrf.mxu2 }
 0xd28   : > { %v8899_v18 = vpack.c.bf16 %v8827_v2, %v8826_v34  ;;  %v8188_v1 = vpack.c.bf16 %v8036_v25, %v8036_v25 }
 0xd2a   : > { %v9074_v49 = vsel %vm4519_vm3, %v8899_v18, 0  ;;  %v8316_v50 = vunpack.c.l.bf16 %v8188_v1 }
 0xd2b   : > { %9178 = vmatpush.bf16.xpose.msra.mxu1 %v9074_v49 }
 0xd2c   : > { %v8444_v26 = vadd.f32 %v8316_v50, %v10228_v56 }
 0xd2e   : > { %v8828_v52 = vmax.f32 %v8444_v26, 0.0 }
 0xd2f   : > { %v8038_v58 = vpop.f32.mrf.mxu2 }
 0xd30   : > { %v8189_v38 = vpack.c.bf16 %v8038_v58, %v8038_v58 }
 0xd32   : > { %v8317_v30 = vunpack.c.l.bf16 %v8189_v38 }
 0xd33   : > { %9179 = vmatpush.bf16.xpose.msra.mxu1 %v9071_v61 }
 0xd34   : > { %v8445_v11 = vadd.f32 %v8317_v30, %v10228_v56 }
 0xd36   : > { %v8829_v45 = vmax.f32 %v8445_v11, 0.0 }
 0xd37   : > { %v8041_v29 = vpop.f32.mrf.mxu2 }
 0xd38   : > { %v11920_v42 = vpack.c.bf16 %v8829_v45, %v8828_v52  ;;  %v8190_v31 = vpack.c.bf16 %v8041_v29, %v8041_v29 }
 0xd3a   : > { %v8318_v54 = vunpack.c.l.bf16 %v8190_v31 }
 0xd3b   : > { %9180 = vmatpush.bf16.xpose.msra.mxu1 %v9068_v48 }
 0xd3c   : > { %v8446_v59 = vadd.f32 %v8318_v54, %v10228_v56 }
 0xd3e   : > { %v8830_v3 = vmax.f32 %v8446_v59, 0.0 }
 0xd3f   : > { %v8043_v36 = vpop.f32.mrf.mxu2 }
 0xd40   : > { %v8191_v62 = vpack.c.bf16 %v8043_v36, %v8043_v36 }
 0xd42   : > { %v8319_v21 = vunpack.c.l.bf16 %v8191_v62 }
 0xd43   : > { %9181 = vmatpush.bf16.xpose.msra.mxu1 %v9065_v60 }
 0xd44   : > { %v8447_v47 = vadd.f32 %v8319_v21, %v10228_v56 }
 0xd46   : > { %v8831_v16 = vmax.f32 %v8447_v47, 0.0 }
 0xd47   : > { %v8046_v28 = vpop.f32.mrf.mxu2 }
 0xd48   : > { %v11927_v33 = vpack.c.bf16 %v8831_v16, %v8830_v3  ;;  %v8192_v17 = vpack.c.bf16 %v8046_v28, %v8046_v28 }
 0xd4a   : > { %v8320_v10 = vunpack.c.l.bf16 %v8192_v17 }
 0xd4b   : > { %9182 = vmatpush.bf16.xpose.msra.mxu1 %v9062_v5 }
 0xd4c   : > { %v8448_v14 = vadd.f32 %v8320_v10, %v10228_v56 }
 0xd4e   : > { %v8832_v27 = vmax.f32 %v8448_v14, 0.0 }
 0xd4f   : > { %v8048_v8 = vpop.f32.mrf.mxu2 }
 0xd50   : > { %v8193_v41 = vpack.c.bf16 %v8048_v8, %v8048_v8 }
 0xd52   : > { %v8321_v55 = vunpack.c.l.bf16 %v8193_v41 }
 0xd53   : > { %9183 = vmatpush.bf16.xpose.msra.mxu1 %v9059_v12 }
 0xd54   : > { %v8449_v46 = vadd.f32 %v8321_v55, %v10228_v56 }
 0xd56   : > { %v8833_v7 = vmax.f32 %v8449_v46, 0.0 }
 0xd57   : > { %v8051_v53 = vpop.f32.mrf.mxu2 }
 0xd58   : > { %v11935_v23 = vpack.c.bf16 %v8833_v7, %v8832_v27  ;;  %v8194_v44 = vpack.c.bf16 %v8051_v53, %v8051_v53 }
 0xd5a   : > { %v8322_v34 = vunpack.c.l.bf16 %v8194_v44  ;;  %v9161_v44 = vpop.f32.mrf.mxu1 }
 0xd5b   : > { %9184 = vmatpush.bf16.xpose.msra.mxu1 %v9056_v0 }
 0xd5c   : > { %v8450_v43 = vadd.f32 %v8322_v34, %v10228_v56 }
 0xd5e   : > { %v8834_v13 = vmax.f32 %v8450_v43, 0.0  ;;  %v9162_v43 = vadd.f32 %v9161_v44, %v10880_v9 }
 0xd5f   : > { %v8053_v2 = vpop.f32.mrf.mxu2 }
 0xd60   : > { %v8195_v25 = vpack.c.bf16 %v8053_v2, %v8053_v2 }
 0xd62   : > { %v8323_v4 = vunpack.c.l.bf16 %v8195_v25  ;;  %v9163_v25 = vpop.f32.mrf.mxu1 }
 0xd63   : > { %9185 = vmatpush.bf16.xpose.msra.mxu1 %v9053_v63 }
 0xd64   : > { %v8451_v18 = vadd.f32 %v8323_v4, %v10228_v56 }
 0xd66   : > { %v8835_v39 = vmax.f32 %v8451_v18, 0.0  ;;  %v9215_v18 = vrot.slane %v9162_v43, 4 }
 0xd67   : > { %v8056_v49 = vpop.f32.mrf.mxu2 }
 0xd68   : > { %v8903_v1 = vpack.c.bf16 %v8835_v39, %v8834_v13  ;;  %v8196_v17 = vpack.c.bf16 %v8056_v49, %v8056_v49  ;;  %v9083_v49 = vsel %vm4519_vm3, %v11935_v23, 0 }
 0xd6a   : > { %9628 = vmatmul.msk.bf16.vlgmr.msra.gmra.mxu1 %vm4519_vm3, %v11811_v57  ;;  %v8324_v14 = vunpack.c.l.bf16 %v8196_v17  ;;  %v9086_v4 = vsel %vm4519_vm3, %v8903_v1, 0  ;;  %v9174_v63 = vpop.f32.mrf.mxu1  ;;  %v9077_v1 = vsel %vm4519_vm3, %v11920_v42, 0 }
 0xd6c   : > { %v8452_v27 = vadd.f32 %v8324_v14, %v10228_v56 }
 0xd6e   : > { %v8836_v0 = vmax.f32 %v8452_v27, 0.0 }
 0xd6f   : > { %v8058_v37 = vpop.f32.mrf.mxu2 }
 0xd70   : > { %v8197_v3 = vpack.c.bf16 %v8058_v37, %v8058_v37 }
 0xd72   : > { %v8325_v10 = vunpack.c.l.bf16 %v8197_v3  ;;  %v9176_v37 = vpop.f32.mrf.mxu1 }
 0xd74   : > { %v8453_v12 = vadd.f32 %v8325_v10, %v10228_v56 }
 0xd76   : > { %v8837_v7 = vmax.f32 %v8453_v12, 0.0 }
 0xd77   : > { %v8061_v51 = vpop.f32.mrf.mxu2 }
 0xd78   : > { %v8198_v48 = vpack.c.bf16 %v8061_v51, %v8061_v51  ;;  %v8904_v34 = vpack.c.bf16 %v8837_v7, %v8836_v0  ;;  %v9080_v51 = vsel %vm4519_vm3, %v11927_v33, 0 }
 0xd7a   : > { %v8326_v60 = vunpack.c.l.bf16 %v8198_v48  ;;  %v9089_v2 = vsel %vm4519_vm3, %v8904_v34, 0 }
 0xd7c   : > { %v8454_v5 = vadd.f32 %v8326_v60, %v10228_v56 }
 0xd7e   : > { %v8838_v55 = vmax.f32 %v8454_v5, 0.0 }
 0xd7f   : > { %v8063_v20 = vpop.f32.mrf.mxu2 }
 0xd80   : > { %v8199_v45 = vpack.c.bf16 %v8063_v20, %v8063_v20 }
 0xd82   : > { %v8327_v62 = vunpack.c.l.bf16 %v8199_v45 }
 0xd84   : > { %v8455_v16 = vadd.f32 %v8327_v62, %v10228_v56 }
 0xd86   : > { %v8839_v8 = vmax.f32 %v8455_v16, 0.0 }
 0xd87   : > { %v8066_v19 = vpop.f32.mrf.mxu2 }
 0xd88   : > { %v8200_v15 = vpack.c.bf16 %v8066_v19, %v8066_v19  ;;  %v8905_v46 = vpack.c.bf16 %v8839_v8, %v8838_v55 }
 0xd8a   : > { %v8328_v11 = vunpack.c.l.bf16 %v8200_v15  ;;  %v9092_v53 = vsel %vm4519_vm3, %v8905_v46, 0 }
 0xd8c   : > { %v8456_v54 = vadd.f32 %v8328_v11, %v10228_v56 }
 0xd8e   : > { %v8840_v47 = vmax.f32 %v8456_v54, 0.0 }
 0xd8f   : > { %v8068_v58 = vpop.f32.mrf.mxu2 }
 0xd90   : > { %v8201_v32 = vpack.c.bf16 %v8068_v58, %v8068_v58 }
 0xd92   : > { %v8329_v30 = vunpack.c.l.bf16 %v8201_v32 }
 0xd94   : > { %v8457_v24 = vadd.f32 %v8329_v30, %v10228_v56 }
 0xd96   : > { %v8841_v59 = vmax.f32 %v8457_v24, 0.0 }
 0xd97   : > { %v8071_v50 = vpop.f32.mrf.mxu3 }
 0xd98   : > { %v8202_v22 = vpack.c.bf16 %v8071_v50, %v8071_v50  ;;  %v8906_v28 = vpack.c.bf16 %v8841_v59, %v8840_v47 }
 0xd9a   : > { %v8330_v38 = vunpack.c.l.bf16 %v8202_v22  ;;  %v9095_v41 = vsel %vm4519_vm3, %v8906_v28, 0 }
 0xd9c   : > { %v8458_v61 = vadd.f32 %v8330_v38, %v10228_v56 }
 0xd9e   : > { %v8842_v29 = vmax.f32 %v8458_v61, 0.0 }
 0xd9f   : > { %v8073_v6 = vpop.f32.mrf.mxu3 }
 0xda0   : > { %v8203_v26 = vpack.c.bf16 %v8073_v6, %v8073_v6 }
 0xda2   : > { %v8331_v40 = vunpack.c.l.bf16 %v8203_v26 }
 0xda4   : > { %v8459_v52 = vadd.f32 %v8331_v40, %v10228_v56  ;;  %v9175_v56 = vadd.f32 %v9174_v63, %v10880_v9 }
 0xda6   : > { %v8843_v31 = vmax.f32 %v8459_v52, 0.0  ;;  %v9216_v13 = vrot.slane %v9175_v56, 3 }
 0xda8   : > { %v8907_v36 = vpack.c.bf16 %v8843_v31, %v8842_v29  ;;  %v9222_v39 = vsel %vm4840_vm7, %v9215_v18, %v9216_v13 }
 0xdaa   : > { %v9098_v21 = vsel %vm4519_vm3, %v8907_v36, 0 }
 0xdab   : > { %9191 = vmatpush.bf16.xpose.msrb.mxu1 %v9098_v21 }
 0xdb3   : > { %9192 = vmatpush.bf16.xpose.msrb.mxu1 %v9095_v41 }
 0xdbb   : > { %9193 = vmatpush.bf16.xpose.msrb.mxu1 %v9092_v53 }
 0xdc3   : > { %9194 = vmatpush.bf16.xpose.msrb.mxu1 %v9089_v2 }
 0xdcb   : > { %9195 = vmatpush.bf16.xpose.msrb.mxu1 %v9086_v4 }
 0xdd3   : > { %9196 = vmatpush.bf16.xpose.msrb.mxu1 %v9083_v49 }
 0xddb   : > { %9197 = vmatpush.bf16.xpose.msrb.mxu1 %v9080_v51 }
 0xde3   : > { %9198 = vmatpush.bf16.xpose.msrb.mxu1 %v9077_v1 }
 0xde7   : > { %v9187_v20 = vpop.f32.mrf.mxu1 }
 0xde8   : > { %v9188_v23 = vadd.f32 %v9187_v20, %v10880_v9 }
 0xdea   : > { %9629 = vmatmul.msk.bf16.vlgmr.msrb.gmra.mxu1 %vm4519_vm3, %v11811_v57  ;;  %v9217_v22 = vrot.slane %v9188_v23, 2 }
 0xdef   : > { %v9189_v19 = vpop.f32.mrf.mxu1 }
 0xe67   : > { %v9200_v50 = vpop.f32.mrf.mxu1 }
 0xe68   : > { %v9201_v33 = vadd.f32 %v9200_v50, %v10880_v9 }
 0xe6a   : > { %v9218_v42 = vrot.slane %v9201_v33, 1 }
 0xe6c   : > { %v9223_v57 = vsel %vm4842_vm8, %v9217_v22, %v9218_v42 }
 0xe6d   : > { %v9224_v58 = vsel %vm4844_vm9, %v9222_v39, %v9223_v57 }
 0xe6e   : > { %v9225_v32 = vsel %vm751_vm0, %v11897_v35, %v9224_v58 }
 0xe6f   : > { %v9202_v38 = vpop.f32.mrf.mxu1  ;;  %9227 = vst [vmem:[%s11079_s23 + $0x8] sm:$0xff] %v9225_v32 }
 0xe70   : > { %9728 = shalt.err (!%p9725_p3)
}
 0xe71   : > { %9655 = dma.vmem_to_hbm [thread:$0]  (%p9856_p5), %s9242_s22, 256, %s9244_s24, %s9229_s8  }
 0xe72 PF: > { %p9661_p4 = scmp.ge.s32.totalorder %s9763_s14, 2  ;;  %s9255_s18 = sand.u32 1, %s9751_s11  }
 0xe73   : > { %s9256_s23 = scalar_lea.sflag [#allocation4], %s9255_s18 }
 0xe74   : > { %p9658_p7 = pnand %p9661_p4, %p9860_p6 }
 0xe76   : > { %p9659_p8 = pneg %p9658_p7 }
 0xe78   : > { %9746 = dma.done.wait (%p9659_p8), %s9256_s23, 256  }
 0xe79   : > { %9748 = vsyncadd (%p9659_p8), %s9256_s23, 4294967040  ;;  %p20_p9 = scmp.ge.s32.totalorder %s9843_s16, 4   ;;  %s12039_s11 = smov %s9755_s12 }
 0xe7a   : > { %s12040_s12 = smov %s9759_s13  ;;  %s12041_s13 = smov %s9854_s19 }
 0xe7b   : > { %s12042_s14 = smov %s9843_s16  ;;  %22 = sbr.rel (!%p20_p9) target bundleno = 5 (0x5), region = 91 }
 0xe80   :  { %9262 = vsyncpa [#allocation4], 1 }
 0xe81   :  { %9264 = vsyncpa [#allocation4 + $0x1], 1 }

</bundles_post_ra>
